<compile_context>
chip_gen: v5e
topology: v5e:2x2
jax: 0.10.0
libtpu: 0.0.40
codegen_flags: <defaults>
</compile_context>

<pallas_src>
import jax
import jax.numpy as jnp
from jax.experimental import pallas as pl
from jax.experimental.pallas import tpu as pltpu

EPS = 1e-5


# ----------------------------------------------------------------------------
# Fused Pallas kernel
# ----------------------------------------------------------------------------
def ecog_fused_kernel(x_ref, w1_ref, c1_ref, w2_ref, c2_ref, w3_ref, c3_ref,
                      fw1_hbm, fv1_ref, fw2_ref, fv2_ref, fw3_ref, fb3_ref,
                      o_ref,
                      pad1_ref, pad2_ref, pad3_ref, flat_ref, fw1_vmem, fw1_sem):
    """Entire ECoGCNN forward for the full batch; everything stays in VMEM."""

    # ---- fc1 weight prefetch (overlaps the conv blocks) ----------------------
    # fw1 (2 MiB bf16) is the single biggest weight: it stays in HBM
    # (memory_space=pl.ANY) and is streamed into VMEM with a manual async copy
    # issued before any conv compute, so the DMA is hidden behind the convs
    # instead of serializing in the Pallas prologue.
    fw1_copy = pltpu.make_async_copy(fw1_hbm, fw1_vmem, fw1_sem)
    fw1_copy.start()

    def conv_block(y, w_ref, c_ref, pad_ref):
        # y: (B, L, Cin) f32; w_ref: (K, Cin, Cout) with BN scale pre-folded;
        # c_ref: (1, Cout) folded conv-bias + BN shift; pad_ref: (B, L+K-1, Cin).
        B, L, Cin = y.shape
        K, _, Cout = w_ref.shape
        pad = (K - 1) // 2

        # Zero only the K-1 border rows, then stage y into the middle
        # (no full-buffer zero-fill pass).
        pad_ref[:, :pad, :] = jnp.zeros((B, pad, Cin), jnp.float32)
        pad_ref[:, pad + L:, :] = jnp.zeros((B, pad, Cin), jnp.float32)
        pad_ref[:, pad:pad + L, :] = y

        # Conv1d(k=5, padding=2) as K shifted matmuls, batch folded into M.
        # TODO(synk): per-tap sublane slices could become a single im2col
        # (contraction K*Cin) matmul / pltpu.roll taps once the batch grows.
        acc = jnp.zeros((B * L, Cout), jnp.float32)
        for k in range(K):
            xs = pad_ref[:, k:k + L, :].reshape(B * L, Cin)
            acc = acc + jnp.dot(xs, w_ref[k],
                                preferred_element_type=jnp.float32)

        acc = jnp.maximum(acc + c_ref[...], 0.0)                    # bias+BN shift, ReLU
        acc = jnp.max(acc.reshape(B * (L // 2), 2, Cout), axis=1)   # MaxPool1d(2)
        # Dropout: eval-mode identity.
        return acc.reshape(B, L // 2, Cout)

    y = x_ref[...]                                            # (B, 64, Cin)
    y = conv_block(y, w1_ref, c1_ref, pad1_ref)               # (B, 32, 64)
    y = conv_block(y, w2_ref, c2_ref, pad2_ref)               # (B, 16, 128)
    y = conv_block(y, w3_ref, c3_ref, pad3_ref)               # (B,  8, 256)

    # ---- fc1: single (B, 2048) @ (2048, 512) bf16 matmul, f32 accumulate -----
    # The PyTorch channel-major flatten (x.view(B,-1) on NCL) is absorbed
    # offline into fw1's row ordering (row = l*256 + c).  The (B, 8, 256)
    # activation is staged into a lane-dense (B, 2048) bf16 buffer with Lf
    # lane-aligned stores (avoids an in-kernel sublane->lane reshape relayout).
    B, Lf, C3 = y.shape
    for l in range(Lf):
        flat_ref[:, l * C3:(l + 1) * C3] = y[:, l, :].astype(flat_ref.dtype)

    fw1_copy.wait()
    h = jnp.dot(flat_ref[...], fw1_vmem[...],
                preferred_element_type=jnp.float32)
    # Linear -> ReLU -> BatchNorm (PyTorch Sequential order); epilogue stays f32.
    # fv rows: [bias, bn_scale, bn_shift]
    h = jnp.maximum(h + fv1_ref[0:1, :], 0.0) * fv1_ref[1:2, :] + fv1_ref[2:3, :]

    # ---- fc2 (bf16 weights / operands, f32 accumulate + epilogue) ------------
    h = jnp.dot(h.astype(jnp.bfloat16), fw2_ref[...],
                preferred_element_type=jnp.float32)
    h = jnp.maximum(h + fv2_ref[0:1, :], 0.0) * fv2_ref[1:2, :] + fv2_ref[2:3, :]

    # ---- fc3 ------------------------------------------------------------------
    out = jnp.dot(h, fw3_ref[...], preferred_element_type=jnp.float32) + fb3_ref[...]
    o_ref[...] = out.astype(o_ref.dtype)


# ----------------------------------------------------------------------------
# Wrapper
# ----------------------------------------------------------------------------
def _full_spec(shape):
    zeros = (0,) * len(shape)
    return pl.BlockSpec(shape, lambda i, _z=zeros: _z)


def ecog_cnn_forward(x_ncl, fp):
    """x_ncl: (B, Cin, L), same layout as the PyTorch module. fp: prepare_params()."""
    B, Cin, L = x_ncl.shape
    x = jnp.transpose(x_ncl, (0, 2, 1)).astype(jnp.float32)   # channels-last (B, L, Cin)

    args = (x, fp['w1'], fp['c1'], fp['w2'], fp['c2'], fp['w3'], fp['c3'],
            fp['fw1'], fp['fv1'], fp['fw2'], fp['fv2'], fp['fw3'], fp['fb3'])
    FW1_IDX = 7   # fc1 weight: stays in HBM, streamed manually inside the kernel

    in_specs = [pl.BlockSpec(memory_space=pl.ANY) if i == FW1_IDX
                else _full_spec(a.shape) for i, a in enumerate(args)]

    K = fp['w1'].shape[0]
    c1 = fp['w1'].shape[2]
    c2 = fp['w2'].shape[2]
    kf, h1 = fp['fw1'].shape
    n_out = fp['fw3'].shape[1]

    return pl.pallas_call(
        ecog_fused_kernel,
        out_shape=jax.ShapeDtypeStruct((B, n_out), jnp.float32),
        grid=(1,),
        in_specs=in_specs,
        out_specs=_full_spec((B, n_out)),
        scratch_shapes=[
            pltpu.VMEM((B, L + K - 1, Cin), jnp.float32),        # conv1 pad staging
            pltpu.VMEM((B, L // 2 + K - 1, c1), jnp.float32),    # conv2 pad staging
            pltpu.VMEM((B, L // 4 + K - 1, c2), jnp.float32),    # conv3 pad staging
            pltpu.VMEM((B, kf), jnp.bfloat16),                   # lane-dense flatten
            pltpu.VMEM((kf, h1), jnp.bfloat16),                  # fc1 weight buffer
            pltpu.SemaphoreType.DMA(()),                         # fc1 weight DMA sem
        ],
        compiler_params=pltpu.CompilerParams(
            dimension_semantics=("arbitrary",),
            vmem_limit_bytes=16 * 1024 * 1024),
    )(*args)


# ----------------------------------------------------------------------------
# One-time (offline) parameter preparation: BN folding, weight transposes,
# bf16 cast of the fc1/fc2 weights, and the channel-major-flatten permutation.
# ----------------------------------------------------------------------------
def prepare_params(p):
    f32 = lambda a: a.astype(jnp.float32)
    fp = {}
    for i in (1, 2, 3):
        w = f32(p[f'conv{i}_w'])                                # (Cout, Cin, K)
        s = f32(p[f'bn{i}_g']) * jax.lax.rsqrt(f32(p[f'bn{i}_v']) + EPS)
        # Fold BN scale into weights; channels-last (K, Cin, Cout) layout (f32).
        fp[f'w{i}'] = jnp.transpose(w, (2, 1, 0)) * s[None, None, :]
        # Conv bias + BN shift folded into a single per-channel vector.
        fp[f'c{i}'] = ((f32(p[f'conv{i}_b']) - f32(p[f'bn{i}_m'])) * s
                       + f32(p[f'bn{i}_be'])).reshape(1, -1)

    # fc1: PyTorch flattens (B, C=256, L=8) channel-major (flat idx = c*8 + l).
    # Activations are channels-last, so permute once so that row = l*256 + c and
    # store as a single (2048, 512) bf16 matrix (halves the dominant HBM stream;
    # accumulation stays f32 in-kernel).
    w1 = f32(p['fc1_w'])                                        # (512, 2048)
    c3_out = p['conv3_w'].shape[0]
    lf = w1.shape[1] // c3_out
    fp['fw1'] = (jnp.transpose(w1.reshape(w1.shape[0], c3_out, lf), (2, 1, 0))
                 .reshape(lf * c3_out, w1.shape[0]).astype(jnp.bfloat16))
    s1 = f32(p['bnf1_g']) * jax.lax.rsqrt(f32(p['bnf1_v']) + EPS)
    fp['fv1'] = jnp.stack([f32(p['fc1_b']), s1,
                           f32(p['bnf1_be']) - f32(p['bnf1_m']) * s1])   # (3, 512)

    fp['fw2'] = f32(p['fc2_w']).T.astype(jnp.bfloat16)          # (512, 256) bf16
    s2 = f32(p['bnf2_g']) * jax.lax.rsqrt(f32(p['bnf2_v']) + EPS)
    fp['fv2'] = jnp.stack([f32(p['fc2_b']), s2,
                           f32(p['bnf2_be']) - f32(p['bnf2_m']) * s2])   # (3, 256)

    fp['fw3'] = f32(p['fc3_w']).T                               # (256, 5) f32
    fp['fb3'] = f32(p['fc3_b']).reshape(1, -1)
    return fp


# ----------------------------------------------------------------------------
# Plain-JAX mirror of the kernel math (folded BN + bf16 fc weights):
# strict check that isolates kernel bugs from the intentional bf16 policy.
# ----------------------------------------------------------------------------
def ecog_cnn_prepared_reference(x_ncl, fp):
    y = jnp.transpose(x_ncl, (0, 2, 1)).astype(jnp.float32)
    for i in (1, 2, 3):
        w, c = fp[f'w{i}'], fp[f'c{i}']                         # (K,Cin,Cout), (1,Cout)
        B, L, _ = y.shape
        K, _, Cout = w.shape
        yp = jnp.pad(y, ((0, 0), (2, 2), (0, 0)))
        acc = jnp.zeros((B, L, Cout), jnp.float32)
        for k in range(K):
            acc = acc + jnp.einsum('blc,cd->bld', yp[:, k:k + L, :], w[k])
        acc = jnp.maximum(acc + c[None], 0.0)
        y = jnp.max(acc.reshape(B, L // 2, 2, Cout), axis=2)
    B = y.shape[0]
    flat = y.reshape(B, -1).astype(jnp.bfloat16)                # row = l*256 + c
    h = jnp.dot(flat, fp['fw1'], preferred_element_type=jnp.float32)
    h = jnp.maximum(h + fp['fv1'][0:1], 0.0) * fp['fv1'][1:2] + fp['fv1'][2:3]
    h = jnp.dot(h.astype(jnp.bfloat16), fp['fw2'], preferred_element_type=jnp.float32)
    h = jnp.maximum(h + fp['fv2'][0:1], 0.0) * fp['fv2'][1:2] + fp['fv2'][2:3]
    return jnp.dot(h, fp['fw3'], preferred_element_type=jnp.float32) + fp['fb3']


# ----------------------------------------------------------------------------
# Pure fp32 reference (mirrors the PyTorch graph, NCL layout) for semantics.
# ----------------------------------------------------------------------------
def ecog_cnn_reference(x, p):
    def bn(y, g, be, m, v):  # y: (B, C, L)
        return (y - m[None, :, None]) * jax.lax.rsqrt(v[None, :, None] + EPS) \
            * g[None, :, None] + be[None, :, None]

    def block(y, i):
        y = jax.lax.conv_general_dilated(
            y, p[f'conv{i}_w'], window_strides=(1,), padding=((2, 2),),
            dimension_numbers=('NCH', 'OIH', 'NCH'))
        y = y + p[f'conv{i}_b'][None, :, None]
        y = bn(y, p[f'bn{i}_g'], p[f'bn{i}_be'], p[f'bn{i}_m'], p[f'bn{i}_v'])
        y = jnp.maximum(y, 0.0)
        B, C, L = y.shape
        return jnp.max(y.reshape(B, C, L // 2, 2), axis=-1)

    y = block(x, 1)
    y = block(y, 2)
    y = block(y, 3)
    y = y.reshape(y.shape[0], -1)

    def fc(y, w, b, g=None, be=None, m=None, v=None, relu=True):
        y = y @ w.T + b[None, :]
        if relu:
            y = jnp.maximum(y, 0.0)
        if g is not None:
            y = (y - m[None, :]) * jax.lax.rsqrt(v[None, :] + EPS) * g[None, :] \
                + be[None, :]
        return y

    y = fc(y, p['fc1_w'], p['fc1_b'], p['bnf1_g'], p['bnf1_be'],
           p['bnf1_m'], p['bnf1_v'])
    y = fc(y, p['fc2_w'], p['fc2_b'], p['bnf2_g'], p['bnf2_be'],
           p['bnf2_m'], p['bnf2_v'])
    y = fc(y, p['fc3_w'], p['fc3_b'], relu=False)
    return y


# ----------------------------------------------------------------------------
# Deterministic parameter init (PyTorch parameter shapes)
# ----------------------------------------------------------------------------
def init_params(key, input_channels):
    keys = iter(jax.random.split(key, 64))
    nrm = lambda shape, s=0.1: s * jax.random.normal(next(keys), shape,
                                                     jnp.float32)
    p = {}

    def conv_bn(name, bname, cin, cout, k=5):
        p[f'{name}_w'] = nrm((cout, cin, k))
        p[f'{name}_b'] = nrm((cout,))
        p[f'{bname}_g'] = 1.0 + nrm((cout,))
        p[f'{bname}_be'] = nrm((cout,))
        p[f'{bname}_m'] = nrm((cout,))
        p[f'{bname}_v'] = 0.5 + jnp.abs(nrm((cout,)))

    conv_bn('conv1', 'bn1', input_channels, 64)
    conv_bn('conv2', 'bn2', 64, 128)
    conv_bn('conv3', 'bn3', 128, 256)

    def fc_bn(name, bname, fin, fout, with_bn=True):
        p[f'{name}_w'] = nrm((fout, fin), 0.05)
        p[f'{name}_b'] = nrm((fout,))
        if with_bn:
            p[f'{bname}_g'] = 1.0 + nrm((fout,))
            p[f'{bname}_be'] = nrm((fout,))
            p[f'{bname}_m'] = nrm((fout,))
            p[f'{bname}_v'] = 0.5 + jnp.abs(nrm((fout,)))

    fc_bn('fc1', 'bnf1', 256 * 8, 512)
    fc_bn('fc2', 'bnf2', 512, 256)
    fc_bn('fc3', None, 256, 5, with_bn=False)
    return p


if __name__ == "__main__":
    # L=64 so that after 3x MaxPool(2) the length is 8 and the flatten is 256*8,
    # matching fc1 exactly like the PyTorch module expects.
    # NOTE: at B=2 the kernel is weight-streaming bound; batching B>=64 amortizes
    # the (now ~3.4 MiB) weight stream far better than any in-kernel tweak.
    B, Cin, L = 2, 4, 64
    key = jax.random.PRNGKey(0)
    k_x, k_p = jax.random.split(key)
    x = jax.random.normal(k_x, (B, Cin, L), jnp.float32)
    params = init_params(k_p, Cin)

    fused_params = prepare_params(params)      # one-time weight prep (BN fold, bf16)
    out = jax.block_until_ready(ecog_cnn_forward(x, fused_params))
    assert out.shape == (B, 5), out.shape

    # (1) Strict check vs a plain-JAX mirror of the exact kernel math (same
    # folded BN + bf16 fc1/fc2 weights): catches genuine kernel bugs.
    ref_prep = ecog_cnn_prepared_reference(x, fused_params)
    err_k = float(jnp.max(jnp.abs(out - ref_prep)))
    scale_k = float(jnp.max(jnp.abs(ref_prep))) + 1.0
    assert err_k / scale_k < 5e-4, f"kernel mismatch vs prepared ref: {err_k}"

    # (2) Semantics check vs the full fp32 PyTorch-equivalent graph. The fp32
    # kernel path was previously verified at 1e-4; the bf16 fc-weight streaming
    # (intentional precision policy) adds ~1e-3 drift, so this check is looser.
    ref_fp32 = ecog_cnn_reference(x, params)
    err_s = float(jnp.max(jnp.abs(out - ref_fp32)))
    scale_s = float(jnp.max(jnp.abs(ref_fp32))) + 1.0
    assert err_s / scale_s < 1e-2, f"mismatch vs fp32 reference: {err_s} (scale {scale_s})"

    print("KERNEL_OK")
</pallas_src>

<mosaic_0001>
module attributes {stable_mosaic.version = 11 : i64} {
  func.func @ecog_fused_kernel(%arg0: i32, %arg1: memref<2x64x4xf32, #tpu.memory_space<vmem>>, %arg2: memref<5x4x64xf32, #tpu.memory_space<vmem>>, %arg3: memref<1x64xf32, #tpu.memory_space<vmem>>, %arg4: memref<5x64x128xf32, #tpu.memory_space<vmem>>, %arg5: memref<1x128xf32, #tpu.memory_space<vmem>>, %arg6: memref<5x128x256xf32, #tpu.memory_space<vmem>>, %arg7: memref<1x256xf32, #tpu.memory_space<vmem>>, %arg8: memref<2048x512xbf16, #tpu.memory_space<any>>, %arg9: memref<3x512xf32, #tpu.memory_space<vmem>>, %arg10: memref<512x256xbf16, #tpu.memory_space<vmem>>, %arg11: memref<3x256xf32, #tpu.memory_space<vmem>>, %arg12: memref<256x5xf32, #tpu.memory_space<vmem>>, %arg13: memref<1x5xf32, #tpu.memory_space<vmem>>, %arg14: memref<2x5xf32, #tpu.memory_space<vmem>>, %arg15: memref<2x68x4xf32, #tpu.memory_space<vmem>>, %arg16: memref<2x36x64xf32, #tpu.memory_space<vmem>>, %arg17: memref<2x20x128xf32, #tpu.memory_space<vmem>>, %arg18: memref<2x2048xbf16, #tpu.memory_space<vmem>>, %arg19: memref<2048x512xbf16, #tpu.memory_space<vmem>>, %arg20: memref<!tpu.dma_semaphore, #tpu.memory_space<semaphore_mem>>) attributes {dimension_semantics = [#tpu.dimension_semantics<arbitrary>], iteration_bounds = array<i64: 1>, scalar_prefetch = 0 : i64, scratch_operands = 6 : i64, tpu.core_type = #tpu.core_type<tc>, window_params = [{pipeline_mode = #tpu.pipeline_mode<synchronous>, transform_indices = @transform_0, window_bounds = array<i64: 2, 64, 4>}, {pipeline_mode = #tpu.pipeline_mode<synchronous>, transform_indices = @transform_1, window_bounds = array<i64: 5, 4, 64>}, {pipeline_mode = #tpu.pipeline_mode<synchronous>, transform_indices = @transform_2, window_bounds = array<i64: 1, 64>}, {pipeline_mode = #tpu.pipeline_mode<synchronous>, transform_indices = @transform_3, window_bounds = array<i64: 5, 64, 128>}, {pipeline_mode = #tpu.pipeline_mode<synchronous>, transform_indices = @transform_4, window_bounds = array<i64: 1, 128>}, {pipeline_mode = #tpu.pipeline_mode<synchronous>, transform_indices = @transform_5, window_bounds = array<i64: 5, 128, 256>}, {pipeline_mode = #tpu.pipeline_mode<synchronous>, transform_indices = @transform_6, window_bounds = array<i64: 1, 256>}, {}, {pipeline_mode = #tpu.pipeline_mode<synchronous>, transform_indices = @transform_8, window_bounds = array<i64: 3, 512>}, {pipeline_mode = #tpu.pipeline_mode<synchronous>, transform_indices = @transform_9, window_bounds = array<i64: 512, 256>}, {pipeline_mode = #tpu.pipeline_mode<synchronous>, transform_indices = @transform_10, window_bounds = array<i64: 3, 256>}, {pipeline_mode = #tpu.pipeline_mode<synchronous>, transform_indices = @transform_11, window_bounds = array<i64: 256, 5>}, {pipeline_mode = #tpu.pipeline_mode<synchronous>, transform_indices = @transform_12, window_bounds = array<i64: 1, 5>}, {pipeline_mode = #tpu.pipeline_mode<synchronous>, transform_indices = @transform_13, window_bounds = array<i64: 2, 5>}]} {
    tpu.enqueue_dma source(%arg8 : memref<2048x512xbf16, #tpu.memory_space<any>>) target(%arg19 : memref<2048x512xbf16, #tpu.memory_space<vmem>>) target_semaphore(%arg20 : memref<!tpu.dma_semaphore, #tpu.memory_space<semaphore_mem>>)
    %c0 = arith.constant 0 : index
    %c0_0 = arith.constant 0 : index
    %c0_1 = arith.constant 0 : index
    %0 = vector.load %arg1[%c0, %c0_0, %c0_1] : memref<2x64x4xf32, #tpu.memory_space<vmem>>, vector<2x64x4xf32>
    %cst = arith.constant 0.000000e+00 : f32
    %1 = vector.broadcast %cst : f32 to vector<2x2x4xf32>
    %c0_2 = arith.constant 0 : index
    %c0_3 = arith.constant 0 : index
    %c0_4 = arith.constant 0 : index
    %2 = vector.load %arg15[%c0_2, %c0_3, %c0_4] : memref<2x68x4xf32, #tpu.memory_space<vmem>>, vector<2x2x4xf32>
    tpu.vector_store %arg15[%c0_2, %c0_3, %c0_4], %1 {strides = array<i32>} : memref<2x68x4xf32, #tpu.memory_space<vmem>>, vector<2x2x4xf32>,
    %cst_5 = arith.constant 0.000000e+00 : f32
    %3 = vector.broadcast %cst_5 : f32 to vector<2x2x4xf32>
    %c0_6 = arith.constant 0 : index
    %c66 = arith.constant 66 : index
    %c0_7 = arith.constant 0 : index
    %4 = vector.load %arg15[%c0_6, %c66, %c0_7] : memref<2x68x4xf32, #tpu.memory_space<vmem>>, vector<2x2x4xf32>
    tpu.vector_store %arg15[%c0_6, %c66, %c0_7], %3 {strides = array<i32>} : memref<2x68x4xf32, #tpu.memory_space<vmem>>, vector<2x2x4xf32>,
    %c0_8 = arith.constant 0 : index
    %c2 = arith.constant 2 : index
    %c0_9 = arith.constant 0 : index
    %5 = vector.load %arg15[%c0_8, %c2, %c0_9] : memref<2x68x4xf32, #tpu.memory_space<vmem>>, vector<2x64x4xf32>
    tpu.vector_store %arg15[%c0_8, %c2, %c0_9], %0 {strides = array<i32>} : memref<2x68x4xf32, #tpu.memory_space<vmem>>, vector<2x64x4xf32>,
    %cst_10 = arith.constant 0.000000e+00 : f32
    %6 = vector.broadcast %cst_10 : f32 to vector<128x64xf32>
    %c0_11 = arith.constant 0 : index
    %c0_12 = arith.constant 0 : index
    %c0_13 = arith.constant 0 : index
    %7 = vector.load %arg15[%c0_11, %c0_12, %c0_13] : memref<2x68x4xf32, #tpu.memory_space<vmem>>, vector<2x64x4xf32>
    %8 = vector.shape_cast %7 : vector<2x64x4xf32> to vector<128x4xf32>
    %c0_14 = arith.constant 0 : index
    %c0_15 = arith.constant 0 : index
    %c0_16 = arith.constant 0 : index
    %9 = vector.load %arg2[%c0_14, %c0_15, %c0_16] : memref<5x4x64xf32, #tpu.memory_space<vmem>>, vector<1x4x64xf32>
    %10 = vector.shape_cast %9 : vector<1x4x64xf32> to vector<4x64xf32>
    %cst_17 = arith.constant dense<0.000000e+00> : vector<128x64xf32>
    %11 = tpu.matmul %8, %10, %cst_17 {dimension_numbers = #tpu.dot_dimension_numbers<[1], [0], [0], [1], [0, 0, 1, 1], [], []>} : vector<128x4xf32>, vector<4x64xf32>, vector<128x64xf32> -> vector<128x64xf32>
    %12 = arith.addf %6, %11 : vector<128x64xf32>
    %c0_18 = arith.constant 0 : index
    %c1 = arith.constant 1 : index
    %c0_19 = arith.constant 0 : index
    %13 = vector.load %arg15[%c0_18, %c1, %c0_19] : memref<2x68x4xf32, #tpu.memory_space<vmem>>, vector<2x64x4xf32>
    %14 = vector.shape_cast %13 : vector<2x64x4xf32> to vector<128x4xf32>
    %c1_20 = arith.constant 1 : index
    %c0_21 = arith.constant 0 : index
    %c0_22 = arith.constant 0 : index
    %15 = vector.load %arg2[%c1_20, %c0_21, %c0_22] : memref<5x4x64xf32, #tpu.memory_space<vmem>>, vector<1x4x64xf32>
    %16 = vector.shape_cast %15 : vector<1x4x64xf32> to vector<4x64xf32>
    %cst_23 = arith.constant dense<0.000000e+00> : vector<128x64xf32>
    %17 = tpu.matmul %14, %16, %cst_23 {dimension_numbers = #tpu.dot_dimension_numbers<[1], [0], [0], [1], [0, 0, 1, 1], [], []>} : vector<128x4xf32>, vector<4x64xf32>, vector<128x64xf32> -> vector<128x64xf32>
    %18 = arith.addf %12, %17 : vector<128x64xf32>
    %c0_24 = arith.constant 0 : index
    %c2_25 = arith.constant 2 : index
    %c0_26 = arith.constant 0 : index
    %19 = vector.load %arg15[%c0_24, %c2_25, %c0_26] : memref<2x68x4xf32, #tpu.memory_space<vmem>>, vector<2x64x4xf32>
    %20 = vector.shape_cast %19 : vector<2x64x4xf32> to vector<128x4xf32>
    %c2_27 = arith.constant 2 : index
    %c0_28 = arith.constant 0 : index
    %c0_29 = arith.constant 0 : index
    %21 = vector.load %arg2[%c2_27, %c0_28, %c0_29] : memref<5x4x64xf32, #tpu.memory_space<vmem>>, vector<1x4x64xf32>
    %22 = vector.shape_cast %21 : vector<1x4x64xf32> to vector<4x64xf32>
    %cst_30 = arith.constant dense<0.000000e+00> : vector<128x64xf32>
    %23 = tpu.matmul %20, %22, %cst_30 {dimension_numbers = #tpu.dot_dimension_numbers<[1], [0], [0], [1], [0, 0, 1, 1], [], []>} : vector<128x4xf32>, vector<4x64xf32>, vector<128x64xf32> -> vector<128x64xf32>
    %24 = arith.addf %18, %23 : vector<128x64xf32>
    %c0_31 = arith.constant 0 : index
    %c3 = arith.constant 3 : index
    %c0_32 = arith.constant 0 : index
    %25 = vector.load %arg15[%c0_31, %c3, %c0_32] : memref<2x68x4xf32, #tpu.memory_space<vmem>>, vector<2x64x4xf32>
    %26 = vector.shape_cast %25 : vector<2x64x4xf32> to vector<128x4xf32>
    %c3_33 = arith.constant 3 : index
    %c0_34 = arith.constant 0 : index
    %c0_35 = arith.constant 0 : index
    %27 = vector.load %arg2[%c3_33, %c0_34, %c0_35] : memref<5x4x64xf32, #tpu.memory_space<vmem>>, vector<1x4x64xf32>
    %28 = vector.shape_cast %27 : vector<1x4x64xf32> to vector<4x64xf32>
    %cst_36 = arith.constant dense<0.000000e+00> : vector<128x64xf32>
    %29 = tpu.matmul %26, %28, %cst_36 {dimension_numbers = #tpu.dot_dimension_numbers<[1], [0], [0], [1], [0, 0, 1, 1], [], []>} : vector<128x4xf32>, vector<4x64xf32>, vector<128x64xf32> -> vector<128x64xf32>
    %30 = arith.addf %24, %29 : vector<128x64xf32>
    %c0_37 = arith.constant 0 : index
    %c4 = arith.constant 4 : index
    %c0_38 = arith.constant 0 : index
    %31 = vector.load %arg15[%c0_37, %c4, %c0_38] : memref<2x68x4xf32, #tpu.memory_space<vmem>>, vector<2x64x4xf32>
    %32 = vector.shape_cast %31 : vector<2x64x4xf32> to vector<128x4xf32>
    %c4_39 = arith.constant 4 : index
    %c0_40 = arith.constant 0 : index
    %c0_41 = arith.constant 0 : index
    %33 = vector.load %arg2[%c4_39, %c0_40, %c0_41] : memref<5x4x64xf32, #tpu.memory_space<vmem>>, vector<1x4x64xf32>
    %34 = vector.shape_cast %33 : vector<1x4x64xf32> to vector<4x64xf32>
    %cst_42 = arith.constant dense<0.000000e+00> : vector<128x64xf32>
    %35 = tpu.matmul %32, %34, %cst_42 {dimension_numbers = #tpu.dot_dimension_numbers<[1], [0], [0], [1], [0, 0, 1, 1], [], []>} : vector<128x4xf32>, vector<4x64xf32>, vector<128x64xf32> -> vector<128x64xf32>
    %36 = arith.addf %30, %35 : vector<128x64xf32>
    %c0_43 = arith.constant 0 : index
    %c0_44 = arith.constant 0 : index
    %37 = vector.load %arg3[%c0_43, %c0_44] : memref<1x64xf32, #tpu.memory_space<vmem>>, vector<1x64xf32>
    %38 = vector.broadcast %37 : vector<1x64xf32> to vector<128x64xf32>
    %39 = arith.addf %36, %38 : vector<128x64xf32>
    %cst_45 = arith.constant 0.000000e+00 : f32
    %40 = vector.broadcast %cst_45 : f32 to vector<128x64xf32>
    %41 = arith.maximumf %39, %40 : vector<128x64xf32>
    %42 = vector.shape_cast %41 : vector<128x64xf32> to vector<64x2x64xf32>
    %cst_46 = arith.constant dense<0xFF800000> : vector<64x64xf32>
    %43 = vector.multi_reduction <maximumf>, %42, %cst_46 [1] : vector<64x2x64xf32> to vector<64x64xf32>
    %44 = vector.shape_cast %43 : vector<64x64xf32> to vector<2x32x64xf32>
    %cst_47 = arith.constant 0.000000e+00 : f32
    %45 = vector.broadcast %cst_47 : f32 to vector<2x2x64xf32>
    %c0_48 = arith.constant 0 : index
    %c0_49 = arith.constant 0 : index
    %c0_50 = arith.constant 0 : index
    %46 = vector.load %arg16[%c0_48, %c0_49, %c0_50] : memref<2x36x64xf32, #tpu.memory_space<vmem>>, vector<2x2x64xf32>
    tpu.vector_store %arg16[%c0_48, %c0_49, %c0_50], %45 {strides = array<i32>} : memref<2x36x64xf32, #tpu.memory_space<vmem>>, vector<2x2x64xf32>,
    %cst_51 = arith.constant 0.000000e+00 : f32
    %47 = vector.broadcast %cst_51 : f32 to vector<2x2x64xf32>
    %c0_52 = arith.constant 0 : index
    %c34 = arith.constant 34 : index
    %c0_53 = arith.constant 0 : index
    %48 = vector.load %arg16[%c0_52, %c34, %c0_53] : memref<2x36x64xf32, #tpu.memory_space<vmem>>, vector<2x2x64xf32>
    tpu.vector_store %arg16[%c0_52, %c34, %c0_53], %47 {strides = array<i32>} : memref<2x36x64xf32, #tpu.memory_space<vmem>>, vector<2x2x64xf32>,
    %c0_54 = arith.constant 0 : index
    %c2_55 = arith.constant 2 : index
    %c0_56 = arith.constant 0 : index
    %49 = vector.load %arg16[%c0_54, %c2_55, %c0_56] : memref<2x36x64xf32, #tpu.memory_space<vmem>>, vector<2x32x64xf32>
    tpu.vector_store %arg16[%c0_54, %c2_55, %c0_56], %44 {strides = array<i32>} : memref<2x36x64xf32, #tpu.memory_space<vmem>>, vector<2x32x64xf32>,
    %cst_57 = arith.constant 0.000000e+00 : f32
    %50 = vector.broadcast %cst_57 : f32 to vector<64x128xf32>
    %c0_58 = arith.constant 0 : index
    %c0_59 = arith.constant 0 : index
    %c0_60 = arith.constant 0 : index
    %51 = vector.load %arg16[%c0_58, %c0_59, %c0_60] : memref<2x36x64xf32, #tpu.memory_space<vmem>>, vector<2x32x64xf32>
    %52 = vector.shape_cast %51 : vector<2x32x64xf32> to vector<64x64xf32>
    %c0_61 = arith.constant 0 : index
    %c0_62 = arith.constant 0 : index
    %c0_63 = arith.constant 0 : index
    %53 = vector.load %arg4[%c0_61, %c0_62, %c0_63] : memref<5x64x128xf32, #tpu.memory_space<vmem>>, vector<1x64x128xf32>
    %54 = vector.shape_cast %53 : vector<1x64x128xf32> to vector<64x128xf32>
    %cst_64 = arith.constant dense<0.000000e+00> : vector<64x128xf32>
    %55 = tpu.matmul %52, %54, %cst_64 {dimension_numbers = #tpu.dot_dimension_numbers<[1], [0], [0], [1], [0, 0, 1, 1], [], []>} : vector<64x64xf32>, vector<64x128xf32>, vector<64x128xf32> -> vector<64x128xf32>
    %56 = arith.addf %50, %55 : vector<64x128xf32>
    %c0_65 = arith.constant 0 : index
    %c1_66 = arith.constant 1 : index
    %c0_67 = arith.constant 0 : index
    %57 = vector.load %arg16[%c0_65, %c1_66, %c0_67] : memref<2x36x64xf32, #tpu.memory_space<vmem>>, vector<2x32x64xf32>
    %58 = vector.shape_cast %57 : vector<2x32x64xf32> to vector<64x64xf32>
    %c1_68 = arith.constant 1 : index
    %c0_69 = arith.constant 0 : index
    %c0_70 = arith.constant 0 : index
    %59 = vector.load %arg4[%c1_68, %c0_69, %c0_70] : memref<5x64x128xf32, #tpu.memory_space<vmem>>, vector<1x64x128xf32>
    %60 = vector.shape_cast %59 : vector<1x64x128xf32> to vector<64x128xf32>
    %cst_71 = arith.constant dense<0.000000e+00> : vector<64x128xf32>
    %61 = tpu.matmul %58, %60, %cst_71 {dimension_numbers = #tpu.dot_dimension_numbers<[1], [0], [0], [1], [0, 0, 1, 1], [], []>} : vector<64x64xf32>, vector<64x128xf32>, vector<64x128xf32> -> vector<64x128xf32>
    %62 = arith.addf %56, %61 : vector<64x128xf32>
    %c0_72 = arith.constant 0 : index
    %c2_73 = arith.constant 2 : index
    %c0_74 = arith.constant 0 : index
    %63 = vector.load %arg16[%c0_72, %c2_73, %c0_74] : memref<2x36x64xf32, #tpu.memory_space<vmem>>, vector<2x32x64xf32>
    %64 = vector.shape_cast %63 : vector<2x32x64xf32> to vector<64x64xf32>
    %c2_75 = arith.constant 2 : index
    %c0_76 = arith.constant 0 : index
    %c0_77 = arith.constant 0 : index
    %65 = vector.load %arg4[%c2_75, %c0_76, %c0_77] : memref<5x64x128xf32, #tpu.memory_space<vmem>>, vector<1x64x128xf32>
    %66 = vector.shape_cast %65 : vector<1x64x128xf32> to vector<64x128xf32>
    %cst_78 = arith.constant dense<0.000000e+00> : vector<64x128xf32>
    %67 = tpu.matmul %64, %66, %cst_78 {dimension_numbers = #tpu.dot_dimension_numbers<[1], [0], [0], [1], [0, 0, 1, 1], [], []>} : vector<64x64xf32>, vector<64x128xf32>, vector<64x128xf32> -> vector<64x128xf32>
    %68 = arith.addf %62, %67 : vector<64x128xf32>
    %c0_79 = arith.constant 0 : index
    %c3_80 = arith.constant 3 : index
    %c0_81 = arith.constant 0 : index
    %69 = vector.load %arg16[%c0_79, %c3_80, %c0_81] : memref<2x36x64xf32, #tpu.memory_space<vmem>>, vector<2x32x64xf32>
    %70 = vector.shape_cast %69 : vector<2x32x64xf32> to vector<64x64xf32>
    %c3_82 = arith.constant 3 : index
    %c0_83 = arith.constant 0 : index
    %c0_84 = arith.constant 0 : index
    %71 = vector.load %arg4[%c3_82, %c0_83, %c0_84] : memref<5x64x128xf32, #tpu.memory_space<vmem>>, vector<1x64x128xf32>
    %72 = vector.shape_cast %71 : vector<1x64x128xf32> to vector<64x128xf32>
    %cst_85 = arith.constant dense<0.000000e+00> : vector<64x128xf32>
    %73 = tpu.matmul %70, %72, %cst_85 {dimension_numbers = #tpu.dot_dimension_numbers<[1], [0], [0], [1], [0, 0, 1, 1], [], []>} : vector<64x64xf32>, vector<64x128xf32>, vector<64x128xf32> -> vector<64x128xf32>
    %74 = arith.addf %68, %73 : vector<64x128xf32>
    %c0_86 = arith.constant 0 : index
    %c4_87 = arith.constant 4 : index
    %c0_88 = arith.constant 0 : index
    %75 = vector.load %arg16[%c0_86, %c4_87, %c0_88] : memref<2x36x64xf32, #tpu.memory_space<vmem>>, vector<2x32x64xf32>
    %76 = vector.shape_cast %75 : vector<2x32x64xf32> to vector<64x64xf32>
    %c4_89 = arith.constant 4 : index
    %c0_90 = arith.constant 0 : index
    %c0_91 = arith.constant 0 : index
    %77 = vector.load %arg4[%c4_89, %c0_90, %c0_91] : memref<5x64x128xf32, #tpu.memory_space<vmem>>, vector<1x64x128xf32>
    %78 = vector.shape_cast %77 : vector<1x64x128xf32> to vector<64x128xf32>
    %cst_92 = arith.constant dense<0.000000e+00> : vector<64x128xf32>
    %79 = tpu.matmul %76, %78, %cst_92 {dimension_numbers = #tpu.dot_dimension_numbers<[1], [0], [0], [1], [0, 0, 1, 1], [], []>} : vector<64x64xf32>, vector<64x128xf32>, vector<64x128xf32> -> vector<64x128xf32>
    %80 = arith.addf %74, %79 : vector<64x128xf32>
    %c0_93 = arith.constant 0 : index
    %c0_94 = arith.constant 0 : index
    %81 = vector.load %arg5[%c0_93, %c0_94] : memref<1x128xf32, #tpu.memory_space<vmem>>, vector<1x128xf32>
    %82 = vector.broadcast %81 : vector<1x128xf32> to vector<64x128xf32>
    %83 = arith.addf %80, %82 : vector<64x128xf32>
    %cst_95 = arith.constant 0.000000e+00 : f32
    %84 = vector.broadcast %cst_95 : f32 to vector<64x128xf32>
    %85 = arith.maximumf %83, %84 : vector<64x128xf32>
    %86 = vector.shape_cast %85 : vector<64x128xf32> to vector<32x2x128xf32>
    %cst_96 = arith.constant dense<0xFF800000> : vector<32x128xf32>
    %87 = vector.multi_reduction <maximumf>, %86, %cst_96 [1] : vector<32x2x128xf32> to vector<32x128xf32>
    %88 = vector.shape_cast %87 : vector<32x128xf32> to vector<2x16x128xf32>
    %cst_97 = arith.constant 0.000000e+00 : f32
    %89 = vector.broadcast %cst_97 : f32 to vector<2x2x128xf32>
    %c0_98 = arith.constant 0 : index
    %c0_99 = arith.constant 0 : index
    %c0_100 = arith.constant 0 : index
    %90 = vector.load %arg17[%c0_98, %c0_99, %c0_100] : memref<2x20x128xf32, #tpu.memory_space<vmem>>, vector<2x2x128xf32>
    tpu.vector_store %arg17[%c0_98, %c0_99, %c0_100], %89 {strides = array<i32>} : memref<2x20x128xf32, #tpu.memory_space<vmem>>, vector<2x2x128xf32>,
    %cst_101 = arith.constant 0.000000e+00 : f32
    %91 = vector.broadcast %cst_101 : f32 to vector<2x2x128xf32>
    %c0_102 = arith.constant 0 : index
    %c18 = arith.constant 18 : index
    %c0_103 = arith.constant 0 : index
    %92 = vector.load %arg17[%c0_102, %c18, %c0_103] : memref<2x20x128xf32, #tpu.memory_space<vmem>>, vector<2x2x128xf32>
    tpu.vector_store %arg17[%c0_102, %c18, %c0_103], %91 {strides = array<i32>} : memref<2x20x128xf32, #tpu.memory_space<vmem>>, vector<2x2x128xf32>,
    %c0_104 = arith.constant 0 : index
    %c2_105 = arith.constant 2 : index
    %c0_106 = arith.constant 0 : index
    %93 = vector.load %arg17[%c0_104, %c2_105, %c0_106] : memref<2x20x128xf32, #tpu.memory_space<vmem>>, vector<2x16x128xf32>
    tpu.vector_store %arg17[%c0_104, %c2_105, %c0_106], %88 {strides = array<i32>} : memref<2x20x128xf32, #tpu.memory_space<vmem>>, vector<2x16x128xf32>,
    %cst_107 = arith.constant 0.000000e+00 : f32
    %94 = vector.broadcast %cst_107 : f32 to vector<32x256xf32>
    %c0_108 = arith.constant 0 : index
    %c0_109 = arith.constant 0 : index
    %c0_110 = arith.constant 0 : index
    %95 = vector.load %arg17[%c0_108, %c0_109, %c0_110] : memref<2x20x128xf32, #tpu.memory_space<vmem>>, vector<2x16x128xf32>
    %96 = vector.shape_cast %95 : vector<2x16x128xf32> to vector<32x128xf32>
    %c0_111 = arith.constant 0 : index
    %c0_112 = arith.constant 0 : index
    %c0_113 = arith.constant 0 : index
    %97 = vector.load %arg6[%c0_111, %c0_112, %c0_113] : memref<5x128x256xf32, #tpu.memory_space<vmem>>, vector<1x128x256xf32>
    %98 = vector.shape_cast %97 : vector<1x128x256xf32> to vector<128x256xf32>
    %cst_114 = arith.constant dense<0.000000e+00> : vector<32x256xf32>
    %99 = tpu.matmul %96, %98, %cst_114 {dimension_numbers = #tpu.dot_dimension_numbers<[1], [0], [0], [1], [0, 0, 1, 1], [], []>} : vector<32x128xf32>, vector<128x256xf32>, vector<32x256xf32> -> vector<32x256xf32>
    %100 = arith.addf %94, %99 : vector<32x256xf32>
    %c0_115 = arith.constant 0 : index
    %c1_116 = arith.constant 1 : index
    %c0_117 = arith.constant 0 : index
    %101 = vector.load %arg17[%c0_115, %c1_116, %c0_117] : memref<2x20x128xf32, #tpu.memory_space<vmem>>, vector<2x16x128xf32>
    %102 = vector.shape_cast %101 : vector<2x16x128xf32> to vector<32x128xf32>
    %c1_118 = arith.constant 1 : index
    %c0_119 = arith.constant 0 : index
    %c0_120 = arith.constant 0 : index
    %103 = vector.load %arg6[%c1_118, %c0_119, %c0_120] : memref<5x128x256xf32, #tpu.memory_space<vmem>>, vector<1x128x256xf32>
    %104 = vector.shape_cast %103 : vector<1x128x256xf32> to vector<128x256xf32>
    %cst_121 = arith.constant dense<0.000000e+00> : vector<32x256xf32>
    %105 = tpu.matmul %102, %104, %cst_121 {dimension_numbers = #tpu.dot_dimension_numbers<[1], [0], [0], [1], [0, 0, 1, 1], [], []>} : vector<32x128xf32>, vector<128x256xf32>, vector<32x256xf32> -> vector<32x256xf32>
    %106 = arith.addf %100, %105 : vector<32x256xf32>
    %c0_122 = arith.constant 0 : index
    %c2_123 = arith.constant 2 : index
    %c0_124 = arith.constant 0 : index
    %107 = vector.load %arg17[%c0_122, %c2_123, %c0_124] : memref<2x20x128xf32, #tpu.memory_space<vmem>>, vector<2x16x128xf32>
    %108 = vector.shape_cast %107 : vector<2x16x128xf32> to vector<32x128xf32>
    %c2_125 = arith.constant 2 : index
    %c0_126 = arith.constant 0 : index
    %c0_127 = arith.constant 0 : index
    %109 = vector.load %arg6[%c2_125, %c0_126, %c0_127] : memref<5x128x256xf32, #tpu.memory_space<vmem>>, vector<1x128x256xf32>
    %110 = vector.shape_cast %109 : vector<1x128x256xf32> to vector<128x256xf32>
    %cst_128 = arith.constant dense<0.000000e+00> : vector<32x256xf32>
    %111 = tpu.matmul %108, %110, %cst_128 {dimension_numbers = #tpu.dot_dimension_numbers<[1], [0], [0], [1], [0, 0, 1, 1], [], []>} : vector<32x128xf32>, vector<128x256xf32>, vector<32x256xf32> -> vector<32x256xf32>
    %112 = arith.addf %106, %111 : vector<32x256xf32>
    %c0_129 = arith.constant 0 : index
    %c3_130 = arith.constant 3 : index
    %c0_131 = arith.constant 0 : index
    %113 = vector.load %arg17[%c0_129, %c3_130, %c0_131] : memref<2x20x128xf32, #tpu.memory_space<vmem>>, vector<2x16x128xf32>
    %114 = vector.shape_cast %113 : vector<2x16x128xf32> to vector<32x128xf32>
    %c3_132 = arith.constant 3 : index
    %c0_133 = arith.constant 0 : index
    %c0_134 = arith.constant 0 : index
    %115 = vector.load %arg6[%c3_132, %c0_133, %c0_134] : memref<5x128x256xf32, #tpu.memory_space<vmem>>, vector<1x128x256xf32>
    %116 = vector.shape_cast %115 : vector<1x128x256xf32> to vector<128x256xf32>
    %cst_135 = arith.constant dense<0.000000e+00> : vector<32x256xf32>
    %117 = tpu.matmul %114, %116, %cst_135 {dimension_numbers = #tpu.dot_dimension_numbers<[1], [0], [0], [1], [0, 0, 1, 1], [], []>} : vector<32x128xf32>, vector<128x256xf32>, vector<32x256xf32> -> vector<32x256xf32>
    %118 = arith.addf %112, %117 : vector<32x256xf32>
    %c0_136 = arith.constant 0 : index
    %c4_137 = arith.constant 4 : index
    %c0_138 = arith.constant 0 : index
    %119 = vector.load %arg17[%c0_136, %c4_137, %c0_138] : memref<2x20x128xf32, #tpu.memory_space<vmem>>, vector<2x16x128xf32>
    %120 = vector.shape_cast %119 : vector<2x16x128xf32> to vector<32x128xf32>
    %c4_139 = arith.constant 4 : index
    %c0_140 = arith.constant 0 : index
    %c0_141 = arith.constant 0 : index
    %121 = vector.load %arg6[%c4_139, %c0_140, %c0_141] : memref<5x128x256xf32, #tpu.memory_space<vmem>>, vector<1x128x256xf32>
    %122 = vector.shape_cast %121 : vector<1x128x256xf32> to vector<128x256xf32>
    %cst_142 = arith.constant dense<0.000000e+00> : vector<32x256xf32>
    %123 = tpu.matmul %120, %122, %cst_142 {dimension_numbers = #tpu.dot_dimension_numbers<[1], [0], [0], [1], [0, 0, 1, 1], [], []>} : vector<32x128xf32>, vector<128x256xf32>, vector<32x256xf32> -> vector<32x256xf32>
    %124 = arith.addf %118, %123 : vector<32x256xf32>
    %c0_143 = arith.constant 0 : index
    %c0_144 = arith.constant 0 : index
    %125 = vector.load %arg7[%c0_143, %c0_144] : memref<1x256xf32, #tpu.memory_space<vmem>>, vector<1x256xf32>
    %126 = vector.broadcast %125 : vector<1x256xf32> to vector<32x256xf32>
    %127 = arith.addf %124, %126 : vector<32x256xf32>
    %cst_145 = arith.constant 0.000000e+00 : f32
    %128 = vector.broadcast %cst_145 : f32 to vector<32x256xf32>
    %129 = arith.maximumf %127, %128 : vector<32x256xf32>
    %130 = vector.shape_cast %129 : vector<32x256xf32> to vector<16x2x256xf32>
    %cst_146 = arith.constant dense<0xFF800000> : vector<16x256xf32>
    %131 = vector.multi_reduction <maximumf>, %130, %cst_146 [1] : vector<16x2x256xf32> to vector<16x256xf32>
    %132 = vector.shape_cast %131 : vector<16x256xf32> to vector<2x8x256xf32>
    %133 = vector.extract_strided_slice %132 {offsets = [0, 0, 0], sizes = [2, 1, 256], strides = [1, 1, 1]} : vector<2x8x256xf32> to vector<2x1x256xf32>
    %134 = vector.shape_cast %133 : vector<2x1x256xf32> to vector<2x256xf32>
    %135 = arith.truncf %134 : vector<2x256xf32> to vector<2x256xbf16>
    %c0_147 = arith.constant 0 : index
    %c0_148 = arith.constant 0 : index
    %136 = vector.load %arg18[%c0_147, %c0_148] : memref<2x2048xbf16, #tpu.memory_space<vmem>>, vector<2x256xbf16>
    tpu.vector_store %arg18[%c0_147, %c0_148], %135 {strides = array<i32>} : memref<2x2048xbf16, #tpu.memory_space<vmem>>, vector<2x256xbf16>,
    %137 = vector.extract_strided_slice %132 {offsets = [0, 1, 0], sizes = [2, 1, 256], strides = [1, 1, 1]} : vector<2x8x256xf32> to vector<2x1x256xf32>
    %138 = vector.shape_cast %137 : vector<2x1x256xf32> to vector<2x256xf32>
    %139 = arith.truncf %138 : vector<2x256xf32> to vector<2x256xbf16>
    %c0_149 = arith.constant 0 : index
    %c256 = arith.constant 256 : index
    %140 = vector.load %arg18[%c0_149, %c256] : memref<2x2048xbf16, #tpu.memory_space<vmem>>, vector<2x256xbf16>
    tpu.vector_store %arg18[%c0_149, %c256], %139 {strides = array<i32>} : memref<2x2048xbf16, #tpu.memory_space<vmem>>, vector<2x256xbf16>,
    %141 = vector.extract_strided_slice %132 {offsets = [0, 2, 0], sizes = [2, 1, 256], strides = [1, 1, 1]} : vector<2x8x256xf32> to vector<2x1x256xf32>
    %142 = vector.shape_cast %141 : vector<2x1x256xf32> to vector<2x256xf32>
    %143 = arith.truncf %142 : vector<2x256xf32> to vector<2x256xbf16>
    %c0_150 = arith.constant 0 : index
    %c512 = arith.constant 512 : index
    %144 = vector.load %arg18[%c0_150, %c512] : memref<2x2048xbf16, #tpu.memory_space<vmem>>, vector<2x256xbf16>
    tpu.vector_store %arg18[%c0_150, %c512], %143 {strides = array<i32>} : memref<2x2048xbf16, #tpu.memory_space<vmem>>, vector<2x256xbf16>,
    %145 = vector.extract_strided_slice %132 {offsets = [0, 3, 0], sizes = [2, 1, 256], strides = [1, 1, 1]} : vector<2x8x256xf32> to vector<2x1x256xf32>
    %146 = vector.shape_cast %145 : vector<2x1x256xf32> to vector<2x256xf32>
    %147 = arith.truncf %146 : vector<2x256xf32> to vector<2x256xbf16>
    %c0_151 = arith.constant 0 : index
    %c768 = arith.constant 768 : index
    %148 = vector.load %arg18[%c0_151, %c768] : memref<2x2048xbf16, #tpu.memory_space<vmem>>, vector<2x256xbf16>
    tpu.vector_store %arg18[%c0_151, %c768], %147 {strides = array<i32>} : memref<2x2048xbf16, #tpu.memory_space<vmem>>, vector<2x256xbf16>,
    %149 = vector.extract_strided_slice %132 {offsets = [0, 4, 0], sizes = [2, 1, 256], strides = [1, 1, 1]} : vector<2x8x256xf32> to vector<2x1x256xf32>
    %150 = vector.shape_cast %149 : vector<2x1x256xf32> to vector<2x256xf32>
    %151 = arith.truncf %150 : vector<2x256xf32> to vector<2x256xbf16>
    %c0_152 = arith.constant 0 : index
    %c1024 = arith.constant 1024 : index
    %152 = vector.load %arg18[%c0_152, %c1024] : memref<2x2048xbf16, #tpu.memory_space<vmem>>, vector<2x256xbf16>
    tpu.vector_store %arg18[%c0_152, %c1024], %151 {strides = array<i32>} : memref<2x2048xbf16, #tpu.memory_space<vmem>>, vector<2x256xbf16>,
    %153 = vector.extract_strided_slice %132 {offsets = [0, 5, 0], sizes = [2, 1, 256], strides = [1, 1, 1]} : vector<2x8x256xf32> to vector<2x1x256xf32>
    %154 = vector.shape_cast %153 : vector<2x1x256xf32> to vector<2x256xf32>
    %155 = arith.truncf %154 : vector<2x256xf32> to vector<2x256xbf16>
    %c0_153 = arith.constant 0 : index
    %c1280 = arith.constant 1280 : index
    %156 = vector.load %arg18[%c0_153, %c1280] : memref<2x2048xbf16, #tpu.memory_space<vmem>>, vector<2x256xbf16>
    tpu.vector_store %arg18[%c0_153, %c1280], %155 {strides = array<i32>} : memref<2x2048xbf16, #tpu.memory_space<vmem>>, vector<2x256xbf16>,
    %157 = vector.extract_strided_slice %132 {offsets = [0, 6, 0], sizes = [2, 1, 256], strides = [1, 1, 1]} : vector<2x8x256xf32> to vector<2x1x256xf32>
    %158 = vector.shape_cast %157 : vector<2x1x256xf32> to vector<2x256xf32>
    %159 = arith.truncf %158 : vector<2x256xf32> to vector<2x256xbf16>
    %c0_154 = arith.constant 0 : index
    %c1536 = arith.constant 1536 : index
    %160 = vector.load %arg18[%c0_154, %c1536] : memref<2x2048xbf16, #tpu.memory_space<vmem>>, vector<2x256xbf16>
    tpu.vector_store %arg18[%c0_154, %c1536], %159 {strides = array<i32>} : memref<2x2048xbf16, #tpu.memory_space<vmem>>, vector<2x256xbf16>,
    %161 = vector.extract_strided_slice %132 {offsets = [0, 7, 0], sizes = [2, 1, 256], strides = [1, 1, 1]} : vector<2x8x256xf32> to vector<2x1x256xf32>
    %162 = vector.shape_cast %161 : vector<2x1x256xf32> to vector<2x256xf32>
    %163 = arith.truncf %162 : vector<2x256xf32> to vector<2x256xbf16>
    %c0_155 = arith.constant 0 : index
    %c1792 = arith.constant 1792 : index
    %164 = vector.load %arg18[%c0_155, %c1792] : memref<2x2048xbf16, #tpu.memory_space<vmem>>, vector<2x256xbf16>
    tpu.vector_store %arg18[%c0_155, %c1792], %163 {strides = array<i32>} : memref<2x2048xbf16, #tpu.memory_space<vmem>>, vector<2x256xbf16>,
    tpu.wait_dma2 semaphore(%arg20 : memref<!tpu.dma_semaphore, #tpu.memory_space<semaphore_mem>>) src(%arg8 : memref<2048x512xbf16, #tpu.memory_space<any>>) dst(%arg19 : memref<2048x512xbf16, #tpu.memory_space<vmem>>)
    %c0_156 = arith.constant 0 : index
    %c0_157 = arith.constant 0 : index
    %165 = vector.load %arg18[%c0_156, %c0_157] : memref<2x2048xbf16, #tpu.memory_space<vmem>>, vector<2x2048xbf16>
    %c0_158 = arith.constant 0 : index
    %c0_159 = arith.constant 0 : index
    %166 = vector.load %arg19[%c0_158, %c0_159] : memref<2048x512xbf16, #tpu.memory_space<vmem>>, vector<2048x512xbf16>
    %cst_160 = arith.constant dense<0.000000e+00> : vector<2x512xf32>
    %167 = tpu.matmul %165, %166, %cst_160 {dimension_numbers = #tpu.dot_dimension_numbers<[1], [0], [0], [1], [0, 0, 1, 1], [], []>} : vector<2x2048xbf16>, vector<2048x512xbf16>, vector<2x512xf32> -> vector<2x512xf32>
    %c0_161 = arith.constant 0 : index
    %c0_162 = arith.constant 0 : index
    %168 = vector.load %arg9[%c0_161, %c0_162] : memref<3x512xf32, #tpu.memory_space<vmem>>, vector<1x512xf32>
    %169 = vector.broadcast %168 : vector<1x512xf32> to vector<2x512xf32>
    %170 = arith.addf %167, %169 : vector<2x512xf32>
    %cst_163 = arith.constant 0.000000e+00 : f32
    %171 = vector.broadcast %cst_163 : f32 to vector<2x512xf32>
    %172 = arith.maximumf %170, %171 : vector<2x512xf32>
    %c1_164 = arith.constant 1 : index
    %c0_165 = arith.constant 0 : index
    %173 = vector.load %arg9[%c1_164, %c0_165] : memref<3x512xf32, #tpu.memory_space<vmem>>, vector<1x512xf32>
    %174 = vector.broadcast %173 : vector<1x512xf32> to vector<2x512xf32>
    %175 = arith.mulf %172, %174 : vector<2x512xf32>
    %c2_166 = arith.constant 2 : index
    %c0_167 = arith.constant 0 : index
    %176 = vector.load %arg9[%c2_166, %c0_167] : memref<3x512xf32, #tpu.memory_space<vmem>>, vector<1x512xf32>
    %177 = vector.broadcast %176 : vector<1x512xf32> to vector<2x512xf32>
    %178 = arith.addf %175, %177 : vector<2x512xf32>
    %179 = arith.truncf %178 : vector<2x512xf32> to vector<2x512xbf16>
    %c0_168 = arith.constant 0 : index
    %c0_169 = arith.constant 0 : index
    %180 = vector.load %arg10[%c0_168, %c0_169] : memref<512x256xbf16, #tpu.memory_space<vmem>>, vector<512x256xbf16>
    %cst_170 = arith.constant dense<0.000000e+00> : vector<2x256xf32>
    %181 = tpu.matmul %179, %180, %cst_170 {dimension_numbers = #tpu.dot_dimension_numbers<[1], [0], [0], [1], [0, 0, 1, 1], [], []>} : vector<2x512xbf16>, vector<512x256xbf16>, vector<2x256xf32> -> vector<2x256xf32>
    %c0_171 = arith.constant 0 : index
    %c0_172 = arith.constant 0 : index
    %182 = vector.load %arg11[%c0_171, %c0_172] : memref<3x256xf32, #tpu.memory_space<vmem>>, vector<1x256xf32>
    %183 = vector.broadcast %182 : vector<1x256xf32> to vector<2x256xf32>
    %184 = arith.addf %181, %183 : vector<2x256xf32>
    %cst_173 = arith.constant 0.000000e+00 : f32
    %185 = vector.broadcast %cst_173 : f32 to vector<2x256xf32>
    %186 = arith.maximumf %184, %185 : vector<2x256xf32>
    %c1_174 = arith.constant 1 : index
    %c0_175 = arith.constant 0 : index
    %187 = vector.load %arg11[%c1_174, %c0_175] : memref<3x256xf32, #tpu.memory_space<vmem>>, vector<1x256xf32>
    %188 = vector.broadcast %187 : vector<1x256xf32> to vector<2x256xf32>
    %189 = arith.mulf %186, %188 : vector<2x256xf32>
    %c2_176 = arith.constant 2 : index
    %c0_177 = arith.constant 0 : index
    %190 = vector.load %arg11[%c2_176, %c0_177] : memref<3x256xf32, #tpu.memory_space<vmem>>, vector<1x256xf32>
    %191 = vector.broadcast %190 : vector<1x256xf32> to vector<2x256xf32>
    %192 = arith.addf %189, %191 : vector<2x256xf32>
    %c0_178 = arith.constant 0 : index
    %c0_179 = arith.constant 0 : index
    %193 = vector.load %arg12[%c0_178, %c0_179] : memref<256x5xf32, #tpu.memory_space<vmem>>, vector<256x5xf32>
    %cst_180 = arith.constant dense<0.000000e+00> : vector<2x5xf32>
    %194 = tpu.matmul %192, %193, %cst_180 {dimension_numbers = #tpu.dot_dimension_numbers<[1], [0], [0], [1], [0, 0, 1, 1], [], []>} : vector<2x256xf32>, vector<256x5xf32>, vector<2x5xf32> -> vector<2x5xf32>
    %c0_181 = arith.constant 0 : index
    %c0_182 = arith.constant 0 : index
    %195 = vector.load %arg13[%c0_181, %c0_182] : memref<1x5xf32, #tpu.memory_space<vmem>>, vector<1x5xf32>
    %196 = vector.broadcast %195 : vector<1x5xf32> to vector<2x5xf32>
    %197 = arith.addf %194, %196 : vector<2x5xf32>
    %c0_183 = arith.constant 0 : index
    %c0_184 = arith.constant 0 : index
    %198 = vector.load %arg14[%c0_183, %c0_184] : memref<2x5xf32, #tpu.memory_space<vmem>>, vector<2x5xf32>
    tpu.vector_store %arg14[%c0_183, %c0_184], %197 {strides = array<i32>} : memref<2x5xf32, #tpu.memory_space<vmem>>, vector<2x5xf32>,
    return
  }
  func.func @transform_0(%arg0: i32) -> (i32, i32, i32) {
    %c0_i32 = arith.constant 0 : i32
    %c0_i32_0 = arith.constant 0 : i32
    %c0_i32_1 = arith.constant 0 : i32
    %c0_i32_2 = arith.constant 0 : i32
    return %c0_i32, %c0_i32_0, %c0_i32_1 : i32, i32, i32
  }
  func.func @transform_1(%arg0: i32) -> (i32, i32, i32) {
    %c0_i32 = arith.constant 0 : i32
    %c0_i32_0 = arith.constant 0 : i32
    %c0_i32_1 = arith.constant 0 : i32
    %c0_i32_2 = arith.constant 0 : i32
    return %c0_i32, %c0_i32_0, %c0_i32_1 : i32, i32, i32
  }
  func.func @transform_2(%arg0: i32) -> (i32, i32) {
    %c0_i32 = arith.constant 0 : i32
    %c0_i32_0 = arith.constant 0 : i32
    %c0_i32_1 = arith.constant 0 : i32
    return %c0_i32, %c0_i32_0 : i32, i32
  }
  func.func @transform_3(%arg0: i32) -> (i32, i32, i32) {
    %c0_i32 = arith.constant 0 : i32
    %c0_i32_0 = arith.constant 0 : i32
    %c0_i32_1 = arith.constant 0 : i32
    %c0_i32_2 = arith.constant 0 : i32
    return %c0_i32, %c0_i32_0, %c0_i32_1 : i32, i32, i32
  }
  func.func @transform_4(%arg0: i32) -> (i32, i32) {
    %c0_i32 = arith.constant 0 : i32
    %c0_i32_0 = arith.constant 0 : i32
    %c0_i32_1 = arith.constant 0 : i32
    return %c0_i32, %c0_i32_0 : i32, i32
  }
  func.func @transform_5(%arg0: i32) -> (i32, i32, i32) {
    %c0_i32 = arith.constant 0 : i32
    %c0_i32_0 = arith.constant 0 : i32
    %c0_i32_1 = arith.constant 0 : i32
    %c0_i32_2 = arith.constant 0 : i32
    return %c0_i32, %c0_i32_0, %c0_i32_1 : i32, i32, i32
  }
  func.func @transform_6(%arg0: i32) -> (i32, i32) {
    %c0_i32 = arith.constant 0 : i32
    %c0_i32_0 = arith.constant 0 : i32
    %c0_i32_1 = arith.constant 0 : i32
    return %c0_i32, %c0_i32_0 : i32, i32
  }
  func.func @transform_8(%arg0: i32) -> (i32, i32) {
    %c0_i32 = arith.constant 0 : i32
    %c0_i32_0 = arith.constant 0 : i32
    %c0_i32_1 = arith.constant 0 : i32
    return %c0_i32, %c0_i32_0 : i32, i32
  }
  func.func @transform_9(%arg0: i32) -> (i32, i32) {
    %c0_i32 = arith.constant 0 : i32
    %c0_i32_0 = arith.constant 0 : i32
    %c0_i32_1 = arith.constant 0 : i32
    return %c0_i32, %c0_i32_0 : i32, i32
  }
  func.func @transform_10(%arg0: i32) -> (i32, i32) {
    %c0_i32 = arith.constant 0 : i32
    %c0_i32_0 = arith.constant 0 : i32
    %c0_i32_1 = arith.constant 0 : i32
    return %c0_i32, %c0_i32_0 : i32, i32
  }
  func.func @transform_11(%arg0: i32) -> (i32, i32) {
    %c0_i32 = arith.constant 0 : i32
    %c0_i32_0 = arith.constant 0 : i32
    %c0_i32_1 = arith.constant 0 : i32
    return %c0_i32, %c0_i32_0 : i32, i32
  }
  func.func @transform_12(%arg0: i32) -> (i32, i32) {
    %c0_i32 = arith.constant 0 : i32
    %c0_i32_0 = arith.constant 0 : i32
    %c0_i32_1 = arith.constant 0 : i32
    return %c0_i32, %c0_i32_0 : i32, i32
  }
  func.func @transform_13(%arg0: i32) -> (i32, i32) {
    %c0_i32 = arith.constant 0 : i32
    %c0_i32_0 = arith.constant 0 : i32
    %c0_i32_1 = arith.constant 0 : i32
    return %c0_i32, %c0_i32_0 : i32, i32
  }
}

</mosaic_0001>

<bundles_post_ra>
// kernel: tpu_custom_call.1
= control target key start
LH: loop header
LB: loop body
LE: loop exit
PB: predicated region body
PF: predicated region fallthrough
CT: control target
= control target key end

     0   :  { %18 = vsyncpa [#allocation9], 0  ;;  %s12886_s0 = inlined_call_operand.vmem [shape: f32[2,64,4], index: 0, kind: input, shape index: {}]   ;;  %s12887_s1 = inlined_call_operand.hbm [shape: f32[5,4,64], index: 1, kind: input, shape index: {}]   ;;  %s12888_s2 = inlined_call_operand.hbm [shape: f32[1,64], index: 2, kind: input, shape index: {}]   ;;  %s12889_s3 = inlined_call_operand.hbm [shape: f32[5,64,128], index: 3, kind: input, shape index: {}]   ;;  %s12890_s4 = inlined_call_operand.hbm [shape: f32[1,128], index: 4, kind: input, shape index: {}]   ;;  %s12891_s5 = inlined_call_operand.hbm [shape: f32[5,128,256], index: 5, kind: input, shape index: {}]   ;;  %s12892_s6 = inlined_call_operand.hbm [shape: f32[1,256], index: 6, kind: input, shape index: {}]   ;;  %s12893_s7 = inlined_call_operand.hbm [shape: bf16[2048,512], index: 7, kind: input, shape index: {}]   ;;  %s12894_s8 = inlined_call_operand.hbm [shape: f32[3,512], index: 8, kind: input, shape index: {}]   ;;  %s12895_s9 = inlined_call_operand.hbm [shape: bf16[512,256], index: 9, kind: input, shape index: {}]   ;;  %s12896_s10 = inlined_call_operand.hbm [shape: f32[3,256], index: 10, kind: input, shape index: {}]   ;;  %s12897_s11 = inlined_call_operand.vmem [shape: f32[256,5], index: 11, kind: input, shape index: {}]   ;;  %s12898_s12 = inlined_call_operand.hbm [shape: f32[1,5], index: 12, kind: input, shape index: {}]   ;;  %s12899_s13 = inlined_call_operand.hbm [shape: f32[2,5], index: 13, kind: output, shape index: {}]  }
   0x1   :  { %19 = vsyncpa [#allocation12], 0 }
   0x2   :  { %20 = vsyncpa [#allocation15], 0 }
   0x3   :  { %21 = vsyncpa [#allocation18], 0 }
   0x4   :  { %22 = vsyncpa [#allocation21], 0 }
   0x5   :  { %23 = vsyncpa [#allocation24], 0  ;;  %s45_s27 = sshll.u32 %s12888_s2, 4  ;;  %s46_s27 = int_to_ptr.hbm [resolvable:$true] %s45_s27 }
   0x6   :  { %24 = vsyncpa [#allocation10], 0  ;;  %s11624_s28 = smov [#allocation11]   ;;  %s69_s15 = sshll.u32 %s12890_s4, 4  ;;  %s70_s15 = int_to_ptr.hbm [resolvable:$true] %s69_s15 }
   0x7   :  { %s47_s29 = sshll.u32 %s11624_s28, 4  ;;  %s11625_s16 = smov [#allocation14]   ;;  %s48_s29 = int_to_ptr.vmem [resolvable:$true] %s47_s29 }
   0x8   :  { %50 = dma.hbm_to_vmem [thread:$0]  %s46_s27, 16, %s48_s29, [#allocation12]  }
   0x9   :  { %s71_s17 = sshll.u32 %s11625_s16, 4  ;;  %s93_s20 = sshll.u32 %s12892_s6, 4  ;;  %s72_s17 = int_to_ptr.vmem [resolvable:$true] %s71_s17  ;;  %s94_s20 = int_to_ptr.hbm [resolvable:$true] %s93_s20 }
   0xa   :  { %74 = dma.hbm_to_vmem [thread:$0]  %s70_s15, 16, %s72_s17, [#allocation15]  }
   0xb   :  { %s11626_s2 = smov [#allocation17]   ;;  %s114_s24 = sshll.u32 %s12895_s9, 4  ;;  %s115_s24 = int_to_ptr.hbm [resolvable:$true] %s114_s24 }
   0xc   :  { %s95_s21 = sshll.u32 %s11626_s2, 4  ;;  %s11627_s4 = smov [#allocation20]   ;;  %s96_s21 = int_to_ptr.vmem [resolvable:$true] %s95_s21 }
   0xd   :  { %98 = dma.hbm_to_vmem [thread:$0]  %s94_s20, 32, %s96_s21, [#allocation18]  }
   0xe   :  { %s116_s25 = sshll.u32 %s11627_s4, 4  ;;  %s31_s28 = sshll.u32 %s12887_s1, 4  ;;  %s117_s25 = int_to_ptr.vmem [resolvable:$true] %s116_s25  ;;  %s32_s28 = int_to_ptr.hbm [resolvable:$true] %s31_s28 }
   0xf   :  { %s11628_s6 = smov 128   ;;  %s11629_s29 = smov 8  }
  0x10   :  { %122 = dma.hbm_to_vmem [thread:$0]  %s115_s24, 8192, %s117_s25, [#allocation21], %s11628_s6, %s11628_s6, %s11629_s29  }
  0x11   :  { %s11630_s30 = smov [#allocation8]   ;;  %s55_s9 = sshll.u32 %s12889_s3, 4  ;;  %s56_s9 = int_to_ptr.hbm [resolvable:$true] %s55_s9 }
  0x12   :  { %s33_s14 = sshll.u32 %s11630_s30, 4  ;;  %s11631_s17 = smov 64   ;;  %s34_s14 = int_to_ptr.vmem [resolvable:$true] %s33_s14 }
  0x13   :  { %s11632_s18 = smov 4   ;;  %s11633_s19 = smov [#allocation13]  }
  0x14   :  { %39 = dma.hbm_to_vmem [thread:$0]  %s32_s28, 320, %s34_s14, [#allocation9], %s11631_s17, %s11631_s17, %s11632_s18  }
  0x15   :  { %s57_s20 = sshll.u32 %s11633_s19, 4  ;;  %s79_s21 = sshll.u32 %s12891_s5, 4  ;;  %s58_s20 = int_to_ptr.vmem [resolvable:$true] %s57_s20  ;;  %s80_s21 = int_to_ptr.hbm [resolvable:$true] %s79_s21 }
  0x16   :  { %63 = dma.hbm_to_vmem [thread:$0]  %s56_s9, 5120, %s58_s20, [#allocation12], %s11628_s6, %s11628_s6, %s11629_s29  }
  0x17   :  { %s11634_s22 = smov [#allocation16]   ;;  %s104_s3 = sshll.u32 %s12894_s8, 4  ;;  %s105_s3 = int_to_ptr.hbm [resolvable:$true] %s104_s3 }
  0x18   :  { %s81_s23 = sshll.u32 %s11634_s22, 4  ;;  %s11635_s25 = smov 256   ;;  %s82_s23 = int_to_ptr.vmem [resolvable:$true] %s81_s23 }
  0x19   :  { %s11636_s26 = smov 16   ;;  %s11637_s27 = smov [#allocation19]  }
  0x1a   :  { %87 = dma.hbm_to_vmem [thread:$0]  %s80_s21, 20480, %s82_s23, [#allocation15], %s11635_s25, %s11635_s25, %s11636_s26  }
  0x1b   :  { %s106_s28 = sshll.u32 %s11637_s27, 4  ;;  %s128_s5 = sshll.u32 %s12896_s10, 4  ;;  %s107_s28 = int_to_ptr.vmem [resolvable:$true] %s106_s28  ;;  %s129_s5 = int_to_ptr.hbm [resolvable:$true] %s128_s5 }
  0x1c   :  { %109 = dma.hbm_to_vmem [thread:$0]  %s105_s3, 256, %s107_s28, [#allocation18]  }
  0x1d   :  { %s141_s15 = sshll.u32 %s12898_s12, 4  ;;  %s11638_s16 = smov [#allocation22]   ;;  %s142_s15 = int_to_ptr.hbm [resolvable:$true] %s141_s15 }
  0x1e   :  { %s130_s9 = sshll.u32 %s11638_s16, 4  ;;  %s11639_s8 = smov [#allocation23]   ;;  %s131_s9 = int_to_ptr.vmem [resolvable:$true] %s130_s9 }
  0x1f   :  { %133 = dma.hbm_to_vmem [thread:$0]  %s129_s5, 128, %s131_s9, [#allocation21]  }
  0x20   :  { %s143_s17 = sshll.u32 %s11639_s8, 4  ;;  %s144_s17 = int_to_ptr.vmem [resolvable:$true] %s143_s17 }
  0x21   :  { %146 = dma.hbm_to_vmem [thread:$0]  %s142_s15, 16, %s144_s17, [#allocation24]  }
  0x22   :  { %11608 = dma.done.wait [#allocation9], 320  }
  0x23   :  { %11609 = vsyncadd [#allocation9], 4294966976 }
  0x24   :  { %11610 = dma.done.wait [#allocation12], 5136  }
  0x25   :  { %11611 = vsyncadd [#allocation12], 4294962160 }
  0x26   :  { %11612 = dma.done.wait [#allocation15], 20496  }
  0x27   :  { %11613 = vsyncadd [#allocation15], 4294946800 }
  0x28   :  { %11614 = dma.done.wait [#allocation18], 288  }
  0x29   :  { %11615 = vsyncadd [#allocation18], 4294967008 }
  0x2a   :  { %11616 = dma.done.wait [#allocation21], 8320  }
  0x2b   :  { %11617 = vsyncadd [#allocation21], 4294958976 }
  0x2c   :  { %11618 = dma.done.wait [#allocation24], 16  }
  0x2d   :  { %11619 = vsyncadd [#allocation24], 4294967280  ;;  %vm216_vm0 = vcmask 25600   ;;  %v11640_v0 = vmov 0.0   ;;  %vm321_vm1 = vcmask 1043456   ;;  %vm221_vm2 = vcmask 31744  }
  0x2e   :  { %217 = vst.msk [vmem:[#allocation2] sm:$0x3] %vm216_vm0, %v11640_v0  ;;  %v272_v1 = vld [vmem:[#allocation8 + $0x4] sm:$0xf]  ;;  %v254_v2 = vld [vmem:[#allocation8] sm:$0xf] }
  0x2f   :  { %218 = vst.msk [vmem:[#allocation2 + $0x48] sm:$0x3] %vm216_vm0, %v11640_v0  ;;  %v200_v3 = vld [vmem:[%s12886_s0] sm:$0xff]  ;;  %8262 = vmatpush.msk.msra.mxu0 %vm321_vm1, %v272_v1  ;;  %11268 = vmatpush.msk.msra.mxu2 %vm321_vm1, %v272_v1  ;;  %v214_v4 = vld [vmem:[%s12886_s0 + $0x70] sm:$0xff]  ;;  %v823_v5 = vld [vmem:[#allocation8 + $0x10] sm:$0xf] }
  0x30   :  { %219 = vst.msk [vmem:[#allocation2 + $0x42] sm:$0x3] %vm216_vm0, %v11640_v0  ;;  %8279 = vmatpush.msk.msra.mxu1 %vm321_vm1, %v254_v2  ;;  %v215_v6 = vld [vmem:[%s12886_s0 + $0x78] sm:$0xff]  ;;  %v523_v7 = vld [vmem:[#allocation8 + $0x8] sm:$0xf]  ;;  %11269 = vmatpush.msk.msra.mxu3 %vm321_vm1, %v254_v2  ;;  %v201_v8 = vld [vmem:[%s12886_s0 + $0x8] sm:$0xff] }
  0x31   :  { %220 = vst.msk [vmem:[#allocation2 + $0x8a] sm:$0x3] %vm216_vm0, %v11640_v0  ;;  %8330 = vmatpush.msk.msrb.mxu0 %vm321_vm1, %v823_v5  ;;  %8296 = vmatpush.msk.msrb.mxu2 %vm321_vm1, %v523_v7  ;;  %v673_v9 = vld [vmem:[#allocation8 + $0xc] sm:$0xf]  ;;  %v203_v11 = vld [vmem:[%s12886_s0 + $0x18] sm:$0xff]  ;;  %v204_v12 = vld [vmem:[%s12886_s0 + $0x20] sm:$0xff] }
  0x32   :  { %2435 = vst [vmem:[#allocation4] sm:$0x3] %v11640_v0  ;;  %8313 = vmatpush.msk.msrb.mxu3 %vm321_vm1, %v673_v9  ;;  %v202_v10 = vld [vmem:[%s12886_s0 + $0x10] sm:$0xff]  ;;  %v205_v17 = vld [vmem:[%s12886_s0 + $0x28] sm:$0xff]  ;;  %v207_v27 = vld [vmem:[%s12886_s0 + $0x38] sm:$0xff]  ;;  %vm1104_vm3 = vcmask 517120  }
  0x33   :  { %2436 = vst [vmem:[#allocation4 + $0x18] sm:$0x3] %v11640_v0  ;;  %v206_v22 = vld [vmem:[%s12886_s0 + $0x30] sm:$0xff]  ;;  %v208_v32 = vld [vmem:[%s12886_s0 + $0x40] sm:$0xff]  ;;  %v209_v37 = vld [vmem:[%s12886_s0 + $0x48] sm:$0xff]  ;;  %vm1621_vm4 = vcmask 1041409  }
  0x34   :  { %222 = vst.msk [vmem:[#allocation2 + $0x2] sm:$0xff] %vm221_vm2, %v200_v3  ;;  %v210_v42 = vld [vmem:[%s12886_s0 + $0x50] sm:$0xff]  ;;  %v211_v47 = vld [vmem:[%s12886_s0 + $0x58] sm:$0xff]  ;;  %v212_v52 = vld [vmem:[%s12886_s0 + $0x60] sm:$0xff]  ;;  %vm1623_vm5 = vcmask 1042434   ;;  %vm1625_vm6 = vcmask 1043459  }
  0x35   :  { %2437 = vst [vmem:[#allocation4 + $0x12] sm:$0x3] %v11640_v0  ;;  %v213_v57 = vld [vmem:[%s12886_s0 + $0x68] sm:$0xff]  ;;  %vm1627_vm7 = vcmask 1044484   ;;  %vm1629_vm8 = vcmask 1045509   ;;  %vm1631_vm9 = vcmask 1046534  }
  0x36   :  { %2438 = vst [vmem:[#allocation4 + $0x2a] sm:$0x3] %v11640_v0  ;;  %vm1633_vm10 = vcmask 1047559   ;;  %vm1692_vm11 = vcmask 523264   ;;  %vm2210_vm12 = vcmask 1041408   ;;  %vm3040_vm13 = vcmask 1043458  }
  0x37   :  { %236 = vst.msk [vmem:[#allocation2 + $0x7a] sm:$0xff] %vm221_vm2, %v214_v4  ;;  %vm3043_vm14 = vcmask 1045508   ;;  %vm3046_vm15 = vcmask 1045504   ;;  %s194_s1 = sshll.u32 %s12893_s7, 4  ;;  %s11641_s21 = smov [#allocation6]   ;;  %vm3381_vm0 = vcmask 1040384   ;;  %s195_s1 = int_to_ptr.hbm [resolvable:$true] %s194_s1 }
  0x38   :  { %237 = vst.msk [vmem:[#allocation2 + $0x82] sm:$0xff] %vm221_vm2, %v215_v6  ;;  %s196_s22 = sshll.u32 %s11641_s21, 4  ;;  %s197_s22 = int_to_ptr.vmem [resolvable:$true] %s196_s22 }
  0x39   :  { %223 = vst.msk [vmem:[#allocation2 + $0xa] sm:$0xff] %vm221_vm2, %v201_v8  ;;  %199 = dma.hbm_to_vmem [thread:$0]  %s195_s1, 65536, %s197_s22, [#allocation7] }
  0x3a   :  { %224 = vst.msk [vmem:[#allocation2 + $0x12] sm:$0xff] %vm221_vm2, %v202_v10 }
  0x3b   :  { %v255_v13 = vld [vmem:[#allocation2 + $0x1] sm:$0xff]  ;;  %225 = vst.msk [vmem:[#allocation2 + $0x1a] sm:$0xff] %vm221_vm2, %v203_v11 }
  0x3c   :  { %v238_v14 = vld [vmem:[#allocation2] sm:$0xff]  ;;  %8263 = vmatmul.msk.f32.vlgmr.msra.gmra.mxu0 %vm221_vm2, %v255_v13  ;;  %226 = vst.msk [vmem:[#allocation2 + $0x22] sm:$0xff] %vm221_vm2, %v204_v12 }
  0x3d   :  { %8280 = vmatmul.msk.f32.vlgmr.msra.gmra.mxu1 %vm221_vm2, %v238_v14  ;;  %227 = vst.msk [vmem:[#allocation2 + $0x2a] sm:$0xff] %vm221_vm2, %v205_v17  ;;  %v506_v20 = vld [vmem:[#allocation2 + $0x2] sm:$0xff] }
  0x3e   :  { %228 = vst.msk [vmem:[#allocation2 + $0x32] sm:$0xff] %vm221_vm2, %v206_v22 }
  0x3f   :  { %v270_v15 = vld [vmem:[#allocation2 + $0x81] sm:$0xff]  ;;  %229 = vst.msk [vmem:[#allocation2 + $0x3a] sm:$0xff] %vm221_vm2, %v207_v27 }
  0x40   :  { %v253_v16 = vld [vmem:[#allocation2 + $0x80] sm:$0xff]  ;;  %8278 = vmatmul.msk.f32.vlgmr.msra.gmra.mxu2 %vm221_vm2, %v270_v15  ;;  %v256_v18 = vld [vmem:[#allocation2 + $0x9] sm:$0xff]  ;;  %230 = vst.msk [vmem:[#allocation2 + $0x4a] sm:$0xff] %vm221_vm2, %v208_v32 }
  0x41   :  { %8295 = vmatmul.msk.f32.vlgmr.msra.gmra.mxu3 %vm221_vm2, %v253_v16  ;;  %v239_v19 = vld [vmem:[#allocation2 + $0x8] sm:$0xff]  ;;  %v257_v23 = vld [vmem:[#allocation2 + $0x11] sm:$0xff]  ;;  %231 = vst.msk [vmem:[#allocation2 + $0x52] sm:$0xff] %vm221_vm2, %v209_v37 }
  0x42   :  { %v656_v21 = vld [vmem:[#allocation2 + $0x3] sm:$0xff]  ;;  %v240_v24 = vld [vmem:[#allocation2 + $0x10] sm:$0xff]  ;;  %v258_v28 = vld [vmem:[#allocation2 + $0x19] sm:$0xff]  ;;  %232 = vst.msk [vmem:[#allocation2 + $0x5a] sm:$0xff] %vm221_vm2, %v210_v42 }
  0x43   :  { %v507_v25 = vld [vmem:[#allocation2 + $0xa] sm:$0xff]  ;;  %v241_v29 = vld [vmem:[#allocation2 + $0x18] sm:$0xff]  ;;  %v259_v33 = vld [vmem:[#allocation2 + $0x21] sm:$0xff]  ;;  %233 = vst.msk [vmem:[#allocation2 + $0x62] sm:$0xff] %vm221_vm2, %v211_v47 }
  0x44   :  { %8264 = vmatmul.msk.f32.gmra.mxu0 %vm221_vm2, %v256_v18  ;;  %v657_v26 = vld [vmem:[#allocation2 + $0xb] sm:$0xff]  ;;  %v658_v31 = vld [vmem:[#allocation2 + $0x13] sm:$0xff]  ;;  %v242_v34 = vld [vmem:[#allocation2 + $0x20] sm:$0xff]  ;;  %234 = vst.msk [vmem:[#allocation2 + $0x6a] sm:$0xff] %vm221_vm2, %v212_v52 }
  0x45   :  { %8281 = vmatmul.msk.f32.gmra.mxu1 %vm221_vm2, %v239_v19  ;;  %v508_v30 = vld [vmem:[#allocation2 + $0x12] sm:$0xff]  ;;  %v509_v35 = vld [vmem:[#allocation2 + $0x1a] sm:$0xff]  ;;  %v260_v38 = vld [vmem:[#allocation2 + $0x29] sm:$0xff]  ;;  %235 = vst.msk [vmem:[#allocation2 + $0x72] sm:$0xff] %vm221_vm2, %v213_v57 }
  0x46   :  { %v659_v36 = vld [vmem:[#allocation2 + $0x1b] sm:$0xff]  ;;  %v243_v39 = vld [vmem:[#allocation2 + $0x28] sm:$0xff]  ;;  %v261_v43 = vld [vmem:[#allocation2 + $0x31] sm:$0xff]  ;;  %1553 = vst.msk [vmem:[#allocation3] sm:$0x3] %vm1104_vm3, %v11640_v0 }
  0x47   :  { %v510_v40 = vld [vmem:[#allocation2 + $0x22] sm:$0xff]  ;;  %v244_v44 = vld [vmem:[#allocation2 + $0x30] sm:$0xff]  ;;  %v262_v48 = vld [vmem:[#allocation2 + $0x39] sm:$0xff]  ;;  %1554 = vst.msk [vmem:[#allocation3 + $0x28] sm:$0x3] %vm1104_vm3, %v11640_v0 }
  0x48   :  { %8297 = vmatmul.msk.f32.vlgmr.msrb.gmra.mxu2 %vm221_vm2, %v506_v20  ;;  %v660_v41 = vld [vmem:[#allocation2 + $0x23] sm:$0xff]  ;;  %v661_v46 = vld [vmem:[#allocation2 + $0x2b] sm:$0xff]  ;;  %v245_v49 = vld [vmem:[#allocation2 + $0x38] sm:$0xff]  ;;  %1555 = vst.msk [vmem:[#allocation3 + $0x22] sm:$0x3] %vm1104_vm3, %v11640_v0 }
  0x49   :  { %8314 = vmatmul.msk.f32.vlgmr.msrb.gmra.mxu3 %vm221_vm2, %v656_v21  ;;  %v511_v45 = vld [vmem:[#allocation2 + $0x2a] sm:$0xff]  ;;  %v512_v50 = vld [vmem:[#allocation2 + $0x32] sm:$0xff]  ;;  %v513_v55 = vld [vmem:[#allocation2 + $0x3a] sm:$0xff]  ;;  %1556 = vst.msk [vmem:[#allocation3 + $0x4a] sm:$0x3] %vm1104_vm3, %v11640_v0 }
  0x4a   :  { %v662_v51 = vld [vmem:[#allocation2 + $0x33] sm:$0xff]  ;;  %v263_v53 = vld [vmem:[#allocation2 + $0x49] sm:$0xff]  ;;  %v663_v56 = vld [vmem:[#allocation2 + $0x3b] sm:$0xff] }
  0x4b   :  { %v246_v54 = vld [vmem:[#allocation2 + $0x48] sm:$0xff]  ;;  %v264_v58 = vld [vmem:[#allocation2 + $0x51] sm:$0xff]  ;;  %v265_v62 = vld [vmem:[#allocation2 + $0x59] sm:$0xff] }
  0x4c   :  { %8265 = vmatmul.msk.f32.gmra.mxu0 %vm221_vm2, %v257_v23  ;;  %v247_v59 = vld [vmem:[#allocation2 + $0x50] sm:$0xff]  ;;  %v248_v63 = vld [vmem:[#allocation2 + $0x58] sm:$0xff]  ;;  %v266_v3 = vld [vmem:[#allocation2 + $0x61] sm:$0xff] }
  0x4d   :  { %8282 = vmatmul.msk.f32.gmra.mxu1 %vm221_vm2, %v240_v24  ;;  %v514_v60 = vld [vmem:[#allocation2 + $0x4a] sm:$0xff]  ;;  %v515_v1 = vld [vmem:[#allocation2 + $0x52] sm:$0xff]  ;;  %v249_v4 = vld [vmem:[#allocation2 + $0x60] sm:$0xff] }
  0x4e   :  { %v664_v61 = vld [vmem:[#allocation2 + $0x4b] sm:$0xff]  ;;  %v665_v2 = vld [vmem:[#allocation2 + $0x53] sm:$0xff]  ;;  %v666_v6 = vld [vmem:[#allocation2 + $0x5b] sm:$0xff] }
  0x4f   :  { %v516_v5 = vld [vmem:[#allocation2 + $0x5a] sm:$0xff]  ;;  %v267_v7 = vld [vmem:[#allocation2 + $0x69] sm:$0xff]  ;;  %v268_v11 = vld [vmem:[#allocation2 + $0x71] sm:$0xff] }
  0x50   :  { %8298 = vmatmul.msk.f32.gmra.mxu2 %vm221_vm2, %v507_v25  ;;  %v250_v8 = vld [vmem:[#allocation2 + $0x68] sm:$0xff]  ;;  %v251_v12 = vld [vmem:[#allocation2 + $0x70] sm:$0xff]  ;;  %v269_v15 = vld [vmem:[#allocation2 + $0x79] sm:$0xff] }
  0x51   :  { %8315 = vmatmul.msk.f32.gmra.mxu3 %vm221_vm2, %v657_v26  ;;  %v517_v9 = vld [vmem:[#allocation2 + $0x62] sm:$0xff]  ;;  %v518_v13 = vld [vmem:[#allocation2 + $0x6a] sm:$0xff]  ;;  %v252_v16 = vld [vmem:[#allocation2 + $0x78] sm:$0xff] }
  0x52   :  { %v667_v10 = vld [vmem:[#allocation2 + $0x63] sm:$0xff]  ;;  %v668_v14 = vld [vmem:[#allocation2 + $0x6b] sm:$0xff]  ;;  %v669_v18 = vld [vmem:[#allocation2 + $0x73] sm:$0xff] }
  0x53   :  { %v519_v17 = vld [vmem:[#allocation2 + $0x72] sm:$0xff]  ;;  %v806_v19 = vld [vmem:[#allocation2 + $0x4] sm:$0xff]  ;;  %v520_v20 = vld [vmem:[#allocation2 + $0x7a] sm:$0xff] }
  0x54   :  { %8266 = vmatmul.msk.f32.gmra.mxu0 %vm221_vm2, %v258_v28  ;;  %v670_v21 = vld [vmem:[#allocation2 + $0x7b] sm:$0xff]  ;;  %v807_v24 = vld [vmem:[#allocation2 + $0xc] sm:$0xff]  ;;  %v671_v26 = vld [vmem:[#allocation2 + $0x83] sm:$0xff] }
  0x55   :  { %8283 = vmatmul.msk.f32.gmra.mxu1 %vm221_vm2, %v241_v29  ;;  %v521_v25 = vld [vmem:[#allocation2 + $0x82] sm:$0xff]  ;;  %v808_v29 = vld [vmem:[#allocation2 + $0x14] sm:$0xff] }
  0x58   :  { %8299 = vmatmul.msk.f32.gmra.mxu2 %vm221_vm2, %v508_v30 }
  0x59   :  { %8316 = vmatmul.msk.f32.gmra.mxu3 %vm221_vm2, %v658_v31 }
  0x5c   :  { %8267 = vmatmul.msk.f32.gmra.mxu0 %vm221_vm2, %v259_v33 }
  0x5d   :  { %8284 = vmatmul.msk.f32.gmra.mxu1 %vm221_vm2, %v242_v34  ;;  %v809_v34 = vld [vmem:[#allocation2 + $0x1c] sm:$0xff] }
  0x60   :  { %8300 = vmatmul.msk.f32.gmra.mxu2 %vm221_vm2, %v509_v35 }
  0x61   :  { %8317 = vmatmul.msk.f32.gmra.mxu3 %vm221_vm2, %v659_v36 }
  0x64   :  { %8268 = vmatmul.msk.f32.gmra.mxu0 %vm221_vm2, %v260_v38 }
  0x65   :  { %8285 = vmatmul.msk.f32.gmra.mxu1 %vm221_vm2, %v243_v39  ;;  %v810_v39 = vld [vmem:[#allocation2 + $0x24] sm:$0xff] }
  0x68   :  { %8301 = vmatmul.msk.f32.gmra.mxu2 %vm221_vm2, %v510_v40 }
  0x69   :  { %8318 = vmatmul.msk.f32.gmra.mxu3 %vm221_vm2, %v660_v41 }
  0x6c   :  { %8269 = vmatmul.msk.f32.gmra.mxu0 %vm221_vm2, %v261_v43 }
  0x6d   :  { %8286 = vmatmul.msk.f32.gmra.mxu1 %vm221_vm2, %v244_v44  ;;  %v811_v44 = vld [vmem:[#allocation2 + $0x2c] sm:$0xff] }
  0x70   :  { %8302 = vmatmul.msk.f32.gmra.mxu2 %vm221_vm2, %v511_v45 }
  0x71   :  { %8319 = vmatmul.msk.f32.gmra.mxu3 %vm221_vm2, %v661_v46 }
  0x74   :  { %8270 = vmatmul.msk.f32.gmra.mxu0 %vm221_vm2, %v262_v48 }
  0x75   :  { %8287 = vmatmul.msk.f32.gmra.mxu1 %vm221_vm2, %v245_v49  ;;  %v812_v49 = vld [vmem:[#allocation2 + $0x34] sm:$0xff] }
  0x78   :  { %8303 = vmatmul.msk.f32.gmra.mxu2 %vm221_vm2, %v512_v50 }
  0x79   :  { %8320 = vmatmul.msk.f32.gmra.mxu3 %vm221_vm2, %v662_v51 }
  0x7c   :  { %8271 = vmatmul.msk.f32.gmra.mxu0 %vm221_vm2, %v263_v53  ;;  %v813_v53 = vld [vmem:[#allocation2 + $0x3c] sm:$0xff] }
  0x7d   :  { %8288 = vmatmul.msk.f32.gmra.mxu1 %vm221_vm2, %v246_v54 }
  0x80   :  { %8304 = vmatmul.msk.f32.gmra.mxu2 %vm221_vm2, %v513_v55 }
  0x81   :  { %8321 = vmatmul.msk.f32.gmra.mxu3 %vm221_vm2, %v663_v56 }
  0x84   :  { %8272 = vmatmul.msk.f32.gmra.mxu0 %vm221_vm2, %v264_v58  ;;  %v814_v58 = vld [vmem:[#allocation2 + $0x4c] sm:$0xff] }
  0x85   :  { %8289 = vmatmul.msk.f32.gmra.mxu1 %vm221_vm2, %v247_v59 }
  0x88   :  { %8305 = vmatmul.msk.f32.gmra.mxu2 %vm221_vm2, %v514_v60 }
  0x89   :  { %8322 = vmatmul.msk.f32.gmra.mxu3 %vm221_vm2, %v664_v61 }
  0x8c   :  { %8273 = vmatmul.msk.f32.gmra.mxu0 %vm221_vm2, %v265_v62  ;;  %v1716_v62 = vld [vmem:[#allocation13 + $0x38] sm:$0xff] }
  0x8d   :  { %8290 = vmatmul.msk.f32.gmra.mxu1 %vm221_vm2, %v248_v63  ;;  %1831 = vmatpush.msra.mxu2 %v1716_v62  ;;  %v821_v62 = vld [vmem:[#allocation2 + $0x84] sm:$0xff] }
  0x90   :  { %8306 = vmatmul.msk.f32.gmra.mxu2 %vm221_vm2, %v515_v1  ;;  %v815_v1 = vld [vmem:[#allocation2 + $0x54] sm:$0xff] }
  0x91   :  { %8323 = vmatmul.msk.f32.gmra.mxu3 %vm221_vm2, %v665_v2 }
  0x94   :  { %8274 = vmatmul.msk.f32.gmra.mxu0 %vm221_vm2, %v266_v3 }
  0x95   :  { %8291 = vmatmul.msk.f32.gmra.mxu1 %vm221_vm2, %v249_v4  ;;  %v1733_v4 = vld [vmem:[#allocation13 + $0x78] sm:$0xff] }
  0x96   :  { %1766 = vmatpush.msrb.mxu1 %v1733_v4 }
  0x98   :  { %8307 = vmatmul.msk.f32.gmra.mxu2 %vm221_vm2, %v516_v5 }
  0x99   :  { %8324 = vmatmul.msk.f32.gmra.mxu3 %vm221_vm2, %v666_v6 }
  0x9c   :  { %8275 = vmatmul.msk.f32.gmra.mxu0 %vm221_vm2, %v267_v7  ;;  %v816_v7 = vld [vmem:[#allocation2 + $0x5c] sm:$0xff] }
  0x9d   :  { %8292 = vmatmul.msk.f32.gmra.mxu1 %vm221_vm2, %v250_v8 }
  0xa0   :  { %8308 = vmatmul.msk.f32.gmra.mxu2 %vm221_vm2, %v517_v9  ;;  %v1715_v9 = vld [vmem:[#allocation13 + $0x30] sm:$0xff] }
  0xa1   :  { %8325 = vmatmul.msk.f32.gmra.mxu3 %vm221_vm2, %v667_v10  ;;  %1832 = vmatpush.msra.mxu2 %v1715_v9 }
  0xa4   :  { %8276 = vmatmul.msk.f32.gmra.mxu0 %vm221_vm2, %v268_v11 }
  0xa5   :  { %8293 = vmatmul.msk.f32.gmra.mxu1 %vm221_vm2, %v251_v12 }
  0xa8   :  { %8309 = vmatmul.msk.f32.gmra.mxu2 %vm221_vm2, %v518_v13  ;;  %v817_v13 = vld [vmem:[#allocation2 + $0x64] sm:$0xff] }
  0xa9   :  { %8326 = vmatmul.msk.f32.gmra.mxu3 %vm221_vm2, %v668_v14 }
  0xac   :  { %8277 = vmatmul.msk.f32.gmra.mxu0 %vm221_vm2, %v269_v15  ;;  %v1732_v15 = vld [vmem:[#allocation13 + $0x70] sm:$0xff] }
  0xad   :  { %8294 = vmatmul.msk.f32.gmra.mxu1 %vm221_vm2, %v252_v16 }
  0xae   :  { %1767 = vmatpush.msrb.mxu1 %v1732_v15 }
  0xb0   :  { %8310 = vmatmul.msk.f32.gmra.mxu2 %vm221_vm2, %v519_v17  ;;  %v818_v17 = vld [vmem:[#allocation2 + $0x6c] sm:$0xff] }
  0xb1   :  { %8327 = vmatmul.msk.f32.gmra.mxu3 %vm221_vm2, %v669_v18 }
  0xb4   :  { %8331 = vmatmul.msk.f32.vlgmr.msrb.gmra.mxu0 %vm221_vm2, %v806_v19 }
  0xb8   :  { %8311 = vmatmul.msk.f32.gmra.mxu2 %vm221_vm2, %v520_v20 }
  0xb9   :  { %8328 = vmatmul.msk.f32.gmra.mxu3 %vm221_vm2, %v670_v21  ;;  %v11885_v22 = vpop.f32.mrf.mxu0 }
  0xba   :  { %v11887_v23 = vpop.f32.mrf.mxu1 }
  0xbc   :  { %8332 = vmatmul.msk.f32.gmra.mxu0 %vm221_vm2, %v807_v24  ;;  %v819_v24 = vld [vmem:[#allocation2 + $0x74] sm:$0xff] }
  0xc0   :  { %8312 = vmatmul.msk.f32.gmra.mxu2 %vm221_vm2, %v521_v25 }
  0xc1   :  { %8329 = vmatmul.msk.f32.gmra.mxu3 %vm221_vm2, %v671_v26  ;;  %v11892_v27 = vpop.f32.mrf.mxu0 }
  0xc2   :  { %v11894_v28 = vpop.f32.mrf.mxu1 }
  0xc3   :  { %v11896_v30 = vpop.f32.mrf.mxu2 }
  0xc4   :  { %v11898_v31 = vpop.f32.mrf.mxu3  ;;  %8333 = vmatmul.msk.f32.gmra.mxu0 %vm221_vm2, %v808_v29 }
  0xc9   :  { %v11901_v32 = vpop.f32.mrf.mxu0 }
  0xca   :  { %v11903_v33 = vpop.f32.mrf.mxu1 }
  0xcb   :  { %v11905_v35 = vpop.f32.mrf.mxu2  ;;  %v465_v9 = vadd.f32 %v11903_v33, %v11901_v32  ;;  %v12016_v32 = vld [vmem:[#allocation11] ss:$0 sm:$0xff] }
  0xcc   :  { %v11907_v36 = vpop.f32.mrf.mxu3  ;;  %8334 = vmatmul.msk.f32.gmra.mxu0 %vm221_vm2, %v809_v34 }
  0xd1   :  { %v11910_v37 = vpop.f32.mrf.mxu0 }
  0xd2   :  { %v11912_v38 = vpop.f32.mrf.mxu1 }
  0xd3   :  { %v11914_v40 = vpop.f32.mrf.mxu2 }
  0xd4   :  { %v11916_v41 = vpop.f32.mrf.mxu3  ;;  %8335 = vmatmul.msk.f32.gmra.mxu0 %vm221_vm2, %v810_v39  ;;  %v820_v39 = vld [vmem:[#allocation2 + $0x7c] sm:$0xff] }
  0xd9   :  { %v11919_v42 = vpop.f32.mrf.mxu0 }
  0xda   :  { %v11921_v43 = vpop.f32.mrf.mxu1 }
  0xdb   :  { %v11923_v45 = vpop.f32.mrf.mxu2 }
  0xdc   :  { %v11925_v46 = vpop.f32.mrf.mxu3  ;;  %8336 = vmatmul.msk.f32.gmra.mxu0 %vm221_vm2, %v811_v44  ;;  %v642_v15 = vadd.f32 %v11923_v45, %v465_v9 }
  0xe1   :  { %v11928_v47 = vpop.f32.mrf.mxu0 }
  0xe2   :  { %v11930_v48 = vpop.f32.mrf.mxu1 }
  0xe3   :  { %v11932_v50 = vpop.f32.mrf.mxu2 }
  0xe4   :  { %v11934_v51 = vpop.f32.mrf.mxu3  ;;  %8337 = vmatmul.msk.f32.gmra.mxu0 %vm221_vm2, %v812_v49 }
  0xe9   :  { %v11937_v52 = vpop.f32.mrf.mxu0 }
  0xea   :  { %v11939_v54 = vpop.f32.mrf.mxu1 }
  0xeb   :  { %v11941_v55 = vpop.f32.mrf.mxu2 }
  0xec   :  { %v11943_v56 = vpop.f32.mrf.mxu3  ;;  %8338 = vmatmul.msk.f32.gmra.mxu0 %vm221_vm2, %v813_v53  ;;  %v459_v53 = vadd.f32 %v11887_v23, %v11885_v22  ;;  %v468_v23 = vadd.f32 %v11912_v38, %v11910_v37 }
  0xee   :  { %v640_v0 = vadd.f32 %v11905_v35, %v459_v53  ;;  %v471_v35 = vadd.f32 %v11921_v43, %v11919_v42  ;;  %v643_v33 = vadd.f32 %v11932_v50, %v468_v23  ;;  %v1880_v42 = vld [vmem:[#allocation13 + $0xb8] sm:$0xff] }
  0xef   :  { %1913 = vmatpush.msra.mxu3 %v1880_v42 }
  0xf0   :  { %v644_v43 = vadd.f32 %v11941_v55, %v471_v35  ;;  %v1729_v35 = vld [vmem:[#allocation13 + $0x58] sm:$0xff] }
  0xf1   :  { %v11946_v57 = vpop.f32.mrf.mxu0 }
  0xf2   :  { %v11950_v60 = vpop.f32.mrf.mxu1 }
  0xf3   :  { %v11948_v59 = vpop.f32.mrf.mxu2 }
  0xf4   :  { %8339 = vmatmul.msk.f32.gmra.mxu0 %vm221_vm2, %v814_v58  ;;  %v11953_v61 = vpop.f32.mrf.mxu3 }
  0xf9   :  { %v11955_v63 = vpop.f32.mrf.mxu0 }
  0xfa   :  { %v482_v3 = vpop.f32.mrf.mxu1 }
  0xfb   :  { %v11957_v2 = vpop.f32.mrf.mxu2  ;;  %v483_v37 = vadd.f32 %v482_v3, %v11955_v63  ;;  %v1879_v63 = vld [vmem:[#allocation13 + $0xb0] sm:$0xff]  ;;  %v12031_v3 = vadd.f32 %v11898_v31, %v11896_v30  ;;  %v12043_v30 = vadd.f32 %v11943_v56, %v644_v43  ;;  %v1730_v56 = vld [vmem:[#allocation13 + $0x60] sm:$0xff] }
  0xfc   :  { %8340 = vmatmul.msk.f32.gmra.mxu0 %vm221_vm2, %v815_v1  ;;  %v11960_v5 = vpop.f32.mrf.mxu3  ;;  %v1714_v1 = vld [vmem:[#allocation13 + $0x28] sm:$0xff]  ;;  %1914 = vmatpush.msra.mxu3 %v1879_v63 }
  0xfd   :  { %1833 = vmatpush.msra.mxu2 %v1714_v1  ;;  %v1727_v63 = vld [vmem:[#allocation13 + $0x48] sm:$0xff] }
 0x101   :  { %v11962_v6 = vpop.f32.mrf.mxu0 }
 0x102   :  { %v485_v10 = vpop.f32.mrf.mxu1 }
 0x103   :  { %v11964_v8 = vpop.f32.mrf.mxu2 }
 0x104   :  { %8341 = vmatmul.msk.f32.gmra.mxu0 %vm221_vm2, %v816_v7  ;;  %v11967_v11 = vpop.f32.mrf.mxu3  ;;  %v462_v7 = vadd.f32 %v11894_v28, %v11892_v27  ;;  %v477_v27 = vadd.f32 %v11939_v54, %v11937_v52  ;;  %v1731_v52 = vld [vmem:[#allocation13 + $0x68] sm:$0xff]  ;;  %v486_v54 = vadd.f32 %v485_v10, %v11962_v6 }
 0x105   :  { %1768 = vmatpush.msrb.mxu1 %v1731_v52 }
 0x106   :  { %v641_v22 = vadd.f32 %v11914_v40, %v462_v7 }
 0x107   :  { %1769 = vmatpush.msrb.mxu1 %v1730_v56  ;;  %v1709_v56 = vld [vmem:[#allocation13] sm:$0xff] }
 0x108   :  { %v791_v55 = vadd.f32 %v11916_v41, %v641_v22 }
 0x109   :  { %v372_v12 = vpop.f32.mrf.mxu0  ;;  %1770 = vmatpush.msrb.mxu1 %v1729_v35 }
 0x10a   :  { %v488_v18 = vpop.f32.mrf.mxu1 }
 0x10b   :  { %v616_v14 = vpop.f32.mrf.mxu2 }
 0x10c   :  { %8342 = vmatmul.msk.f32.gmra.mxu0 %vm221_vm2, %v817_v13  ;;  %v11972_v19 = vpop.f32.mrf.mxu3  ;;  %v790_v13 = vadd.f32 %v11907_v36, %v640_v0  ;;  %v480_v36 = vadd.f32 %v11950_v60, %v11946_v57  ;;  %v648_v57 = vadd.f32 %v616_v14, %v483_v37  ;;  %v489_v60 = vadd.f32 %v488_v18, %v372_v12  ;;  %v1878_v14 = vld [vmem:[#allocation13 + $0xa8] sm:$0xff]  ;;  %v1713_v18 = vld [vmem:[#allocation13 + $0x20] sm:$0xff] }
 0x10d   :  { %1915 = vmatpush.msra.mxu3 %v1878_v14  ;;  %1834 = vmatpush.msra.mxu2 %v1713_v18  ;;  %v1877_v0 = vld [vmem:[#allocation13 + $0xa0] sm:$0xff] }
 0x10e   :  { %v647_v50 = vadd.f32 %v11964_v8, %v480_v36  ;;  %v12039_v8 = vadd.f32 %v11934_v51, %v643_v33 }
 0x10f   :  { %1916 = vmatpush.msra.mxu3 %v1877_v0 }
 0x110   :  { %v12052_v51 = vadd.f32 %v11967_v11, %v647_v50 }
 0x111   :  { %v11970_v16 = vpop.f32.mrf.mxu0 }
 0x112   :  { %v491_v25 = vpop.f32.mrf.mxu1 }
 0x113   :  { %v619_v20 = vpop.f32.mrf.mxu2  ;;  %v492_v10 = vadd.f32 %v491_v25, %v11970_v16 }
 0x114   :  { %8343 = vmatmul.msk.f32.gmra.mxu0 %vm221_vm2, %v818_v17  ;;  %v11986_v26 = vpop.f32.mrf.mxu3  ;;  %v474_v17 = vadd.f32 %v11930_v48, %v11928_v47  ;;  %v646_v47 = vadd.f32 %v11957_v2, %v477_v27  ;;  %v649_v6 = vadd.f32 %v619_v20, %v486_v54  ;;  %v12055_v20 = vadd.f32 %v11972_v19, %v648_v57 }
 0x116   :  { %v645_v45 = vadd.f32 %v11948_v59, %v474_v17  ;;  %v12035_v59 = vadd.f32 %v11925_v46, %v642_v15  ;;  %v12049_v41 = vadd.f32 %v11960_v5, %v646_v47  ;;  %v12060_v53 = vadd.f32 %v11986_v26, %v649_v6  ;;  %v1876_v17 = vld [vmem:[#allocation13 + $0x98] sm:$0xff]  ;;  %v1711_v47 = vld [vmem:[#allocation13 + $0x10] sm:$0xff] }
 0x117   :  { %1917 = vmatpush.msra.mxu3 %v1876_v17 }
 0x118   :  { %v12046_v31 = vadd.f32 %v11953_v61, %v645_v45  ;;  %v1728_v45 = vld [vmem:[#allocation13 + $0x50] sm:$0xff] }
 0x119   :  { %v11975_v21 = vpop.f32.mrf.mxu0  ;;  %1771 = vmatpush.msrb.mxu1 %v1728_v45 }
 0x11a   :  { %v494_v44 = vpop.f32.mrf.mxu1 }
 0x11b   :  { %v622_v29 = vpop.f32.mrf.mxu2  ;;  %v495_v16 = vadd.f32 %v494_v44, %v11975_v21  ;;  %1772 = vmatpush.msrb.mxu1 %v1727_v63 }
 0x11c   :  { %8344 = vmatmul.msk.f32.gmra.mxu0 %vm221_vm2, %v819_v24  ;;  %v11991_v49 = vpop.f32.mrf.mxu3  ;;  %v650_v12 = vadd.f32 %v622_v29, %v489_v60 }
 0x11e   :  { %v12063_v11 = vadd.f32 %v11991_v49, %v650_v12  ;;  %v1712_v49 = vld [vmem:[#allocation13 + $0x18] sm:$0xff] }
 0x11f   :  { %1835 = vmatpush.msra.mxu2 %v1712_v49 }
 0x121   :  { %v11988_v34 = vpop.f32.mrf.mxu0  ;;  %1836 = vmatpush.msra.mxu2 %v1711_v47 }
 0x122   :  { %v12014_v28 = vpop.f32.mrf.mxu1 }
 0x123   :  { %v625_v4 = vpop.f32.mrf.mxu2  ;;  %v498_v27 = vadd.f32 %v12014_v28, %v11988_v34 }
 0x124   :  { %8345 = vmatmul.msk.f32.gmra.mxu0 %vm221_vm2, %v820_v39  ;;  %v12022_v38 = vpop.f32.mrf.mxu3  ;;  %v651_v25 = vadd.f32 %v625_v4, %v492_v10 }
 0x126   :  { %v12071_v33 = vadd.f32 %v12022_v38, %v651_v25  ;;  %v1726_v25 = vld [vmem:[#allocation13 + $0x40] sm:$0xff] }
 0x127   :  { %1773 = vmatpush.msrb.mxu1 %v1726_v25 }
 0x129   :  { %v11995_v58 = vpop.f32.mrf.mxu0 }
 0x12a   :  { %v500_v9 = vpop.f32.mrf.mxu1 }
 0x12b   :  { %v628_v2 = vpop.f32.mrf.mxu2  ;;  %v12075_v52 = vadd.f32 %v500_v9, %v11995_v58 }
 0x12c   :  { %8346 = vmatmul.msk.f32.gmra.mxu0 %vm221_vm2, %v821_v62  ;;  %v652_v62 = vadd.f32 %v628_v2, %v495_v16  ;;  %v1874_v2 = vld [vmem:[#allocation13 + $0x88] sm:$0xff] }
 0x131   :  { %v892_v40 = vpop.f32.mrf.mxu0 }
 0x132   :  { %v940_v48 = vadd.f32 %v892_v40, %v790_v13  ;;  %v778_v13 = vpop.f32.mrf.mxu3 }
 0x133   :  { %v12077_v34 = vadd.f32 %v778_v13, %v652_v62  ;;  %v631_v28 = vpop.f32.mrf.mxu2 }
 0x134   :  { %v960_v24 = vadd.f32 %v12016_v32, %v940_v48  ;;  %v1875_v48 = vld [vmem:[#allocation13 + $0x90] sm:$0xff] }
 0x135   :  { %1918 = vmatpush.msra.mxu3 %v1875_v48 }
 0x136   :  { %v976_v46 = vmax.f32 %v960_v24, 0.0 }
 0x137   :  { %1919 = vmatpush.msra.mxu3 %v1874_v2 }
 0x138   :  { %v1008_v29 = vrot.slane %v976_v46, 2  ;;  %v1009_v61 = vrot.slane %v976_v46, 4  ;;  %v1010_v39 = vrot.slane %v976_v46, 6  ;;  %v1105_v5 = vsel %vm1104_vm3, %v976_v46, -inf }
 0x139   :  { %v1106_v19 = vrot.slane %v1105_v5, 4  ;;  %v895_v1 = vpop.f32.mrf.mxu0 }
 0x13a   :  { %v1112_v21 = vsel %vm1104_vm3, %v1008_v29, -inf  ;;  %v1119_v44 = vsel %vm1104_vm3, %v1009_v61, -inf  ;;  %v1126_v4 = vsel %vm1104_vm3, %v1010_v39, -inf  ;;  %v941_v7 = vadd.f32 %v895_v1, %v791_v55  ;;  %v1710_v55 = vld [vmem:[#allocation13 + $0x8] sm:$0xff]  ;;  %v1873_v29 = vld [vmem:[#allocation13 + $0x80] sm:$0xff] }
 0x13b   :  { %v1107_v22 = vmax.f32 %v1105_v5, %v1106_v19  ;;  %v1113_v26 = vrot.slane %v1112_v21, 4  ;;  %v1120_v23 = vrot.slane %v1119_v44, 4  ;;  %v1127_v15 = vrot.slane %v1126_v4, 4  ;;  %1837 = vmatpush.msra.mxu2 %v1710_v55  ;;  %1920 = vmatpush.msra.mxu3 %v1873_v29 }
 0x13c   :  { %v961_v36 = vadd.f32 %v12016_v32, %v941_v7  ;;  %v653_v19 = vadd.f32 %v631_v28, %v498_v27 }
 0x13d   :  { %v1108_v37 = vrot.slane %v1107_v22, 2  ;;  %v1114_v40 = vmax.f32 %v1112_v21, %v1113_v26  ;;  %v1121_v42 = vmax.f32 %v1119_v44, %v1120_v23  ;;  %v1128_v43 = vmax.f32 %v1126_v4, %v1127_v15  ;;  %1838 = vmatpush.msra.mxu2 %v1709_v56  ;;  %v781_v23 = vpop.f32.mrf.mxu3 }
 0x13e   :  { %v977_v38 = vmax.f32 %v961_v36, 0.0  ;;  %v12086_v47 = vadd.f32 %v781_v23, %v653_v19 }
 0x13f   :  { %v1109_v50 = vmax.f32 %v1107_v22, %v1108_v37  ;;  %v1115_v54 = vrot.slane %v1114_v40, 2  ;;  %v1122_v57 = vrot.slane %v1121_v42, 2  ;;  %v1129_v60 = vrot.slane %v1128_v43, 2 }
 0x140   :  { %v1011_v24 = vrot.slane %v977_v38, 2  ;;  %v1012_v6 = vrot.slane %v977_v38, 4  ;;  %v1013_v58 = vrot.slane %v977_v38, 6  ;;  %v1133_v10 = vsel %vm1104_vm3, %v977_v38, -inf }
 0x141   :  { %v1110_v12 = vrot.slane %v1109_v50, 1  ;;  %v1116_v14 = vmax.f32 %v1114_v40, %v1115_v54  ;;  %v1123_v46 = vmax.f32 %v1121_v42, %v1122_v57  ;;  %v1130_v18 = vmax.f32 %v1128_v43, %v1129_v60  ;;  %v898_v16 = vpop.f32.mrf.mxu0  ;;  %v634_v40 = vpop.f32.mrf.mxu2 }
 0x142   :  { %v1134_v61 = vrot.slane %v1133_v10, 4  ;;  %v1140_v39 = vsel %vm1104_vm3, %v1011_v24, -inf  ;;  %v1147_v5 = vsel %vm1104_vm3, %v1012_v6, -inf  ;;  %v1154_v62 = vsel %vm1104_vm3, %v1013_v58, -inf }
 0x143   :  { %v1117_v1 = vrot.slane %v1116_v14, 1  ;;  %v1124_v0 = vrot.slane %v1123_v46, 1  ;;  %v1141_v44 = vrot.slane %v1140_v39, 4  ;;  %v1148_v4 = vrot.slane %v1147_v5, 4 }
 0x144   :  { %v1135_v21 = vmax.f32 %v1133_v10, %v1134_v61  ;;  %v1155_v7 = vrot.slane %v1154_v62, 4  ;;  %v1111_v9 = vmax.f32 %v1109_v50, %v1110_v12  ;;  %v1131_v26 = vrot.slane %v1130_v18, 1 }
 0x145   :  { %v1118_v13 = vmax.f32 %v1116_v14, %v1117_v1  ;;  %v1125_v22 = vmax.f32 %v1123_v46, %v1124_v0  ;;  %v1142_v49 = vmax.f32 %v1140_v39, %v1141_v44  ;;  %v1149_v35 = vmax.f32 %v1147_v5, %v1148_v4 }
 0x146   :  { %v1136_v15 = vrot.slane %v1135_v21, 2  ;;  %v1156_v17 = vmax.f32 %v1154_v62, %v1155_v7  ;;  %v942_v36 = vadd.f32 %v898_v16, %v12035_v59  ;;  %v1132_v48 = vmax.f32 %v1130_v18, %v1131_v26 }
 0x147   :  { %v1622_v27 = vsel %vm1621_vm4, %v1118_v13, %v1111_v9  ;;  %v1143_v43 = vrot.slane %v1142_v49, 2  ;;  %v1150_v45 = vrot.slane %v1149_v35, 2  ;;  %v12092_v55 = vadd.f32 %v634_v40, %v12075_v52 }
 0x148   :  { %v1624_v37 = vsel %vm1623_vm5, %v1125_v22, %v1622_v27  ;;  %v1137_v42 = vmax.f32 %v1135_v21, %v1136_v15  ;;  %v1157_v28 = vrot.slane %v1156_v17, 2  ;;  %v962_v38 = vadd.f32 %v12016_v32, %v942_v36 }
 0x149   :  { %v901_v50 = vpop.f32.mrf.mxu0  ;;  %v1144_v57 = vmax.f32 %v1142_v49, %v1143_v43  ;;  %v1151_v60 = vmax.f32 %v1149_v35, %v1150_v45  ;;  %v1626_v59 = vsel %vm1625_vm6, %v1132_v48, %v1624_v37 }
 0x14a   :  { %v1138_v54 = vrot.slane %v1137_v42, 1  ;;  %v943_v63 = vadd.f32 %v901_v50, %v12039_v8  ;;  %v1158_v2 = vmax.f32 %v1156_v17, %v1157_v28  ;;  %v978_v24 = vmax.f32 %v962_v38, 0.0 }
 0x14b   :  { %v1145_v58 = vrot.slane %v1144_v57, 1  ;;  %v1152_v10 = vrot.slane %v1151_v60, 1 }
 0x14c   :  { %v1139_v6 = vmax.f32 %v1137_v42, %v1138_v54  ;;  %v963_v12 = vadd.f32 %v12016_v32, %v943_v63  ;;  %v1159_v14 = vrot.slane %v1158_v2, 1  ;;  %v1014_v46 = vrot.slane %v978_v24, 2 }
 0x14d   :  { %v1015_v18 = vrot.slane %v978_v24, 4  ;;  %v1016_v16 = vrot.slane %v978_v24, 6  ;;  %v1146_v25 = vmax.f32 %v1144_v57, %v1145_v58  ;;  %v1153_v56 = vmax.f32 %v1151_v60, %v1152_v10 }
 0x14e   :  { %v1628_v8 = vsel %vm1627_vm7, %v1139_v6, %v1626_v59  ;;  %v1161_v29 = vsel %vm1104_vm3, %v978_v24, -inf  ;;  %v1160_v61 = vmax.f32 %v1158_v2, %v1159_v14  ;;  %v1168_v39 = vsel %vm1104_vm3, %v1014_v46, -inf }
 0x14f   :  { %v1162_v52 = vrot.slane %v1161_v29, 4  ;;  %v1175_v5 = vsel %vm1104_vm3, %v1015_v18, -inf  ;;  %v1630_v62 = vsel %vm1629_vm8, %v1146_v25, %v1628_v8  ;;  %v1169_v19 = vrot.slane %v1168_v39, 4 }
 0x150   :  { %v1176_v1 = vrot.slane %v1175_v5, 4  ;;  %v1182_v0 = vsel %vm1104_vm3, %v1016_v16, -inf  ;;  %v1632_v21 = vsel %vm1631_vm9, %v1153_v56, %v1630_v62  ;;  %v979_v7 = vmax.f32 %v963_v12, 0.0 }
 0x151   :  { %v1163_v44 = vmax.f32 %v1161_v29, %v1162_v52  ;;  %v1183_v4 = vrot.slane %v1182_v0, 4  ;;  %v904_v9 = vpop.f32.mrf.mxu0  ;;  %v1634_v13 = vsel %vm1633_vm10, %v1160_v61, %v1632_v21  ;;  %v1170_v22 = vmax.f32 %v1168_v39, %v1169_v19 }
 0x152   :  { %v1177_v26 = vmax.f32 %v1175_v5, %v1176_v1  ;;  %v944_v23 = vadd.f32 %v904_v9, %v12043_v30  ;;  %1693 = vst.msk [vmem:[#allocation3 + $0x2] sm:$0xff] %vm1692_vm11, %v1634_v13  ;;  %v1017_v35 = vrot.slane %v979_v7, 2  ;;  %v1018_v17 = vrot.slane %v979_v7, 4 }
 0x153   :  { %v1164_v15 = vrot.slane %v1163_v44, 2  ;;  %v1184_v49 = vmax.f32 %v1182_v0, %v1183_v4  ;;  %v1171_v27 = vrot.slane %v1170_v22, 2  ;;  %v1019_v37 = vrot.slane %v979_v7, 6 }
 0x154   :  { %v1178_v36 = vrot.slane %v1177_v26, 2  ;;  %v1189_v40 = vsel %vm1104_vm3, %v979_v7, -inf  ;;  %v1196_v48 = vsel %vm1104_vm3, %v1017_v35, -inf  ;;  %v1203_v30 = vsel %vm1104_vm3, %v1018_v17, -inf }
 0x155   :  { %v1165_v42 = vmax.f32 %v1163_v44, %v1164_v15  ;;  %v1185_v43 = vrot.slane %v1184_v49, 2  ;;  %v1190_v45 = vrot.slane %v1189_v40, 4  ;;  %v1172_v28 = vmax.f32 %v1170_v22, %v1171_v27 }
 0x156   :  { %v1179_v38 = vmax.f32 %v1177_v26, %v1178_v36  ;;  %v1197_v50 = vrot.slane %v1196_v48, 4  ;;  %v1204_v63 = vrot.slane %v1203_v30, 4  ;;  %v1210_v6 = vsel %vm1104_vm3, %v1019_v37, -inf }
 0x157   :  { %v1166_v54 = vrot.slane %v1165_v42, 1  ;;  %v1186_v57 = vmax.f32 %v1184_v49, %v1185_v43  ;;  %v1191_v60 = vmax.f32 %v1189_v40, %v1190_v45  ;;  %v1173_v59 = vrot.slane %v1172_v28, 1 }
 0x158   :  { %v1180_v2 = vrot.slane %v1179_v38, 1  ;;  %v1198_v24 = vmax.f32 %v1196_v48, %v1197_v50  ;;  %v1205_v14 = vmax.f32 %v1203_v30, %v1204_v63  ;;  %v1211_v56 = vrot.slane %v1210_v6, 4 }
 0x159   :  { %v1167_v58 = vmax.f32 %v1165_v42, %v1166_v54  ;;  %v1187_v10 = vrot.slane %v1186_v57, 1  ;;  %v1192_v12 = vrot.slane %v1191_v60, 2  ;;  %v907_v46 = vpop.f32.mrf.mxu0  ;;  %v1174_v18 = vmax.f32 %v1172_v28, %v1173_v59  ;;  %v1717_v8 = vld [vmem:[#allocation3 + $0x1] sm:$0xff]  ;;  %v637_v28 = vpop.f32.mrf.mxu2 }
 0x15a   :  { %v1181_v16 = vmax.f32 %v1179_v38, %v1180_v2  ;;  %v1199_v25 = vrot.slane %v1198_v24, 2  ;;  %v1701_v29 = vld [vmem:[#allocation3] sm:$0xff]  ;;  %v1206_v5 = vrot.slane %v1205_v14, 2  ;;  %v964_v62 = vadd.f32 %v12016_v32, %v944_v23  ;;  %8347 = vmatmul.msk.f32.vlgmr.msrb.gmra.mxu1 %vm1692_vm11, %v1717_v8 }
 0x15b   :  { %v1864_v61 = vld [vmem:[#allocation3 + $0x2] sm:$0xff]  ;;  %v1188_v52 = vmax.f32 %v1186_v57, %v1187_v10  ;;  %v1193_v39 = vmax.f32 %v1191_v60, %v1192_v12  ;;  %8355 = vmatmul.msk.f32.vlgmr.msra.gmra.mxu2 %vm1692_vm11, %v1701_v29  ;;  %v1635_v19 = vsel %vm1621_vm4, %v1174_v18, %v1167_v58  ;;  %v1212_v0 = vmax.f32 %v1210_v6, %v1211_v56 }
 0x15c   :  { %v1200_v1 = vmax.f32 %v1198_v24, %v1199_v25  ;;  %v945_v21 = vadd.f32 %v907_v46, %v12046_v31  ;;  %8363 = vmatmul.msk.f32.vlgmr.msra.gmra.mxu3 %vm1692_vm11, %v1864_v61  ;;  %v1636_v44 = vsel %vm1623_vm5, %v1181_v16, %v1635_v19  ;;  %v1207_v7 = vmax.f32 %v1205_v14, %v1206_v5 }
 0x15d   :  { %v1194_v4 = vrot.slane %v1193_v39, 1  ;;  %v980_v9 = vmax.f32 %v964_v62, 0.0  ;;  %v1637_v13 = vsel %vm1625_vm6, %v1188_v52, %v1636_v44  ;;  %v1213_v26 = vrot.slane %v1212_v0, 2 }
 0x15e   :  { %v1201_v22 = vrot.slane %v1200_v1, 1  ;;  %v965_v23 = vadd.f32 %v12016_v32, %v945_v21  ;;  %v1208_v49 = vrot.slane %v1207_v7, 1  ;;  %v12126_v10 = vadd.f32 %v637_v28, %v12031_v3 }
 0x15f   :  { %v1195_v15 = vmax.f32 %v1193_v39, %v1194_v4  ;;  %v1020_v35 = vrot.slane %v980_v9, 2  ;;  %v1021_v17 = vrot.slane %v980_v9, 4  ;;  %v1214_v36 = vmax.f32 %v1212_v0, %v1213_v26 }
 0x160   :  { %v1202_v27 = vmax.f32 %v1200_v1, %v1201_v22  ;;  %v1022_v31 = vrot.slane %v980_v9, 6  ;;  %v1217_v37 = vsel %vm1104_vm3, %v980_v9, -inf  ;;  %v1209_v40 = vmax.f32 %v1207_v7, %v1208_v49 }
 0x161   :  { %v1638_v42 = vsel %vm1627_vm7, %v1195_v15, %v1637_v13  ;;  %v1218_v43 = vrot.slane %v1217_v37, 4  ;;  %v1224_v45 = vsel %vm1104_vm3, %v1020_v35, -inf  ;;  %v910_v48 = vpop.f32.mrf.mxu0  ;;  %v1215_v38 = vrot.slane %v1214_v36, 1 }
 0x162   :  { %v1639_v50 = vsel %vm1629_vm8, %v1202_v27, %v1638_v42  ;;  %v1225_v30 = vrot.slane %v1224_v45, 4  ;;  %v1231_v54 = vsel %vm1104_vm3, %v1021_v17, -inf  ;;  %v1238_v59 = vsel %vm1104_vm3, %v1022_v31, -inf  ;;  %v784_v27 = vpop.f32.mrf.mxu3 }
 0x163   :  { %v1640_v57 = vsel %vm1631_vm9, %v1209_v40, %v1639_v50  ;;  %v1219_v60 = vmax.f32 %v1217_v37, %v1218_v43  ;;  %v1232_v63 = vrot.slane %v1231_v54, 4  ;;  %v1216_v2 = vmax.f32 %v1214_v36, %v1215_v38 }
 0x164   :  { %v1226_v24 = vmax.f32 %v1224_v45, %v1225_v30  ;;  %v1239_v6 = vrot.slane %v1238_v59, 4  ;;  %v981_v58 = vmax.f32 %v965_v23, 0.0  ;;  %v946_v46 = vadd.f32 %v910_v48, %v12049_v41 }
 0x165   :  { %v1220_v12 = vrot.slane %v1219_v60, 2  ;;  %v1233_v14 = vmax.f32 %v1231_v54, %v1232_v63  ;;  %v1641_v18 = vsel %vm1633_vm10, %v1216_v2, %v1640_v57 }
 0x166   :  { %v1227_v16 = vrot.slane %v1226_v24, 2  ;;  %v1240_v25 = vmax.f32 %v1238_v59, %v1239_v6  ;;  %v1023_v56 = vrot.slane %v981_v58, 2  ;;  %1694 = vst.msk [vmem:[#allocation3 + $0xa] sm:$0xff] %vm1692_vm11, %v1641_v18  ;;  %v1024_v61 = vrot.slane %v981_v58, 4 }
 0x167   :  { %v1221_v8 = vmax.f32 %v1219_v60, %v1220_v12  ;;  %v1234_v29 = vrot.slane %v1233_v14, 2  ;;  %v1025_v52 = vrot.slane %v981_v58, 6  ;;  %v1245_v3 = vsel %vm1104_vm3, %v981_v58, -inf }
 0x168   :  { %v1228_v39 = vmax.f32 %v1226_v24, %v1227_v16  ;;  %v1241_v5 = vrot.slane %v1240_v25, 2  ;;  %v1252_v62 = vsel %vm1104_vm3, %v1023_v56, -inf  ;;  %v1246_v41 = vrot.slane %v1245_v3, 4 }
 0x169   :  { %v1222_v19 = vrot.slane %v1221_v8, 1  ;;  %v1235_v1 = vmax.f32 %v1233_v14, %v1234_v29  ;;  %v1253_v0 = vrot.slane %v1252_v62, 4  ;;  %v913_v21 = vpop.f32.mrf.mxu0  ;;  %v1259_v7 = vsel %vm1104_vm3, %v1024_v61, -inf }
 0x16a   :  { %v1229_v44 = vrot.slane %v1228_v39, 1  ;;  %v1242_v4 = vmax.f32 %v1240_v25, %v1241_v5  ;;  %v1266_v9 = vsel %vm1104_vm3, %v1025_v52, -inf  ;;  %v1247_v26 = vmax.f32 %v1245_v3, %v1246_v41 }
 0x16b   :  { %v1223_v13 = vmax.f32 %v1221_v8, %v1222_v19  ;;  %v1236_v22 = vrot.slane %v1235_v1, 1  ;;  %v1254_v23 = vmax.f32 %v1252_v62, %v1253_v0  ;;  %v1260_v35 = vrot.slane %v1259_v7, 4 }
 0x16c   :  { %v1230_v15 = vmax.f32 %v1228_v39, %v1229_v44  ;;  %v1243_v49 = vrot.slane %v1242_v4, 1  ;;  %v1267_v17 = vrot.slane %v1266_v9, 4  ;;  %v1248_v31 = vrot.slane %v1247_v26, 2 }
 0x16d   :  { %v1237_v36 = vmax.f32 %v1235_v1, %v1236_v22  ;;  %v1255_v37 = vrot.slane %v1254_v23, 2  ;;  %v966_v40 = vadd.f32 %v12016_v32, %v946_v46  ;;  %v1261_v45 = vmax.f32 %v1259_v7, %v1260_v35  ;;  %v1718_v28 = vld [vmem:[#allocation3 + $0x9] sm:$0xff]  ;;  %v787_v7 = vpop.f32.mrf.mxu3 }
 0x16e   :  { %v1244_v42 = vmax.f32 %v1242_v4, %v1243_v49  ;;  %v1642_v43 = vsel %vm1621_vm4, %v1230_v15, %v1223_v13  ;;  %v1268_v48 = vmax.f32 %v1266_v9, %v1267_v17  ;;  %v1702_v38 = vld [vmem:[#allocation3 + $0x8] sm:$0xff]  ;;  %v1249_v54 = vmax.f32 %v1247_v26, %v1248_v31  ;;  %8348 = vmatmul.msk.f32.gmra.mxu1 %vm1692_vm11, %v1718_v28 }
 0x16f   :  { %v1865_v50 = vld [vmem:[#allocation3 + $0xa] sm:$0xff]  ;;  %v1643_v30 = vsel %vm1623_vm5, %v1237_v36, %v1642_v43  ;;  %v1256_v57 = vmax.f32 %v1254_v23, %v1255_v37  ;;  %v982_v60 = vmax.f32 %v966_v40, 0.0  ;;  %8356 = vmatmul.msk.f32.gmra.mxu2 %vm1692_vm11, %v1702_v38  ;;  %v1262_v59 = vrot.slane %v1261_v45, 2 }
 0x170   :  { %v1644_v63 = vsel %vm1625_vm6, %v1244_v42, %v1643_v30  ;;  %v1269_v2 = vrot.slane %v1268_v48, 2  ;;  %v947_v24 = vadd.f32 %v913_v21, %v12052_v51  ;;  %8364 = vmatmul.msk.f32.gmra.mxu3 %vm1692_vm11, %v1865_v50  ;;  %v1250_v6 = vrot.slane %v1249_v54, 1 }
 0x171   :  { %v1257_v58 = vrot.slane %v1256_v57, 1  ;;  %v1026_v12 = vrot.slane %v982_v60, 2  ;;  %v1027_v14 = vrot.slane %v982_v60, 4  ;;  %v916_v46 = vpop.f32.mrf.mxu0  ;;  %v1263_v18 = vmax.f32 %v1261_v45, %v1262_v59 }
 0x172   :  { %v1270_v16 = vmax.f32 %v1268_v48, %v1269_v2  ;;  %v1028_v25 = vrot.slane %v982_v60, 6  ;;  %v1273_v56 = vsel %vm1104_vm3, %v982_v60, -inf  ;;  %v1251_v8 = vmax.f32 %v1249_v54, %v1250_v6 }
 0x173   :  { %v1258_v29 = vmax.f32 %v1256_v57, %v1257_v58  ;;  %v1274_v61 = vrot.slane %v1273_v56, 4  ;;  %v1280_v52 = vsel %vm1104_vm3, %v1026_v12, -inf  ;;  %v1264_v39 = vrot.slane %v1263_v18, 1 }
 0x174   :  { %v1271_v5 = vrot.slane %v1270_v16, 1  ;;  %v1281_v51 = vrot.slane %v1280_v52, 4  ;;  %v1287_v3 = vsel %vm1104_vm3, %v1027_v14, -inf  ;;  %v1645_v62 = vsel %vm1627_vm7, %v1251_v8, %v1644_v63 }
 0x175   :  { %v1275_v19 = vmax.f32 %v1273_v56, %v1274_v61  ;;  %v1288_v1 = vrot.slane %v1287_v3, 4  ;;  %v1294_v41 = vsel %vm1104_vm3, %v1028_v25, -inf  ;;  %v1265_v0 = vmax.f32 %v1263_v18, %v1264_v39 }
 0x176   :  { %v1272_v21 = vmax.f32 %v1270_v16, %v1271_v5  ;;  %v1646_v44 = vsel %vm1629_vm8, %v1258_v29, %v1645_v62  ;;  %v1282_v4 = vmax.f32 %v1280_v52, %v1281_v51  ;;  %v1295_v22 = vrot.slane %v1294_v41, 4 }
 0x177   :  { %v1276_v9 = vrot.slane %v1275_v19, 2  ;;  %v1289_v13 = vmax.f32 %v1287_v3, %v1288_v1  ;;  %v967_v26 = vadd.f32 %v12016_v32, %v947_v24  ;;  %v12151_v23 = vadd.f32 %v784_v27, %v12092_v55 }
 0x178   :  { %v1647_v15 = vsel %vm1631_vm9, %v1265_v0, %v1646_v44  ;;  %v1283_v49 = vrot.slane %v1282_v4, 2  ;;  %v948_v35 = vadd.f32 %v916_v46, %v12055_v20  ;;  %v1296_v37 = vmax.f32 %v1294_v41, %v1295_v22 }
 0x179   :  { %v1648_v17 = vsel %vm1633_vm10, %v1272_v21, %v1647_v15  ;;  %v1277_v36 = vmax.f32 %v1275_v19, %v1276_v9  ;;  %v1290_v31 = vrot.slane %v1289_v13, 2  ;;  %v919_v40 = vpop.f32.mrf.mxu0  ;;  %v12157_v42 = vadd.f32 %v787_v7, %v12126_v10 }
 0x17a   :  { %1695 = vst.msk [vmem:[#allocation3 + $0x12] sm:$0xff] %vm1692_vm11, %v1648_v17  ;;  %v1284_v43 = vmax.f32 %v1282_v4, %v1283_v49  ;;  %v983_v45 = vmax.f32 %v967_v26, 0.0  ;;  %v968_v55 = vadd.f32 %v12016_v32, %v948_v35  ;;  %v1297_v28 = vrot.slane %v1296_v37, 2 }
 0x17b   :  { %v1278_v27 = vrot.slane %v1277_v36, 1  ;;  %v1291_v48 = vmax.f32 %v1289_v13, %v1290_v31  ;;  %v12162_v20 = vadd.f32 %v919_v40, %v12060_v53 }
 0x17c   :  { %v1285_v38 = vrot.slane %v1284_v43, 1  ;;  %v1029_v50 = vrot.slane %v983_v45, 2  ;;  %v1030_v30 = vrot.slane %v983_v45, 4  ;;  %v1031_v54 = vrot.slane %v983_v45, 6 }
 0x17d   :  { %v1279_v57 = vmax.f32 %v1277_v36, %v1278_v27  ;;  %v1292_v60 = vrot.slane %v1291_v48, 1  ;;  %v1298_v10 = vmax.f32 %v1296_v37, %v1297_v28  ;;  %v1301_v63 = vsel %vm1104_vm3, %v983_v45, -inf }
 0x17e   :  { %v1286_v59 = vmax.f32 %v1284_v43, %v1285_v38  ;;  %v1302_v2 = vrot.slane %v1301_v63, 4  ;;  %v1308_v24 = vsel %vm1104_vm3, %v1029_v50, -inf  ;;  %v1315_v6 = vsel %vm1104_vm3, %v1030_v30, -inf }
 0x17f   :  { %v1293_v58 = vmax.f32 %v1291_v48, %v1292_v60  ;;  %v1299_v12 = vrot.slane %v1298_v10, 1  ;;  %v1309_v14 = vrot.slane %v1308_v24, 4  ;;  %v1316_v53 = vrot.slane %v1315_v6, 4 }
 0x180   :  { %v1649_v46 = vsel %vm1621_vm4, %v1286_v59, %v1279_v57  ;;  %v1303_v18 = vmax.f32 %v1301_v63, %v1302_v2  ;;  %v1322_v16 = vsel %vm1104_vm3, %v1031_v54, -inf  ;;  %v984_v25 = vmax.f32 %v968_v55, 0.0 }
 0x181   :  { %v1300_v56 = vmax.f32 %v1298_v10, %v1299_v12  ;;  %v1650_v8 = vsel %vm1623_vm5, %v1293_v58, %v1649_v46  ;;  %v1310_v29 = vmax.f32 %v1308_v24, %v1309_v14  ;;  %v1317_v61 = vmax.f32 %v1315_v6, %v1316_v53  ;;  %v1719_v52 = vld [vmem:[#allocation3 + $0x11] sm:$0xff]  ;;  %v922_v51 = vpop.f32.mrf.mxu0 }
 0x182   :  { %v1703_v39 = vld [vmem:[#allocation3 + $0x10] sm:$0xff]  ;;  %v1304_v3 = vrot.slane %v1303_v18, 2  ;;  %v1323_v62 = vrot.slane %v1322_v16, 4  ;;  %v1032_v19 = vrot.slane %v984_v25, 2  ;;  %v1033_v1 = vrot.slane %v984_v25, 4  ;;  %8349 = vmatmul.msk.f32.gmra.mxu1 %vm1692_vm11, %v1719_v52 }
 0x183   :  { %v1866_v5 = vld [vmem:[#allocation3 + $0x12] sm:$0xff]  ;;  %8357 = vmatmul.msk.f32.gmra.mxu2 %vm1692_vm11, %v1703_v39  ;;  %v1651_v41 = vsel %vm1625_vm6, %v1300_v56, %v1650_v8  ;;  %v1311_v0 = vrot.slane %v1310_v29, 2  ;;  %v1318_v21 = vrot.slane %v1317_v61, 2  ;;  %v1034_v44 = vrot.slane %v984_v25, 6 }
 0x184   :  { %8365 = vmatmul.msk.f32.gmra.mxu3 %vm1692_vm11, %v1866_v5  ;;  %v1305_v4 = vmax.f32 %v1303_v18, %v1304_v3  ;;  %v1324_v7 = vmax.f32 %v1322_v16, %v1323_v62  ;;  %v1329_v9 = vsel %vm1104_vm3, %v984_v25, -inf  ;;  %v1336_v13 = vsel %vm1104_vm3, %v1032_v19, -inf }
 0x185   :  { %v1312_v22 = vmax.f32 %v1310_v29, %v1311_v0  ;;  %v1319_v26 = vmax.f32 %v1317_v61, %v1318_v21  ;;  %v1330_v15 = vrot.slane %v1329_v9, 4  ;;  %v1337_v49 = vrot.slane %v1336_v13, 4 }
 0x186   :  { %v1306_v35 = vrot.slane %v1305_v4, 1  ;;  %v1325_v17 = vrot.slane %v1324_v7, 2  ;;  %v1343_v36 = vsel %vm1104_vm3, %v1033_v1, -inf  ;;  %v1350_v31 = vsel %vm1104_vm3, %v1034_v44, -inf }
 0x187   :  { %v1313_v37 = vrot.slane %v1312_v22, 1  ;;  %v1320_v40 = vrot.slane %v1319_v26, 1  ;;  %v1331_v43 = vmax.f32 %v1329_v9, %v1330_v15  ;;  %v1338_v45 = vmax.f32 %v1336_v13, %v1337_v49 }
 0x188   :  { %v1307_v55 = vmax.f32 %v1305_v4, %v1306_v35  ;;  %v1326_v27 = vmax.f32 %v1324_v7, %v1325_v17  ;;  %v1344_v48 = vrot.slane %v1343_v36, 4  ;;  %v1351_v28 = vrot.slane %v1350_v31, 4 }
 0x189   :  { %v1314_v38 = vmax.f32 %v1312_v22, %v1313_v37  ;;  %v1321_v50 = vmax.f32 %v1319_v26, %v1320_v40  ;;  %v1332_v30 = vrot.slane %v1331_v43, 2  ;;  %v1339_v54 = vrot.slane %v1338_v45, 2  ;;  %v925_v57 = vpop.f32.mrf.mxu0 }
 0x18a   :  { %v1327_v60 = vrot.slane %v1326_v27, 1  ;;  %v1652_v10 = vsel %vm1627_vm7, %v1307_v55, %v1651_v41  ;;  %v1345_v63 = vmax.f32 %v1343_v36, %v1344_v48  ;;  %v1352_v59 = vmax.f32 %v1350_v31, %v1351_v28 }
 0x18b   :  { %v1653_v2 = vsel %vm1629_vm8, %v1314_v38, %v1652_v10  ;;  %v1333_v24 = vmax.f32 %v1331_v43, %v1332_v30  ;;  %v1340_v6 = vmax.f32 %v1338_v45, %v1339_v54  ;;  %v969_v58 = vadd.f32 %v12016_v32, %v12162_v20 }
 0x18c   :  { %v1328_v12 = vmax.f32 %v1326_v27, %v1327_v60  ;;  %v1654_v14 = vsel %vm1631_vm9, %v1321_v50, %v1653_v2  ;;  %v1346_v53 = vrot.slane %v1345_v63, 2  ;;  %v1353_v46 = vrot.slane %v1352_v59, 2 }
 0x18d   :  { %v1334_v18 = vrot.slane %v1333_v24, 1  ;;  %v1341_v16 = vrot.slane %v1340_v6, 1  ;;  %v985_v25 = vmax.f32 %v969_v58, 0.0  ;;  %v950_v56 = vadd.f32 %v922_v51, %v12063_v11 }
 0x18e   :  { %v1655_v8 = vsel %vm1633_vm10, %v1328_v12, %v1654_v14  ;;  %v1347_v29 = vmax.f32 %v1345_v63, %v1346_v53  ;;  %v1354_v61 = vmax.f32 %v1352_v59, %v1353_v46  ;;  %v951_v52 = vadd.f32 %v925_v57, %v12071_v33 }
 0x18f   :  { %1696 = vst.msk [vmem:[#allocation3 + $0x1a] sm:$0xff] %vm1692_vm11, %v1655_v8  ;;  %v1335_v39 = vmax.f32 %v1333_v24, %v1334_v18  ;;  %v1342_v20 = vmax.f32 %v1340_v6, %v1341_v16  ;;  %v1035_v5 = vrot.slane %v985_v25, 2  ;;  %v1036_v3 = vrot.slane %v985_v25, 4 }
 0x190   :  { %v1348_v62 = vrot.slane %v1347_v29, 1  ;;  %v1355_v19 = vrot.slane %v1354_v61, 1  ;;  %v1037_v1 = vrot.slane %v985_v25, 6  ;;  %v1357_v41 = vsel %vm1104_vm3, %v985_v25, -inf }
 0x191   :  { %v1656_v0 = vsel %vm1621_vm4, %v1342_v20, %v1335_v39  ;;  %v1358_v11 = vrot.slane %v1357_v41, 4  ;;  %v1364_v51 = vsel %vm1104_vm3, %v1035_v5, -inf  ;;  %v1371_v21 = vsel %vm1104_vm3, %v1036_v3, -inf  ;;  %v928_v44 = vpop.f32.mrf.mxu0  ;;  %v2060_v39 = vld [vmem:[#allocation13 + $0x138] sm:$0xff] }
 0x192   :  { %v1349_v33 = vmax.f32 %v1347_v29, %v1348_v62  ;;  %v1356_v4 = vmax.f32 %v1354_v61, %v1355_v19  ;;  %v1365_v7 = vrot.slane %v1364_v51, 4  ;;  %v1372_v9 = vrot.slane %v1371_v21, 4  ;;  %v1970_v20 = vld [vmem:[#allocation13 + $0xf8] sm:$0xff]  ;;  %2093 = vmatpush.msrb.mxu2 %v2060_v39 }
 0x193   :  { %v1359_v13 = vmax.f32 %v1357_v41, %v1358_v11  ;;  %v1378_v22 = vsel %vm1104_vm3, %v1037_v1, -inf  ;;  %v970_v26 = vadd.f32 %v12016_v32, %v950_v56  ;;  %v971_v15 = vadd.f32 %v12016_v32, %v951_v52  ;;  %2003 = vmatpush.msra.mxu1 %v1970_v20 }
 0x194   :  { %v1657_v49 = vsel %vm1623_vm5, %v1349_v33, %v1656_v0  ;;  %v1366_v35 = vmax.f32 %v1364_v51, %v1365_v7  ;;  %v1373_v17 = vmax.f32 %v1371_v21, %v1372_v9  ;;  %v1379_v36 = vrot.slane %v1378_v22, 4 }
 0x195   :  { %v1658_v31 = vsel %vm1625_vm6, %v1356_v4, %v1657_v49  ;;  %v1360_v37 = vrot.slane %v1359_v13, 2  ;;  %v986_v40 = vmax.f32 %v970_v26, 0.0  ;;  %v12196_v43 = vmax.f32 %v971_v15, 0.0 }
 0x196   :  { %v1367_v45 = vrot.slane %v1366_v35, 2  ;;  %v1374_v55 = vrot.slane %v1373_v17, 2  ;;  %v1380_v27 = vmax.f32 %v1378_v22, %v1379_v36  ;;  %v1720_v48 = vld [vmem:[#allocation3 + $0x19] sm:$0xff]  ;;  %v12199_v50 = vadd.f32 %v928_v44, %v12077_v34 }
 0x197   :  { %v1704_v28 = vld [vmem:[#allocation3 + $0x18] sm:$0xff]  ;;  %v1361_v32 = vmax.f32 %v1359_v13, %v1360_v37  ;;  %v1038_v30 = vrot.slane %v986_v40, 2  ;;  %v1039_v54 = vrot.slane %v986_v40, 4  ;;  %v1040_v57 = vrot.slane %v986_v40, 6  ;;  %8350 = vmatmul.msk.f32.gmra.mxu1 %vm1692_vm11, %v1720_v48 }
 0x198   :  { %v1867_v38 = vld [vmem:[#allocation3 + $0x1a] sm:$0xff]  ;;  %8358 = vmatmul.msk.f32.gmra.mxu2 %vm1692_vm11, %v1704_v28  ;;  %v1368_v60 = vmax.f32 %v1366_v35, %v1367_v45  ;;  %v1375_v10 = vmax.f32 %v1373_v17, %v1374_v55  ;;  %v1381_v63 = vrot.slane %v1380_v27, 2  ;;  %v1385_v59 = vsel %vm1104_vm3, %v986_v40, -inf }
 0x199   :  { %8366 = vmatmul.msk.f32.gmra.mxu3 %vm1692_vm11, %v1867_v38  ;;  %v1362_v2 = vrot.slane %v1361_v32, 1  ;;  %v1386_v24 = vrot.slane %v1385_v59, 4  ;;  %v1392_v34 = vsel %vm1104_vm3, %v1038_v30, -inf  ;;  %v1399_v6 = vsel %vm1104_vm3, %v1039_v54, -inf  ;;  %v931_v56 = vpop.f32.mrf.mxu0 }
 0x19a   :  { %v1369_v58 = vrot.slane %v1368_v60, 1  ;;  %v1376_v12 = vrot.slane %v1375_v10, 1  ;;  %v1382_v14 = vmax.f32 %v1380_v27, %v1381_v63  ;;  %v1393_v53 = vrot.slane %v1392_v34, 4 }
 0x19b   :  { %v1363_v46 = vmax.f32 %v1361_v32, %v1362_v2  ;;  %v1387_v18 = vmax.f32 %v1385_v59, %v1386_v24  ;;  %v1400_v16 = vrot.slane %v1399_v6, 4  ;;  %v1406_v25 = vsel %vm1104_vm3, %v1040_v57, -inf  ;;  %v12222_v59 = vld [vmem:[#allocation11] ss:$0 sm:$0xff] }
 0x19c   :  { %v1370_v8 = vmax.f32 %v1368_v60, %v1369_v58  ;;  %v1377_v29 = vmax.f32 %v1375_v10, %v1376_v12  ;;  %v1383_v61 = vrot.slane %v1382_v14, 1  ;;  %v1394_v52 = vmax.f32 %v1392_v34, %v1393_v53 }
 0x19d   :  { %v1659_v5 = vsel %vm1627_vm7, %v1363_v46, %v1658_v31  ;;  %v1388_v3 = vrot.slane %v1387_v18, 2  ;;  %v1401_v62 = vmax.f32 %v1399_v6, %v1400_v16  ;;  %v1407_v19 = vrot.slane %v1406_v25, 4 }
 0x19e   :  { %v1384_v1 = vmax.f32 %v1382_v14, %v1383_v61  ;;  %v1660_v41 = vsel %vm1629_vm8, %v1370_v8, %v1659_v5  ;;  %v1395_v0 = vrot.slane %v1394_v52, 2  ;;  %v1041_v11 = vrot.slane %v12196_v43, 2 }
 0x19f   :  { %v1661_v51 = vsel %vm1631_vm9, %v1377_v29, %v1660_v41  ;;  %v1389_v21 = vmax.f32 %v1387_v18, %v1388_v3  ;;  %v1402_v44 = vrot.slane %v1401_v62, 2  ;;  %v1408_v33 = vmax.f32 %v1406_v25, %v1407_v19 }
 0x1a0   :  { %v1662_v4 = vsel %vm1633_vm10, %v1384_v1, %v1661_v51  ;;  %v1396_v7 = vmax.f32 %v1394_v52, %v1395_v0  ;;  %v1042_v9 = vrot.slane %v12196_v43, 4  ;;  %v1043_v13 = vrot.slane %v12196_v43, 6  ;;  %v1969_v52 = vld [vmem:[#allocation13 + $0xf0] sm:$0xff] }
 0x1a1   :  { %1697 = vst.msk [vmem:[#allocation3 + $0x2a] sm:$0xff] %vm1692_vm11, %v1662_v4  ;;  %v1390_v22 = vrot.slane %v1389_v21, 1  ;;  %v1403_v26 = vmax.f32 %v1401_v62, %v1402_v44  ;;  %v1409_v15 = vrot.slane %v1408_v33, 2  ;;  %v1413_v49 = vsel %vm1104_vm3, %v12196_v43, -inf  ;;  %v934_v43 = vpop.f32.mrf.mxu0  ;;  %2004 = vmatpush.msra.mxu1 %v1969_v52 }
 0x1a2   :  { %v1397_v35 = vrot.slane %v1396_v7, 1  ;;  %v1414_v17 = vrot.slane %v1413_v49, 4  ;;  %v1420_v36 = vsel %vm1104_vm3, %v1041_v11, -inf  ;;  %v1427_v31 = vsel %vm1104_vm3, %v1042_v9, -inf }
 0x1a3   :  { %v1391_v37 = vmax.f32 %v1389_v21, %v1390_v22  ;;  %v1404_v40 = vrot.slane %v1403_v26, 1  ;;  %v1410_v45 = vmax.f32 %v1408_v33, %v1409_v15  ;;  %v1421_v55 = vrot.slane %v1420_v36, 4  ;;  %v2058_v22 = vld [vmem:[#allocation13 + $0x128] sm:$0xff] }
 0x1a4   :  { %v1398_v27 = vmax.f32 %v1396_v7, %v1397_v35  ;;  %v1415_v48 = vmax.f32 %v1413_v49, %v1414_v17  ;;  %v1428_v28 = vrot.slane %v1427_v31, 4  ;;  %v1434_v38 = vsel %vm1104_vm3, %v1043_v13, -inf }
 0x1a5   :  { %v1405_v32 = vmax.f32 %v1403_v26, %v1404_v40  ;;  %v1411_v30 = vrot.slane %v1410_v45, 1  ;;  %v1422_v54 = vmax.f32 %v1420_v36, %v1421_v55  ;;  %v1435_v57 = vrot.slane %v1434_v38, 4  ;;  %v1968_v26 = vld [vmem:[#allocation13 + $0xe8] sm:$0xff] }
 0x1a6   :  { %v1663_v60 = vsel %vm1621_vm4, %v1398_v27, %v1391_v37  ;;  %v1416_v10 = vrot.slane %v1415_v48, 2  ;;  %v1429_v63 = vmax.f32 %v1427_v31, %v1428_v28  ;;  %v972_v2 = vadd.f32 %v12222_v59, %v12199_v50  ;;  %v2059_v50 = vld [vmem:[#allocation13 + $0x130] sm:$0xff]  ;;  %2005 = vmatpush.msra.mxu1 %v1968_v26 }
 0x1a7   :  { %v1412_v24 = vmax.f32 %v1410_v45, %v1411_v30  ;;  %v1664_v34 = vsel %vm1623_vm5, %v1405_v32, %v1663_v60  ;;  %v1423_v6 = vrot.slane %v1422_v54, 2  ;;  %v1436_v58 = vmax.f32 %v1434_v38, %v1435_v57  ;;  %2094 = vmatpush.msrb.mxu2 %v2059_v50 }
 0x1a8   :  { %v1417_v12 = vmax.f32 %v1415_v48, %v1416_v10  ;;  %v1430_v14 = vrot.slane %v1429_v63, 2  ;;  %v988_v53 = vmax.f32 %v972_v2, 0.0  ;;  %v953_v46 = vadd.f32 %v931_v56, %v12086_v47  ;;  %v1721_v18 = vld [vmem:[#allocation3 + $0x29] sm:$0xff] }
 0x1a9   :  { %v1705_v16 = vld [vmem:[#allocation3 + $0x28] sm:$0xff]  ;;  %v1665_v8 = vsel %vm1625_vm6, %v1412_v24, %v1664_v34  ;;  %v1424_v29 = vmax.f32 %v1422_v54, %v1423_v6  ;;  %v1437_v61 = vrot.slane %v1436_v58, 2  ;;  %8351 = vmatmul.msk.f32.gmra.mxu1 %vm1692_vm11, %v1721_v18  ;;  %v954_v39 = vadd.f32 %v934_v43, %v12151_v23  ;;  %2095 = vmatpush.msrb.mxu2 %v2058_v22  ;;  %v937_v36 = vpop.f32.mrf.mxu0 }
 0x1aa   :  { %v1868_v25 = vld [vmem:[#allocation3 + $0x2a] sm:$0xff]  ;;  %8359 = vmatmul.msk.f32.gmra.mxu2 %vm1692_vm11, %v1705_v16  ;;  %v1418_v20 = vrot.slane %v1417_v12, 1  ;;  %v1431_v5 = vmax.f32 %v1429_v63, %v1430_v14  ;;  %v1044_v3 = vrot.slane %v988_v53, 2  ;;  %v1045_v62 = vrot.slane %v988_v53, 4 }
 0x1ab   :  { %8367 = vmatmul.msk.f32.gmra.mxu3 %vm1692_vm11, %v1868_v25  ;;  %v1425_v47 = vrot.slane %v1424_v29, 1  ;;  %v1438_v56 = vmax.f32 %v1436_v58, %v1437_v61  ;;  %v1046_v19 = vrot.slane %v988_v53, 6  ;;  %v1441_v1 = vsel %vm1104_vm3, %v988_v53, -inf }
 0x1ac   :  { %v1419_v41 = vmax.f32 %v1417_v12, %v1418_v20  ;;  %v1432_v0 = vrot.slane %v1431_v5, 1  ;;  %v1442_v11 = vrot.slane %v1441_v1, 4  ;;  %v1448_v51 = vsel %vm1104_vm3, %v1044_v3, -inf }
 0x1ad   :  { %v1426_v21 = vmax.f32 %v1424_v29, %v1425_v47  ;;  %v1439_v23 = vrot.slane %v1438_v56, 1  ;;  %v1449_v44 = vrot.slane %v1448_v51, 4  ;;  %v1455_v33 = vsel %vm1104_vm3, %v1045_v62, -inf }
 0x1ae   :  { %v1433_v4 = vmax.f32 %v1431_v5, %v1432_v0  ;;  %v1666_v7 = vsel %vm1627_vm7, %v1419_v41, %v1665_v8  ;;  %v1443_v9 = vmax.f32 %v1441_v1, %v1442_v11  ;;  %v1456_v13 = vrot.slane %v1455_v33, 4  ;;  %v2057_v0 = vld [vmem:[#allocation13 + $0x120] sm:$0xff] }
 0x1af   :  { %v1440_v15 = vmax.f32 %v1438_v56, %v1439_v23  ;;  %v1667_v49 = vsel %vm1629_vm8, %v1426_v21, %v1666_v7  ;;  %v1450_v35 = vmax.f32 %v1448_v51, %v1449_v44  ;;  %v1462_v17 = vsel %vm1104_vm3, %v1046_v19, -inf  ;;  %v1967_v11 = vld [vmem:[#allocation13 + $0xe0] sm:$0xff]  ;;  %2096 = vmatpush.msrb.mxu2 %v2057_v0 }
 0x1b0   :  { %v1668_v31 = vsel %vm1631_vm9, %v1433_v4, %v1667_v49  ;;  %v1444_v37 = vrot.slane %v1443_v9, 2  ;;  %v1457_v40 = vmax.f32 %v1455_v33, %v1456_v13  ;;  %v1463_v45 = vrot.slane %v1462_v17, 4  ;;  %v2056_v33 = vld [vmem:[#allocation13 + $0x118] sm:$0xff]  ;;  %2006 = vmatpush.msra.mxu1 %v1967_v11 }
 0x1b1   :  { %v1669_v55 = vsel %vm1633_vm10, %v1440_v15, %v1668_v31  ;;  %v1451_v27 = vrot.slane %v1450_v35, 2  ;;  %v973_v48 = vadd.f32 %v12222_v59, %v953_v46  ;;  %v974_v28 = vadd.f32 %v12222_v59, %v954_v39  ;;  %v1966_v4 = vld [vmem:[#allocation13 + $0xd8] sm:$0xff]  ;;  %2097 = vmatpush.msrb.mxu2 %v2056_v33 }
 0x1b2   :  { %1698 = vst.msk [vmem:[#allocation3 + $0x32] sm:$0xff] %vm1692_vm11, %v1669_v55  ;;  %v1445_v38 = vmax.f32 %v1443_v9, %v1444_v37  ;;  %v1458_v32 = vrot.slane %v1457_v40, 2  ;;  %v1464_v30 = vmax.f32 %v1462_v17, %v1463_v45  ;;  %v955_v54 = vadd.f32 %v937_v36, %v12157_v42  ;;  %v2055_v17 = vld [vmem:[#allocation13 + $0x110] sm:$0xff]  ;;  %2007 = vmatpush.msra.mxu1 %v1966_v4 }
 0x1b3   :  { %v1452_v57 = vmax.f32 %v1450_v35, %v1451_v27  ;;  %v989_v43 = vmax.f32 %v973_v48, 0.0  ;;  %v12245_v60 = vmax.f32 %v974_v28, 0.0  ;;  %v1965_v36 = vld [vmem:[#allocation13 + $0xd0] sm:$0xff]  ;;  %2098 = vmatpush.msrb.mxu2 %v2055_v17 }
 0x1b4   :  { %v1446_v10 = vrot.slane %v1445_v38, 1  ;;  %v1459_v63 = vmax.f32 %v1457_v40, %v1458_v32  ;;  %v1465_v2 = vrot.slane %v1464_v30, 2  ;;  %v12248_v24 = vadd.f32 %v12222_v59, %v955_v54  ;;  %v1964_v32 = vld [vmem:[#allocation13 + $0xc8] sm:$0xff]  ;;  %2008 = vmatpush.msra.mxu1 %v1965_v36 }
 0x1b5   :  { %v1453_v34 = vrot.slane %v1452_v57, 1  ;;  %v1047_v6 = vrot.slane %v989_v43, 2  ;;  %v1048_v58 = vrot.slane %v989_v43, 4  ;;  %v1049_v12 = vrot.slane %v989_v43, 6 }
 0x1b6   :  { %v1447_v14 = vmax.f32 %v1445_v38, %v1446_v10  ;;  %v1460_v53 = vrot.slane %v1459_v63, 1  ;;  %v1466_v46 = vmax.f32 %v1464_v30, %v1465_v2  ;;  %v1469_v18 = vsel %vm1104_vm3, %v989_v43, -inf  ;;  %v2054_v38 = vld [vmem:[#allocation13 + $0x108] sm:$0xff]  ;;  %2009 = vmatpush.msra.mxu1 %v1964_v32 }
 0x1b7   :  { %v1454_v42 = vmax.f32 %v1452_v57, %v1453_v34  ;;  %v1470_v16 = vrot.slane %v1469_v18, 4  ;;  %v1476_v25 = vsel %vm1104_vm3, %v1047_v6, -inf  ;;  %v1483_v8 = vsel %vm1104_vm3, %v1048_v58, -inf  ;;  %2099 = vmatpush.msrb.mxu2 %v2054_v38 }
 0x1b8   :  { %v1461_v29 = vmax.f32 %v1459_v63, %v1460_v53  ;;  %v1467_v61 = vrot.slane %v1466_v46, 1  ;;  %v1477_v50 = vrot.slane %v1476_v25, 4  ;;  %v1484_v59 = vrot.slane %v1483_v8, 4  ;;  %v1963_v53 = vld [vmem:[#allocation13 + $0xc0] sm:$0xff] }
 0x1b9   :  { %v1670_v52 = vsel %vm1621_vm4, %v1454_v42, %v1447_v14  ;;  %v1471_v39 = vmax.f32 %v1469_v18, %v1470_v16  ;;  %v1490_v20 = vsel %vm1104_vm3, %v1049_v12, -inf  ;;  %v1050_v5 = vrot.slane %v12245_v60, 2  ;;  %v1722_v3 = vld [vmem:[#allocation3 + $0x31] sm:$0xff]  ;;  %v2053_v14 = vld [vmem:[#allocation13 + $0x100] sm:$0xff]  ;;  %2010 = vmatpush.msra.mxu1 %v1963_v53 }
 0x1ba   :  { %v1706_v62 = vld [vmem:[#allocation3 + $0x30] sm:$0xff]  ;;  %v1468_v56 = vmax.f32 %v1466_v46, %v1467_v61  ;;  %v1671_v19 = vsel %vm1623_vm5, %v1461_v29, %v1670_v52  ;;  %v1478_v1 = vmax.f32 %v1476_v25, %v1477_v50  ;;  %v1485_v41 = vmax.f32 %v1483_v8, %v1484_v59  ;;  %8352 = vmatmul.msk.f32.gmra.mxu1 %vm1692_vm11, %v1722_v3 }
 0x1bb   :  { %v1869_v47 = vld [vmem:[#allocation3 + $0x32] sm:$0xff]  ;;  %v1472_v51 = vrot.slane %v1471_v39, 2  ;;  %v1491_v21 = vrot.slane %v1490_v20, 4  ;;  %v1051_v23 = vrot.slane %v12245_v60, 4  ;;  %v1052_v44 = vrot.slane %v12245_v60, 6  ;;  %8360 = vmatmul.msk.f32.gmra.mxu2 %vm1692_vm11, %v1706_v62 }
 0x1bc   :  { %8368 = vmatmul.msk.f32.gmra.mxu3 %vm1692_vm11, %v1869_v47  ;;  %v1672_v7 = vsel %vm1625_vm6, %v1468_v56, %v1671_v19  ;;  %v1479_v9 = vrot.slane %v1478_v1, 2  ;;  %v1486_v13 = vrot.slane %v1485_v41, 2  ;;  %v1497_v22 = vsel %vm1104_vm3, %v12245_v60, -inf  ;;  %2100 = vmatpush.msrb.mxu2 %v2053_v14 }
 0x1bd   :  { %v1473_v26 = vmax.f32 %v1471_v39, %v1472_v51  ;;  %v1492_v15 = vmax.f32 %v1490_v20, %v1491_v21  ;;  %v1498_v49 = vrot.slane %v1497_v22, 4  ;;  %v1504_v35 = vsel %vm1104_vm3, %v1050_v5, -inf }
 0x1be   :  { %v1480_v31 = vmax.f32 %v1478_v1, %v1479_v9  ;;  %v1487_v37 = vmax.f32 %v1485_v41, %v1486_v13  ;;  %v1505_v40 = vrot.slane %v1504_v35, 4  ;;  %v1511_v45 = vsel %vm1104_vm3, %v1051_v23, -inf }
 0x1bf   :  { %v1474_v55 = vrot.slane %v1473_v26, 1  ;;  %v1493_v27 = vrot.slane %v1492_v15, 2  ;;  %v1499_v48 = vmax.f32 %v1497_v22, %v1498_v49  ;;  %v1512_v28 = vrot.slane %v1511_v45, 4 }
 0x1c0   :  { %v1481_v30 = vrot.slane %v1480_v31, 1  ;;  %v1488_v54 = vrot.slane %v1487_v37, 1  ;;  %v1506_v57 = vmax.f32 %v1504_v35, %v1505_v40  ;;  %v1518_v43 = vsel %vm1104_vm3, %v1052_v44, -inf }
 0x1c1   :  { %v1475_v60 = vmax.f32 %v1473_v26, %v1474_v55  ;;  %v1494_v10 = vmax.f32 %v1492_v15, %v1493_v27  ;;  %v1500_v63 = vrot.slane %v1499_v48, 2  ;;  %v1513_v2 = vmax.f32 %v1511_v45, %v1512_v28 }
 0x1c2   :  { %v1482_v34 = vmax.f32 %v1480_v31, %v1481_v30  ;;  %v1489_v6 = vmax.f32 %v1487_v37, %v1488_v54  ;;  %v1507_v58 = vrot.slane %v1506_v57, 2  ;;  %v1519_v12 = vrot.slane %v1518_v43, 4 }
 0x1c3   :  { %v1495_v46 = vrot.slane %v1494_v10, 1  ;;  %v1673_v18 = vsel %vm1627_vm7, %v1475_v60, %v1672_v7  ;;  %v1501_v42 = vmax.f32 %v1499_v48, %v1500_v63  ;;  %v1514_v16 = vrot.slane %v1513_v2, 2 }
 0x1c4   :  { %v1674_v25 = vsel %vm1629_vm8, %v1482_v34, %v1673_v18  ;;  %v1508_v8 = vmax.f32 %v1506_v57, %v1507_v58  ;;  %v1520_v29 = vmax.f32 %v1518_v43, %v1519_v12  ;;  %v991_v61 = vmax.f32 %v12248_v24, 0.0 }
 0x1c5   :  { %v1496_v50 = vmax.f32 %v1494_v10, %v1495_v46  ;;  %v1675_v59 = vsel %vm1631_vm9, %v1489_v6, %v1674_v25  ;;  %v1515_v52 = vmax.f32 %v1513_v2, %v1514_v16  ;;  %v1502_v56 = vrot.slane %v1501_v42, 1  ;;  %v2044_v16 = vld [vmem:[#allocation3 + $0x4] sm:$0xff] }
 0x1c6   :  { %v1509_v39 = vrot.slane %v1508_v8, 1  ;;  %v1521_v20 = vrot.slane %v1520_v29, 2  ;;  %v1053_v5 = vrot.slane %v991_v61, 2  ;;  %v1054_v3 = vrot.slane %v991_v61, 4  ;;  %v1955_v25 = vld [vmem:[#allocation3 + $0xb] sm:$0xff] }
 0x1c7   :  { %v1676_v62 = vsel %vm1633_vm10, %v1496_v50, %v1675_v59  ;;  %v1055_v47 = vrot.slane %v991_v61, 6  ;;  %v1525_v19 = vsel %vm1104_vm3, %v991_v61, -inf  ;;  %v1516_v1 = vrot.slane %v1515_v52, 1  ;;  %v1956_v50 = vld [vmem:[#allocation3 + $0x13] sm:$0xff] }
 0x1c8   :  { %1699 = vst.msk [vmem:[#allocation3 + $0x3a] sm:$0xff] %vm1692_vm11, %v1676_v62  ;;  %v1532_v24 = vsel %vm1104_vm3, %v1053_v5, -inf  ;;  %v1526_v41 = vrot.slane %v1525_v19, 4  ;;  %v1539_v11 = vsel %vm1104_vm3, %v1054_v3, -inf  ;;  %v1510_v51 = vmax.f32 %v1508_v8, %v1509_v39  ;;  %v2045_v8 = vld [vmem:[#allocation3 + $0xc] sm:$0xff]  ;;  %v2046_v59 = vld [vmem:[#allocation3 + $0x14] sm:$0xff] }
 0x1c9   :  { %v1533_v0 = vrot.slane %v1532_v24, 4  ;;  %v1522_v21 = vmax.f32 %v1520_v29, %v1521_v20  ;;  %v1540_v23 = vrot.slane %v1539_v11, 4  ;;  %v1546_v44 = vsel %vm1104_vm3, %v1055_v47, -inf  ;;  %v1957_v20 = vld [vmem:[#allocation3 + $0x1b] sm:$0xff] }
 0x1ca   :  { %v1527_v33 = vmax.f32 %v1525_v19, %v1526_v41  ;;  %v1547_v7 = vrot.slane %v1546_v44, 4  ;;  %v1503_v9 = vmax.f32 %v1501_v42, %v1502_v56  ;;  %v1517_v22 = vmax.f32 %v1515_v52, %v1516_v1  ;;  %v1954_v42 = vld [vmem:[#allocation3 + $0x3] sm:$0xff]  ;;  %v1958_v56 = vld [vmem:[#allocation3 + $0x2b] sm:$0xff] }
 0x1cb   :  { %v1534_v4 = vmax.f32 %v1532_v24, %v1533_v0  ;;  %v1541_v13 = vmax.f32 %v1539_v11, %v1540_v23  ;;  %v1523_v35 = vrot.slane %v1522_v21, 1  ;;  %v2047_v5 = vld [vmem:[#allocation3 + $0x1c] sm:$0xff]  ;;  %v2048_v19 = vld [vmem:[#allocation3 + $0x2c] sm:$0xff] }
 0x1cc   :  { %v1528_v26 = vrot.slane %v1527_v33, 2  ;;  %v1548_v49 = vmax.f32 %v1546_v44, %v1547_v7  ;;  %v1677_v17 = vsel %vm1621_vm4, %v1510_v51, %v1503_v9 }
 0x1cd   :  { %v1535_v15 = vrot.slane %v1534_v4, 2  ;;  %v1542_v36 = vrot.slane %v1541_v13, 2  ;;  %v1678_v28 = vsel %vm1623_vm5, %v1517_v22, %v1677_v17  ;;  %v1524_v54 = vmax.f32 %v1522_v21, %v1523_v35  ;;  %v2731_v22 = vld [vmem:[#allocation16 + $0x2f0] sm:$0xff] }
 0x1ce   :  { %v1529_v31 = vmax.f32 %v1527_v33, %v1528_v26  ;;  %v1549_v40 = vrot.slane %v1548_v49, 2  ;;  %2733 = vmatpush.msra.mxu2 %v2731_v22  ;;  %v2729_v26 = vld [vmem:[#allocation16 + $0x2e0] sm:$0xff]  ;;  %v2727_v35 = vld [vmem:[#allocation16 + $0x2d0] sm:$0xff] }
 0x1cf   :  { %v1536_v37 = vmax.f32 %v1534_v4, %v1535_v15  ;;  %v1723_v45 = vld [vmem:[#allocation3 + $0x39] sm:$0xff]  ;;  %v1543_v48 = vmax.f32 %v1541_v13, %v1542_v36  ;;  %v1679_v63 = vsel %vm1625_vm6, %v1524_v54, %v1678_v28  ;;  %v2721_v54 = vld [vmem:[#allocation16 + $0x2a0] sm:$0xff] }
 0x1d0   :  { %v1707_v55 = vld [vmem:[#allocation3 + $0x38] sm:$0xff]  ;;  %8353 = vmatmul.msk.f32.gmra.mxu1 %vm1692_vm11, %v1723_v45  ;;  %v1530_v38 = vrot.slane %v1529_v31, 1  ;;  %v1550_v30 = vmax.f32 %v1548_v49, %v1549_v40  ;;  %2734 = vmatpush.msra.mxu2 %v2729_v26  ;;  %v2725_v45 = vld [vmem:[#allocation16 + $0x2c0] sm:$0xff] }
 0x1d1   :  { %v1870_v27 = vld [vmem:[#allocation3 + $0x3a] sm:$0xff]  ;;  %8361 = vmatmul.msk.f32.gmra.mxu2 %vm1692_vm11, %v1707_v55  ;;  %v1537_v32 = vrot.slane %v1536_v37, 1  ;;  %v1544_v57 = vrot.slane %v1543_v48, 1  ;;  %v2576_v55 = vld [vmem:[#allocation16 + $0x1e0] sm:$0xff] }
 0x1d2   :  { %8369 = vmatmul.msk.f32.gmra.mxu3 %vm1692_vm11, %v1870_v27  ;;  %v1531_v43 = vmax.f32 %v1529_v31, %v1530_v38  ;;  %v1551_v10 = vrot.slane %v1550_v30, 1  ;;  %v1959_v24 = vld [vmem:[#allocation3 + $0x33] sm:$0xff]  ;;  %2735 = vmatpush.msra.mxu2 %v2727_v35  ;;  %v2539_v27 = vld [vmem:[#allocation16 + $0xe0] sm:$0xff] }
 0x1d3   :  { %v1538_v60 = vmax.f32 %v1536_v37, %v1537_v32  ;;  %v1545_v2 = vmax.f32 %v1543_v48, %v1544_v57  ;;  %v2049_v1 = vld [vmem:[#allocation3 + $0x34] sm:$0xff]  ;;  %v2542_v37 = vld [vmem:[#allocation16 + $0xf8] sm:$0xff]  ;;  %v2572_v57 = vld [vmem:[#allocation16 + $0x1c0] sm:$0xff] }
 0x1d4   :  { %v1680_v34 = vsel %vm1627_vm7, %v1531_v43, %v1679_v63  ;;  %v1552_v6 = vmax.f32 %v1550_v30, %v1551_v10  ;;  %v2578_v36 = vld [vmem:[#allocation16 + $0x1f0] sm:$0xff]  ;;  %2667 = vmatpush.msrb.mxu1 %v2542_v37  ;;  %v2540_v48 = vld [vmem:[#allocation16 + $0xe8] sm:$0xff]  ;;  %2736 = vmatpush.msra.mxu2 %v2725_v45  ;;  %v2538_v30 = vld [vmem:[#allocation16 + $0xd8] sm:$0xff] }
 0x1d5   :  { %v1681_v58 = vsel %vm1629_vm8, %v1538_v60, %v1680_v34  ;;  %v2541_v31 = vld [vmem:[#allocation16 + $0xf0] sm:$0xff]  ;;  %2580 = vmatpush.msrb.mxu3 %v2578_v36  ;;  %v2535_v63 = vld [vmem:[#allocation16 + $0xc0] sm:$0xff]  ;;  %v2522_v45 = vld [vmem:[#allocation16 + $0x58] sm:$0xff] }
 0x1d6   :  { %v1682_v12 = vsel %vm1631_vm9, %v1545_v2, %v1681_v58  ;;  %2638 = vmatpush.msra.mxu0 %v2541_v31  ;;  %v2723_v28 = vld [vmem:[#allocation16 + $0x2b0] sm:$0xff]  ;;  %2668 = vmatpush.msrb.mxu1 %v2540_v48  ;;  %v2536_v2 = vld [vmem:[#allocation16 + $0xc8] sm:$0xff]  ;;  %v2534_v58 = vld [vmem:[#allocation16 + $0xb8] sm:$0xff] }
 0x1d7   :  { %v1683_v14 = vsel %vm1633_vm10, %v1552_v6, %v1682_v12  ;;  %v12296_v29 = vpop.f32.mrf.mxu1  ;;  %2581 = vmatpush.msrb.mxu3 %v2576_v55  ;;  %v2574_v38 = vld [vmem:[#allocation16 + $0x1d0] sm:$0xff]  ;;  %2737 = vmatpush.msra.mxu2 %v2723_v28  ;;  %v2717_v12 = vld [vmem:[#allocation16 + $0x280] sm:$0xff] }
 0x1d8   :  { %1700 = vst.msk [vmem:[#allocation3 + $0x42] sm:$0xff] %vm1692_vm11, %v1683_v14  ;;  %2639 = vmatpush.msra.mxu0 %v2539_v27  ;;  %v2537_v32 = vld [vmem:[#allocation16 + $0xd0] sm:$0xff]  ;;  %2669 = vmatpush.msrb.mxu1 %v2538_v30  ;;  %v2705_v36 = vld [vmem:[#allocation16 + $0x220] sm:$0xff] }
 0x1d9   :  { %2582 = vmatpush.msrb.mxu3 %v2574_v38  ;;  %2738 = vmatpush.msra.mxu2 %v2721_v54  ;;  %v2719_v60 = vld [vmem:[#allocation16 + $0x290] sm:$0xff] }
 0x1da   :  { %2640 = vmatpush.msra.mxu0 %v2537_v32  ;;  %2670 = vmatpush.msrb.mxu1 %v2536_v2  ;;  %v2570_v34 = vld [vmem:[#allocation16 + $0x1b0] sm:$0xff] }
 0x1db   :  { %2583 = vmatpush.msrb.mxu3 %v2572_v57  ;;  %2739 = vmatpush.msra.mxu2 %v2719_v60  ;;  %v2533_v6 = vld [vmem:[#allocation16 + $0xb0] sm:$0xff]  ;;  %v2519_v60 = vld [vmem:[#allocation16 + $0x40] sm:$0xff] }
 0x1dc   :  { %2641 = vmatpush.msra.mxu0 %v2535_v63  ;;  %2671 = vmatpush.msrb.mxu1 %v2534_v58  ;;  %v2707_v22 = vld [vmem:[#allocation16 + $0x230] sm:$0xff] }
 0x1dd   :  { %2584 = vmatpush.msrb.mxu3 %v2570_v34  ;;  %2740 = vmatpush.msra.mxu2 %v2717_v12  ;;  %v2558_v37 = vld [vmem:[#allocation16 + $0x150] sm:$0xff] }
 0x1de   :  { %v12298_v61 = vpop.f32.mrf.mxu2  ;;  %2642 = vmatpush.msra.mxu0 %v2533_v6  ;;  %v2703_v27 = vld [vmem:[#allocation16 + $0x210] sm:$0xff] }
 0x1df   :  { %v1724_v53 = vld [vmem:[#allocation3 + $0x41] sm:$0xff]  ;;  %v1922_v40 = vpop.f32.mrf.mxu3 }
 0x1e0   :  { %v1708_v46 = vld [vmem:[#allocation3 + $0x40] sm:$0xff]  ;;  %8354 = vmatmul.msk.f32.gmra.mxu1 %vm1692_vm11, %v1724_v53  ;;  %v2568_v53 = vld [vmem:[#allocation16 + $0x1a0] sm:$0xff] }
 0x1e1   :  { %v1871_v18 = vld [vmem:[#allocation3 + $0x42] sm:$0xff]  ;;  %8362 = vmatmul.msk.f32.gmra.mxu2 %vm1692_vm11, %v1708_v46  ;;  %2585 = vmatpush.msrb.mxu3 %v2568_v53 }
 0x1e2   :  { %8370 = vmatmul.msk.f32.gmra.mxu3 %vm1692_vm11, %v1871_v18  ;;  %v1960_v41 = vld [vmem:[#allocation3 + $0x3b] sm:$0xff]  ;;  %v1961_v11 = vld [vmem:[#allocation3 + $0x43] sm:$0xff]  ;;  %v2532_v18 = vld [vmem:[#allocation16 + $0xa8] sm:$0xff] }
 0x1e3   :  { %v2050_v0 = vld [vmem:[#allocation3 + $0x3c] sm:$0xff]  ;;  %v2051_v51 = vld [vmem:[#allocation3 + $0x44] sm:$0xff]  ;;  %2672 = vmatpush.msrb.mxu1 %v2532_v18 }
 0x1e4   :  { %v2531_v46 = vld [vmem:[#allocation16 + $0xa0] sm:$0xff]  ;;  %v2518_v18 = vld [vmem:[#allocation16 + $0x38] sm:$0xff] }
 0x1e5   :  { %2643 = vmatpush.msra.mxu0 %v2531_v46 }
 0x1e8   :  { %8371 = vmatmul.msk.f32.vlgmr.msra.gmra.mxu1 %vm1692_vm11, %v1954_v42  ;;  %v1841_v42 = vadd.f32 %v12298_v61, %v12296_v29  ;;  %v2711_v29 = vld [vmem:[#allocation16 + $0x250] sm:$0xff]  ;;  %v12336_v61 = vld [vmem:[#allocation14] ss:$0 sm:$0xff] }
 0x1e9   :  { %8379 = vmatmul.msk.f32.vlgmr.msrb.gmra.mxu2 %vm1692_vm11, %v2044_v16 }
 0x1eb   :  { %v12302_v52 = vpop.f32.mrf.mxu1 }
 0x1f0   :  { %8372 = vmatmul.msk.f32.gmra.mxu1 %vm1692_vm11, %v1955_v25  ;;  %v2715_v25 = vld [vmem:[#allocation16 + $0x270] sm:$0xff] }
 0x1f1   :  { %8380 = vmatmul.msk.f32.gmra.mxu2 %vm1692_vm11, %v2045_v8 }
 0x1f2   :  { %v12304_v39 = vpop.f32.mrf.mxu2  ;;  %2741 = vmatpush.msra.mxu2 %v2715_v25  ;;  %v2701_v25 = vld [vmem:[#allocation16 + $0x200] sm:$0xff] }
 0x1f3   :  { %v12328_v10 = vpop.f32.mrf.mxu3 }
 0x1f8   :  { %8373 = vmatmul.msk.f32.gmra.mxu1 %vm1692_vm11, %v1956_v50  ;;  %v2566_v50 = vld [vmem:[#allocation16 + $0x190] sm:$0xff] }
 0x1f9   :  { %8381 = vmatmul.msk.f32.gmra.mxu2 %vm1692_vm11, %v2046_v59  ;;  %v2529_v59 = vld [vmem:[#allocation16 + $0x90] sm:$0xff]  ;;  %2586 = vmatpush.msrb.mxu3 %v2566_v50 }
 0x1fa   :  { %2644 = vmatpush.msra.mxu0 %v2529_v59 }
 0x1ff   :  { %v1781_v3 = vpop.f32.mrf.mxu1 }
 0x200   :  { %8374 = vmatmul.msk.f32.gmra.mxu1 %vm1692_vm11, %v1957_v20  ;;  %v2530_v20 = vld [vmem:[#allocation16 + $0x98] sm:$0xff] }
 0x201   :  { %8382 = vmatmul.msk.f32.gmra.mxu2 %vm1692_vm11, %v2047_v5  ;;  %v2713_v5 = vld [vmem:[#allocation16 + $0x260] sm:$0xff]  ;;  %2673 = vmatpush.msrb.mxu1 %v2530_v20 }
 0x202   :  { %2742 = vmatpush.msra.mxu2 %v2713_v5 }
 0x204   :  { %2743 = vmatpush.msra.mxu2 %v2711_v29  ;;  %v2515_v29 = vld [vmem:[#allocation16 + $0x20] sm:$0xff] }
 0x206   :  { %v1846_v62 = vpop.f32.mrf.mxu2 }
 0x207   :  { %v12308_v47 = vadd.f32 %v1846_v62, %v1781_v3  ;;  %v12334_v3 = vpop.f32.mrf.mxu3  ;;  %v1946_v62 = vadd.f32 %v1922_v40, %v1841_v42  ;;  %v2521_v40 = vld [vmem:[#allocation16 + $0x50] sm:$0xff] }
 0x208   :  { %8375 = vmatmul.msk.f32.gmra.mxu1 %vm1692_vm11, %v1958_v56 }
 0x209   :  { %8383 = vmatmul.msk.f32.gmra.mxu2 %vm1692_vm11, %v2048_v19  ;;  %v2564_v19 = vld [vmem:[#allocation16 + $0x180] sm:$0xff] }
 0x20a   :  { %2587 = vmatpush.msrb.mxu3 %v2564_v19  ;;  %v1948_v19 = vadd.f32 %v12334_v3, %v12308_v47 }
 0x210   :  { %8376 = vmatmul.msk.f32.gmra.mxu1 %vm1692_vm11, %v1959_v24  ;;  %v2527_v24 = vld [vmem:[#allocation16 + $0x80] sm:$0xff] }
 0x211   :  { %8384 = vmatmul.msk.f32.gmra.mxu2 %vm1692_vm11, %v2049_v1  ;;  %v2528_v1 = vld [vmem:[#allocation16 + $0x88] sm:$0xff]  ;;  %2645 = vmatpush.msra.mxu0 %v2527_v24 }
 0x212   :  { %2674 = vmatpush.msrb.mxu1 %v2528_v1 }
 0x214   :  { %v12318_v21 = vpop.f32.mrf.mxu1 }
 0x218   :  { %8377 = vmatmul.msk.f32.gmra.mxu1 %vm1692_vm11, %v1960_v41  ;;  %v1844_v41 = vadd.f32 %v12304_v39, %v12302_v52  ;;  %v2524_v52 = vld [vmem:[#allocation16 + $0x68] sm:$0xff] }
 0x219   :  { %8385 = vmatmul.msk.f32.gmra.mxu2 %vm1692_vm11, %v2050_v0 }
 0x21a   :  { %v1947_v39 = vadd.f32 %v12328_v10, %v1844_v41  ;;  %v2520_v10 = vld [vmem:[#allocation16 + $0x48] sm:$0xff] }
 0x21b   :  { %v12320_v23 = vpop.f32.mrf.mxu2 }
 0x21c   :  { %v1931_v35 = vpop.f32.mrf.mxu3  ;;  %v1850_v30 = vadd.f32 %v12320_v23, %v12318_v21  ;;  %v2554_v21 = vld [vmem:[#allocation16 + $0x130] sm:$0xff] }
 0x21d   :  { %v2517_v23 = vld [vmem:[#allocation16 + $0x30] sm:$0xff] }
 0x21e   :  { %v1949_v24 = vadd.f32 %v1931_v35, %v1850_v30 }
 0x220   :  { %8378 = vmatmul.msk.f32.gmra.mxu1 %vm1692_vm11, %v1961_v11  ;;  %v2709_v11 = vld [vmem:[#allocation16 + $0x240] sm:$0xff] }
 0x221   :  { %8386 = vmatmul.msk.f32.gmra.mxu2 %vm1692_vm11, %v2051_v51 }
 0x222   :  { %2744 = vmatpush.msra.mxu2 %v2709_v11 }
 0x224   :  { %2745 = vmatpush.msra.mxu2 %v2707_v22 }
 0x226   :  { %v1787_v44 = vpop.f32.mrf.mxu1  ;;  %2746 = vmatpush.msra.mxu2 %v2705_v36 }
 0x228   :  { %2747 = vmatpush.msra.mxu2 %v2703_v27 }
 0x22a   :  { %2748 = vmatpush.msra.mxu2 %v2701_v25 }
 0x22d   :  { %v1852_v33 = vpop.f32.mrf.mxu2 }
 0x22e   :  { %v12322_v4 = vadd.f32 %v1852_v33, %v1787_v44  ;;  %v2562_v44 = vld [vmem:[#allocation16 + $0x170] sm:$0xff] }
 0x22f   :  { %v2525_v33 = vld [vmem:[#allocation16 + $0x70] sm:$0xff]  ;;  %2588 = vmatpush.msrb.mxu3 %v2562_v44 }
 0x230   :  { %2646 = vmatpush.msra.mxu0 %v2525_v33  ;;  %v2550_v33 = vld [vmem:[#allocation16 + $0x110] sm:$0xff] }
 0x237   :  { %v1790_v7 = vpop.f32.mrf.mxu1 }
 0x23e   :  { %v1855_v9 = vpop.f32.mrf.mxu2 }
 0x23f   :  { %v12324_v13 = vadd.f32 %v1855_v9, %v1790_v7  ;;  %v2526_v7 = vld [vmem:[#allocation16 + $0x78] sm:$0xff] }
 0x240   :  { %2675 = vmatpush.msrb.mxu1 %v2526_v7  ;;  %v2513_v7 = vld [vmem:[#allocation16 + $0x10] sm:$0xff] }
 0x242   :  { %2676 = vmatpush.msrb.mxu1 %v2524_v52 }
 0x244   :  { %2677 = vmatpush.msrb.mxu1 %v2522_v45 }
 0x246   :  { %2678 = vmatpush.msrb.mxu1 %v2520_v10 }
 0x248   :  { %2679 = vmatpush.msrb.mxu1 %v2518_v18 }
 0x24d   :  { %v1793_v15 = vpop.f32.mrf.mxu1 }
 0x254   :  { %v1858_v49 = vpop.f32.mrf.mxu2 }
 0x255   :  { %v12326_v17 = vadd.f32 %v1858_v49, %v1793_v15  ;;  %v2560_v15 = vld [vmem:[#allocation16 + $0x160] sm:$0xff] }
 0x256   :  { %v2523_v49 = vld [vmem:[#allocation16 + $0x60] sm:$0xff]  ;;  %2589 = vmatpush.msrb.mxu3 %v2560_v15 }
 0x257   :  { %2647 = vmatpush.msra.mxu0 %v2523_v49 }
 0x258   :  { %2590 = vmatpush.msrb.mxu3 %v2558_v37 }
 0x259   :  { %2648 = vmatpush.msra.mxu0 %v2521_v40 }
 0x25b   :  { %2649 = vmatpush.msra.mxu0 %v2519_v60 }
 0x25d   :  { %v1796_v43 = vpop.f32.mrf.mxu1  ;;  %2650 = vmatpush.msra.mxu0 %v2517_v23 }
 0x25f   :  { %2651 = vmatpush.msra.mxu0 %v2515_v29 }
 0x261   :  { %2652 = vmatpush.msra.mxu0 %v2513_v7 }
 0x264   :  { %v1861_v14 = vpop.f32.mrf.mxu2 }
 0x265   :  { %v12332_v16 = vadd.f32 %v1861_v14, %v1796_v43  ;;  %v2012_v8 = vpop.f32.mrf.mxu1  ;;  %v2556_v43 = vld [vmem:[#allocation16 + $0x140] sm:$0xff] }
 0x266   :  { %v2036_v56 = vadd.f32 %v2012_v8, %v1946_v62  ;;  %2591 = vmatpush.msrb.mxu3 %v2556_v43  ;;  %v1934_v8 = vpop.f32.mrf.mxu3  ;;  %v2552_v62 = vld [vmem:[#allocation16 + $0x120] sm:$0xff] }
 0x267   :  { %v12352_v1 = vadd.f32 %v1934_v8, %v12322_v4 }
 0x268   :  { %2592 = vmatpush.msrb.mxu3 %v2554_v21 }
 0x26a   :  { %2593 = vmatpush.msrb.mxu3 %v2552_v62 }
 0x26c   :  { %v2102_v0 = vpop.f32.mrf.mxu2  ;;  %2594 = vmatpush.msrb.mxu3 %v2550_v33 }
 0x26d   :  { %v2126_v51 = vadd.f32 %v2102_v0, %v2036_v56  ;;  %v2015_v9 = vpop.f32.mrf.mxu1  ;;  %v2516_v56 = vld [vmem:[#allocation16 + $0x28] sm:$0xff] }
 0x26e   :  { %v2037_v55 = vadd.f32 %v2015_v9, %v1947_v39  ;;  %2680 = vmatpush.msrb.mxu1 %v2516_v56  ;;  %v2514_v9 = vld [vmem:[#allocation16 + $0x18] sm:$0xff]  ;;  %v1937_v23 = vpop.f32.mrf.mxu3 }
 0x26f   :  { %v2138_v26 = vadd.f32 %v12336_v61, %v2126_v51 }
 0x270   :  { %2681 = vmatpush.msrb.mxu1 %v2514_v9 }
 0x271   :  { %v2146_v31 = vmax.f32 %v2138_v26, 0.0 }
 0x273   :  { %v2162_v48 = vrot.slane %v2146_v31, 2  ;;  %v2163_v28 = vrot.slane %v2146_v31, 4  ;;  %v2164_v38 = vrot.slane %v2146_v31, 6  ;;  %v2211_v32 = vsel %vm2210_vm12, %v2146_v31, -inf }
 0x274   :  { %v2212_v54 = vrot.slane %v2211_v32, 4  ;;  %v2105_v57 = vpop.f32.mrf.mxu2 }
 0x275   :  { %v2218_v63 = vsel %vm2210_vm12, %v2162_v48, -inf  ;;  %v2225_v2 = vsel %vm2210_vm12, %v2163_v28, -inf  ;;  %v2232_v34 = vsel %vm2210_vm12, %v2164_v38, -inf  ;;  %v2127_v6 = vadd.f32 %v2105_v57, %v2037_v55  ;;  %v2018_v46 = vpop.f32.mrf.mxu1  ;;  %v2548_v48 = vld [vmem:[#allocation16 + $0x100] sm:$0xff]  ;;  %v2512_v38 = vld [vmem:[#allocation16 + $0x8] sm:$0xff] }
 0x276   :  { %v2213_v58 = vmax.f32 %v2211_v32, %v2212_v54  ;;  %v2219_v12 = vrot.slane %v2218_v63, 4  ;;  %v2226_v14 = vrot.slane %v2225_v2, 4  ;;  %v2233_v53 = vrot.slane %v2232_v34, 4  ;;  %v2511_v28 = vld [vmem:[#allocation16] sm:$0xff]  ;;  %2595 = vmatpush.msrb.mxu3 %v2548_v48  ;;  %2682 = vmatpush.msrb.mxu1 %v2512_v38 }
 0x277   :  { %v2139_v42 = vadd.f32 %v12336_v61, %v2127_v6  ;;  %v2038_v27 = vadd.f32 %v2018_v46, %v1948_v19  ;;  %2653 = vmatpush.msra.mxu0 %v2511_v28 }
 0x278   :  { %v2214_v50 = vrot.slane %v2213_v58, 2  ;;  %v2220_v59 = vmax.f32 %v2218_v63, %v2219_v12  ;;  %v2227_v20 = vmax.f32 %v2225_v2, %v2226_v14  ;;  %v2234_v5 = vmax.f32 %v2232_v34, %v2233_v53 }
 0x279   :  { %v2147_v41 = vmax.f32 %v2139_v42, 0.0 }
 0x27a   :  { %v2215_v0 = vmax.f32 %v2213_v58, %v2214_v50  ;;  %v2221_v11 = vrot.slane %v2220_v59, 2  ;;  %v2228_v51 = vrot.slane %v2227_v20, 2  ;;  %v2235_v44 = vrot.slane %v2234_v5, 2 }
 0x27b   :  { %v2165_v22 = vrot.slane %v2147_v41, 2  ;;  %v2166_v26 = vrot.slane %v2147_v41, 4  ;;  %v2167_v15 = vrot.slane %v2147_v41, 6  ;;  %v2239_v47 = vsel %vm2210_vm12, %v2147_v41, -inf }
 0x27c   :  { %v2216_v4 = vrot.slane %v2215_v0, 1  ;;  %v2222_v3 = vmax.f32 %v2220_v59, %v2221_v11  ;;  %v2229_v49 = vmax.f32 %v2227_v20, %v2228_v51  ;;  %v2236_v52 = vmax.f32 %v2234_v5, %v2235_v44  ;;  %v2108_v39 = vpop.f32.mrf.mxu2 }
 0x27d   :  { %v2240_v35 = vrot.slane %v2239_v47, 4  ;;  %v2246_v36 = vsel %vm2210_vm12, %v2165_v22, -inf  ;;  %v2253_v31 = vsel %vm2210_vm12, %v2166_v26, -inf  ;;  %v2260_v37 = vsel %vm2210_vm12, %v2167_v15, -inf  ;;  %v2021_v43 = vpop.f32.mrf.mxu1 }
 0x27e   :  { %v2223_v40 = vrot.slane %v2222_v3, 1  ;;  %v2230_v45 = vrot.slane %v2229_v49, 1  ;;  %v2237_v55 = vrot.slane %v2236_v52, 1  ;;  %v2247_v30 = vrot.slane %v2246_v36, 4 }
 0x27f   :  { %v2241_v32 = vmax.f32 %v2239_v47, %v2240_v35  ;;  %v2254_v54 = vrot.slane %v2253_v31, 4  ;;  %v2261_v57 = vrot.slane %v2260_v37, 4  ;;  %v2217_v60 = vmax.f32 %v2215_v0, %v2216_v4 }
 0x280   :  { %v2224_v10 = vmax.f32 %v2222_v3, %v2223_v40  ;;  %v2231_v63 = vmax.f32 %v2229_v49, %v2230_v45  ;;  %v2128_v2 = vadd.f32 %v2108_v39, %v2038_v27  ;;  %v2248_v6 = vmax.f32 %v2246_v36, %v2247_v30  ;;  %v1940_v30 = vpop.f32.mrf.mxu3 }
 0x281   :  { %v2242_v34 = vrot.slane %v2241_v32, 2  ;;  %v2255_v58 = vmax.f32 %v2253_v31, %v2254_v54  ;;  %v2262_v12 = vmax.f32 %v2260_v37, %v2261_v57  ;;  %v2238_v14 = vmax.f32 %v2236_v52, %v2237_v55 }
 0x282   :  { %v2471_v53 = vsel %vm1621_vm4, %v2224_v10, %v2217_v60  ;;  %v2140_v46 = vadd.f32 %v12336_v61, %v2128_v2  ;;  %v2039_v21 = vadd.f32 %v2021_v43, %v1949_v24  ;;  %v2249_v25 = vrot.slane %v2248_v6, 2 }
 0x283   :  { %v2472_v18 = vsel %vm1623_vm5, %v2231_v63, %v2471_v53  ;;  %v2243_v42 = vmax.f32 %v2241_v32, %v2242_v34  ;;  %v2256_v8 = vrot.slane %v2255_v58, 2  ;;  %v12362_v50 = vadd.f32 %v1937_v23, %v12324_v13 }
 0x284   :  { %v2473_v59 = vsel %vm1625_vm6, %v2238_v14, %v2472_v18  ;;  %v2263_v20 = vrot.slane %v2262_v12, 2  ;;  %v2148_v5 = vmax.f32 %v2140_v46, 0.0  ;;  %v2111_v62 = vpop.f32.mrf.mxu2  ;;  %v2250_v56 = vmax.f32 %v2248_v6, %v2249_v25 }
 0x285   :  { %v2244_v29 = vrot.slane %v2243_v42, 1  ;;  %v2257_v19 = vmax.f32 %v2255_v58, %v2256_v8  ;;  %v2129_v41 = vadd.f32 %v2111_v62, %v2039_v21  ;;  %v2024_v52 = vpop.f32.mrf.mxu1  ;;  %v12378_v10 = vadd.f32 %v1940_v30, %v12326_v17 }
 0x286   :  { %v2264_v0 = vmax.f32 %v2262_v12, %v2263_v20  ;;  %v2168_v24 = vrot.slane %v2148_v5, 2  ;;  %v2169_v11 = vrot.slane %v2148_v5, 4  ;;  %v2170_v51 = vrot.slane %v2148_v5, 6 }
 0x287   :  { %v2245_v44 = vmax.f32 %v2243_v42, %v2244_v29  ;;  %v2251_v33 = vrot.slane %v2250_v56, 1  ;;  %v2258_v7 = vrot.slane %v2257_v19, 1  ;;  %v2267_v9 = vsel %vm2210_vm12, %v2148_v5, -inf }
 0x288   :  { %v2265_v13 = vrot.slane %v2264_v0, 1  ;;  %v2268_v22 = vrot.slane %v2267_v9, 4  ;;  %v2274_v26 = vsel %vm2210_vm12, %v2168_v24, -inf  ;;  %v2281_v15 = vsel %vm2210_vm12, %v2169_v11, -inf }
 0x289   :  { %v2252_v47 = vmax.f32 %v2250_v56, %v2251_v33  ;;  %v2259_v4 = vmax.f32 %v2257_v19, %v2258_v7  ;;  %v2474_v3 = vsel %vm1627_vm7, %v2245_v44, %v2473_v59  ;;  %v2275_v49 = vrot.slane %v2274_v26, 4 }
 0x28a   :  { %v2266_v39 = vmax.f32 %v2264_v0, %v2265_v13  ;;  %v2269_v35 = vmax.f32 %v2267_v9, %v2268_v22  ;;  %v2282_v36 = vrot.slane %v2281_v15, 4  ;;  %v2288_v31 = vsel %vm2210_vm12, %v2170_v51, -inf }
 0x28b   :  { %v2475_v37 = vsel %vm1629_vm8, %v2252_v47, %v2474_v3  ;;  %v2276_v40 = vmax.f32 %v2274_v26, %v2275_v49  ;;  %v2289_v45 = vrot.slane %v2288_v31, 4  ;;  %v2141_v55 = vadd.f32 %v12336_v61, %v2129_v41  ;;  %v2937_v3 = vld [vmem:[#allocation16 + $0x4f0] sm:$0xff] }
 0x28c   :  { %v2476_v27 = vsel %vm1631_vm9, %v2259_v4, %v2475_v37  ;;  %v2270_v48 = vrot.slane %v2269_v35, 2  ;;  %v2283_v28 = vmax.f32 %v2281_v15, %v2282_v36  ;;  %v2040_v38 = vadd.f32 %v2024_v52, %v12352_v1  ;;  %v2114_v32 = vpop.f32.mrf.mxu2  ;;  %2939 = vmatpush.msrb.mxu2 %v2937_v3 }
 0x28d   :  { %v12375_v54 = vsel %vm1633_vm10, %v2266_v39, %v2476_v27  ;;  %v2277_v57 = vrot.slane %v2276_v40, 2  ;;  %v2290_v43 = vmax.f32 %v2288_v31, %v2289_v45  ;;  %v2149_v60 = vmax.f32 %v2141_v55, 0.0  ;;  %v2027_v19 = vpop.f32.mrf.mxu1  ;;  %v2935_v45 = vld [vmem:[#allocation16 + $0x4e0] sm:$0xff] }
 0x28e   :  { %2503 = vst [vmem:[#allocation4 + $0x2] sm:$0xff] %v12375_v54  ;;  %v2271_v63 = vmax.f32 %v2269_v35, %v2270_v48  ;;  %v2284_v2 = vrot.slane %v2283_v28, 2  ;;  %v2130_v34 = vadd.f32 %v2114_v32, %v2040_v38  ;;  %2749 = vmatmul.f32.vlgmr.msra.gmra.mxu2 %v12375_v54  ;;  %v2041_v35 = vadd.f32 %v2027_v19, %v12362_v50 }
 0x28f   :  { %v2278_v6 = vmax.f32 %v2276_v40, %v2277_v57  ;;  %v2291_v1 = vrot.slane %v2290_v43, 2  ;;  %v2171_v58 = vrot.slane %v2149_v60, 2  ;;  %v2172_v12 = vrot.slane %v2149_v60, 4  ;;  %2940 = vmatpush.msrb.mxu2 %v2935_v45 }
 0x290   :  { %v2272_v14 = vrot.slane %v2271_v63, 1  ;;  %v2285_v53 = vmax.f32 %v2283_v28, %v2284_v2  ;;  %v2173_v46 = vrot.slane %v2149_v60, 6  ;;  %v2295_v21 = vsel %vm2210_vm12, %v2149_v60, -inf }
 0x291   :  { %v2279_v23 = vrot.slane %v2278_v6, 1  ;;  %v2292_v18 = vmax.f32 %v2290_v43, %v2291_v1  ;;  %v2296_v17 = vrot.slane %v2295_v21, 4  ;;  %v2302_v42 = vsel %vm2210_vm12, %v2171_v58, -inf  ;;  %v2933_v43 = vld [vmem:[#allocation16 + $0x4d0] sm:$0xff] }
 0x292   :  { %v2273_v25 = vmax.f32 %v2271_v63, %v2272_v14  ;;  %v2286_v8 = vrot.slane %v2285_v53, 1  ;;  %v2303_v59 = vrot.slane %v2302_v42, 4  ;;  %v2309_v20 = vsel %vm2210_vm12, %v2172_v12, -inf  ;;  %2941 = vmatpush.msrb.mxu2 %v2933_v43  ;;  %v2931_v12 = vld [vmem:[#allocation16 + $0x4c0] sm:$0xff] }
 0x293   :  { %v2280_v5 = vmax.f32 %v2278_v6, %v2279_v23  ;;  %v2293_v62 = vrot.slane %v2292_v18, 1  ;;  %v2297_v29 = vmax.f32 %v2295_v21, %v2296_v17  ;;  %v2310_v56 = vrot.slane %v2309_v20, 4  ;;  %v2923_v43 = vld [vmem:[#allocation16 + $0x480] sm:$0xff] }
 0x294   :  { %v2287_v41 = vmax.f32 %v2285_v53, %v2286_v8  ;;  %v2304_v0 = vmax.f32 %v2302_v42, %v2303_v59  ;;  %v2316_v24 = vsel %vm2210_vm12, %v2173_v46, -inf  ;;  %v2142_v11 = vadd.f32 %v12336_v61, %v2130_v34  ;;  %v2117_v9 = vpop.f32.mrf.mxu2  ;;  %2942 = vmatpush.msrb.mxu2 %v2931_v12  ;;  %v2579_v8 = vld [vmem:[#allocation16 + $0x1f8] sm:$0xff]  ;;  %v2834_v59 = vld [vmem:[#allocation16 + $0x3f0] sm:$0xff] }
 0x295   :  { %v2294_v51 = vmax.f32 %v2292_v18, %v2293_v62  ;;  %v2478_v44 = vsel %vm1621_vm4, %v2280_v5, %v2273_v25  ;;  %v2298_v33 = vrot.slane %v2297_v29, 2  ;;  %v2311_v7 = vmax.f32 %v2309_v20, %v2310_v56  ;;  %v12388_v13 = vld [vmem:[#allocation4 + $0x1] sm:$0xff]  ;;  %v2030_v23 = vpop.f32.mrf.mxu1  ;;  %v2835_v20 = vld [vmem:[#allocation16 + $0x3f8] sm:$0xff]  ;;  %2609 = vmatpush.msra.mxu3 %v2579_v8  ;;  %2836 = vmatpush.msrb.mxu0 %v2834_v59 }
 0x296   :  { %v2507_v22 = vld [vmem:[#allocation4] sm:$0xff]  ;;  %v2479_v26 = vsel %vm1623_vm5, %v2287_v41, %v2478_v44  ;;  %v2305_v15 = vrot.slane %v2304_v0, 2  ;;  %v2317_v47 = vrot.slane %v2316_v24, 4  ;;  %v2150_v4 = vmax.f32 %v2142_v11, 0.0  ;;  %2596 = vmatmul.f32.vlgmr.msrb.gmra.mxu3 %v12388_v13  ;;  %v2929_v41 = vld [vmem:[#allocation16 + $0x4b0] sm:$0xff]  ;;  %2865 = vmatpush.msra.mxu1 %v2835_v20 }
 0x297   :  { %2654 = vmatmul.f32.vlgmr.msra.gmra.mxu0 %v2507_v22  ;;  %v2480_v49 = vsel %vm1625_vm6, %v2294_v51, %v2479_v26  ;;  %v2299_v52 = vmax.f32 %v2297_v29, %v2298_v33  ;;  %v2312_v39 = vrot.slane %v2311_v7, 2  ;;  %2683 = vmatmul.f32.vlgmr.msrb.gmra.mxu1 %v2507_v22  ;;  %v2131_v56 = vadd.f32 %v2117_v9, %v2041_v35  ;;  %v2577_v44 = vld [vmem:[#allocation16 + $0x1e8] sm:$0xff]  ;;  %v2832_v33 = vld [vmem:[#allocation16 + $0x3e0] sm:$0xff] }
 0x298   :  { %v2306_v36 = vmax.f32 %v2304_v0, %v2305_v15  ;;  %v2318_v31 = vmax.f32 %v2316_v24, %v2317_v47  ;;  %v2174_v37 = vrot.slane %v2150_v4, 2  ;;  %v2175_v40 = vrot.slane %v2150_v4, 4  ;;  %2943 = vmatpush.msrb.mxu2 %v2929_v41  ;;  %2610 = vmatpush.msra.mxu3 %v2577_v44  ;;  %v2927_v9 = vld [vmem:[#allocation16 + $0x4a0] sm:$0xff] }
 0x299   :  { %v2300_v55 = vrot.slane %v2299_v52, 1  ;;  %v2313_v27 = vmax.f32 %v2311_v7, %v2312_v39  ;;  %v2176_v48 = vrot.slane %v2150_v4, 6  ;;  %v2323_v28 = vsel %vm2210_vm12, %v2150_v4, -inf  ;;  %v2833_v7 = vld [vmem:[#allocation16 + $0x3e8] sm:$0xff]  ;;  %2837 = vmatpush.msrb.mxu0 %v2832_v33  ;;  %v2831_v39 = vld [vmem:[#allocation16 + $0x3d8] sm:$0xff]  ;;  %v2822_v33 = vld [vmem:[#allocation16 + $0x390] sm:$0xff] }
 0x29a   :  { %v2307_v38 = vrot.slane %v2306_v36, 1  ;;  %v2319_v32 = vrot.slane %v2318_v31, 2  ;;  %v2324_v30 = vrot.slane %v2323_v28, 4  ;;  %v2330_v57 = vsel %vm2210_vm12, %v2174_v37, -inf  ;;  %2866 = vmatpush.msra.mxu1 %v2833_v7  ;;  %v2925_v37 = vld [vmem:[#allocation16 + $0x490] sm:$0xff]  ;;  %2944 = vmatpush.msrb.mxu2 %v2927_v9  ;;  %v2823_v7 = vld [vmem:[#allocation16 + $0x398] sm:$0xff] }
 0x29b   :  { %v2301_v50 = vmax.f32 %v2299_v52, %v2300_v55  ;;  %v2314_v60 = vrot.slane %v2313_v27, 1  ;;  %v2331_v63 = vrot.slane %v2330_v57, 4  ;;  %v2337_v2 = vsel %vm2210_vm12, %v2175_v40, -inf  ;;  %v2830_v52 = vld [vmem:[#allocation16 + $0x3d0] sm:$0xff] }
 0x29c   :  { %v2308_v34 = vmax.f32 %v2306_v36, %v2307_v38  ;;  %v2320_v6 = vmax.f32 %v2318_v31, %v2319_v32  ;;  %v2325_v1 = vmax.f32 %v2323_v28, %v2324_v30  ;;  %v2338_v58 = vrot.slane %v2337_v2, 4  ;;  %v2120_v19 = vpop.f32.mrf.mxu2  ;;  %2838 = vmatpush.msrb.mxu0 %v2830_v52  ;;  %2867 = vmatpush.msra.mxu1 %v2831_v39  ;;  %v2829_v28 = vld [vmem:[#allocation16 + $0x3c8] sm:$0xff] }
 0x29d   :  { %v2315_v14 = vmax.f32 %v2313_v27, %v2314_v60  ;;  %v2481_v53 = vsel %vm1627_vm7, %v2301_v50, %v2480_v49  ;;  %v2332_v46 = vmax.f32 %v2330_v57, %v2331_v63  ;;  %v2344_v21 = vsel %vm2210_vm12, %v2176_v48, -inf  ;;  %v2573_v27 = vld [vmem:[#allocation16 + $0x1c8] sm:$0xff]  ;;  %v2828_v48 = vld [vmem:[#allocation16 + $0x3c0] sm:$0xff]  ;;  %2945 = vmatpush.msrb.mxu2 %v2925_v37 }
 0x29e   :  { %v2321_v18 = vrot.slane %v2320_v6, 1  ;;  %v2482_v17 = vsel %vm1629_vm8, %v2308_v34, %v2481_v53  ;;  %v2326_v42 = vrot.slane %v2325_v1, 2  ;;  %v2339_v25 = vmax.f32 %v2337_v2, %v2338_v58  ;;  %2839 = vmatpush.msrb.mxu0 %v2828_v48  ;;  %2868 = vmatpush.msra.mxu1 %v2829_v28  ;;  %v2571_v34 = vld [vmem:[#allocation16 + $0x1b8] sm:$0xff]  ;;  %v2919_v37 = vld [vmem:[#allocation16 + $0x460] sm:$0xff]  ;;  %v2818_v48 = vld [vmem:[#allocation16 + $0x370] sm:$0xff] }
 0x29f   :  { %v2483_v5 = vsel %vm1631_vm9, %v2315_v14, %v2482_v17  ;;  %v2333_v62 = vrot.slane %v2332_v46, 2  ;;  %v2345_v29 = vrot.slane %v2344_v21, 4  ;;  %v2042_v51 = vadd.f32 %v2030_v23, %v12378_v10  ;;  %v2575_v10 = vld [vmem:[#allocation16 + $0x1d8] sm:$0xff]  ;;  %v2824_v17 = vld [vmem:[#allocation16 + $0x3a0] sm:$0xff]  ;;  %2946 = vmatpush.msrb.mxu2 %v2923_v43  ;;  %v2561_v43 = vld [vmem:[#allocation16 + $0x168] sm:$0xff] }
 0x2a0   :  { %v2322_v0 = vmax.f32 %v2320_v6, %v2321_v18  ;;  %v2327_v24 = vmax.f32 %v2325_v1, %v2326_v42  ;;  %v2340_v11 = vrot.slane %v2339_v25, 2  ;;  %v2143_v15 = vadd.f32 %v12336_v61, %v2131_v56  ;;  %2611 = vmatpush.msra.mxu3 %v2575_v10  ;;  %v2826_v6 = vld [vmem:[#allocation16 + $0x3b0] sm:$0xff]  ;;  %v2827_v1 = vld [vmem:[#allocation16 + $0x3b8] sm:$0xff]  ;;  %v2569_v18 = vld [vmem:[#allocation16 + $0x1a8] sm:$0xff] }
 0x2a1   :  { %v2334_v22 = vmax.f32 %v2332_v46, %v2333_v62  ;;  %v2346_v26 = vmax.f32 %v2344_v21, %v2345_v29  ;;  %v2132_v49 = vadd.f32 %v2120_v19, %v2042_v51  ;;  %2840 = vmatpush.msrb.mxu0 %v2826_v6  ;;  %2869 = vmatpush.msra.mxu1 %v2827_v1  ;;  %v2825_v42 = vld [vmem:[#allocation16 + $0x3a8] sm:$0xff]  ;;  %v2819_v28 = vld [vmem:[#allocation16 + $0x378] sm:$0xff]  ;;  %v2033_v1 = vpop.f32.mrf.mxu1 }
 0x2a2   :  { %v12404_v47 = vsel %vm1633_vm10, %v2322_v0, %v2483_v5  ;;  %v2328_v4 = vrot.slane %v2327_v24, 1  ;;  %v2341_v3 = vmax.f32 %v2339_v25, %v2340_v11  ;;  %v2151_v31 = vmax.f32 %v2143_v15, 0.0  ;;  %2612 = vmatpush.msra.mxu3 %v2573_v27  ;;  %v2567_v0 = vld [vmem:[#allocation16 + $0x198] sm:$0xff] }
 0x2a3   :  { %2504 = vst [vmem:[#allocation4 + $0xa] sm:$0xff] %v12404_v47  ;;  %v2335_v35 = vrot.slane %v2334_v22, 1  ;;  %v2347_v36 = vrot.slane %v2346_v26, 2  ;;  %2752 = vmatmul.f32.gmra.mxu2 %v12404_v47  ;;  %v2144_v55 = vadd.f32 %v12336_v61, %v2132_v49  ;;  %2841 = vmatpush.msrb.mxu0 %v2824_v17  ;;  %v2820_v49 = vld [vmem:[#allocation16 + $0x380] sm:$0xff] }
 0x2a4   :  { %v2329_v40 = vmax.f32 %v2327_v24, %v2328_v4  ;;  %v2342_v45 = vrot.slane %v2341_v3, 1  ;;  %v2177_v30 = vrot.slane %v2151_v31, 2  ;;  %v2178_v57 = vrot.slane %v2151_v31, 4  ;;  %2613 = vmatpush.msra.mxu3 %v2571_v34  ;;  %2870 = vmatpush.msra.mxu1 %v2825_v42 }
 0x2a5   :  { %v2336_v38 = vmax.f32 %v2334_v22, %v2335_v35  ;;  %v2348_v32 = vmax.f32 %v2346_v26, %v2347_v36  ;;  %v2179_v60 = vrot.slane %v2151_v31, 6  ;;  %v2351_v63 = vsel %vm2210_vm12, %v2151_v31, -inf  ;;  %v2921_v22 = vld [vmem:[#allocation16 + $0x470] sm:$0xff]  ;;  %2842 = vmatpush.msrb.mxu0 %v2822_v33  ;;  %v2821_v36 = vld [vmem:[#allocation16 + $0x388] sm:$0xff]  ;;  %v2563_v31 = vld [vmem:[#allocation16 + $0x178] sm:$0xff] }
 0x2a6   :  { %v2343_v50 = vmax.f32 %v2341_v3, %v2342_v45  ;;  %v12410_v2 = vmax.f32 %v2144_v55, 0.0  ;;  %v2352_v14 = vrot.slane %v2351_v63, 4  ;;  %v2358_v53 = vsel %vm2210_vm12, %v2177_v30, -inf  ;;  %2614 = vmatpush.msra.mxu3 %v2569_v18  ;;  %v2565_v3 = vld [vmem:[#allocation16 + $0x188] sm:$0xff]  ;;  %2871 = vmatpush.msra.mxu1 %v2823_v7 }
 0x2a7   :  { %v2349_v58 = vrot.slane %v2348_v32, 1  ;;  %v2485_v12 = vsel %vm1621_vm4, %v2336_v38, %v2329_v40  ;;  %v2359_v46 = vrot.slane %v2358_v53, 4  ;;  %v2365_v21 = vsel %vm2210_vm12, %v2178_v57, -inf  ;;  %2947 = vmatpush.msrb.mxu2 %v2921_v22  ;;  %2843 = vmatpush.msrb.mxu0 %v2820_v49  ;;  %v2813_v7 = vld [vmem:[#allocation16 + $0x348] sm:$0xff]  ;;  %v2555_v22 = vld [vmem:[#allocation16 + $0x138] sm:$0xff] }
 0x2a8   :  { %v2372_v23 = vsel %vm2210_vm12, %v2179_v60, -inf  ;;  %v12417_v25 = vsel %vm1623_vm5, %v2343_v50, %v2485_v12  ;;  %v2353_v8 = vmax.f32 %v2351_v63, %v2352_v14  ;;  %v2366_v59 = vrot.slane %v2365_v21, 4  ;;  %2615 = vmatpush.msra.mxu3 %v2567_v0  ;;  %2872 = vmatpush.msra.mxu1 %v2821_v36  ;;  %v2917_v50 = vld [vmem:[#allocation16 + $0x450] sm:$0xff]  ;;  %v1943_v60 = vpop.f32.mrf.mxu3  ;;  %v2808_v36 = vld [vmem:[#allocation16 + $0x320] sm:$0xff] }
 0x2a9   :  { %v2373_v20 = vrot.slane %v2372_v23, 4  ;;  %v2360_v5 = vmax.f32 %v2358_v53, %v2359_v46  ;;  %v2180_v62 = vrot.slane %v12410_v2, 2  ;;  %v2181_v29 = vrot.slane %v12410_v2, 4  ;;  %2948 = vmatpush.msrb.mxu2 %v2919_v37  ;;  %2844 = vmatpush.msrb.mxu0 %v2818_v48 }
 0x2aa   :  { %v2182_v56 = vrot.slane %v12410_v2, 6  ;;  %v12422_v19 = vld [vmem:[#allocation4 + $0x9] sm:$0xff]  ;;  %v2350_v24 = vmax.f32 %v2348_v32, %v2349_v58  ;;  %v2354_v11 = vrot.slane %v2353_v8, 2  ;;  %v2367_v51 = vmax.f32 %v2365_v21, %v2366_v59  ;;  %2616 = vmatpush.msra.mxu3 %v2565_v3  ;;  %v2816_v58 = vld [vmem:[#allocation16 + $0x360] sm:$0xff]  ;;  %2873 = vmatpush.msra.mxu1 %v2819_v28  ;;  %v2817_v21 = vld [vmem:[#allocation16 + $0x368] sm:$0xff] }
 0x2ab   :  { %v2508_v41 = vld [vmem:[#allocation4 + $0x8] sm:$0xff]  ;;  %v2374_v44 = vmax.f32 %v2372_v23, %v2373_v20  ;;  %2599 = vmatmul.f32.gmra.mxu3 %v12422_v19  ;;  %v2361_v26 = vrot.slane %v2360_v5, 2  ;;  %v2379_v15 = vsel %vm2210_vm12, %v12410_v2, -inf  ;;  %v2386_v9 = vsel %vm2210_vm12, %v2180_v62, -inf  ;;  %v2559_v23 = vld [vmem:[#allocation16 + $0x158] sm:$0xff]  ;;  %2949 = vmatpush.msrb.mxu2 %v2917_v50  ;;  %v2915_v20 = vld [vmem:[#allocation16 + $0x440] sm:$0xff] }
 0x2ac   :  { %2657 = vmatmul.f32.gmra.mxu0 %v2508_v41  ;;  %v2393_v4 = vsel %vm2210_vm12, %v2181_v29, -inf  ;;  %2686 = vmatmul.f32.gmra.mxu1 %v2508_v41  ;;  %v2355_v10 = vmax.f32 %v2353_v8, %v2354_v11  ;;  %v2368_v52 = vrot.slane %v2367_v51, 2  ;;  %v2380_v35 = vrot.slane %v2379_v15, 4  ;;  %v2123_v8 = vpop.f32.mrf.mxu2  ;;  %v2814_v59 = vld [vmem:[#allocation16 + $0x350] sm:$0xff]  ;;  %v2557_v41 = vld [vmem:[#allocation16 + $0x148] sm:$0xff] }
 0x2ad   :  { %v2375_v39 = vrot.slane %v2374_v44, 2  ;;  %v2362_v40 = vmax.f32 %v2360_v5, %v2361_v26  ;;  %v2387_v45 = vrot.slane %v2386_v9, 4  ;;  %v2394_v55 = vrot.slane %v2393_v4, 4  ;;  %2617 = vmatpush.msra.mxu3 %v2563_v31  ;;  %2845 = vmatpush.msrb.mxu0 %v2816_v58  ;;  %v2911_v31 = vld [vmem:[#allocation16 + $0x420] sm:$0xff] }
 0x2ae   :  { %v2400_v27 = vsel %vm2210_vm12, %v2182_v56, -inf  ;;  %v2356_v38 = vrot.slane %v2355_v10, 1  ;;  %v2369_v32 = vmax.f32 %v2367_v51, %v2368_v52  ;;  %v2381_v57 = vmax.f32 %v2379_v15, %v2380_v35  ;;  %v2815_v56 = vld [vmem:[#allocation16 + $0x358] sm:$0xff]  ;;  %2874 = vmatpush.msra.mxu1 %v2817_v21  ;;  %2950 = vmatpush.msrb.mxu2 %v2915_v20  ;;  %v2553_v52 = vld [vmem:[#allocation16 + $0x128] sm:$0xff]  ;;  %v2907_v58 = vld [vmem:[#allocation16 + $0x400] sm:$0xff] }
 0x2af   :  { %v2376_v30 = vmax.f32 %v2374_v44, %v2375_v39  ;;  %v2363_v63 = vrot.slane %v2362_v40, 1  ;;  %v2388_v2 = vmax.f32 %v2386_v9, %v2387_v45  ;;  %v2395_v34 = vmax.f32 %v2393_v4, %v2394_v55  ;;  %2618 = vmatpush.msra.mxu3 %v2561_v43  ;;  %2846 = vmatpush.msrb.mxu0 %v2814_v59  ;;  %v2810_v9 = vld [vmem:[#allocation16 + $0x330] sm:$0xff]  ;;  %v2551_v45 = vld [vmem:[#allocation16 + $0x118] sm:$0xff] }
 0x2b0   :  { %v2401_v6 = vrot.slane %v2400_v27, 4  ;;  %v1953_v12 = vadd.f32 %v1943_v60, %v12332_v16  ;;  %v2357_v14 = vmax.f32 %v2355_v10, %v2356_v38  ;;  %v2370_v53 = vrot.slane %v2369_v32, 1  ;;  %2875 = vmatpush.msra.mxu1 %v2815_v56  ;;  %v2913_v4 = vld [vmem:[#allocation16 + $0x430] sm:$0xff]  ;;  %v2811_v10 = vld [vmem:[#allocation16 + $0x338] sm:$0xff]  ;;  %v2730_v56 = vld [vmem:[#allocation16 + $0x2e8] sm:$0xff] }
 0x2b1   :  { %v2377_v46 = vrot.slane %v2376_v30, 1  ;;  %v2487_v18 = vsel %vm1625_vm6, %v2350_v24, %v12417_v25  ;;  %v2364_v17 = vmax.f32 %v2362_v40, %v2363_v63  ;;  %v2389_v42 = vrot.slane %v2388_v2, 2  ;;  %2619 = vmatpush.msra.mxu3 %v2559_v23  ;;  %v2812_v24 = vld [vmem:[#allocation16 + $0x340] sm:$0xff]  ;;  %2951 = vmatpush.msrb.mxu2 %v2913_v4  ;;  %v2809_v40 = vld [vmem:[#allocation16 + $0x328] sm:$0xff] }
 0x2b2   :  { %v2371_v5 = vmax.f32 %v2369_v32, %v2370_v53  ;;  %v2488_v16 = vsel %vm1627_vm7, %v2357_v14, %v2487_v18  ;;  %v2382_v62 = vrot.slane %v2381_v57, 2  ;;  %v2043_v29 = vadd.f32 %v2033_v1, %v1953_v12  ;;  %2847 = vmatpush.msrb.mxu0 %v2812_v24  ;;  %2876 = vmatpush.msra.mxu1 %v2813_v7  ;;  %v2804_v1 = vld [vmem:[#allocation16 + $0x300] sm:$0xff]  ;;  %v2805_v18 = vld [vmem:[#allocation16 + $0x308] sm:$0xff]  ;;  %v2728_v24 = vld [vmem:[#allocation16 + $0x2d8] sm:$0xff] }
 0x2b3   :  { %v2378_v0 = vmax.f32 %v2376_v30, %v2377_v46  ;;  %v2489_v11 = vsel %vm1629_vm8, %v2364_v17, %v2488_v16  ;;  %v2396_v51 = vrot.slane %v2395_v34, 2  ;;  %v2402_v25 = vmax.f32 %v2400_v27, %v2401_v6  ;;  %2620 = vmatpush.msra.mxu3 %v2557_v41  ;;  %v2909_v27 = vld [vmem:[#allocation16 + $0x410] sm:$0xff]  ;;  %2952 = vmatpush.msrb.mxu2 %v2911_v31  ;;  %v2807_v30 = vld [vmem:[#allocation16 + $0x318] sm:$0xff] }
 0x2b4   :  { %v2490_v44 = vsel %vm1631_vm9, %v2371_v5, %v2489_v11  ;;  %v2133_v33 = vadd.f32 %v2123_v8, %v2043_v29  ;;  %v2390_v15 = vmax.f32 %v2388_v2, %v2389_v42  ;;  %v2383_v3 = vmax.f32 %v2381_v57, %v2382_v62  ;;  %2848 = vmatpush.msrb.mxu0 %v2810_v9  ;;  %v2549_v57 = vld [vmem:[#allocation16 + $0x108] sm:$0xff]  ;;  %v2732_v8 = vld [vmem:[#allocation16 + $0x2f8] sm:$0xff] }
 0x2b5   :  { %v12437_v26 = vsel %vm1633_vm10, %v2378_v0, %v2490_v44  ;;  %v2397_v39 = vmax.f32 %v2395_v34, %v2396_v51  ;;  %v2403_v35 = vrot.slane %v2402_v25, 2  ;;  %2621 = vmatpush.msra.mxu3 %v2555_v22  ;;  %2877 = vmatpush.msra.mxu1 %v2811_v10  ;;  %v2726_v9 = vld [vmem:[#allocation16 + $0x2c8] sm:$0xff] }
 0x2b6   :  { %2505 = vst [vmem:[#allocation4 + $0x1a] sm:$0xff] %v12437_v26  ;;  %v2145_v49 = vadd.f32 %v12336_v61, %v2133_v33  ;;  %2755 = vmatmul.f32.gmra.mxu2 %v12437_v26  ;;  %v2391_v55 = vrot.slane %v2390_v15, 1  ;;  %v2806_v61 = vld [vmem:[#allocation16 + $0x310] sm:$0xff]  ;;  %v2384_v48 = vrot.slane %v2383_v3, 1  ;;  %2849 = vmatpush.msrb.mxu0 %v2808_v36 }
 0x2b7   :  { %2622 = vmatpush.msra.mxu3 %v2553_v52  ;;  %v2398_v43 = vrot.slane %v2397_v39, 1  ;;  %v2404_v50 = vmax.f32 %v2402_v25, %v2403_v35  ;;  %2878 = vmatpush.msra.mxu1 %v2809_v40  ;;  %v2722_v40 = vld [vmem:[#allocation16 + $0x2a8] sm:$0xff] }
 0x2b8   :  { %v2153_v37 = vmax.f32 %v2145_v49, 0.0  ;;  %2850 = vmatpush.msrb.mxu0 %v2806_v61  ;;  %2953 = vmatpush.msrb.mxu2 %v2909_v27  ;;  %v2392_v12 = vmax.f32 %v2390_v15, %v2391_v55  ;;  %v2385_v17 = vmax.f32 %v2383_v3, %v2384_v48  ;;  %v2720_v27 = vld [vmem:[#allocation16 + $0x298] sm:$0xff] }
 0x2b9   :  { %2623 = vmatpush.msra.mxu3 %v2551_v45  ;;  %2879 = vmatpush.msra.mxu1 %v2807_v30  ;;  %v2399_v16 = vmax.f32 %v2397_v39, %v2398_v43  ;;  %v2405_v62 = vrot.slane %v2404_v50, 1  ;;  %v2724_v39 = vld [vmem:[#allocation16 + $0x2b8] sm:$0xff] }
 0x2ba   :  { %v2183_v28 = vrot.slane %v2153_v37, 2  ;;  %v2184_v38 = vrot.slane %v2153_v37, 4  ;;  %v2185_v32 = vrot.slane %v2153_v37, 6  ;;  %v2407_v60 = vsel %vm2210_vm12, %v2153_v37, -inf  ;;  %2851 = vmatpush.msrb.mxu0 %v2804_v1  ;;  %2954 = vmatpush.msrb.mxu2 %v2907_v58  ;;  %v2712_v43 = vld [vmem:[#allocation16 + $0x258] sm:$0xff]  ;;  %v2702_v58 = vld [vmem:[#allocation16 + $0x208] sm:$0xff] }
 0x2bb   :  { %v2408_v63 = vrot.slane %v2407_v60, 4  ;;  %2624 = vmatpush.msra.mxu3 %v2549_v57  ;;  %2880 = vmatpush.msra.mxu1 %v2805_v18  ;;  %v2492_v41 = vsel %vm1621_vm4, %v2392_v12, %v2385_v17  ;;  %v2406_v4 = vmax.f32 %v2404_v50, %v2405_v62  ;;  %v12460_v50 = vld [vmem:[#allocation4 + $0x4] sm:$0xff]  ;;  %v2704_v1 = vld [vmem:[#allocation16 + $0x218] sm:$0xff] }
 0x2bc   :  { %v2414_v2 = vsel %vm2210_vm12, %v2183_v28, -inf  ;;  %v2421_v34 = vsel %vm2210_vm12, %v2184_v38, -inf  ;;  %v2428_v6 = vsel %vm2210_vm12, %v2185_v32, -inf  ;;  %v2493_v22 = vsel %vm1623_vm5, %v2399_v16, %v2492_v41  ;;  %v2718_v28 = vld [vmem:[#allocation16 + $0x288] sm:$0xff]  ;;  %v2716_v38 = vld [vmem:[#allocation16 + $0x278] sm:$0xff] }
 0x2bd   :  { %v2415_v14 = vrot.slane %v2414_v2, 4  ;;  %v2422_v53 = vrot.slane %v2421_v34, 4  ;;  %v2429_v46 = vrot.slane %v2428_v6, 4  ;;  %v12446_v21 = vld [vmem:[#allocation4 + $0x19] sm:$0xff]  ;;  %v2409_v42 = vmax.f32 %v2407_v60, %v2408_v63  ;;  %2762 = vmatpush.msrb.mxu3 %v2732_v8  ;;  %v2708_v63 = vld [vmem:[#allocation16 + $0x238] sm:$0xff] }
 0x2be   :  { %v2509_v23 = vld [vmem:[#allocation4 + $0x18] sm:$0xff]  ;;  %2602 = vmatmul.f32.gmra.mxu3 %v12446_v21  ;;  %v2494_v35 = vsel %vm1625_vm6, %v2406_v4, %v2493_v22  ;;  %v2714_v32 = vld [vmem:[#allocation16 + $0x268] sm:$0xff]  ;;  %v2938_v12 = vld [vmem:[#allocation16 + $0x4f8] sm:$0xff] }
 0x2bf   :  { %2660 = vmatmul.f32.gmra.mxu0 %v2509_v23  ;;  %v2416_v59 = vmax.f32 %v2414_v2, %v2415_v14  ;;  %v2423_v20 = vmax.f32 %v2421_v34, %v2422_v53  ;;  %v2430_v5 = vmax.f32 %v2428_v6, %v2429_v46  ;;  %2689 = vmatmul.f32.gmra.mxu1 %v2509_v23  ;;  %v2410_v29 = vrot.slane %v2409_v42, 2  ;;  %v2710_v60 = vld [vmem:[#allocation16 + $0x248] sm:$0xff]  ;;  %v2903_v6 = vld [vmem:[#allocation4 + $0xc] sm:$0xff] }
 0x2c0   :  { %2763 = vmatpush.msrb.mxu3 %v2730_v56  ;;  %v2799_v2 = vld [vmem:[#allocation4 + $0x3] sm:$0xff]  ;;  %v2800_v14 = vld [vmem:[#allocation4 + $0xb] sm:$0xff] }
 0x2c1   :  { %v2417_v0 = vrot.slane %v2416_v59, 2  ;;  %v2424_v11 = vrot.slane %v2423_v20, 2  ;;  %v2431_v51 = vrot.slane %v2430_v5, 2  ;;  %v2411_v25 = vmax.f32 %v2409_v42, %v2410_v29  ;;  %v2706_v34 = vld [vmem:[#allocation16 + $0x228] sm:$0xff]  ;;  %v2930_v17 = vld [vmem:[#allocation16 + $0x4b8] sm:$0xff] }
 0x2c2   :  { %2764 = vmatpush.msrb.mxu3 %v2728_v24  ;;  %v2936_v53 = vld [vmem:[#allocation16 + $0x4e8] sm:$0xff]  ;;  %v2918_v62 = vld [vmem:[#allocation16 + $0x458] sm:$0xff] }
 0x2c3   :  { %v2418_v44 = vmax.f32 %v2416_v59, %v2417_v0  ;;  %v2425_v33 = vmax.f32 %v2423_v20, %v2424_v11  ;;  %v2432_v7 = vmax.f32 %v2430_v5, %v2431_v51  ;;  %v2412_v15 = vrot.slane %v2411_v25, 1  ;;  %v2932_v23 = vld [vmem:[#allocation16 + $0x4c8] sm:$0xff]  ;;  %v2922_v5 = vld [vmem:[#allocation16 + $0x478] sm:$0xff] }
 0x2c4   :  { %2765 = vmatpush.msrb.mxu3 %v2726_v9  ;;  %v2928_v8 = vld [vmem:[#allocation16 + $0x4a8] sm:$0xff]  ;;  %v2914_v29 = vld [vmem:[#allocation16 + $0x438] sm:$0xff] }
 0x2c5   :  { %v2419_v3 = vrot.slane %v2418_v44, 1  ;;  %v2426_v49 = vrot.slane %v2425_v33, 1  ;;  %v2433_v10 = vrot.slane %v2432_v7, 1  ;;  %v2413_v52 = vmax.f32 %v2411_v25, %v2412_v15  ;;  %v2924_v59 = vld [vmem:[#allocation16 + $0x488] sm:$0xff]  ;;  %v2910_v41 = vld [vmem:[#allocation16 + $0x418] sm:$0xff] }
 0x2c6   :  { %2766 = vmatpush.msrb.mxu3 %v2724_v39  ;;  %v2920_v16 = vld [vmem:[#allocation16 + $0x468] sm:$0xff] }
 0x2c7   :  { %v2420_v36 = vmax.f32 %v2418_v44, %v2419_v3  ;;  %v2427_v31 = vmax.f32 %v2425_v33, %v2426_v49  ;;  %v2495_v37 = vsel %vm1627_vm7, %v2413_v52, %v2494_v35  ;;  %v2434_v45 = vmax.f32 %v2432_v7, %v2433_v10  ;;  %v2912_v56 = vld [vmem:[#allocation16 + $0x428] sm:$0xff] }
 0x2c8   :  { %2767 = vmatpush.msrb.mxu3 %v2722_v40  ;;  %v2908_v0 = vld [vmem:[#allocation16 + $0x408] sm:$0xff] }
 0x2c9   :  { %v2496_v55 = vsel %vm1629_vm8, %v2420_v36, %v2495_v37 }
 0x2ca   :  { %v2497_v61 = vsel %vm1631_vm9, %v2427_v31, %v2496_v55  ;;  %2768 = vmatpush.msrb.mxu3 %v2720_v27 }
 0x2cb   :  { %v12456_v48 = vsel %vm1633_vm10, %v2434_v45, %v2497_v61  ;;  %v3005_v61 = vld [vmem:[#allocation17] sm:$0x3] }
 0x2cc   :  { %2506 = vst [vmem:[#allocation4 + $0x22] sm:$0xff] %v12456_v48  ;;  %2758 = vmatmul.f32.gmra.mxu2 %v12456_v48  ;;  %2769 = vmatpush.msrb.mxu3 %v2718_v28 }
 0x2ce   :  { %2770 = vmatpush.msrb.mxu3 %v2716_v38  ;;  %v12475_v38 = vperm.slane %v3005_v61, 0 }
 0x2d0   :  { %2771 = vmatpush.msrb.mxu3 %v2714_v32 }
 0x2d2   :  { %2772 = vmatpush.msrb.mxu3 %v2712_v43 }
 0x2d3   :  { %v2546_v30 = vld [vmem:[#allocation4 + $0x21] sm:$0xff] }
 0x2d4   :  { %v2510_v57 = vld [vmem:[#allocation4 + $0x20] sm:$0xff]  ;;  %2605 = vmatmul.f32.gmra.mxu3 %v2546_v30  ;;  %2955 = vmatmul.f32.vlgmr.msrb.gmra.mxu2 %v12460_v50 }
 0x2d5   :  { %2663 = vmatmul.f32.gmra.mxu0 %v2510_v57  ;;  %2692 = vmatmul.f32.gmra.mxu1 %v2510_v57  ;;  %v2904_v46 = vld [vmem:[#allocation4 + $0x1c] sm:$0xff]  ;;  %v2905_v42 = vld [vmem:[#allocation4 + $0x24] sm:$0xff] }
 0x2d6   :  { %2773 = vmatpush.msrb.mxu3 %v2710_v60  ;;  %v2801_v18 = vld [vmem:[#allocation4 + $0x1b] sm:$0xff]  ;;  %v2802_v20 = vld [vmem:[#allocation4 + $0x23] sm:$0xff] }
 0x2d8   :  { %2774 = vmatpush.msrb.mxu3 %v2708_v63 }
 0x2da   :  { %2775 = vmatpush.msrb.mxu3 %v2706_v34 }
 0x2dc   :  { %2625 = vmatmul.f32.vlgmr.msra.gmra.mxu3 %v12388_v13  ;;  %2958 = vmatmul.f32.gmra.mxu2 %v2903_v6  ;;  %v2934_v13 = vld [vmem:[#allocation16 + $0x4d8] sm:$0xff] }
 0x2dd   :  { %2852 = vmatmul.f32.vlgmr.msrb.gmra.mxu0 %v2799_v2  ;;  %2881 = vmatmul.f32.vlgmr.msra.gmra.mxu1 %v2799_v2 }
 0x2de   :  { %2776 = vmatpush.msrb.mxu3 %v2704_v1 }
 0x2e0   :  { %2777 = vmatpush.msrb.mxu3 %v2702_v58 }
 0x2e2   :  { %2968 = vmatpush.msra.mxu3 %v2938_v12 }
 0x2e4   :  { %2628 = vmatmul.f32.gmra.mxu3 %v12422_v19  ;;  %2961 = vmatmul.f32.gmra.mxu2 %v2904_v46  ;;  %v2926_v19 = vld [vmem:[#allocation16 + $0x498] sm:$0xff] }
 0x2e5   :  { %2855 = vmatmul.f32.gmra.mxu0 %v2800_v14  ;;  %2884 = vmatmul.f32.gmra.mxu1 %v2800_v14 }
 0x2e6   :  { %2969 = vmatpush.msra.mxu3 %v2936_v53 }
 0x2e8   :  { %2970 = vmatpush.msra.mxu3 %v2934_v13 }
 0x2ea   :  { %2971 = vmatpush.msra.mxu3 %v2932_v23 }
 0x2ec   :  { %2631 = vmatmul.f32.gmra.mxu3 %v12446_v21  ;;  %2964 = vmatmul.f32.gmra.mxu2 %v2905_v42  ;;  %v2916_v21 = vld [vmem:[#allocation16 + $0x448] sm:$0xff] }
 0x2ed   :  { %2858 = vmatmul.f32.gmra.mxu0 %v2801_v18  ;;  %2887 = vmatmul.f32.gmra.mxu1 %v2801_v18 }
 0x2ee   :  { %2972 = vmatpush.msra.mxu3 %v2930_v17  ;;  %v12482_v17 = vperm.slane %v3005_v61, 1 }
 0x2f0   :  { %2973 = vmatpush.msra.mxu3 %v2928_v8 }
 0x2f2   :  { %2974 = vmatpush.msra.mxu3 %v2926_v19 }
 0x2f4   :  { %2634 = vmatmul.f32.gmra.mxu3 %v2546_v30 }
 0x2f5   :  { %2861 = vmatmul.f32.gmra.mxu0 %v2802_v20  ;;  %2890 = vmatmul.f32.gmra.mxu1 %v2802_v20 }
 0x2f6   :  { %2975 = vmatpush.msra.mxu3 %v2924_v59 }
 0x2f8   :  { %2976 = vmatpush.msra.mxu3 %v2922_v5 }
 0x2fa   :  { %2977 = vmatpush.msra.mxu3 %v2920_v16 }
 0x2fc   :  { %2978 = vmatpush.msra.mxu3 %v2918_v62 }
 0x2fd   :  { %2778 = vmatmul.f32.vlgmr.msrb.gmra.mxu3 %v12375_v54 }
 0x2fe   :  { %2979 = vmatpush.msra.mxu3 %v2916_v21 }
 0x300   :  { %2980 = vmatpush.msra.mxu3 %v2914_v29 }
 0x302   :  { %2981 = vmatpush.msra.mxu3 %v2912_v56 }
 0x304   :  { %2982 = vmatpush.msra.mxu3 %v2910_v41 }
 0x305   :  { %2781 = vmatmul.f32.gmra.mxu3 %v12404_v47 }
 0x306   :  { %2983 = vmatpush.msra.mxu3 %v2908_v0 }
 0x30d   :  { %2784 = vmatmul.f32.gmra.mxu3 %v12437_v26 }
 0x311   :  { %v2750_v54 = vpop.f32.mrf.mxu2 }
 0x314   :  { %v2655_v11 = vpop.f32.mrf.mxu0  ;;  %v2684_v10 = vpop.f32.mrf.mxu1 }
 0x315   :  { %2787 = vmatmul.f32.gmra.mxu3 %v12456_v48 }
 0x319   :  { %v2597_v51 = vpop.f32.mrf.mxu3 }
 0x31a   :  { %v2656_v34 = vadd.f32 %v2655_v11, %v2597_v51 }
 0x31c   :  { %v2791_v1 = vadd.f32 %v2750_v54, %v2656_v34 }
 0x31d   :  { %2984 = vmatmul.f32.vlgmr.msra.gmra.mxu3 %v12460_v50 }
 0x325   :  { %2987 = vmatmul.f32.gmra.mxu3 %v2903_v6 }
 0x326   :  { %v2753_v25 = vpop.f32.mrf.mxu2 }
 0x329   :  { %v2658_v24 = vpop.f32.mrf.mxu0  ;;  %v2687_v36 = vpop.f32.mrf.mxu1 }
 0x32d   :  { %2990 = vmatmul.f32.gmra.mxu3 %v2904_v46 }
 0x32e   :  { %v2600_v44 = vpop.f32.mrf.mxu3 }
 0x32f   :  { %v2659_v13 = vadd.f32 %v2658_v24, %v2600_v44 }
 0x331   :  { %v2793_v19 = vadd.f32 %v2753_v25, %v2659_v13 }
 0x335   :  { %2993 = vmatmul.f32.gmra.mxu3 %v2905_v42 }
 0x339   :  { %v12471_v33 = vpop.f32.mrf.mxu2 }
 0x33c   :  { %v2661_v7 = vpop.f32.mrf.mxu0  ;;  %v2690_v45 = vpop.f32.mrf.mxu1 }
 0x341   :  { %v2603_v47 = vpop.f32.mrf.mxu3 }
 0x342   :  { %v2662_v56 = vadd.f32 %v2661_v7, %v2603_v47 }
 0x34f   :  { %v2759_v22 = vpop.f32.mrf.mxu2 }
 0x352   :  { %v2664_v15 = vpop.f32.mrf.mxu0  ;;  %v2693_v57 = vpop.f32.mrf.mxu1 }
 0x357   :  { %v2606_v26 = vpop.f32.mrf.mxu3  ;;  %v2956_v4 = vpop.f32.mrf.mxu2 }
 0x358   :  { %v2665_v9 = vadd.f32 %v2664_v15, %v2606_v26 }
 0x35a   :  { %v2853_v3 = vpop.f32.mrf.mxu0  ;;  %v2797_v49 = vadd.f32 %v2759_v22, %v2665_v9  ;;  %v2882_v14 = vpop.f32.mrf.mxu1  ;;  %v2795_v22 = vadd.f32 %v12471_v33, %v2662_v56 }
 0x35b   :  { %v2894_v53 = vadd.f32 %v2853_v3, %v2791_v1 }
 0x35d   :  { %v2997_v23 = vadd.f32 %v2956_v4, %v2894_v53 }
 0x35f   :  { %v2626_v52 = vpop.f32.mrf.mxu3  ;;  %v2959_v39 = vpop.f32.mrf.mxu2  ;;  %v3011_v20 = vadd.f32 %v12475_v38, %v2997_v23 }
 0x360   :  { %v2685_v58 = vadd.f32 %v2684_v10, %v2626_v52 }
 0x361   :  { %v3019_v41 = vmax.f32 %v3011_v20, 0.0 }
 0x362   :  { %v2856_v35 = vpop.f32.mrf.mxu0  ;;  %v2885_v62 = vpop.f32.mrf.mxu1 }
 0x363   :  { %v2896_v16 = vadd.f32 %v2856_v35, %v2793_v19 }
 0x365   :  { %v2999_v54 = vadd.f32 %v2959_v39, %v2896_v16 }
 0x367   :  { %v2629_v31 = vpop.f32.mrf.mxu3  ;;  %v12473_v40 = vpop.f32.mrf.mxu2  ;;  %v3013_v7 = vadd.f32 %v12475_v38, %v2999_v54 }
 0x368   :  { %v2688_v59 = vadd.f32 %v2687_v36, %v2629_v31 }
 0x369   :  { %v3021_v33 = vmax.f32 %v3013_v7, 0.0 }
 0x36a   :  { %v2859_v37 = vpop.f32.mrf.mxu0 }
 0x36b   :  { %v2898_v47 = vadd.f32 %v2859_v37, %v2795_v22 }
 0x36d   :  { %v3001_v35 = vadd.f32 %v12473_v40, %v2898_v47 }
 0x36f   :  { %v2632_v55 = vpop.f32.mrf.mxu3  ;;  %v2965_v28 = vpop.f32.mrf.mxu2 }
 0x370   :  { %v2691_v24 = vadd.f32 %v2690_v45, %v2632_v55 }
 0x372   :  { %v2862_v27 = vpop.f32.mrf.mxu0 }
 0x373   :  { %v2900_v48 = vadd.f32 %v2862_v27, %v2797_v49  ;;  %v2888_v49 = vpop.f32.mrf.mxu1 }
 0x375   :  { %v3003_v32 = vadd.f32 %v2965_v28, %v2900_v48 }
 0x377   :  { %v12478_v30 = vadd.f32 %v12475_v38, %v3003_v32  ;;  %v2635_v43 = vpop.f32.mrf.mxu3 }
 0x378   :  { %v2694_v50 = vadd.f32 %v2693_v57, %v2635_v43 }
 0x380   :  { %v2779_v60 = vpop.f32.mrf.mxu3 }
 0x381   :  { %v2792_v46 = vadd.f32 %v2779_v60, %v2685_v58  ;;  %v3015_v60 = vadd.f32 %v12475_v38, %v3001_v35 }
 0x383   :  { %v2895_v18 = vadd.f32 %v2882_v14, %v2792_v46 }
 0x388   :  { %v2782_v63 = vpop.f32.mrf.mxu3 }
 0x389   :  { %v2794_v21 = vadd.f32 %v2782_v63, %v2688_v59 }
 0x38b   :  { %v2897_v11 = vadd.f32 %v2885_v62, %v2794_v21  ;;  %v2891_v62 = vpop.f32.mrf.mxu1 }
 0x390   :  { %v2785_v2 = vpop.f32.mrf.mxu3 }
 0x391   :  { %v2796_v9 = vadd.f32 %v2785_v2, %v2691_v24  ;;  %v3023_v2 = vmax.f32 %v3015_v60, 0.0 }
 0x393   :  { %v2899_v39 = vadd.f32 %v2888_v49, %v2796_v9 }
 0x398   :  { %v2788_v6 = vpop.f32.mrf.mxu3 }
 0x399   :  { %v12480_v12 = vadd.f32 %v2788_v6, %v2694_v50 }
 0x3a0   :  { %v2985_v42 = vpop.f32.mrf.mxu3 }
 0x3a1   :  { %v2998_v8 = vadd.f32 %v2985_v42, %v2895_v18 }
 0x3a3   :  { %v3012_v5 = vadd.f32 %v12482_v17, %v2998_v8 }
 0x3a5   :  { %v3020_v29 = vmax.f32 %v3012_v5, 0.0 }
 0x3a7   :  { %v3035_v0 = vrot.slane %v3020_v29, 6 }
 0x3a8   :  { %v2988_v51 = vpop.f32.mrf.mxu3 }
 0x3a9   :  { %v3039_v44 = vsel %vm2210_vm12, %v3019_v41, %v3035_v0  ;;  %v3041_v25 = vsel %vm3040_vm13, %v3019_v41, %v3035_v0  ;;  %v3000_v26 = vadd.f32 %v2988_v51, %v2897_v11  ;;  %v3044_v3 = vsel %vm3043_vm14, %v3019_v41, %v3035_v0 }
 0x3aa   :  { %v3042_v15 = vrot.slane %v3041_v25, 2  ;;  %3070 = vst [vmem:[#allocation1] ss:$4 sm:$0xff] %v3039_v44  ;;  %v3047_v52 = vsel %vm3046_vm15, %v3035_v0, %v3019_v41  ;;  %v3045_v36 = vrot.slane %v3044_v3, 4  ;;  %v2901_v41 = vadd.f32 %v2891_v62, %v12480_v12 }
 0x3ab   :  { %v3014_v4 = vadd.f32 %v12482_v17, %v3000_v26  ;;  %v3048_v27 = vrot.slane %v3047_v52, 6 }
 0x3ac   :  { %3074 = vst [vmem:[#allocation1 + $0x20] ss:$4 sm:$0xff] %v3042_v15 }
 0x3ad   :  { %v3022_v10 = vmax.f32 %v3014_v4, 0.0 }
 0x3af   :  { %v3036_v31 = vrot.slane %v3022_v10, 6 }
 0x3b0   :  { %v2991_v45 = vpop.f32.mrf.mxu3 }
 0x3b1   :  { %v3071_v55 = vld.sshfl [vmem:[#allocation1] sm:$0xff pattern:$0x73625140]  ;;  %v3072_v61 = vld.sshfl [vmem:[#allocation1 + $0x8] sm:$0xff pattern:$0x73625140]  ;;  %v3002_v37 = vadd.f32 %v2991_v45, %v2899_v39  ;;  %v3049_v48 = vsel %vm2210_vm12, %v3021_v33, %v3036_v31  ;;  %v3050_v28 = vsel %vm3040_vm13, %v3021_v33, %v3036_v31  ;;  %v3052_v43 = vsel %vm3043_vm14, %v3021_v33, %v3036_v31 }
 0x3b2   :  { %3077 = vst [vmem:[#allocation1] ss:$4 sm:$0xff] %v3045_v36  ;;  %v3054_v50 = vsel %vm3046_vm15, %v3036_v31, %v3021_v33  ;;  %v3051_v58 = vrot.slane %v3050_v28, 2  ;;  %v3053_v38 = vrot.slane %v3052_v43, 4  ;;  %v3151_v19 = vsel %vm2210_vm12, %v3071_v55, -inf }
 0x3b3   :  { %v3075_v32 = vld.sshfl [vmem:[#allocation1 + $0x20] sm:$0xff pattern:$0x73625140]  ;;  %v3076_v57 = vld.sshfl [vmem:[#allocation1 + $0x28] sm:$0xff pattern:$0x73625140]  ;;  %v3016_v40 = vadd.f32 %v12482_v17, %v3002_v37 }
 0x3b4   :  { %3080 = vst [vmem:[#allocation1 + $0x20] ss:$4 sm:$0xff] %v3048_v27  ;;  %v3158_v59 = vsel %vm2210_vm12, %v3072_v61, -inf  ;;  %v3055_v20 = vrot.slane %v3054_v50, 6  ;;  %v3152_v29 = vrot.slane %v3151_v19, 4  ;;  %v3165_v0 = vsel %vm2210_vm12, %v3075_v32, -inf }
 0x3b5   :  { %v3024_v63 = vmax.f32 %v3016_v40, 0.0  ;;  %v3159_v56 = vrot.slane %v3158_v59, 4  ;;  %v3172_v54 = vsel %vm2210_vm12, %v3076_v57, -inf  ;;  %v3166_v25 = vrot.slane %v3165_v0, 4 }
 0x3b6   :  { %v3153_v12 = vmax.f32 %v3151_v19, %v3152_v29  ;;  %v3173_v22 = vrot.slane %v3172_v54, 4 }
 0x3b7   :  { %v3037_v34 = vrot.slane %v3024_v63, 6  ;;  %v3160_v44 = vmax.f32 %v3158_v59, %v3159_v56  ;;  %v3167_v3 = vmax.f32 %v3165_v0, %v3166_v25 }
 0x3b8   :  { %v2994_v21 = vpop.f32.mrf.mxu3  ;;  %v3154_v47 = vrot.slane %v3153_v12, 2  ;;  %v3174_v49 = vmax.f32 %v3172_v54, %v3173_v22  ;;  %v3025_v22 = vmax.f32 %v12478_v30, 0.0 }
 0x3b9   :  { %v3078_v6 = vld.sshfl [vmem:[#allocation1] sm:$0xff pattern:$0x73625140]  ;;  %v3079_v1 = vld.sshfl [vmem:[#allocation1 + $0x8] sm:$0xff pattern:$0x73625140]  ;;  %v3056_v46 = vsel %vm2210_vm12, %v3023_v2, %v3037_v34  ;;  %v3057_v13 = vsel %vm3040_vm13, %v3023_v2, %v3037_v34  ;;  %v3059_v23 = vsel %vm3043_vm14, %v3023_v2, %v3037_v34  ;;  %v3061_v18 = vsel %vm3046_vm15, %v3037_v34, %v3023_v2 }
 0x3ba   :  { %3083 = vst [vmem:[#allocation1] ss:$4 sm:$0xff] %v3049_v48  ;;  %v3004_v24 = vadd.f32 %v2994_v21, %v2901_v41  ;;  %v3058_v26 = vrot.slane %v3057_v13, 2  ;;  %v3161_v4 = vrot.slane %v3160_v44, 2  ;;  %v3179_v52 = vsel %vm2210_vm12, %v3078_v6, -inf }
 0x3bb   :  { %v3081_v14 = vld.sshfl [vmem:[#allocation1 + $0x20] sm:$0xff pattern:$0x73625140]  ;;  %v3082_v53 = vld.sshfl [vmem:[#allocation1 + $0x28] sm:$0xff pattern:$0x73625140]  ;;  %v3155_v35 = vmax.f32 %v3153_v12, %v3154_v47 }
 0x3bc   :  { %3086 = vst [vmem:[#allocation1 + $0x20] ss:$4 sm:$0xff] %v3051_v58  ;;  %v12527_v9 = vadd.f32 %v12482_v17, %v3004_v24  ;;  %v3060_v39 = vrot.slane %v3059_v23, 4  ;;  %v3162_v36 = vmax.f32 %v3160_v44, %v3161_v4  ;;  %v3168_v31 = vrot.slane %v3167_v3, 2 }
 0x3bd   :  { %v3175_v45 = vrot.slane %v3174_v49, 2  ;;  %v3186_v55 = vsel %vm2210_vm12, %v3079_v1, -inf  ;;  %v3180_v17 = vrot.slane %v3179_v52, 4  ;;  %v3193_v61 = vsel %vm2210_vm12, %v3081_v14, -inf }
 0x3be   :  { %v3200_v37 = vsel %vm2210_vm12, %v3082_v53, -inf  ;;  %v3062_v27 = vrot.slane %v3061_v18, 6  ;;  %v3156_v32 = vrot.slane %v3155_v35, 1  ;;  %v3163_v57 = vrot.slane %v3162_v36, 1 }
 0x3bf   :  { %v3187_v43 = vrot.slane %v3186_v55, 4  ;;  %v3194_v50 = vrot.slane %v3193_v61, 4  ;;  %v3201_v40 = vrot.slane %v3200_v37, 4  ;;  %v3169_v2 = vmax.f32 %v3167_v3, %v3168_v31 }
 0x3c0   :  { %v3176_v34 = vmax.f32 %v3174_v49, %v3175_v45  ;;  %v3181_v6 = vmax.f32 %v3179_v52, %v3180_v17  ;;  %v3157_v53 = vmax.f32 %v3155_v35, %v3156_v32 }
 0x3c1   :  { %v12504_v42 = vld.sshfl [vmem:[#allocation1] sm:$0xff pattern:$0x73625140]  ;;  %v12506_v8 = vld.sshfl [vmem:[#allocation1 + $0x8] sm:$0xff pattern:$0x73625140]  ;;  %v3188_v1 = vmax.f32 %v3186_v55, %v3187_v43  ;;  %v3195_v13 = vmax.f32 %v3193_v61, %v3194_v50  ;;  %v3202_v23 = vmax.f32 %v3200_v37, %v3201_v40 }
 0x3c2   :  { %3089 = vst [vmem:[#allocation1] ss:$4 sm:$0xff] %v3053_v38  ;;  %v3170_v18 = vrot.slane %v3169_v2, 1  ;;  %v3177_v38 = vrot.slane %v3176_v34, 1  ;;  %v3182_v19 = vrot.slane %v3181_v6, 2  ;;  %v3207_v59 = vsel %vm2210_vm12, %v12504_v42, -inf }
 0x3c3   :  { %v12510_v5 = vld.sshfl [vmem:[#allocation1 + $0x20] sm:$0xff pattern:$0x73625140]  ;;  %v12512_v16 = vld.sshfl [vmem:[#allocation1 + $0x28] sm:$0xff pattern:$0x73625140] }
 0x3c4   :  { %3092 = vst [vmem:[#allocation1 + $0x20] ss:$4 sm:$0xff] %v3055_v20  ;;  %v3214_v20 = vsel %vm2210_vm12, %v12506_v8, -inf  ;;  %v3189_v21 = vrot.slane %v3188_v1, 2  ;;  %v3196_v0 = vrot.slane %v3195_v13, 2  ;;  %v3203_v54 = vrot.slane %v3202_v23, 2 }
 0x3c5   :  { %v3208_v12 = vrot.slane %v3207_v59, 4  ;;  %v3215_v44 = vrot.slane %v3214_v20, 4  ;;  %v3171_v42 = vmax.f32 %v3169_v2, %v3170_v18  ;;  %v3178_v4 = vmax.f32 %v3176_v34, %v3177_v38 }
 0x3c6   :  { %v3190_v3 = vmax.f32 %v3188_v1, %v3189_v21  ;;  %v3197_v52 = vmax.f32 %v3195_v13, %v3196_v0  ;;  %v3221_v61 = vsel %vm2210_vm12, %v12510_v5, -inf  ;;  %v3228_v21 = vsel %vm2210_vm12, %v12512_v16, -inf }
 0x3c7   :  { %v3209_v31 = vmax.f32 %v3207_v59, %v3208_v12  ;;  %v3216_v45 = vmax.f32 %v3214_v20, %v3215_v44  ;;  %v3222_v38 = vrot.slane %v3221_v61, 4 }
 0x3c8   :  { %v3198_v43 = vrot.slane %v3197_v52, 1 }
 0x3c9   :  { %v12520_v11 = vld.sshfl [vmem:[#allocation1] sm:$0xff pattern:$0x73625140]  ;;  %v12522_v51 = vld.sshfl [vmem:[#allocation1 + $0x8] sm:$0xff pattern:$0x73625140] }
 0x3ca   :  { %3095 = vst [vmem:[#allocation1] ss:$4 sm:$0xff] %v3056_v46  ;;  %v3164_v46 = vmax.f32 %v3162_v36, %v3163_v57  ;;  %v3026_v36 = vmax.f32 %v12527_v9, 0.0  ;;  %v3217_v18 = vrot.slane %v3216_v45, 2  ;;  %v3235_v16 = vsel %vm2210_vm12, %v12520_v11, -inf }
 0x3cb   :  { %v12524_v15 = vld.sshfl [vmem:[#allocation1 + $0x20] sm:$0xff pattern:$0x73625140]  ;;  %v12529_v7 = vld.sshfl [vmem:[#allocation1 + $0x28] sm:$0xff pattern:$0x73625140] }
 0x3cc   :  { %3098 = vst [vmem:[#allocation1 + $0x20] ss:$4 sm:$0xff] %v3058_v26  ;;  %v12543_v24 = vpack.c.bf16 %v3164_v46, %v3157_v53  ;;  %v3183_v26 = vmax.f32 %v3181_v6, %v3182_v19  ;;  %v3210_v53 = vrot.slane %v3209_v31, 2  ;;  %v3236_v11 = vrot.slane %v3235_v16, 4 }
 0x3ce   :  { %v3184_v17 = vrot.slane %v3183_v26, 1 }
 0x3d0   :  { %v3185_v20 = vmax.f32 %v3183_v26, %v3184_v17 }
 0x3d1   :  { %v3096_v10 = vld.sshfl [vmem:[#allocation1] sm:$0xff pattern:$0x73625140]  ;;  %v3097_v33 = vld.sshfl [vmem:[#allocation1 + $0x8] sm:$0xff pattern:$0x73625140] }
 0x3d2   :  { %3101 = vst [vmem:[#allocation1] ss:$4 sm:$0xff] %v3060_v39  ;;  %v3263_v60 = vsel %vm2210_vm12, %v3096_v10, -inf  ;;  %v3270_v63 = vsel %vm2210_vm12, %v3097_v33, -inf  ;;  %v3204_v39 = vmax.f32 %v3202_v23, %v3203_v54  ;;  %v3379_v33 = vrot.slane %v12543_v24, 3 }
 0x3d3   :  { %v3099_v48 = vld.sshfl [vmem:[#allocation1 + $0x20] sm:$0xff pattern:$0x73625140]  ;;  %v3100_v28 = vld.sshfl [vmem:[#allocation1 + $0x28] sm:$0xff pattern:$0x73625140] }
 0x3d4   :  { %3104 = vst [vmem:[#allocation1 + $0x20] ss:$4 sm:$0xff] %v3062_v27  ;;  %v3264_v58 = vrot.slane %v3263_v60, 4  ;;  %v3271_v14 = vrot.slane %v3270_v63, 4  ;;  %v3277_v62 = vsel %vm2210_vm12, %v3099_v48, -inf  ;;  %v3284_v41 = vsel %vm2210_vm12, %v3100_v28, -inf }
 0x3d5   :  { %v3278_v25 = vrot.slane %v3277_v62, 4  ;;  %v3285_v8 = vrot.slane %v3284_v41, 4  ;;  %v3038_v27 = vrot.slane %v3026_v36, 6  ;;  %v3191_v48 = vrot.slane %v3190_v3, 1 }
 0x3d6   :  { %v3265_v29 = vmax.f32 %v3263_v60, %v3264_v58  ;;  %v3272_v56 = vmax.f32 %v3270_v63, %v3271_v14  ;;  %v3205_v50 = vrot.slane %v3204_v39, 1  ;;  %v12553_v63 = vpack.c.bf16 %v3178_v4, %v3171_v42 }
 0x3d7   :  { %v3279_v55 = vmax.f32 %v3277_v62, %v3278_v25  ;;  %v3286_v37 = vmax.f32 %v3284_v41, %v3285_v8  ;;  %v3063_v60 = vsel %vm2210_vm12, %v3025_v22, %v3038_v27  ;;  %v3064_v6 = vsel %vm3040_vm13, %v3025_v22, %v3038_v27 }
 0x3d8   :  { %v3266_v49 = vrot.slane %v3265_v29, 2  ;;  %v3273_v10 = vrot.slane %v3272_v56, 2  ;;  %v3065_v58 = vrot.slane %v3064_v6, 2  ;;  %v3066_v14 = vsel %vm3043_vm14, %v3025_v22, %v3038_v27 }
 0x3d9   :  { %v3102_v47 = vld.sshfl [vmem:[#allocation1] sm:$0xff pattern:$0x73625140]  ;;  %v3103_v35 = vld.sshfl [vmem:[#allocation1 + $0x8] sm:$0xff pattern:$0x73625140]  ;;  %v3068_v59 = vsel %vm3046_vm15, %v3038_v27, %v3025_v22  ;;  %v3192_v62 = vmax.f32 %v3190_v3, %v3191_v48  ;;  %v3206_v8 = vmax.f32 %v3204_v39, %v3205_v50  ;;  %v3211_v4 = vmax.f32 %v3209_v31, %v3210_v53 }
 0x3da   :  { %v3291_v30 = vsel %vm2210_vm12, %v3102_v47, -inf  ;;  %v3267_v28 = vmax.f32 %v3265_v29, %v3266_v49  ;;  %v3274_v32 = vmax.f32 %v3272_v56, %v3273_v10  ;;  %v3298_v57 = vsel %vm2210_vm12, %v3103_v35, -inf  ;;  %3107 = vst [vmem:[#allocation1] ss:$4 sm:$0xff] %v3063_v60 }
 0x3db   :  { %v3105_v40 = vld.sshfl [vmem:[#allocation1 + $0x20] sm:$0xff pattern:$0x73625140]  ;;  %v3292_v9 = vrot.slane %v3291_v30, 4  ;;  %v3280_v34 = vrot.slane %v3279_v55, 2  ;;  %v3287_v5 = vrot.slane %v3286_v37, 2  ;;  %v3199_v47 = vmax.f32 %v3197_v52, %v3198_v43 }
 0x3dc   :  { %v3106_v2 = vld.sshfl [vmem:[#allocation1 + $0x28] sm:$0xff pattern:$0x73625140]  ;;  %v3299_v1 = vrot.slane %v3298_v57, 4  ;;  %v3268_v46 = vrot.slane %v3267_v28, 1  ;;  %v3275_v13 = vrot.slane %v3274_v32, 1  ;;  %v3218_v22 = vmax.f32 %v3216_v45, %v3217_v18 }
 0x3dd   :  { %v3305_v23 = vsel %vm2210_vm12, %v3105_v40, -inf  ;;  %v3312_v19 = vsel %vm2210_vm12, %v3106_v2, -inf  ;;  %3110 = vst [vmem:[#allocation1 + $0x20] ss:$4 sm:$0xff] %v3065_v58  ;;  %v3293_v29 = vmax.f32 %v3291_v30, %v3292_v9  ;;  %v3281_v56 = vmax.f32 %v3279_v55, %v3280_v34 }
 0x3de   :  { %v3288_v41 = vmax.f32 %v3286_v37, %v3287_v5  ;;  %v3300_v0 = vmax.f32 %v3298_v57, %v3299_v1  ;;  %v3306_v54 = vrot.slane %v3305_v23, 4  ;;  %v3269_v12 = vmax.f32 %v3267_v28, %v3268_v46 }
 0x3df   :  { %v3276_v44 = vmax.f32 %v3274_v32, %v3275_v13  ;;  %v3313_v25 = vrot.slane %v3312_v19, 4  ;;  %v3067_v42 = vrot.slane %v3066_v14, 4  ;;  %v3223_v3 = vmax.f32 %v3221_v61, %v3222_v38 }
 0x3e0   :  { %v3229_v10 = vrot.slane %v3228_v21, 4  ;;  %v3294_v35 = vrot.slane %v3293_v29, 2  ;;  %v3282_v36 = vrot.slane %v3281_v56, 1  ;;  %v3289_v55 = vrot.slane %v3288_v41, 1 }
 0x3e1   :  { %v3108_v49 = vld.sshfl [vmem:[#allocation1] sm:$0xff pattern:$0x73625140]  ;;  %v3109_v26 = vld.sshfl [vmem:[#allocation1 + $0x8] sm:$0xff pattern:$0x73625140]  ;;  %v3307_v17 = vmax.f32 %v3305_v23, %v3306_v54  ;;  %v3314_v27 = vmax.f32 %v3312_v19, %v3313_v25  ;;  %v3376_v52 = vpack.c.bf16 %v3276_v44, %v3269_v12  ;;  %v3444_v45 = vpack.c.bf16 %v3192_v62, %v3185_v20 }
 0x3e2   :  { %3113 = vst [vmem:[#allocation1] ss:$4 sm:$0xff] %v3067_v42  ;;  %v3301_v30 = vrot.slane %v3300_v0, 2  ;;  %v3414_v37 = vrot.slane %v12553_v63, 3  ;;  %v3069_v39 = vrot.slane %v3068_v59, 6  ;;  %v3478_v48 = vpack.c.bf16 %v3206_v8, %v3199_v47 }
 0x3e3   :  { %v3212_v28 = vrot.slane %v3211_v4, 1  ;;  %v3219_v61 = vrot.slane %v3218_v22, 1  ;;  %v3224_v57 = vrot.slane %v3223_v3, 2  ;;  %v3230_v43 = vmax.f32 %v3228_v21, %v3229_v10 }
 0x3e4   :  { %v3111_v31 = vld.sshfl [vmem:[#allocation1 + $0x20] sm:$0xff pattern:$0x73625140]  ;;  %v3112_v32 = vld.sshfl [vmem:[#allocation1 + $0x28] sm:$0xff pattern:$0x73625140]  ;;  %v3295_v50 = vmax.f32 %v3293_v29, %v3294_v35  ;;  %v3283_v40 = vmax.f32 %v3281_v56, %v3282_v36  ;;  %v3290_v9 = vmax.f32 %v3288_v41, %v3289_v55  ;;  %v3302_v60 = vmax.f32 %v3300_v0, %v3301_v30 }
 0x3e5   :  { %3116 = vst [vmem:[#allocation1 + $0x20] ss:$4 sm:$0xff] %v3069_v39  ;;  %v3308_v2 = vrot.slane %v3307_v17, 2  ;;  %v3315_v34 = vrot.slane %v3314_v27, 2  ;;  %v3380_v6 = vrot.slane %v3376_v52, 3  ;;  %v3319_v5 = vsel %vm2210_vm12, %v3108_v49, -inf }
 0x3e6   :  { %v3326_v1 = vsel %vm2210_vm12, %v3109_v26, -inf  ;;  %v3384_v58 = vsel %vm3381_vm0, %v12543_v24, %v3379_v33  ;;  %v3418_v14 = vsel %vm3381_vm0, %v12553_v63, %v3414_v37  ;;  %v3448_v13 = vrot.slane %v3444_v45, 3 }
 0x3e7   :  { %v3482_v23 = vrot.slane %v3478_v48, 3  ;;  %v3225_v18 = vmax.f32 %v3223_v3, %v3224_v57  ;;  %v3242_v38 = vsel %vm2210_vm12, %v12522_v51, -inf  ;;  %v3213_v19 = vmax.f32 %v3211_v4, %v3212_v28 }
 0x3e8   :  { %v3296_v59 = vrot.slane %v3295_v50, 1  ;;  %v3303_v20 = vrot.slane %v3302_v60, 1  ;;  %v3320_v62 = vrot.slane %v3319_v5, 4  ;;  %v3231_v21 = vrot.slane %v3230_v43, 2 }
 0x3e9   :  { %v12573_v53 = vld.sshfl [vmem:[#allocation1] sm:$0xff pattern:$0x73625140]  ;;  %v12575_v46 = vld.sshfl [vmem:[#allocation1 + $0x8] sm:$0xff pattern:$0x73625140]  ;;  %v3237_v24 = vmax.f32 %v3235_v16, %v3236_v11  ;;  %v3411_v33 = vpack.c.bf16 %v3290_v9, %v3283_v40  ;;  %v3220_v63 = vmax.f32 %v3218_v22, %v3219_v61  ;;  %v3309_v56 = vmax.f32 %v3307_v17, %v3308_v2 }
 0x3ea   :  { %3388 = vst [vmem:[#allocation1] ss:$4 sm:$0xff] %v3384_v58  ;;  %v3327_v29 = vrot.slane %v3326_v1, 4  ;;  %v3316_v41 = vmax.f32 %v3314_v27, %v3315_v34  ;;  %v3387_v0 = vsel %vm3381_vm0, %v3376_v52, %v3380_v6  ;;  %v3452_v51 = vsel %vm3381_vm0, %v3444_v45, %v3448_v13 }
 0x3eb   :  { %v3226_v44 = vrot.slane %v3225_v18, 1  ;;  %v3243_v25 = vrot.slane %v3242_v38, 4  ;;  %v3249_v42 = vsel %vm2210_vm12, %v12524_v15, -inf  ;;  %v3297_v47 = vmax.f32 %v3295_v50, %v3296_v59 }
 0x3ec   :  { %v12580_v54 = vld.sshfl [vmem:[#allocation1 + $0x20] sm:$0xff pattern:$0x73625140]  ;;  %v12582_v12 = vld.sshfl [vmem:[#allocation1 + $0x28] sm:$0xff pattern:$0x73625140]  ;;  %v3304_v8 = vmax.f32 %v3302_v60, %v3303_v20  ;;  %v3321_v4 = vmax.f32 %v3319_v5, %v3320_v62  ;;  %v3232_v49 = vmax.f32 %v3230_v43, %v3231_v21  ;;  %v12591_v16 = vsel %vm3381_vm0, %v3478_v48, %v3482_v23 }
 0x3ed   :  { %3392 = vst [vmem:[#allocation1 + $0x20] ss:$4 sm:$0xff] %v3387_v0  ;;  %v3333_v22 = vsel %vm2210_vm12, %v3111_v31, -inf  ;;  %v3238_v26 = vrot.slane %v3237_v24, 2  ;;  %v3256_v3 = vsel %vm2210_vm12, %v12529_v7, -inf  ;;  %v3415_v10 = vrot.slane %v3411_v33, 3 }
 0x3ee   :  { %v3310_v35 = vrot.slane %v3309_v56, 1  ;;  %v3317_v36 = vrot.slane %v3316_v41, 1  ;;  %v3328_v55 = vmax.f32 %v3326_v1, %v3327_v29  ;;  %v3244_v15 = vmax.f32 %v3242_v38, %v3243_v25 }
 0x3ef   :  { %v3250_v17 = vrot.slane %v3249_v42, 4  ;;  %v3334_v37 = vrot.slane %v3333_v22, 4  ;;  %v3340_v27 = vsel %vm2210_vm12, %v3112_v32, -inf  ;;  %v12594_v52 = vmax.f32 %v3225_v18, %v3226_v44 }
 0x3f0   :  { %v3257_v39 = vrot.slane %v3256_v3, 4  ;;  %v3445_v31 = vpack.c.bf16 %v3304_v8, %v3297_v47  ;;  %v3322_v45 = vrot.slane %v3321_v4, 2  ;;  %v3233_v7 = vrot.slane %v3232_v49, 1 }
 0x3f1   :  { %v3389_v30 = vld [vmem:[#allocation1] sm:$0xff]  ;;  %v12596_v28 = vmax.f32 %v3237_v24, %v3238_v26  ;;  %v12598_v48 = vpack.c.bf16 %v3220_v63, %v3213_v19  ;;  %v3421_v61 = vsel %vm3381_vm0, %v3411_v33, %v3415_v10  ;;  %v3311_v57 = vmax.f32 %v3309_v56, %v3310_v35 }
 0x3f2   :  { %3422 = vst [vmem:[#allocation1] ss:$4 sm:$0xff] %v3418_v14  ;;  %v3318_v43 = vmax.f32 %v3316_v41, %v3317_v36  ;;  %v3329_v11 = vrot.slane %v3328_v55, 2  ;;  %v3341_v50 = vrot.slane %v3340_v27, 4  ;;  %v3245_v9 = vrot.slane %v3244_v15, 2 }
 0x3f3   :  { %v3335_v32 = vmax.f32 %v3333_v22, %v3334_v37  ;;  %v12601_v34 = vmax.f32 %v3249_v42, %v3250_v17  ;;  %v3449_v6 = vrot.slane %v3445_v31, 3  ;;  %v3323_v5 = vmax.f32 %v3321_v4, %v3322_v45 }
 0x3f4   :  { %v3393_v40 = vld [vmem:[#allocation1 + $0x20] sm:$0xff]  ;;  %v3347_v1 = vsel %vm2210_vm12, %v12573_v53, -inf  ;;  %v3395_v58 = vunpack.c.l.b16 %v3389_v30  ;;  %v3396_v14 = vunpack.c.h.b16 %v3389_v30  ;;  %v12605_v18 = vmax.f32 %v3256_v3, %v3257_v39 }
 0x3f5   :  { %v3397_v60 = vunpack.c.l.b16 %v3393_v40  ;;  %v3398_v2 = vunpack.c.h.b16 %v3393_v40  ;;  %3426 = vst [vmem:[#allocation1 + $0x20] ss:$4 sm:$0xff] %v3421_v61  ;;  %v3479_v38 = vpack.c.bf16 %v3318_v43, %v3311_v57  ;;  %v3330_v19 = vmax.f32 %v3328_v55, %v3329_v11 }
 0x3f6   :  { %v3342_v59 = vmax.f32 %v3340_v27, %v3341_v50  ;;  %v3336_v62 = vrot.slane %v3335_v32, 2  ;;  %v3354_v21 = vsel %vm2210_vm12, %v12575_v46, -inf  ;;  %v3234_v53 = vmax.f32 %v3232_v49, %v3233_v7 }
 0x3f7   :  { %v3399_v13 = vrot.slane %v3397_v60, 7  ;;  %v3401_v23 = vrot.slane %v3398_v2, 7  ;;  %v3516_v29 = vrot.slane %v12598_v48, 3  ;;  %v3348_v63 = vrot.slane %v3347_v1, 4 }
 0x3f8   :  { %v3240_v41 = vrot.slane %v12596_v28, 1  ;;  %v12613_v0 = vmax.f32 %v3244_v15, %v3245_v9  ;;  %v3455_v44 = vsel %vm3381_vm0, %v3445_v31, %v3449_v6  ;;  %v3324_v25 = vrot.slane %v3323_v5, 1 }
 0x3f9   :  { %v3423_v20 = vld [vmem:[#allocation1] sm:$0xff]  ;;  %v3400_v24 = vsel %vm1621_vm4, %v3399_v13, %v3395_v58  ;;  %v3402_v33 = vsel %vm1621_vm4, %v3401_v23, %v3396_v14  ;;  %v3331_v42 = vrot.slane %v3330_v19, 1  ;;  %v3343_v47 = vrot.slane %v3342_v59, 2 }
 0x3fa   :  { %3456 = vst [vmem:[#allocation1] ss:$4 sm:$0xff] %v3452_v51  ;;  %v3403_v56 = vpack.c.b16 %v3402_v33, %v3400_v24  ;;  %v3355_v46 = vrot.slane %v3354_v21, 4  ;;  %v3483_v22 = vrot.slane %v3479_v38, 3  ;;  %v3337_v26 = vmax.f32 %v3335_v32, %v3336_v62 }
 0x3fb   :  { %v3349_v3 = vmax.f32 %v3347_v1, %v3348_v63  ;;  %v3361_v10 = vsel %vm2210_vm12, %v12580_v54, -inf  ;;  %v3368_v35 = vsel %vm2210_vm12, %v12582_v12, -inf  ;;  %v3429_v55 = vunpack.c.l.b16 %v3423_v20 }
 0x3fc   :  { %v3404_v8 = vrot.slane %v3403_v56, 3  ;;  %v3427_v4 = vld [vmem:[#allocation1 + $0x20] sm:$0xff]  ;;  %v3430_v30 = vunpack.c.h.b16 %v3423_v20  ;;  %v3325_v37 = vmax.f32 %v3323_v5, %v3324_v25  ;;  %v3332_v27 = vmax.f32 %v3330_v19, %v3331_v42 }
 0x3fd   :  { %v3431_v51 = vunpack.c.l.b16 %v3427_v4  ;;  %v3432_v49 = vunpack.c.h.b16 %v3427_v4  ;;  %3460 = vst [vmem:[#allocation1 + $0x20] ss:$4 sm:$0xff] %v3455_v44  ;;  %v3344_v39 = vmax.f32 %v3342_v59, %v3343_v47  ;;  %v3356_v31 = vmax.f32 %v3354_v21, %v3355_v46 }
 0x3fe   :  { %v3407_v36 = vsel %vm3381_vm0, %v3403_v56, %v3404_v8  ;;  %v3252_v7 = vrot.slane %v12601_v34, 2  ;;  %v3259_v61 = vrot.slane %v12605_v18, 2  ;;  %v3350_v57 = vrot.slane %v3349_v3, 2 }
 0x3ff   :  { %3409 = vst [vmem:[#allocation5] sm:$0x3] %v3407_v36  ;;  %v3433_v15 = vrot.slane %v3431_v51, 7  ;;  %v3435_v17 = vrot.slane %v3432_v49, 7  ;;  %v3362_v43 = vrot.slane %v3361_v10, 4  ;;  %v3369_v11 = vrot.slane %v3368_v35, 4 }
 0x400   :  { %v3520_v40 = vsel %vm3381_vm0, %v12598_v48, %v3516_v29  ;;  %v3546_v9 = vpack.c.bf16 %v3234_v53, %v12594_v52  ;;  %v3489_v32 = vsel %vm3381_vm0, %v3479_v38, %v3483_v22  ;;  %v3338_v60 = vrot.slane %v3337_v26, 1 }
 0x401   :  { %v3457_v45 = vld [vmem:[#allocation1] sm:$0xff]  ;;  %v3434_v54 = vsel %vm1621_vm4, %v3433_v15, %v3429_v55  ;;  %v3436_v12 = vsel %vm1621_vm4, %v3435_v17, %v3430_v30  ;;  %v3345_v2 = vrot.slane %v3344_v39, 1  ;;  %v3357_v6 = vrot.slane %v3356_v31, 2 }
 0x402   :  { %3490 = vst [vmem:[#allocation1] ss:$4 sm:$0xff] %v12591_v16  ;;  %v3437_v50 = vpack.c.b16 %v3436_v12, %v3434_v54  ;;  %v3513_v58 = vpack.c.bf16 %v3332_v27, %v3325_v37  ;;  %v3241_v14 = vmax.f32 %v12596_v28, %v3240_v41  ;;  %v3247_v16 = vrot.slane %v12613_v0, 1 }
 0x403   :  { %v3351_v19 = vmax.f32 %v3349_v3, %v3350_v57  ;;  %v3363_v59 = vmax.f32 %v3361_v10, %v3362_v43  ;;  %v3370_v48 = vmax.f32 %v3368_v35, %v3369_v11  ;;  %v3463_v38 = vunpack.c.l.b16 %v3457_v45 }
 0x404   :  { %v3438_v5 = vrot.slane %v3437_v50, 3  ;;  %v3461_v1 = vld [vmem:[#allocation1 + $0x20] sm:$0xff]  ;;  %v3464_v20 = vunpack.c.h.b16 %v3457_v45  ;;  %v3339_v24 = vmax.f32 %v3337_v26, %v3338_v60  ;;  %v3346_v33 = vmax.f32 %v3344_v39, %v3345_v2 }
 0x405   :  { %v3465_v13 = vunpack.c.l.b16 %v3461_v1  ;;  %v3466_v23 = vunpack.c.h.b16 %v3461_v1  ;;  %3494 = vst [vmem:[#allocation1 + $0x20] ss:$4 sm:$0xff] %v3489_v32  ;;  %v3358_v53 = vmax.f32 %v3356_v31, %v3357_v6  ;;  %v3517_v28 = vrot.slane %v3513_v58, 3 }
 0x406   :  { %v3441_v52 = vsel %vm3381_vm0, %v3437_v50, %v3438_v5  ;;  %v3253_v63 = vmax.f32 %v12601_v34, %v3252_v7  ;;  %v3260_v56 = vmax.f32 %v12605_v18, %v3259_v61  ;;  %v3248_v25 = vmax.f32 %v12613_v0, %v3247_v16 }
 0x407   :  { %3443 = vst [vmem:[#allocation5 + $0x2] sm:$0x3] %v3441_v52  ;;  %v3467_v62 = vrot.slane %v3465_v13, 7  ;;  %v3469_v21 = vrot.slane %v3466_v23, 7  ;;  %v3550_v42 = vrot.slane %v3546_v9, 3  ;;  %v3364_v47 = vrot.slane %v3363_v59, 2 }
 0x408   :  { %v3352_v8 = vrot.slane %v3351_v19, 1  ;;  %v3371_v4 = vrot.slane %v3370_v48, 2  ;;  %v3359_v22 = vrot.slane %v3358_v53, 1  ;;  %v3523_v49 = vsel %vm3381_vm0, %v3513_v58, %v3517_v28 }
 0x409   :  { %v3491_v29 = vld [vmem:[#allocation1] sm:$0xff]  ;;  %v3468_v41 = vsel %vm1621_vm4, %v3467_v62, %v3463_v38  ;;  %v3470_v44 = vsel %vm1621_vm4, %v3469_v21, %v3464_v20  ;;  %v3547_v34 = vpack.c.bf16 %v3346_v33, %v3339_v24  ;;  %v3254_v3 = vrot.slane %v3253_v63, 1 }
 0x40a   :  { %3524 = vst [vmem:[#allocation1] ss:$4 sm:$0xff] %v3520_v40  ;;  %v3471_v46 = vpack.c.b16 %v3470_v44, %v3468_v41  ;;  %v3261_v18 = vrot.slane %v3260_v56, 1  ;;  %v3554_v36 = vsel %vm3381_vm0, %v3546_v9, %v3550_v42  ;;  %v3580_v55 = vpack.c.bf16 %v3248_v25, %v3241_v14 }
 0x40b   :  { %v3365_v0 = vmax.f32 %v3363_v59, %v3364_v47  ;;  %v3497_v15 = vunpack.c.l.b16 %v3491_v29  ;;  %v3498_v17 = vunpack.c.h.b16 %v3491_v29  ;;  %v3353_v39 = vmax.f32 %v3351_v19, %v3352_v8 }
 0x40c   :  { %v3472_v26 = vrot.slane %v3471_v46, 3  ;;  %v3495_v51 = vld [vmem:[#allocation1 + $0x20] sm:$0xff]  ;;  %v3360_v31 = vmax.f32 %v3358_v53, %v3359_v22  ;;  %v3372_v45 = vmax.f32 %v3370_v48, %v3371_v4  ;;  %v3551_v61 = vrot.slane %v3547_v34, 3 }
 0x40d   :  { %v3499_v10 = vunpack.c.l.b16 %v3495_v51  ;;  %v3500_v35 = vunpack.c.h.b16 %v3495_v51  ;;  %3528 = vst [vmem:[#allocation1 + $0x20] ss:$4 sm:$0xff] %v3523_v49  ;;  %v3255_v57 = vmax.f32 %v3253_v63, %v3254_v3  ;;  %v3262_v43 = vmax.f32 %v3260_v56, %v3261_v18 }
 0x40e   :  { %v3475_v30 = vsel %vm3381_vm0, %v3471_v46, %v3472_v26  ;;  %v3584_v50 = vrot.slane %v3580_v55, 3  ;;  %v3366_v40 = vrot.slane %v3365_v0, 1  ;;  %v3373_v9 = vrot.slane %v3372_v45, 1 }
 0x40f   :  { %3477 = vst [vmem:[#allocation5 + $0x4] sm:$0x3] %v3475_v30  ;;  %v3501_v37 = vrot.slane %v3499_v10, 7  ;;  %v3503_v27 = vrot.slane %v3500_v35, 7  ;;  %v3557_v2 = vsel %vm3381_vm0, %v3547_v34, %v3551_v61  ;;  %v3581_v6 = vpack.c.bf16 %v3360_v31, %v3353_v39 }
 0x410   :  { %v3614_v58 = vpack.c.bf16 %v3262_v43, %v3255_v57  ;;  %v3588_v59 = vsel %vm3381_vm0, %v3580_v55, %v3584_v50  ;;  %v3367_v48 = vmax.f32 %v3365_v0, %v3366_v40  ;;  %v3374_v52 = vmax.f32 %v3372_v45, %v3373_v9 }
 0x411   :  { %v3525_v7 = vld [vmem:[#allocation1] sm:$0xff]  ;;  %v3502_v54 = vsel %vm1621_vm4, %v3501_v37, %v3497_v15  ;;  %v3504_v12 = vsel %vm1621_vm4, %v3503_v27, %v3498_v17  ;;  %v3585_v20 = vrot.slane %v3581_v6, 3 }
 0x412   :  { %3558 = vst [vmem:[#allocation1] ss:$4 sm:$0xff] %v3554_v36  ;;  %v3505_v11 = vpack.c.b16 %v3504_v12, %v3502_v54  ;;  %v3531_v16 = vunpack.c.l.b16 %v3525_v7  ;;  %v3532_v13 = vunpack.c.h.b16 %v3525_v7  ;;  %v3618_v33 = vrot.slane %v3614_v58, 3 }
 0x413   :  { %v3591_v28 = vsel %vm3381_vm0, %v3581_v6, %v3585_v20  ;;  %v3615_v63 = vpack.c.bf16 %v3374_v52, %v3367_v48 }
 0x414   :  { %v3506_v32 = vrot.slane %v3505_v11, 3  ;;  %v3529_v60 = vld [vmem:[#allocation1 + $0x20] sm:$0xff]  ;;  %v3622_v8 = vsel %vm3381_vm0, %v3614_v58, %v3618_v33 }
 0x415   :  { %v3533_v5 = vunpack.c.l.b16 %v3529_v60  ;;  %v3534_v1 = vunpack.c.h.b16 %v3529_v60  ;;  %3562 = vst [vmem:[#allocation1 + $0x20] ss:$4 sm:$0xff] %v3557_v2  ;;  %v3619_v22 = vrot.slane %v3615_v63, 3 }
 0x416   :  { %v3509_v14 = vsel %vm3381_vm0, %v3505_v11, %v3506_v32 }
 0x417   :  { %3511 = vst [vmem:[#allocation5 + $0x6] sm:$0x3] %v3509_v14  ;;  %v3535_v23 = vrot.slane %v3533_v5, 7  ;;  %v3537_v19 = vrot.slane %v3534_v1, 7  ;;  %v3625_v18 = vsel %vm3381_vm0, %v3615_v63, %v3619_v22 }
 0x419   :  { %v3559_v38 = vld [vmem:[#allocation1] sm:$0xff]  ;;  %v3536_v62 = vsel %vm1621_vm4, %v3535_v23, %v3531_v16  ;;  %v3538_v21 = vsel %vm1621_vm4, %v3537_v19, %v3532_v13 }
 0x41a   :  { %3592 = vst [vmem:[#allocation1] ss:$4 sm:$0xff] %v3588_v59  ;;  %v3539_v24 = vpack.c.b16 %v3538_v21, %v3536_v62  ;;  %v3565_v25 = vunpack.c.l.b16 %v3559_v38  ;;  %v3566_v42 = vunpack.c.h.b16 %v3559_v38 }
 0x41c   :  { %v3540_v53 = vrot.slane %v3539_v24, 3  ;;  %v3563_v29 = vld [vmem:[#allocation1 + $0x20] sm:$0xff] }
 0x41d   :  { %v3567_v56 = vunpack.c.l.b16 %v3563_v29  ;;  %v3568_v41 = vunpack.c.h.b16 %v3563_v29  ;;  %3596 = vst [vmem:[#allocation1 + $0x20] ss:$4 sm:$0xff] %v3591_v28 }
 0x41e   :  { %v3543_v44 = vsel %vm3381_vm0, %v3539_v24, %v3540_v53 }
 0x41f   :  { %3545 = vst [vmem:[#allocation5 + $0x8] sm:$0x3] %v3543_v44  ;;  %v3569_v47 = vrot.slane %v3567_v56, 7  ;;  %v3571_v46 = vrot.slane %v3568_v41, 7 }
 0x421   :  { %v3593_v4 = vld [vmem:[#allocation1] sm:$0xff]  ;;  %v3570_v26 = vsel %vm1621_vm4, %v3569_v47, %v3565_v25  ;;  %v3572_v51 = vsel %vm1621_vm4, %v3571_v46, %v3566_v42 }
 0x422   :  { %3626 = vst [vmem:[#allocation1] ss:$4 sm:$0xff] %v3622_v8  ;;  %v3573_v49 = vpack.c.b16 %v3572_v51, %v3570_v26  ;;  %v3599_v55 = vunpack.c.l.b16 %v3593_v4  ;;  %v3600_v0 = vunpack.c.h.b16 %v3593_v4 }
 0x424   :  { %v3574_v34 = vrot.slane %v3573_v49, 3  ;;  %v3597_v3 = vld [vmem:[#allocation1 + $0x20] sm:$0xff] }
 0x425   :  { %v3601_v10 = vunpack.c.l.b16 %v3597_v3  ;;  %v3602_v35 = vunpack.c.h.b16 %v3597_v3  ;;  %3630 = vst [vmem:[#allocation1 + $0x20] ss:$4 sm:$0xff] %v3625_v18 }
 0x426   :  { %v3577_v36 = vsel %vm3381_vm0, %v3573_v49, %v3574_v34 }
 0x427   :  { %3579 = vst [vmem:[#allocation5 + $0xa] sm:$0x3] %v3577_v36  ;;  %v3603_v30 = vrot.slane %v3601_v10, 7  ;;  %v3605_v15 = vrot.slane %v3602_v35, 7 }
 0x429   :  { %v3604_v17 = vsel %vm1621_vm4, %v3603_v30, %v3599_v55  ;;  %v3606_v37 = vsel %vm1621_vm4, %v3605_v15, %v3600_v0  ;;  %v3627_v31 = vld [vmem:[#allocation1] sm:$0xff] }
 0x42a   :  { %v3607_v27 = vpack.c.b16 %v3606_v37, %v3604_v17  ;;  %v3633_v12 = vunpack.c.l.b16 %v3627_v31  ;;  %v3634_v57 = vunpack.c.h.b16 %v3627_v31 }
 0x42c   :  { %v3608_v39 = vrot.slane %v3607_v27, 3  ;;  %v3631_v45 = vld [vmem:[#allocation1 + $0x20] sm:$0xff] }
 0x42d   :  { %v3635_v7 = vunpack.c.l.b16 %v3631_v45  ;;  %v3636_v61 = vunpack.c.h.b16 %v3631_v45 }
 0x42e   :  { %v3611_v54 = vsel %vm3381_vm0, %v3607_v27, %v3608_v39 }
 0x42f   :  { %3613 = vst [vmem:[#allocation5 + $0xc] sm:$0x3] %v3611_v54  ;;  %v3637_v43 = vrot.slane %v3635_v7, 7  ;;  %v3639_v11 = vrot.slane %v3636_v61, 7 }
 0x431   :  { %v3638_v50 = vsel %vm1621_vm4, %v3637_v43, %v3633_v12  ;;  %v3640_v40 = vsel %vm1621_vm4, %v3639_v11, %v3634_v57 }
 0x432   :  { %v3641_v9 = vpack.c.b16 %v3640_v40, %v3638_v50 }
 0x434   :  { %v3642_v32 = vrot.slane %v3641_v9, 3 }
 0x436   :  { %v3645_v60 = vsel %vm3381_vm0, %v3641_v9, %v3642_v32 }
 0x437   :  { %3647 = vst [vmem:[#allocation5 + $0xe] sm:$0x3] %v3645_v60 }
 0x438   :  { %11620 = dma.done.wait [#allocation7], 65536 }
 0x439   :  { %11621 = vsyncadd [#allocation7], 4294901760  ;;  %v8501_v2 = vld [vmem:[#allocation6 + $0xe0] sm:$0xf]  ;;  %v10722_v6 = vld [vmem:[#allocation6 + $0xec] sm:$0xf0] }
 0x43a   :  { %v8629_v5 = vld [vmem:[#allocation6 + $0x1e0] sm:$0xf]  ;;  %v8502_v1 = vor.u32 %v10722_v6, %v8501_v2  ;;  %v10754_v58 = vld [vmem:[#allocation6 + $0x1ec] sm:$0xf0]  ;;  %s8241_s30 = sshll.u32 %s12899_s13, 4  ;;  %vm8232_vm1 = vcmask 33792   ;;  %s8242_s30 = int_to_ptr.hbm [resolvable:$true] %s8241_s30 }
 0x43b   :  { %v8757_v14 = vld [vmem:[#allocation6 + $0x2e0] sm:$0xf]  ;;  %v10786_v16 = vld [vmem:[#allocation6 + $0x2ec] sm:$0xf0]  ;;  %v8630_v13 = vor.u32 %v10754_v58, %v8629_v5 }
 0x43c   :  { %v8758_v23 = vor.u32 %v10786_v16, %v8757_v14  ;;  %v8885_v19 = vld [vmem:[#allocation6 + $0x3e0] sm:$0xf]  ;;  %v10818_v59 = vld [vmem:[#allocation6 + $0x3ec] sm:$0xf0]  ;;  %6772 = vmatpush.bf16.msra.mxu0 %v8502_v1 }
 0x43d   :  { %v8485_v48 = vld [vmem:[#allocation6 + $0xc0] sm:$0xf]  ;;  %v8886_v52 = vor.u32 %v10818_v59, %v8885_v19  ;;  %v10718_v38 = vld [vmem:[#allocation6 + $0xcc] sm:$0xf0]  ;;  %6785 = vmatpush.bf16.msrb.mxu1 %v8630_v13 }
 0x43e   :  { %v8613_v20 = vld [vmem:[#allocation6 + $0x1c0] sm:$0xf]  ;;  %v10750_v62 = vld [vmem:[#allocation6 + $0x1cc] sm:$0xf0]  ;;  %6798 = vmatpush.bf16.msra.mxu2 %v8758_v23  ;;  %v8486_v21 = vor.u32 %v10718_v38, %v8485_v48 }
 0x43f   :  { %v8614_v24 = vor.u32 %v10750_v62, %v8613_v20  ;;  %v8741_v33 = vld [vmem:[#allocation6 + $0x2c0] sm:$0xf]  ;;  %v10782_v53 = vld [vmem:[#allocation6 + $0x2cc] sm:$0xf0]  ;;  %6811 = vmatpush.bf16.msrb.mxu3 %v8886_v52 }
 0x440   :  { %v8869_v29 = vld [vmem:[#allocation6 + $0x3c0] sm:$0xf]  ;;  %v8742_v28 = vor.u32 %v10782_v53, %v8741_v33  ;;  %v10814_v63 = vld [vmem:[#allocation6 + $0x3cc] sm:$0xf0]  ;;  %6773 = vmatpush.bf16.msra.mxu0 %v8486_v21 }
 0x441   :  { %v8469_v56 = vld [vmem:[#allocation6 + $0xa0] sm:$0xf]  ;;  %v10714_v41 = vld [vmem:[#allocation6 + $0xac] sm:$0xf0]  ;;  %v8870_v44 = vor.u32 %v10814_v63, %v8869_v29  ;;  %6786 = vmatpush.bf16.msrb.mxu1 %v8614_v24 }
 0x442   :  { %v8597_v25 = vld [vmem:[#allocation6 + $0x1a0] sm:$0xf]  ;;  %v10746_v42 = vld [vmem:[#allocation6 + $0x1ac] sm:$0xf0]  ;;  %v8470_v46 = vor.u32 %v10714_v41, %v8469_v56  ;;  %6799 = vmatpush.bf16.msra.mxu2 %v8742_v28 }
 0x443   :  { %v8725_v47 = vld [vmem:[#allocation6 + $0x2a0] sm:$0xf]  ;;  %v10778_v8 = vld [vmem:[#allocation6 + $0x2ac] sm:$0xf0]  ;;  %v8598_v26 = vor.u32 %v10746_v42, %v8597_v25  ;;  %6812 = vmatpush.bf16.msrb.mxu3 %v8870_v44 }
 0x444   :  { %v8853_v4 = vld [vmem:[#allocation6 + $0x3a0] sm:$0xf]  ;;  %v10810_v22 = vld [vmem:[#allocation6 + $0x3ac] sm:$0xf0]  ;;  %v8726_v51 = vor.u32 %v10778_v8, %v8725_v47  ;;  %6774 = vmatpush.bf16.msra.mxu0 %v8470_v46 }
 0x445   :  { %v8453_v49 = vld [vmem:[#allocation6 + $0x80] sm:$0xf]  ;;  %v10710_v34 = vld [vmem:[#allocation6 + $0x8c] sm:$0xf0]  ;;  %v8854_v18 = vor.u32 %v10810_v22, %v8853_v4  ;;  %6787 = vmatpush.bf16.msrb.mxu1 %v8598_v26 }
 0x446   :  { %v8581_v3 = vld [vmem:[#allocation6 + $0x180] sm:$0xf]  ;;  %v10742_v10 = vld [vmem:[#allocation6 + $0x18c] sm:$0xf0]  ;;  %v8454_v30 = vor.u32 %v10710_v34, %v8453_v49  ;;  %6800 = vmatpush.bf16.msra.mxu2 %v8726_v51 }
 0x447   :  { %v8709_v35 = vld [vmem:[#allocation6 + $0x280] sm:$0xf]  ;;  %v10774_v36 = vld [vmem:[#allocation6 + $0x28c] sm:$0xf0]  ;;  %v8582_v15 = vor.u32 %v10742_v10, %v8581_v3  ;;  %6813 = vmatpush.bf16.msrb.mxu3 %v8854_v18 }
 0x448   :  { %v8837_v55 = vld [vmem:[#allocation6 + $0x380] sm:$0xf]  ;;  %v10806_v0 = vld [vmem:[#allocation6 + $0x38c] sm:$0xf0]  ;;  %v8710_v17 = vor.u32 %v10774_v36, %v8709_v35  ;;  %6775 = vmatpush.bf16.msra.mxu0 %v8454_v30 }
 0x449   :  { %v8437_v37 = vld [vmem:[#allocation6 + $0x60] sm:$0xf]  ;;  %v10706_v27 = vld [vmem:[#allocation6 + $0x6c] sm:$0xf0]  ;;  %v8838_v31 = vor.u32 %v10806_v0, %v8837_v55  ;;  %6788 = vmatpush.bf16.msrb.mxu1 %v8582_v15 }
 0x44a   :  { %v8565_v39 = vld [vmem:[#allocation6 + $0x160] sm:$0xf]  ;;  %v10738_v45 = vld [vmem:[#allocation6 + $0x16c] sm:$0xf0]  ;;  %v8438_v57 = vor.u32 %v10706_v27, %v8437_v37  ;;  %6801 = vmatpush.bf16.msra.mxu2 %v8710_v17 }
 0x44b   :  { %v8693_v7 = vld [vmem:[#allocation6 + $0x260] sm:$0xf]  ;;  %v10770_v61 = vld [vmem:[#allocation6 + $0x26c] sm:$0xf0]  ;;  %v8566_v43 = vor.u32 %v10738_v45, %v8565_v39  ;;  %6814 = vmatpush.bf16.msrb.mxu3 %v8838_v31 }
 0x44c   :  { %v8821_v54 = vld [vmem:[#allocation6 + $0x360] sm:$0xf]  ;;  %v10802_v12 = vld [vmem:[#allocation6 + $0x36c] sm:$0xf0]  ;;  %v8694_v11 = vor.u32 %v10770_v61, %v8693_v7  ;;  %6776 = vmatpush.bf16.msra.mxu0 %v8438_v57 }
 0x44d   :  { %v8421_v50 = vld [vmem:[#allocation6 + $0x40] sm:$0xf]  ;;  %v10702_v40 = vld [vmem:[#allocation6 + $0x4c] sm:$0xf0]  ;;  %v8822_v32 = vor.u32 %v10802_v12, %v8821_v54  ;;  %6789 = vmatpush.bf16.msrb.mxu1 %v8566_v43 }
 0x44e   :  { %v8549_v9 = vld [vmem:[#allocation6 + $0x140] sm:$0xf]  ;;  %v10734_v60 = vld [vmem:[#allocation6 + $0x14c] sm:$0xf0]  ;;  %v8422_v58 = vor.u32 %v10702_v40, %v8421_v50  ;;  %6802 = vmatpush.bf16.msra.mxu2 %v8694_v11 }
 0x44f   :  { %v8677_v2 = vld [vmem:[#allocation6 + $0x240] sm:$0xf]  ;;  %v10766_v6 = vld [vmem:[#allocation6 + $0x24c] sm:$0xf0]  ;;  %v8550_v14 = vor.u32 %v10734_v60, %v8549_v9  ;;  %6815 = vmatpush.bf16.msrb.mxu3 %v8822_v32 }
 0x450   :  { %v8805_v5 = vld [vmem:[#allocation6 + $0x340] sm:$0xf]  ;;  %v10798_v1 = vld [vmem:[#allocation6 + $0x34c] sm:$0xf0]  ;;  %v8678_v16 = vor.u32 %v10766_v6, %v8677_v2  ;;  %6777 = vmatpush.bf16.msra.mxu0 %v8422_v58 }
 0x451   :  { %v8405_v13 = vld [vmem:[#allocation6 + $0x20] sm:$0xf]  ;;  %v10698_v23 = vld [vmem:[#allocation6 + $0x2c] sm:$0xf0]  ;;  %v8806_v59 = vor.u32 %v10798_v1, %v8805_v5  ;;  %6790 = vmatpush.bf16.msrb.mxu1 %v8550_v14 }
 0x452   :  { %v8533_v19 = vld [vmem:[#allocation6 + $0x120] sm:$0xf]  ;;  %v10730_v48 = vld [vmem:[#allocation6 + $0x12c] sm:$0xf0]  ;;  %v8406_v21 = vor.u32 %v10698_v23, %v8405_v13  ;;  %6803 = vmatpush.bf16.msra.mxu2 %v8678_v16 }
 0x453   :  { %v8661_v52 = vld [vmem:[#allocation6 + $0x220] sm:$0xf]  ;;  %v10762_v38 = vld [vmem:[#allocation6 + $0x22c] sm:$0xf0]  ;;  %v8534_v53 = vor.u32 %v10730_v48, %v8533_v19  ;;  %6816 = vmatpush.bf16.msrb.mxu3 %v8806_v59 }
 0x454   :  { %v8789_v20 = vld [vmem:[#allocation6 + $0x320] sm:$0xf]  ;;  %v10794_v62 = vld [vmem:[#allocation6 + $0x32c] sm:$0xf0]  ;;  %v8662_v29 = vor.u32 %v10762_v38, %v8661_v52  ;;  %6778 = vmatpush.bf16.msra.mxu0 %v8406_v21 }
 0x455   :  { %v8389_v24 = vld [vmem:[#allocation6] sm:$0xf]  ;;  %v10694_v33 = vld [vmem:[#allocation6 + $0xc] sm:$0xf0]  ;;  %v8790_v41 = vor.u32 %v10794_v62, %v8789_v20  ;;  %6791 = vmatpush.bf16.msrb.mxu1 %v8534_v53 }
 0x456   :  { %v8517_v28 = vld [vmem:[#allocation6 + $0x100] sm:$0xf]  ;;  %v10726_v63 = vld [vmem:[#allocation6 + $0x10c] sm:$0xf0]  ;;  %v8390_v4 = vor.u32 %v10694_v33, %v8389_v24  ;;  %6804 = vmatpush.bf16.msra.mxu2 %v8662_v29 }
 0x457   :  { %v8645_v56 = vld [vmem:[#allocation6 + $0x200] sm:$0xf]  ;;  %v10758_v44 = vld [vmem:[#allocation6 + $0x20c] sm:$0xf0]  ;;  %v8518_v49 = vor.u32 %v10726_v63, %v8517_v28  ;;  %6817 = vmatpush.bf16.msrb.mxu3 %v8790_v41 }
 0x458   :  { %v8773_v25 = vld [vmem:[#allocation6 + $0x300] sm:$0xf]  ;;  %v10790_v42 = vld [vmem:[#allocation6 + $0x30c] sm:$0xf0]  ;;  %v8646_v34 = vor.u32 %v10758_v44, %v8645_v56  ;;  %6779 = vmatpush.bf16.msra.mxu0 %v8390_v4 }
 0x459   :  { %v9013_v47 = vld [vmem:[#allocation6 + $0x4e0] sm:$0xf]  ;;  %v10850_v46 = vld [vmem:[#allocation6 + $0x4ec] sm:$0xf0]  ;;  %v8774_v10 = vor.u32 %v10790_v42, %v8773_v25  ;;  %6792 = vmatpush.bf16.msrb.mxu1 %v8518_v49 }
 0x45a   :  { %v9141_v8 = vld [vmem:[#allocation6 + $0x5e0] sm:$0xf]  ;;  %v10882_v22 = vld [vmem:[#allocation6 + $0x5ec] sm:$0xf0]  ;;  %v9014_v35 = vor.u32 %v10850_v46, %v9013_v47  ;;  %6805 = vmatpush.bf16.msra.mxu2 %v8646_v34 }
 0x45b   :  { %v9269_v26 = vld [vmem:[#allocation6 + $0x6e0] sm:$0xf]  ;;  %v10914_v51 = vld [vmem:[#allocation6 + $0x6ec] sm:$0xf0]  ;;  %v9142_v36 = vor.u32 %v10882_v22, %v9141_v8  ;;  %6818 = vmatpush.bf16.msrb.mxu3 %v8774_v10 }
 0x45c   :  { %v9397_v3 = vld [vmem:[#allocation6 + $0x7e0] sm:$0xf]  ;;  %v10946_v18 = vld [vmem:[#allocation6 + $0x7ec] sm:$0xf0]  ;;  %v9270_v55 = vor.u32 %v10914_v51, %v9269_v26  ;;  %6824 = vmatpush.bf16.msrb.mxu0 %v9014_v35 }
 0x45d   :  { %v8997_v0 = vld [vmem:[#allocation6 + $0x4c0] sm:$0xf]  ;;  %v10846_v30 = vld [vmem:[#allocation6 + $0x4cc] sm:$0xf0]  ;;  %v9398_v17 = vor.u32 %v10946_v18, %v9397_v3  ;;  %6837 = vmatpush.bf16.msra.mxu1 %v9142_v36 }
 0x45e   :  { %v9125_v15 = vld [vmem:[#allocation6 + $0x5c0] sm:$0xf]  ;;  %v10878_v37 = vld [vmem:[#allocation6 + $0x5cc] sm:$0xf0]  ;;  %v8998_v7 = vor.u32 %v10846_v30, %v8997_v0  ;;  %6850 = vmatpush.bf16.msrb.mxu2 %v9270_v55 }
 0x45f   :  { %v9253_v27 = vld [vmem:[#allocation6 + $0x6c0] sm:$0xf]  ;;  %v10910_v39 = vld [vmem:[#allocation6 + $0x6cc] sm:$0xf0]  ;;  %v9126_v61 = vor.u32 %v10878_v37, %v9125_v15  ;;  %6863 = vmatpush.bf16.msra.mxu3 %v9398_v17 }
 0x460   :  { %v9381_v31 = vld [vmem:[#allocation6 + $0x7c0] sm:$0xf]  ;;  %v10942_v45 = vld [vmem:[#allocation6 + $0x7cc] sm:$0xf0]  ;;  %v9254_v54 = vor.u32 %v10910_v39, %v9253_v27  ;;  %6825 = vmatpush.bf16.msrb.mxu0 %v8998_v7 }
 0x461   :  { %v8981_v12 = vld [vmem:[#allocation6 + $0x4a0] sm:$0xf]  ;;  %v10842_v57 = vld [vmem:[#allocation6 + $0x4ac] sm:$0xf0]  ;;  %v9382_v11 = vor.u32 %v10942_v45, %v9381_v31  ;;  %6838 = vmatpush.bf16.msra.mxu1 %v9126_v61 }
 0x462   :  { %v9109_v43 = vld [vmem:[#allocation6 + $0x5a0] sm:$0xf]  ;;  %v10874_v50 = vld [vmem:[#allocation6 + $0x5ac] sm:$0xf0]  ;;  %v8982_v2 = vor.u32 %v10842_v57, %v8981_v12  ;;  %6851 = vmatpush.bf16.msrb.mxu2 %v9254_v54 }
 0x463   :  { %v9237_v40 = vld [vmem:[#allocation6 + $0x6a0] sm:$0xf]  ;;  %v10906_v9 = vld [vmem:[#allocation6 + $0x6ac] sm:$0xf0]  ;;  %v9110_v1 = vor.u32 %v10874_v50, %v9109_v43  ;;  %6864 = vmatpush.bf16.msra.mxu3 %v9382_v11 }
 0x464   :  { %v9365_v32 = vld [vmem:[#allocation6 + $0x7a0] sm:$0xf]  ;;  %v10938_v60 = vld [vmem:[#allocation6 + $0x7ac] sm:$0xf0]  ;;  %v9238_v58 = vor.u32 %v10906_v9, %v9237_v40  ;;  %6826 = vmatpush.bf16.msrb.mxu0 %v8982_v2 }
 0x465   :  { %v8965_v6 = vld [vmem:[#allocation6 + $0x480] sm:$0xf]  ;;  %v3652_v5 = vld [vmem:[#allocation5] sm:$0xff]  ;;  %v9366_v13 = vor.u32 %v10938_v60, %v9365_v32  ;;  %6839 = vmatpush.bf16.msra.mxu1 %v9110_v1 }
 0x466   :  { %v10838_v14 = vld [vmem:[#allocation6 + $0x48c] sm:$0xf0]  ;;  %v9093_v16 = vld [vmem:[#allocation6 + $0x580] sm:$0xf]  ;;  %4177 = vst [vmem:[#allocation1] ss:$9 sm:$0xff] %v3652_v5  ;;  %6852 = vmatpush.bf16.msrb.mxu2 %v9238_v58 }
 0x467   :  { %v10870_v23 = vld [vmem:[#allocation6 + $0x58c] sm:$0xf0]  ;;  %v9221_v19 = vld [vmem:[#allocation6 + $0x680] sm:$0xf]  ;;  %v8966_v38 = vor.u32 %v10838_v14, %v8965_v6  ;;  %6865 = vmatpush.bf16.msra.mxu3 %v9366_v13 }
 0x468   :  { %v10902_v59 = vld [vmem:[#allocation6 + $0x68c] sm:$0xf0]  ;;  %v9349_v48 = vld [vmem:[#allocation6 + $0x780] sm:$0xf]  ;;  %v9094_v20 = vor.u32 %v10870_v23, %v9093_v16 }
 0x469   :  { %v10934_v52 = vld [vmem:[#allocation6 + $0x78c] sm:$0xf0]  ;;  %v9222_v62 = vor.u32 %v10902_v59, %v9221_v19  ;;  %v8949_v21 = vld [vmem:[#allocation6 + $0x460] sm:$0xf]  ;;  %6827 = vmatpush.bf16.msrb.mxu0 %v8966_v38 }
 0x46a   :  { %v10834_v24 = vld [vmem:[#allocation6 + $0x46c] sm:$0xf0]  ;;  %v9077_v33 = vld [vmem:[#allocation6 + $0x560] sm:$0xf]  ;;  %v9350_v53 = vor.u32 %v10934_v52, %v9349_v48  ;;  %6840 = vmatpush.bf16.msra.mxu1 %v9094_v20 }
 0x46b   :  { %v10866_v29 = vld [vmem:[#allocation6 + $0x56c] sm:$0xf0]  ;;  %v9205_v28 = vld [vmem:[#allocation6 + $0x660] sm:$0xf]  ;;  %v8950_v25 = vor.u32 %v10834_v24, %v8949_v21  ;;  %6853 = vmatpush.bf16.msrb.mxu2 %v9222_v62 }
 0x46c   :  { %v10898_v63 = vld [vmem:[#allocation6 + $0x66c] sm:$0xf0]  ;;  %v9333_v56 = vld [vmem:[#allocation6 + $0x760] sm:$0xf]  ;;  %v9078_v8 = vor.u32 %v10866_v29, %v9077_v33  ;;  %6866 = vmatpush.bf16.msra.mxu3 %v9350_v53 }
 0x46d   :  { %v10930_v41 = vld [vmem:[#allocation6 + $0x76c] sm:$0xf0]  ;;  %v8933_v44 = vld [vmem:[#allocation6 + $0x440] sm:$0xf]  ;;  %v12663_v47 = vld [vmem:[#allocation1] sm:$0xff]  ;;  %v9206_v4 = vor.u32 %v10898_v63, %v9205_v28  ;;  %6828 = vmatpush.bf16.msrb.mxu0 %v8950_v25 }
 0x46e   :  { %v12661_v42 = vld [vmem:[#allocation1 + $0x12] sm:$0xff]  ;;  %v12665_v46 = vld [vmem:[#allocation1 + $0x1b] sm:$0xff]  ;;  %v9061_v26 = vld [vmem:[#allocation6 + $0x540] sm:$0xf]  ;;  %v9334_v49 = vor.u32 %v10930_v41, %v9333_v56  ;;  %6780 = vmatmul.bf16.vlgmr.msra.gmra.mxu0 %v12663_v47  ;;  %6841 = vmatpush.bf16.msra.mxu1 %v9078_v8 }
 0x46f   :  { %v10830_v22 = vld [vmem:[#allocation6 + $0x44c] sm:$0xf0]  ;;  %v12667_v51 = vld [vmem:[#allocation1 + $0x9] sm:$0xff]  ;;  %6806 = vmatmul.bf16.vlgmr.msra.gmra.mxu2 %v12661_v42  ;;  %6819 = vmatmul.bf16.vlgmr.msrb.gmra.mxu3 %v12665_v46 }
 0x470   :  { %v10862_v34 = vld [vmem:[#allocation6 + $0x54c] sm:$0xf0]  ;;  %v9189_v3 = vld [vmem:[#allocation6 + $0x640] sm:$0xf]  ;;  %v8934_v36 = vor.u32 %v10830_v22, %v8933_v44  ;;  %6793 = vmatmul.bf16.vlgmr.msrb.gmra.mxu1 %v12667_v51  ;;  %6854 = vmatpush.bf16.msrb.mxu2 %v9206_v4  ;;  %v12677_v22 = vld [vmem:[#allocation1 + $0x3f] sm:$0xff] }
 0x471   :  { %v10894_v18 = vld [vmem:[#allocation6 + $0x64c] sm:$0xf0]  ;;  %v9317_v10 = vld [vmem:[#allocation6 + $0x740] sm:$0xf]  ;;  %v9062_v55 = vor.u32 %v10862_v34, %v9061_v26  ;;  %6867 = vmatpush.bf16.msra.mxu3 %v9334_v49 }
 0x472   :  { %v10926_v35 = vld [vmem:[#allocation6 + $0x74c] sm:$0xf0]  ;;  %v9190_v0 = vor.u32 %v10894_v18, %v9189_v3  ;;  %v8917_v30 = vld [vmem:[#allocation6 + $0x420] sm:$0xf]  ;;  %6829 = vmatpush.bf16.msrb.mxu0 %v8934_v36  ;;  %v12679_v18 = vld [vmem:[#allocation1 + $0x2d] sm:$0xff] }
 0x473   :  { %v10826_v15 = vld [vmem:[#allocation6 + $0x42c] sm:$0xf0]  ;;  %v9045_v17 = vld [vmem:[#allocation6 + $0x520] sm:$0xf]  ;;  %v9318_v37 = vor.u32 %v10926_v35, %v9317_v10  ;;  %6842 = vmatpush.bf16.msra.mxu1 %v9062_v55 }
 0x474   :  { %v10858_v27 = vld [vmem:[#allocation6 + $0x52c] sm:$0xf0]  ;;  %v9173_v39 = vld [vmem:[#allocation6 + $0x620] sm:$0xf]  ;;  %v8918_v61 = vor.u32 %v10826_v15, %v8917_v30  ;;  %6855 = vmatpush.bf16.msrb.mxu2 %v9190_v0 }
 0x475   :  { %v10890_v31 = vld [vmem:[#allocation6 + $0x62c] sm:$0xf0]  ;;  %v9301_v45 = vld [vmem:[#allocation6 + $0x720] sm:$0xf]  ;;  %v9046_v57 = vor.u32 %v10858_v27, %v9045_v17  ;;  %6868 = vmatpush.bf16.msra.mxu3 %v9318_v37 }
 0x476   :  { %v10922_v7 = vld [vmem:[#allocation6 + $0x72c] sm:$0xf0]  ;;  %v8901_v54 = vld [vmem:[#allocation6 + $0x400] sm:$0xf]  ;;  %v9174_v43 = vor.u32 %v10890_v31, %v9173_v39  ;;  %6830 = vmatpush.bf16.msrb.mxu0 %v8918_v61 }
 0x477   :  { %v10822_v12 = vld [vmem:[#allocation6 + $0x40c] sm:$0xf0]  ;;  %v9029_v11 = vld [vmem:[#allocation6 + $0x500] sm:$0xf]  ;;  %v9302_v9 = vor.u32 %v10922_v7, %v9301_v45  ;;  %6843 = vmatpush.bf16.msra.mxu1 %v9046_v57 }
 0x478   :  { %v10854_v50 = vld [vmem:[#allocation6 + $0x50c] sm:$0xf0]  ;;  %v9157_v40 = vld [vmem:[#allocation6 + $0x600] sm:$0xf]  ;;  %v8902_v58 = vor.u32 %v10822_v12, %v8901_v54  ;;  %6856 = vmatpush.bf16.msrb.mxu2 %v9174_v43  ;;  %v3653_v43 = vld [vmem:[#allocation5 + $0x8] sm:$0xff] }
 0x479   :  { %v10886_v32 = vld [vmem:[#allocation6 + $0x60c] sm:$0xf0]  ;;  %v9285_v60 = vld [vmem:[#allocation6 + $0x700] sm:$0xf]  ;;  %v9030_v23 = vor.u32 %v10854_v50, %v9029_v11  ;;  %6869 = vmatpush.bf16.msra.mxu3 %v9302_v9 }
 0x47a   :  { %v10918_v2 = vld [vmem:[#allocation6 + $0x70c] sm:$0xf0]  ;;  %v9525_v6 = vld [vmem:[#allocation6 + $0x8e0] sm:$0xf]  ;;  %v9158_v19 = vor.u32 %v10886_v32, %v9157_v40  ;;  %6831 = vmatpush.bf16.msrb.mxu0 %v8902_v58 }
 0x47b   :  { %v10978_v5 = vld [vmem:[#allocation6 + $0x8ec] sm:$0xf0]  ;;  %v9653_v1 = vld [vmem:[#allocation6 + $0x9e0] sm:$0xf]  ;;  %v9286_v52 = vor.u32 %v10918_v2, %v9285_v60  ;;  %6844 = vmatpush.bf16.msra.mxu1 %v9030_v23 }
 0x47c   :  { %v11010_v14 = vld [vmem:[#allocation6 + $0x9ec] sm:$0xf0]  ;;  %v9781_v16 = vld [vmem:[#allocation6 + $0xae0] sm:$0xf]  ;;  %v9526_v38 = vor.u32 %v10978_v5, %v9525_v6  ;;  %6857 = vmatpush.bf16.msrb.mxu2 %v9158_v19 }
 0x47d   :  { %v11042_v13 = vld [vmem:[#allocation6 + $0xaec] sm:$0xf0]  ;;  %v9909_v59 = vld [vmem:[#allocation6 + $0xbe0] sm:$0xf]  ;;  %v9654_v20 = vor.u32 %v11010_v14, %v9653_v1  ;;  %6870 = vmatpush.bf16.msra.mxu3 %v9286_v52 }
 0x47e   :  { %v11074_v48 = vld [vmem:[#allocation6 + $0xbec] sm:$0xf0]  ;;  %v9782_v62 = vor.u32 %v11042_v13, %v9781_v16  ;;  %v9509_v21 = vld [vmem:[#allocation6 + $0x8c0] sm:$0xf]  ;;  %6876 = vmatpush.bf16.msra.mxu0 %v9526_v38 }
 0x47f   :  { %v10974_v24 = vld [vmem:[#allocation6 + $0x8cc] sm:$0xf0]  ;;  %v9637_v33 = vld [vmem:[#allocation6 + $0x9c0] sm:$0xf]  ;;  %v9910_v53 = vor.u32 %v11074_v48, %v9909_v59  ;;  %6889 = vmatpush.bf16.msrb.mxu1 %v9654_v20 }
 0x480   :  { %v11006_v29 = vld [vmem:[#allocation6 + $0x9cc] sm:$0xf0]  ;;  %v9765_v28 = vld [vmem:[#allocation6 + $0xac0] sm:$0xf]  ;;  %v9510_v25 = vor.u32 %v10974_v24, %v9509_v21  ;;  %6902 = vmatpush.bf16.msra.mxu2 %v9782_v62  ;;  %6871 = vmatmul.bf16.vlgmr.msra.gmra.mxu3 %v12677_v22 }
 0x481   :  { %v11038_v63 = vld [vmem:[#allocation6 + $0xacc] sm:$0xf0]  ;;  %v9893_v56 = vld [vmem:[#allocation6 + $0xbc0] sm:$0xf]  ;;  %v9638_v26 = vor.u32 %v11006_v29, %v9637_v33  ;;  %6915 = vmatpush.bf16.msrb.mxu3 %v9910_v53  ;;  %6845 = vmatmul.bf16.vlgmr.msra.gmra.mxu1 %v12679_v18 }
 0x482   :  { %v11070_v41 = vld [vmem:[#allocation6 + $0xbcc] sm:$0xf0]  ;;  %v9493_v8 = vld [vmem:[#allocation6 + $0x8a0] sm:$0xf]  ;;  %v9766_v49 = vor.u32 %v11038_v63, %v9765_v28  ;;  %6877 = vmatpush.bf16.msra.mxu0 %v9510_v25 }
 0x483   :  { %v12673_v44 = vld [vmem:[#allocation1 + $0x36] sm:$0xff]  ;;  %v12675_v4 = vld [vmem:[#allocation1 + $0x24] sm:$0xff]  ;;  %v9894_v10 = vor.u32 %v11070_v41, %v9893_v56  ;;  %6890 = vmatpush.bf16.msrb.mxu1 %v9638_v26 }
 0x484   :  { %v10970_v34 = vld [vmem:[#allocation6 + $0x8ac] sm:$0xf0]  ;;  %v9621_v3 = vld [vmem:[#allocation6 + $0x9a0] sm:$0xf]  ;;  %6858 = vmatmul.bf16.vlgmr.msrb.gmra.mxu2 %v12673_v44  ;;  %6832 = vmatmul.bf16.vlgmr.msrb.gmra.mxu0 %v12675_v4  ;;  %4187 = vst [vmem:[#allocation1] ss:$9 sm:$0xff] %v3653_v43 }
 0x485   :  { %v11002_v35 = vld [vmem:[#allocation6 + $0x9ac] sm:$0xf0]  ;;  %v9749_v36 = vld [vmem:[#allocation6 + $0xaa0] sm:$0xf]  ;;  %v9494_v15 = vor.u32 %v10970_v34, %v9493_v8  ;;  %6903 = vmatpush.bf16.msra.mxu2 %v9766_v49  ;;  %6916 = vmatpush.bf16.msrb.mxu3 %v9894_v10 }
 0x486   :  { %v11034_v55 = vld [vmem:[#allocation6 + $0xaac] sm:$0xf0]  ;;  %v9877_v0 = vld [vmem:[#allocation6 + $0xba0] sm:$0xf]  ;;  %v9622_v17 = vor.u32 %v11002_v35, %v9621_v3 }
 0x487   :  { %v11066_v30 = vld [vmem:[#allocation6 + $0xbac] sm:$0xf0]  ;;  %v9750_v37 = vor.u32 %v11034_v55, %v9749_v36  ;;  %v9477_v27 = vld [vmem:[#allocation6 + $0x880] sm:$0xf]  ;;  %6878 = vmatpush.bf16.msra.mxu0 %v9494_v15 }
 0x488   :  { %v10966_v39 = vld [vmem:[#allocation6 + $0x88c] sm:$0xf0]  ;;  %v9605_v31 = vld [vmem:[#allocation6 + $0x980] sm:$0xf]  ;;  %v9878_v45 = vor.u32 %v11066_v30, %v9877_v0  ;;  %6891 = vmatpush.bf16.msrb.mxu1 %v9622_v17 }
 0x489   :  { %v10998_v7 = vld [vmem:[#allocation6 + $0x98c] sm:$0xf0]  ;;  %v9733_v61 = vld [vmem:[#allocation6 + $0xa80] sm:$0xf]  ;;  %v9478_v11 = vor.u32 %v10966_v39, %v9477_v27  ;;  %6904 = vmatpush.bf16.msra.mxu2 %v9750_v37 }
 0x48a   :  { %v11030_v54 = vld [vmem:[#allocation6 + $0xa8c] sm:$0xf0]  ;;  %v9861_v12 = vld [vmem:[#allocation6 + $0xb80] sm:$0xf]  ;;  %v9606_v50 = vor.u32 %v10998_v7, %v9605_v31  ;;  %6917 = vmatpush.bf16.msrb.mxu3 %v9878_v45 }
 0x48b   :  { %v11062_v57 = vld [vmem:[#allocation6 + $0xb8c] sm:$0xf0]  ;;  %v9734_v40 = vor.u32 %v11030_v54, %v9733_v61  ;;  %v9461_v9 = vld [vmem:[#allocation6 + $0x860] sm:$0xf]  ;;  %6879 = vmatpush.bf16.msra.mxu0 %v9478_v11 }
 0x48c   :  { %v10962_v32 = vld [vmem:[#allocation6 + $0x86c] sm:$0xf0]  ;;  %v9589_v60 = vld [vmem:[#allocation6 + $0x960] sm:$0xf]  ;;  %v9862_v2 = vor.u32 %v11062_v57, %v9861_v12  ;;  %6892 = vmatpush.bf16.msrb.mxu1 %v9606_v50 }
 0x48d   :  { %v10994_v6 = vld [vmem:[#allocation6 + $0x96c] sm:$0xf0]  ;;  %v9717_v5 = vld [vmem:[#allocation6 + $0xa60] sm:$0xf]  ;;  %v9462_v16 = vor.u32 %v10962_v32, %v9461_v9  ;;  %6905 = vmatpush.bf16.msra.mxu2 %v9734_v40 }
 0x48e   :  { %v11026_v1 = vld [vmem:[#allocation6 + $0xa6c] sm:$0xf0]  ;;  %v9845_v58 = vld [vmem:[#allocation6 + $0xb60] sm:$0xf]  ;;  %v9590_v13 = vor.u32 %v10994_v6, %v9589_v60  ;;  %6918 = vmatpush.bf16.msrb.mxu3 %v9862_v2 }
 0x48f   :  { %v11058_v14 = vld [vmem:[#allocation6 + $0xb6c] sm:$0xf0]  ;;  %v9718_v23 = vor.u32 %v11026_v1, %v9717_v5  ;;  %v9445_v19 = vld [vmem:[#allocation6 + $0x840] sm:$0xf]  ;;  %6880 = vmatpush.bf16.msra.mxu0 %v9462_v16 }
 0x490   :  { %v10958_v59 = vld [vmem:[#allocation6 + $0x84c] sm:$0xf0]  ;;  %v9573_v48 = vld [vmem:[#allocation6 + $0x940] sm:$0xf]  ;;  %v9846_v52 = vor.u32 %v11058_v14, %v9845_v58  ;;  %6893 = vmatpush.bf16.msrb.mxu1 %v9590_v13 }
 0x491   :  { %v10990_v38 = vld [vmem:[#allocation6 + $0x94c] sm:$0xf0]  ;;  %v9701_v20 = vld [vmem:[#allocation6 + $0xa40] sm:$0xf]  ;;  %v9446_v33 = vor.u32 %v10958_v59, %v9445_v19  ;;  %6906 = vmatpush.bf16.msra.mxu2 %v9718_v23  ;;  %v4188_v23 = vld [vmem:[#allocation1] sm:$0xff] }
 0x492   :  { %v11022_v62 = vld [vmem:[#allocation6 + $0xa4c] sm:$0xf0]  ;;  %v9829_v21 = vld [vmem:[#allocation6 + $0xb40] sm:$0xf]  ;;  %v9574_v53 = vor.u32 %v10990_v38, %v9573_v48  ;;  %6919 = vmatpush.bf16.msrb.mxu3 %v9846_v52 }
 0x493   :  { %v11054_v24 = vld [vmem:[#allocation6 + $0xb4c] sm:$0xf0]  ;;  %v9702_v29 = vor.u32 %v11022_v62, %v9701_v20  ;;  %v9429_v28 = vld [vmem:[#allocation6 + $0x820] sm:$0xf]  ;;  %6881 = vmatpush.bf16.msra.mxu0 %v9446_v33 }
 0x494   :  { %v10954_v63 = vld [vmem:[#allocation6 + $0x82c] sm:$0xf0]  ;;  %v9557_v56 = vld [vmem:[#allocation6 + $0x920] sm:$0xf]  ;;  %v9830_v41 = vor.u32 %v11054_v24, %v9829_v21  ;;  %6894 = vmatpush.bf16.msrb.mxu1 %v9574_v53 }
 0x495   :  { %v10986_v25 = vld [vmem:[#allocation6 + $0x92c] sm:$0xf0]  ;;  %v9685_v8 = vld [vmem:[#allocation6 + $0xa20] sm:$0xf]  ;;  %v9430_v3 = vor.u32 %v10954_v63, %v9429_v28  ;;  %6907 = vmatpush.bf16.msra.mxu2 %v9702_v29 }
 0x496   :  { %v11018_v26 = vld [vmem:[#allocation6 + $0xa2c] sm:$0xf0]  ;;  %v9813_v49 = vld [vmem:[#allocation6 + $0xb20] sm:$0xf]  ;;  %v9558_v36 = vor.u32 %v10986_v25, %v9557_v56  ;;  %6920 = vmatpush.bf16.msrb.mxu3 %v9830_v41 }
 0x497   :  { %v11050_v34 = vld [vmem:[#allocation6 + $0xb2c] sm:$0xf0]  ;;  %v9413_v10 = vld [vmem:[#allocation6 + $0x800] sm:$0xf]  ;;  %v9686_v55 = vor.u32 %v11018_v26, %v9685_v8  ;;  %6882 = vmatpush.bf16.msra.mxu0 %v9430_v3 }
 0x498   :  { %v10950_v35 = vld [vmem:[#allocation6 + $0x80c] sm:$0xf0]  ;;  %v9541_v0 = vld [vmem:[#allocation6 + $0x900] sm:$0xf]  ;;  %v9814_v17 = vor.u32 %v11050_v34, %v9813_v49  ;;  %6895 = vmatpush.bf16.msrb.mxu1 %v9558_v36 }
 0x499   :  { %v10982_v30 = vld [vmem:[#allocation6 + $0x90c] sm:$0xf0]  ;;  %v9669_v15 = vld [vmem:[#allocation6 + $0xa00] sm:$0xf]  ;;  %v9414_v61 = vor.u32 %v10950_v35, %v9413_v10  ;;  %6908 = vmatpush.bf16.msra.mxu2 %v9686_v55 }
 0x49a   :  { %v11014_v37 = vld [vmem:[#allocation6 + $0xa0c] sm:$0xf0]  ;;  %v9797_v27 = vld [vmem:[#allocation6 + $0xb00] sm:$0xf]  ;;  %v9542_v43 = vor.u32 %v10982_v30, %v9541_v0  ;;  %6921 = vmatpush.bf16.msrb.mxu3 %v9814_v17 }
 0x49b   :  { %v11046_v39 = vld [vmem:[#allocation6 + $0xb0c] sm:$0xf0]  ;;  %v10037_v31 = vld [vmem:[#allocation6 + $0xce0] sm:$0xf]  ;;  %v9670_v11 = vor.u32 %v11014_v37, %v9669_v15  ;;  %6883 = vmatpush.bf16.msra.mxu0 %v9414_v61 }
 0x49c   :  { %v11106_v45 = vld [vmem:[#allocation6 + $0xcec] sm:$0xf0]  ;;  %v10165_v7 = vld [vmem:[#allocation6 + $0xde0] sm:$0xf]  ;;  %v9798_v9 = vor.u32 %v11046_v39, %v9797_v27  ;;  %6896 = vmatpush.bf16.msrb.mxu1 %v9542_v43 }
 0x49d   :  { %v11138_v54 = vld [vmem:[#allocation6 + $0xdec] sm:$0xf0]  ;;  %v10293_v12 = vld [vmem:[#allocation6 + $0xee0] sm:$0xf]  ;;  %v10038_v32 = vor.u32 %v11106_v45, %v10037_v31  ;;  %6909 = vmatpush.bf16.msra.mxu2 %v9670_v11 }
 0x49e   :  { %v11170_v57 = vld [vmem:[#allocation6 + $0xeec] sm:$0xf0]  ;;  %v10421_v50 = vld [vmem:[#allocation6 + $0xfe0] sm:$0xf]  ;;  %v10166_v60 = vor.u32 %v11138_v54, %v10165_v7  ;;  %6922 = vmatpush.bf16.msrb.mxu3 %v9798_v9  ;;  %6884 = vmatmul.bf16.vlgmr.msra.gmra.mxu0 %v4188_v23 }
 0x49f   :  { %v11202_v40 = vld [vmem:[#allocation6 + $0xfec] sm:$0xf0]  ;;  %v10294_v2 = vor.u32 %v11170_v57, %v10293_v12  ;;  %v10021_v6 = vld [vmem:[#allocation6 + $0xcc0] sm:$0xf]  ;;  %6928 = vmatpush.bf16.msrb.mxu0 %v10038_v32 }
 0x4a0   :  { %v11102_v5 = vld [vmem:[#allocation6 + $0xccc] sm:$0xf0]  ;;  %v10149_v1 = vld [vmem:[#allocation6 + $0xdc0] sm:$0xf]  ;;  %v10422_v58 = vor.u32 %v11202_v40, %v10421_v50  ;;  %6941 = vmatpush.bf16.msra.mxu1 %v10166_v60 }
 0x4a1   :  { %v11134_v14 = vld [vmem:[#allocation6 + $0xdcc] sm:$0xf0]  ;;  %v10277_v16 = vld [vmem:[#allocation6 + $0xec0] sm:$0xf]  ;;  %v10022_v38 = vor.u32 %v11102_v5, %v10021_v6  ;;  %6954 = vmatpush.bf16.msrb.mxu2 %v10294_v2 }
 0x4a2   :  { %v11166_v13 = vld [vmem:[#allocation6 + $0xecc] sm:$0xf0]  ;;  %v10405_v19 = vld [vmem:[#allocation6 + $0xfc0] sm:$0xf]  ;;  %v10150_v21 = vor.u32 %v11134_v14, %v10149_v1  ;;  %6967 = vmatpush.bf16.msra.mxu3 %v10422_v58 }
 0x4a3   :  { %v11198_v59 = vld [vmem:[#allocation6 + $0xfcc] sm:$0xf0]  ;;  %v4189_v52 = vld [vmem:[#allocation1 + $0x9] sm:$0xff]  ;;  %v10278_v24 = vor.u32 %v11166_v13, %v10277_v16  ;;  %6929 = vmatpush.bf16.msrb.mxu0 %v10022_v38 }
 0x4a4   :  { %v4190_v48 = vld [vmem:[#allocation1 + $0x12] sm:$0xff]  ;;  %v10005_v20 = vld [vmem:[#allocation6 + $0xca0] sm:$0xf]  ;;  %v4191_v62 = vld [vmem:[#allocation1 + $0x1b] sm:$0xff]  ;;  %v10406_v29 = vor.u32 %v11198_v59, %v10405_v19  ;;  %6897 = vmatmul.bf16.vlgmr.msrb.gmra.mxu1 %v4189_v52 }
 0x4a5   :  { %v11098_v33 = vld [vmem:[#allocation6 + $0xcac] sm:$0xf0]  ;;  %v10133_v53 = vld [vmem:[#allocation6 + $0xda0] sm:$0xf]  ;;  %6910 = vmatmul.bf16.vlgmr.msra.gmra.mxu2 %v4190_v48  ;;  %6923 = vmatmul.bf16.vlgmr.msrb.gmra.mxu3 %v4191_v62 }
 0x4a6   :  { %v11130_v28 = vld [vmem:[#allocation6 + $0xdac] sm:$0xf0]  ;;  %v10261_v63 = vld [vmem:[#allocation6 + $0xea0] sm:$0xf]  ;;  %v10006_v8 = vor.u32 %v11098_v33, %v10005_v20  ;;  %6942 = vmatpush.bf16.msra.mxu1 %v10150_v21  ;;  %6955 = vmatpush.bf16.msrb.mxu2 %v10278_v24 }
 0x4a7   :  { %v11162_v56 = vld [vmem:[#allocation6 + $0xeac] sm:$0xf0]  ;;  %v10389_v41 = vld [vmem:[#allocation6 + $0xfa0] sm:$0xf]  ;;  %v10134_v26 = vor.u32 %v11130_v28, %v10133_v53  ;;  %6968 = vmatpush.bf16.msra.mxu3 %v10406_v29 }
 0x4a8   :  { %v11194_v25 = vld [vmem:[#allocation6 + $0xfac] sm:$0xf0]  ;;  %v10262_v49 = vor.u32 %v11162_v56, %v10261_v63  ;;  %v9989_v34 = vld [vmem:[#allocation6 + $0xc80] sm:$0xf]  ;;  %6930 = vmatpush.bf16.msrb.mxu0 %v10006_v8 }
 0x4a9   :  { %v11094_v3 = vld [vmem:[#allocation6 + $0xc8c] sm:$0xf0]  ;;  %v10117_v10 = vld [vmem:[#allocation6 + $0xd80] sm:$0xf]  ;;  %v10390_v35 = vor.u32 %v11194_v25, %v10389_v41 }
 0x4aa   :  { %v11126_v36 = vld [vmem:[#allocation6 + $0xd8c] sm:$0xf0]  ;;  %v10245_v55 = vld [vmem:[#allocation6 + $0xe80] sm:$0xf]  ;;  %v9990_v17 = vor.u32 %v11094_v3, %v9989_v34  ;;  %6943 = vmatpush.bf16.msra.mxu1 %v10134_v26  ;;  %6956 = vmatpush.bf16.msrb.mxu2 %v10262_v49  ;;  %v10720_v3 = vld [vmem:[#allocation6 + $0xe4] sm:$0xf] }
 0x4ab   :  { %v11158_v0 = vld [vmem:[#allocation6 + $0xe8c] sm:$0xf0]  ;;  %v10373_v30 = vld [vmem:[#allocation6 + $0xf80] sm:$0xf]  ;;  %v10118_v37 = vor.u32 %v11126_v36, %v10117_v10  ;;  %6969 = vmatpush.bf16.msra.mxu3 %v10390_v35  ;;  %v8503_v10 = vld [vmem:[#allocation6 + $0xf0] sm:$0xf0] }
 0x4ac   :  { %v11190_v15 = vld [vmem:[#allocation6 + $0xf8c] sm:$0xf0]  ;;  %v10246_v27 = vor.u32 %v11158_v0, %v10245_v55  ;;  %v9973_v39 = vld [vmem:[#allocation6 + $0xc60] sm:$0xf]  ;;  %6931 = vmatpush.bf16.msrb.mxu0 %v9990_v17  ;;  %v10752_v35 = vld [vmem:[#allocation6 + $0x1e4] sm:$0xf] }
 0x4ad   :  { %v11090_v31 = vld [vmem:[#allocation6 + $0xc6c] sm:$0xf0]  ;;  %v10101_v45 = vld [vmem:[#allocation6 + $0xd60] sm:$0xf]  ;;  %v10374_v7 = vor.u32 %v11190_v15, %v10373_v30  ;;  %v8631_v55 = vld [vmem:[#allocation6 + $0x1f0] sm:$0xf0] }
 0x4ae   :  { %v11122_v61 = vld [vmem:[#allocation6 + $0xd6c] sm:$0xf0]  ;;  %v10229_v54 = vld [vmem:[#allocation6 + $0xe60] sm:$0xf]  ;;  %v9974_v11 = vor.u32 %v11090_v31, %v9973_v39  ;;  %6944 = vmatpush.bf16.msra.mxu1 %v10118_v37  ;;  %6957 = vmatpush.bf16.msrb.mxu2 %v10246_v27  ;;  %v10784_v0 = vld [vmem:[#allocation6 + $0x2e4] sm:$0xf]  ;;  %v8506_v31 = vor.u32 %v10720_v3, %v8503_v10 }
 0x4af   :  { %v11154_v12 = vld [vmem:[#allocation6 + $0xe6c] sm:$0xf0]  ;;  %v10357_v57 = vld [vmem:[#allocation6 + $0xf60] sm:$0xf]  ;;  %v10102_v50 = vor.u32 %v11122_v61, %v10101_v45  ;;  %6970 = vmatpush.bf16.msra.mxu3 %v10374_v7  ;;  %v8759_v30 = vld [vmem:[#allocation6 + $0x2f0] sm:$0xf0]  ;;  %v8634_v45 = vor.u32 %v10752_v35, %v8631_v55 }
 0x4b0   :  { %v11186_v43 = vld [vmem:[#allocation6 + $0xf6c] sm:$0xf0]  ;;  %v10230_v40 = vor.u32 %v11154_v12, %v10229_v54  ;;  %v9957_v9 = vld [vmem:[#allocation6 + $0xc40] sm:$0xf]  ;;  %6932 = vmatpush.bf16.msrb.mxu0 %v9974_v11  ;;  %v10816_v37 = vld [vmem:[#allocation6 + $0x3e4] sm:$0xf]  ;;  %v8762_v7 = vor.u32 %v10784_v0, %v8759_v30 }
 0x4b1   :  { %v11086_v32 = vld [vmem:[#allocation6 + $0xc4c] sm:$0xf0]  ;;  %v10085_v60 = vld [vmem:[#allocation6 + $0xd40] sm:$0xf]  ;;  %v10358_v2 = vor.u32 %v11186_v43, %v10357_v57  ;;  %v8887_v27 = vld [vmem:[#allocation6 + $0x3f0] sm:$0xf0] }
 0x4b2   :  { %v11118_v6 = vld [vmem:[#allocation6 + $0xd4c] sm:$0xf0]  ;;  %v10213_v5 = vld [vmem:[#allocation6 + $0xe40] sm:$0xf]  ;;  %v9958_v16 = vor.u32 %v11086_v32, %v9957_v9  ;;  %6945 = vmatpush.bf16.msra.mxu1 %v10102_v50  ;;  %6958 = vmatpush.bf16.msrb.mxu2 %v10230_v40  ;;  %v10716_v61 = vld [vmem:[#allocation6 + $0xc4] sm:$0xf]  ;;  %v8890_v57 = vor.u32 %v10816_v37, %v8887_v27 }
 0x4b3   :  { %v11150_v1 = vld [vmem:[#allocation6 + $0xe4c] sm:$0xf0]  ;;  %v10341_v58 = vld [vmem:[#allocation6 + $0xf40] sm:$0xf]  ;;  %v10086_v13 = vor.u32 %v11118_v6, %v10085_v60  ;;  %6971 = vmatpush.bf16.msra.mxu3 %v10358_v2  ;;  %v8487_v54 = vld [vmem:[#allocation6 + $0xd0] sm:$0xf0] }
 0x4b4   :  { %v11182_v14 = vld [vmem:[#allocation6 + $0xf4c] sm:$0xf0]  ;;  %v10214_v23 = vor.u32 %v11150_v1, %v10213_v5  ;;  %v9941_v19 = vld [vmem:[#allocation6 + $0xc20] sm:$0xf]  ;;  %6933 = vmatpush.bf16.msrb.mxu0 %v9958_v16  ;;  %v10748_v12 = vld [vmem:[#allocation6 + $0x1c4] sm:$0xf]  ;;  %v8490_v5 = vor.u32 %v10716_v61, %v8487_v54 }
 0x4b5   :  { %v11082_v59 = vld [vmem:[#allocation6 + $0xc2c] sm:$0xf0]  ;;  %v10069_v48 = vld [vmem:[#allocation6 + $0xd20] sm:$0xf]  ;;  %v10342_v52 = vor.u32 %v11182_v14, %v10341_v58  ;;  %v8615_v43 = vld [vmem:[#allocation6 + $0x1d0] sm:$0xf0] }
 0x4b6   :  { %v11114_v38 = vld [vmem:[#allocation6 + $0xd2c] sm:$0xf0]  ;;  %v10197_v20 = vld [vmem:[#allocation6 + $0xe20] sm:$0xf]  ;;  %v9942_v33 = vor.u32 %v11082_v59, %v9941_v19  ;;  %6946 = vmatpush.bf16.msra.mxu1 %v10086_v13  ;;  %6959 = vmatpush.bf16.msrb.mxu2 %v10214_v23  ;;  %v10780_v11 = vld [vmem:[#allocation6 + $0x2c4] sm:$0xf]  ;;  %v8618_v1 = vor.u32 %v10748_v12, %v8615_v43 }
 0x4b7   :  { %v11146_v62 = vld [vmem:[#allocation6 + $0xe2c] sm:$0xf0]  ;;  %v10325_v21 = vld [vmem:[#allocation6 + $0xf20] sm:$0xf]  ;;  %v10070_v28 = vor.u32 %v11114_v38, %v10069_v48  ;;  %6972 = vmatpush.bf16.msra.mxu3 %v10342_v52  ;;  %v8743_v50 = vld [vmem:[#allocation6 + $0x2d0] sm:$0xf0] }
 0x4b8   :  { %v11178_v24 = vld [vmem:[#allocation6 + $0xf2c] sm:$0xf0]  ;;  %v9925_v53 = vld [vmem:[#allocation6 + $0xc00] sm:$0xf]  ;;  %v10198_v63 = vor.u32 %v11146_v62, %v10197_v20  ;;  %6934 = vmatpush.bf16.msrb.mxu0 %v9942_v33  ;;  %v10812_v9 = vld [vmem:[#allocation6 + $0x3c4] sm:$0xf]  ;;  %v8746_v58 = vor.u32 %v10780_v11, %v8743_v50 }
 0x4b9   :  { %v11078_v29 = vld [vmem:[#allocation6 + $0xc0c] sm:$0xf0]  ;;  %v10053_v56 = vld [vmem:[#allocation6 + $0xd00] sm:$0xf]  ;;  %v10326_v8 = vor.u32 %v11178_v24, %v10325_v21  ;;  %v8871_v32 = vld [vmem:[#allocation6 + $0x3d0] sm:$0xf0] }
 0x4ba   :  { %v11110_v41 = vld [vmem:[#allocation6 + $0xd0c] sm:$0xf0]  ;;  %v10181_v25 = vld [vmem:[#allocation6 + $0xe00] sm:$0xf]  ;;  %v9926_v36 = vor.u32 %v11078_v29, %v9925_v53  ;;  %6947 = vmatpush.bf16.msra.mxu1 %v10070_v28  ;;  %6960 = vmatpush.bf16.msrb.mxu2 %v10198_v63  ;;  %v4193_v2 = vld [vmem:[#allocation1 + $0x2d] sm:$0xff]  ;;  %v8874_v23 = vor.u32 %v10812_v9, %v8871_v32 }
 0x4bb   :  { %v11142_v26 = vld [vmem:[#allocation6 + $0xe0c] sm:$0xf0]  ;;  %v10309_v49 = vld [vmem:[#allocation6 + $0xf00] sm:$0xf]  ;;  %v10054_v15 = vor.u32 %v11110_v41, %v10053_v56  ;;  %6973 = vmatpush.bf16.msra.mxu3 %v10326_v8  ;;  %v4195_v6 = vld [vmem:[#allocation1 + $0x3f] sm:$0xff] }
 0x4bc   :  { %v11174_v34 = vld [vmem:[#allocation6 + $0xf0c] sm:$0xf0]  ;;  %v10182_v17 = vor.u32 %v11142_v26, %v10181_v25  ;;  %6935 = vmatpush.bf16.msrb.mxu0 %v9926_v36  ;;  %v4192_v40 = vld [vmem:[#allocation1 + $0x24] sm:$0xff]  ;;  %v10712_v14 = vld [vmem:[#allocation6 + $0xa4] sm:$0xf] }
 0x4bd   :  { %v10310_v39 = vor.u32 %v11174_v34, %v10309_v49  ;;  %v4194_v60 = vld [vmem:[#allocation1 + $0x36] sm:$0xff]  ;;  %v10744_v13 = vld [vmem:[#allocation6 + $0x1a4] sm:$0xf] }
 0x4be   :  { %6948 = vmatpush.bf16.msra.mxu1 %v10054_v15  ;;  %6961 = vmatpush.bf16.msrb.mxu2 %v10182_v17  ;;  %v8471_v16 = vld [vmem:[#allocation6 + $0xb0] sm:$0xf0]  ;;  %v10776_v59 = vld [vmem:[#allocation6 + $0x2a4] sm:$0xf] }
 0x4bf   :  { %6974 = vmatpush.bf16.msra.mxu3 %v10310_v39  ;;  %6936 = vmatmul.bf16.vlgmr.msrb.gmra.mxu0 %v4192_v40  ;;  %v8599_v19 = vld [vmem:[#allocation6 + $0x1b0] sm:$0xf0]  ;;  %v10808_v52 = vld [vmem:[#allocation6 + $0x3a4] sm:$0xf]  ;;  %v8474_v20 = vor.u32 %v10712_v14, %v8471_v16 }
 0x4c0   :  { %6980 = vmatpush.bf16.msra.mxu0 %v8506_v31  ;;  %v8727_v48 = vld [vmem:[#allocation6 + $0x2b0] sm:$0xf0]  ;;  %v8602_v62 = vor.u32 %v10744_v13, %v8599_v19  ;;  %v10708_v24 = vld [vmem:[#allocation6 + $0x84] sm:$0xf] }
 0x4c1   :  { %6962 = vmatmul.bf16.vlgmr.msrb.gmra.mxu2 %v4194_v60  ;;  %6949 = vmatmul.bf16.vlgmr.msra.gmra.mxu1 %v4193_v2  ;;  %v8855_v38 = vld [vmem:[#allocation6 + $0x3b0] sm:$0xf0]  ;;  %v8730_v21 = vor.u32 %v10776_v59, %v8727_v48  ;;  %v10740_v53 = vld [vmem:[#allocation6 + $0x184] sm:$0xf] }
 0x4c2   :  { %6993 = vmatpush.bf16.msrb.mxu1 %v8634_v45  ;;  %7006 = vmatpush.bf16.msra.mxu2 %v8762_v7  ;;  %v8455_v33 = vld [vmem:[#allocation6 + $0x90] sm:$0xf0]  ;;  %v8858_v29 = vor.u32 %v10808_v52, %v8855_v38  ;;  %v10772_v63 = vld [vmem:[#allocation6 + $0x284] sm:$0xf] }
 0x4c3   :  { %7019 = vmatpush.bf16.msrb.mxu3 %v8890_v57  ;;  %v8583_v28 = vld [vmem:[#allocation6 + $0x190] sm:$0xf0]  ;;  %v10804_v41 = vld [vmem:[#allocation6 + $0x384] sm:$0xf]  ;;  %v8458_v8 = vor.u32 %v10708_v24, %v8455_v33 }
 0x4c4   :  { %6975 = vmatmul.bf16.vlgmr.msra.gmra.mxu3 %v4195_v6  ;;  %6981 = vmatpush.bf16.msra.mxu0 %v8490_v5  ;;  %v8711_v56 = vld [vmem:[#allocation6 + $0x290] sm:$0xf0]  ;;  %v8586_v26 = vor.u32 %v10740_v53, %v8583_v28  ;;  %v10704_v34 = vld [vmem:[#allocation6 + $0x64] sm:$0xf] }
 0x4c5   :  { %v8839_v25 = vld [vmem:[#allocation6 + $0x390] sm:$0xf0]  ;;  %v8714_v49 = vor.u32 %v10772_v63, %v8711_v56  ;;  %v10736_v10 = vld [vmem:[#allocation6 + $0x164] sm:$0xf] }
 0x4c6   :  { %6994 = vmatpush.bf16.msrb.mxu1 %v8618_v1  ;;  %7007 = vmatpush.bf16.msra.mxu2 %v8746_v58  ;;  %v8439_v3 = vld [vmem:[#allocation6 + $0x70] sm:$0xf0]  ;;  %v8842_v35 = vor.u32 %v10804_v41, %v8839_v25  ;;  %v10768_v55 = vld [vmem:[#allocation6 + $0x264] sm:$0xf] }
 0x4c7   :  { %7020 = vmatpush.bf16.msrb.mxu3 %v8874_v23  ;;  %v8567_v36 = vld [vmem:[#allocation6 + $0x170] sm:$0xf0]  ;;  %v10800_v30 = vld [vmem:[#allocation6 + $0x364] sm:$0xf]  ;;  %v8442_v17 = vor.u32 %v10704_v34, %v8439_v3 }
 0x4c8   :  { %6982 = vmatpush.bf16.msra.mxu0 %v8474_v20  ;;  %v8695_v0 = vld [vmem:[#allocation6 + $0x270] sm:$0xf0]  ;;  %v8570_v37 = vor.u32 %v10736_v10, %v8567_v36  ;;  %v10700_v39 = vld [vmem:[#allocation6 + $0x44] sm:$0xf] }
 0x4c9   :  { %v8823_v15 = vld [vmem:[#allocation6 + $0x370] sm:$0xf0]  ;;  %v8698_v27 = vor.u32 %v10768_v55, %v8695_v0  ;;  %v10732_v45 = vld [vmem:[#allocation6 + $0x144] sm:$0xf] }
 0x4ca   :  { %6995 = vmatpush.bf16.msrb.mxu1 %v8602_v62  ;;  %7008 = vmatpush.bf16.msra.mxu2 %v8730_v21  ;;  %v8423_v31 = vld [vmem:[#allocation6 + $0x50] sm:$0xf0]  ;;  %v8826_v7 = vor.u32 %v10800_v30, %v8823_v15  ;;  %v10764_v54 = vld [vmem:[#allocation6 + $0x244] sm:$0xf] }
 0x4cb   :  { %7021 = vmatpush.bf16.msrb.mxu3 %v8858_v29  ;;  %v8551_v61 = vld [vmem:[#allocation6 + $0x150] sm:$0xf0]  ;;  %v10796_v57 = vld [vmem:[#allocation6 + $0x344] sm:$0xf]  ;;  %v8426_v11 = vor.u32 %v10700_v39, %v8423_v31 }
 0x4cc   :  { %6983 = vmatpush.bf16.msra.mxu0 %v8458_v8  ;;  %v8679_v12 = vld [vmem:[#allocation6 + $0x250] sm:$0xf0]  ;;  %v8554_v50 = vor.u32 %v10732_v45, %v8551_v61  ;;  %v10696_v9 = vld [vmem:[#allocation6 + $0x24] sm:$0xf] }
 0x4cd   :  { %v8807_v43 = vld [vmem:[#allocation6 + $0x350] sm:$0xf0]  ;;  %v8682_v40 = vor.u32 %v10764_v54, %v8679_v12  ;;  %v10728_v60 = vld [vmem:[#allocation6 + $0x124] sm:$0xf] }
 0x4ce   :  { %6996 = vmatpush.bf16.msrb.mxu1 %v8586_v26  ;;  %7009 = vmatpush.bf16.msra.mxu2 %v8714_v49  ;;  %v8407_v32 = vld [vmem:[#allocation6 + $0x30] sm:$0xf0]  ;;  %v8810_v2 = vor.u32 %v10796_v57, %v8807_v43  ;;  %v10760_v5 = vld [vmem:[#allocation6 + $0x224] sm:$0xf] }
 0x4cf   :  { %7022 = vmatpush.bf16.msrb.mxu3 %v8842_v35  ;;  %v8535_v6 = vld [vmem:[#allocation6 + $0x130] sm:$0xf0]  ;;  %v10792_v58 = vld [vmem:[#allocation6 + $0x324] sm:$0xf]  ;;  %v8410_v16 = vor.u32 %v10696_v9, %v8407_v32 }
 0x4d0   :  { %6984 = vmatpush.bf16.msra.mxu0 %v8442_v17  ;;  %v8663_v1 = vld [vmem:[#allocation6 + $0x230] sm:$0xf0]  ;;  %v10692_v13 = vld [vmem:[#allocation6 + $0x4] sm:$0xf]  ;;  %v8538_v19 = vor.u32 %v10728_v60, %v8535_v6 }
 0x4d1   :  { %v8791_v14 = vld [vmem:[#allocation6 + $0x330] sm:$0xf0]  ;;  %v8666_v59 = vor.u32 %v10760_v5, %v8663_v1  ;;  %v10724_v48 = vld [vmem:[#allocation6 + $0x104] sm:$0xf] }
 0x4d2   :  { %6997 = vmatpush.bf16.msrb.mxu1 %v8570_v37  ;;  %7010 = vmatpush.bf16.msra.mxu2 %v8698_v27  ;;  %v8391_v23 = vld [vmem:[#allocation6 + $0x10] sm:$0xf0]  ;;  %v10756_v38 = vld [vmem:[#allocation6 + $0x204] sm:$0xf]  ;;  %v8794_v20 = vor.u32 %v10792_v58, %v8791_v14 }
 0x4d3   :  { %7023 = vmatpush.bf16.msrb.mxu3 %v8826_v7  ;;  %v8519_v52 = vld [vmem:[#allocation6 + $0x110] sm:$0xf0]  ;;  %v10788_v21 = vld [vmem:[#allocation6 + $0x304] sm:$0xf]  ;;  %v8394_v28 = vor.u32 %v10692_v13, %v8391_v23 }
 0x4d4   :  { %6985 = vmatpush.bf16.msra.mxu0 %v8426_v11  ;;  %v8647_v62 = vld [vmem:[#allocation6 + $0x210] sm:$0xf0]  ;;  %v10848_v33 = vld [vmem:[#allocation6 + $0x4e4] sm:$0xf]  ;;  %v8522_v25 = vor.u32 %v10724_v48, %v8519_v52 }
 0x4d5   :  { %v8775_v24 = vld [vmem:[#allocation6 + $0x310] sm:$0xf0]  ;;  %v10880_v29 = vld [vmem:[#allocation6 + $0x5e4] sm:$0xf]  ;;  %v8650_v8 = vor.u32 %v10756_v38, %v8647_v62 }
 0x4d6   :  { %6998 = vmatpush.bf16.msrb.mxu1 %v8554_v50  ;;  %7011 = vmatpush.bf16.msra.mxu2 %v8682_v40  ;;  %v9015_v53 = vld [vmem:[#allocation6 + $0x4f0] sm:$0xf0]  ;;  %v10912_v56 = vld [vmem:[#allocation6 + $0x6e4] sm:$0xf]  ;;  %v8778_v34 = vor.u32 %v10788_v21, %v8775_v24 }
 0x4d7   :  { %7024 = vmatpush.bf16.msrb.mxu3 %v8810_v2  ;;  %v9143_v63 = vld [vmem:[#allocation6 + $0x5f0] sm:$0xf0]  ;;  %v10944_v26 = vld [vmem:[#allocation6 + $0x7e4] sm:$0xf]  ;;  %v9018_v3 = vor.u32 %v10848_v33, %v9015_v53 }
 0x4d8   :  { %6986 = vmatpush.bf16.msra.mxu0 %v8410_v16  ;;  %v9271_v41 = vld [vmem:[#allocation6 + $0x6f0] sm:$0xf0]  ;;  %v9146_v10 = vor.u32 %v10880_v29, %v9143_v63  ;;  %v10844_v36 = vld [vmem:[#allocation6 + $0x4c4] sm:$0xf] }
 0x4d9   :  { %v9399_v49 = vld [vmem:[#allocation6 + $0x7f0] sm:$0xf0]  ;;  %v9274_v35 = vor.u32 %v10912_v56, %v9271_v41  ;;  %v10876_v0 = vld [vmem:[#allocation6 + $0x5c4] sm:$0xf] }
 0x4da   :  { %6999 = vmatpush.bf16.msrb.mxu1 %v8538_v19  ;;  %7012 = vmatpush.bf16.msra.mxu2 %v8666_v59  ;;  %v8999_v55 = vld [vmem:[#allocation6 + $0x4d0] sm:$0xf0]  ;;  %v9402_v30 = vor.u32 %v10944_v26, %v9399_v49  ;;  %v10908_v17 = vld [vmem:[#allocation6 + $0x6c4] sm:$0xf] }
 0x4db   :  { %7025 = vmatpush.bf16.msrb.mxu3 %v8794_v20  ;;  %v9127_v15 = vld [vmem:[#allocation6 + $0x5d0] sm:$0xf0]  ;;  %v10940_v27 = vld [vmem:[#allocation6 + $0x7c4] sm:$0xf]  ;;  %v9002_v31 = vor.u32 %v10844_v36, %v8999_v55 }
 0x4dc   :  { %6987 = vmatpush.bf16.msra.mxu0 %v8394_v28  ;;  %v9255_v37 = vld [vmem:[#allocation6 + $0x6d0] sm:$0xf0]  ;;  %v9130_v45 = vor.u32 %v10876_v0, %v9127_v15  ;;  %v10840_v61 = vld [vmem:[#allocation6 + $0x4a4] sm:$0xf] }
 0x4dd   :  { %v9383_v39 = vld [vmem:[#allocation6 + $0x7d0] sm:$0xf0]  ;;  %v9258_v7 = vor.u32 %v10908_v17, %v9255_v37  ;;  %v10872_v12 = vld [vmem:[#allocation6 + $0x5a4] sm:$0xf] }
 0x4de   :  { %7000 = vmatpush.bf16.msrb.mxu1 %v8522_v25  ;;  %7013 = vmatpush.bf16.msra.mxu2 %v8650_v8  ;;  %v8983_v54 = vld [vmem:[#allocation6 + $0x4b0] sm:$0xf0]  ;;  %v9386_v57 = vor.u32 %v10940_v27, %v9383_v39  ;;  %v10904_v11 = vld [vmem:[#allocation6 + $0x6a4] sm:$0xf] }
 0x4df   :  { %7026 = vmatpush.bf16.msrb.mxu3 %v8778_v34  ;;  %v9111_v43 = vld [vmem:[#allocation6 + $0x5b0] sm:$0xf0]  ;;  %v10936_v40 = vld [vmem:[#allocation6 + $0x7a4] sm:$0xf]  ;;  %6988 = vmatmul.bf16.vlgmr.msra.gmra.mxu0 %v12663_v47  ;;  %v8986_v32 = vor.u32 %v10840_v61, %v8983_v54 }
 0x4e0   :  { %7032 = vmatpush.bf16.msrb.mxu0 %v9018_v3  ;;  %v9239_v50 = vld [vmem:[#allocation6 + $0x6b0] sm:$0xf0]  ;;  %v9114_v60 = vor.u32 %v10872_v12, %v9111_v43  ;;  %v10836_v6 = vld [vmem:[#allocation6 + $0x484] sm:$0xf] }
 0x4e1   :  { %7014 = vmatmul.bf16.vlgmr.msra.gmra.mxu2 %v12661_v42  ;;  %v9367_v9 = vld [vmem:[#allocation6 + $0x7b0] sm:$0xf0]  ;;  %7001 = vmatmul.bf16.vlgmr.msrb.gmra.mxu1 %v12667_v51  ;;  %v9242_v2 = vor.u32 %v10904_v11, %v9239_v50  ;;  %v10868_v1 = vld [vmem:[#allocation6 + $0x584] sm:$0xf] }
 0x4e2   :  { %7045 = vmatpush.bf16.msra.mxu1 %v9146_v10  ;;  %7058 = vmatpush.bf16.msrb.mxu2 %v9274_v35  ;;  %v8967_v5 = vld [vmem:[#allocation6 + $0x490] sm:$0xf0]  ;;  %v9370_v58 = vor.u32 %v10936_v40, %v9367_v9  ;;  %v10900_v16 = vld [vmem:[#allocation6 + $0x684] sm:$0xf] }
 0x4e3   :  { %7071 = vmatpush.bf16.msra.mxu3 %v9402_v30  ;;  %v9095_v14 = vld [vmem:[#allocation6 + $0x590] sm:$0xf0]  ;;  %v10932_v23 = vld [vmem:[#allocation6 + $0x784] sm:$0xf]  ;;  %v8970_v59 = vor.u32 %v10836_v6, %v8967_v5 }
 0x4e4   :  { %7027 = vmatmul.bf16.vlgmr.msrb.gmra.mxu3 %v12665_v46  ;;  %7033 = vmatpush.bf16.msrb.mxu0 %v9002_v31  ;;  %v9223_v13 = vld [vmem:[#allocation6 + $0x690] sm:$0xf0]  ;;  %v9098_v48 = vor.u32 %v10868_v1, %v9095_v14  ;;  %v10832_v38 = vld [vmem:[#allocation6 + $0x464] sm:$0xf] }
 0x4e5   :  { %v9351_v19 = vld [vmem:[#allocation6 + $0x790] sm:$0xf0]  ;;  %v9226_v52 = vor.u32 %v10900_v16, %v9223_v13  ;;  %v10864_v62 = vld [vmem:[#allocation6 + $0x564] sm:$0xf] }
 0x4e6   :  { %7046 = vmatpush.bf16.msra.mxu1 %v9130_v45  ;;  %7059 = vmatpush.bf16.msrb.mxu2 %v9258_v7  ;;  %v8951_v20 = vld [vmem:[#allocation6 + $0x470] sm:$0xf0]  ;;  %v9354_v21 = vor.u32 %v10932_v23, %v9351_v19  ;;  %v10896_v33 = vld [vmem:[#allocation6 + $0x664] sm:$0xf] }
 0x4e7   :  { %7072 = vmatpush.bf16.msra.mxu3 %v9386_v57  ;;  %v9079_v24 = vld [vmem:[#allocation6 + $0x570] sm:$0xf0]  ;;  %v10928_v29 = vld [vmem:[#allocation6 + $0x764] sm:$0xf]  ;;  %v8954_v63 = vor.u32 %v10832_v38, %v8951_v20 }
 0x4e8   :  { %7034 = vmatpush.bf16.msrb.mxu0 %v8986_v32  ;;  %v9207_v53 = vld [vmem:[#allocation6 + $0x670] sm:$0xf0]  ;;  %v10828_v56 = vld [vmem:[#allocation6 + $0x444] sm:$0xf]  ;;  %v9082_v25 = vor.u32 %v10864_v62, %v9079_v24 }
 0x4e9   :  { %v9335_v28 = vld [vmem:[#allocation6 + $0x770] sm:$0xf0]  ;;  %v9210_v8 = vor.u32 %v10896_v33, %v9207_v53  ;;  %v10860_v26 = vld [vmem:[#allocation6 + $0x544] sm:$0xf] }
 0x4ea   :  { %7047 = vmatpush.bf16.msra.mxu1 %v9114_v60  ;;  %7060 = vmatpush.bf16.msrb.mxu2 %v9242_v2  ;;  %v8935_v41 = vld [vmem:[#allocation6 + $0x450] sm:$0xf0]  ;;  %v10892_v34 = vld [vmem:[#allocation6 + $0x644] sm:$0xf]  ;;  %v9338_v3 = vor.u32 %v10928_v29, %v9335_v28 }
 0x4eb   :  { %7073 = vmatpush.bf16.msra.mxu3 %v9370_v58  ;;  %v9063_v49 = vld [vmem:[#allocation6 + $0x550] sm:$0xf0]  ;;  %v4166_v35 = vld [vmem:[#allocation19] ss:$4 sm:$0xf]  ;;  %v8938_v0 = vor.u32 %v10828_v56, %v8935_v41  ;;  %v6781_v50 = vpop.f32.mrf.mxu0 }
 0x4ec   :  { %7035 = vmatpush.bf16.msrb.mxu0 %v8970_v59  ;;  %v9191_v10 = vld [vmem:[#allocation6 + $0x650] sm:$0xf0]  ;;  %v10924_v36 = vld [vmem:[#allocation6 + $0x744] sm:$0xf]  ;;  %v9066_v15 = vor.u32 %v10860_v26, %v9063_v49  ;;  %v4168_v39 = vperm.slane %v4166_v35, 0 }
 0x4ed   :  { %v9319_v55 = vld [vmem:[#allocation6 + $0x750] sm:$0xf0]  ;;  %v10824_v30 = vld [vmem:[#allocation6 + $0x424] sm:$0xf]  ;;  %v9194_v17 = vor.u32 %v10892_v34, %v9191_v10  ;;  %v6794_v5 = vpop.f32.mrf.mxu1 }
 0x4ee   :  { %7048 = vmatpush.bf16.msra.mxu1 %v9098_v48  ;;  %7061 = vmatpush.bf16.msrb.mxu2 %v9226_v52  ;;  %v8919_v37 = vld [vmem:[#allocation6 + $0x430] sm:$0xf0]  ;;  %v10856_v27 = vld [vmem:[#allocation6 + $0x524] sm:$0xf]  ;;  %v9322_v31 = vor.u32 %v10924_v36, %v9319_v55  ;;  %v6782_v6 = vadd.f32 %v6781_v50, %v4168_v39 }
 0x4ef   :  { %7074 = vmatpush.bf16.msra.mxu3 %v9354_v21  ;;  %v9047_v45 = vld [vmem:[#allocation6 + $0x530] sm:$0xf0]  ;;  %v10888_v7 = vld [vmem:[#allocation6 + $0x624] sm:$0xf]  ;;  %v8922_v57 = vor.u32 %v10824_v30, %v8919_v37 }
 0x4f0   :  { %7036 = vmatpush.bf16.msrb.mxu0 %v8954_v63  ;;  %v9175_v61 = vld [vmem:[#allocation6 + $0x630] sm:$0xf0]  ;;  %v10920_v54 = vld [vmem:[#allocation6 + $0x724] sm:$0xf]  ;;  %v9050_v40 = vor.u32 %v10856_v27, %v9047_v45  ;;  %v6795_v59 = vadd.f32 %v6794_v5, %v6782_v6 }
 0x4f1   :  { %v9303_v12 = vld [vmem:[#allocation6 + $0x730] sm:$0xf0]  ;;  %v10820_v43 = vld [vmem:[#allocation6 + $0x404] sm:$0xf]  ;;  %v9178_v9 = vor.u32 %v10888_v7, %v9175_v61 }
 0x4f2   :  { %7049 = vmatpush.bf16.msra.mxu1 %v9082_v25  ;;  %7062 = vmatpush.bf16.msrb.mxu2 %v9210_v8  ;;  %v8903_v11 = vld [vmem:[#allocation6 + $0x410] sm:$0xf0]  ;;  %v10852_v32 = vld [vmem:[#allocation6 + $0x504] sm:$0xf]  ;;  %v9306_v1 = vor.u32 %v10920_v54, %v9303_v12  ;;  %v6807_v53 = vpop.f32.mrf.mxu2  ;;  %v6820_v56 = vpop.f32.mrf.mxu3 }
 0x4f3   :  { %7075 = vmatpush.bf16.msra.mxu3 %v9338_v3  ;;  %v9031_v60 = vld [vmem:[#allocation6 + $0x510] sm:$0xf0]  ;;  %v10884_v2 = vld [vmem:[#allocation6 + $0x604] sm:$0xf]  ;;  %v8906_v48 = vor.u32 %v10820_v43, %v8903_v11  ;;  %v6808_v63 = vadd.f32 %v6807_v53, %v6795_v59  ;;  %v6783_v55 = vpop.f32.mrf.mxu0 }
 0x4f4   :  { %7037 = vmatpush.bf16.msrb.mxu0 %v8938_v0  ;;  %v9159_v58 = vld [vmem:[#allocation6 + $0x610] sm:$0xf0]  ;;  %v10916_v14 = vld [vmem:[#allocation6 + $0x704] sm:$0xf]  ;;  %v9034_v62 = vor.u32 %v10852_v32, %v9031_v60 }
 0x4f5   :  { %v9287_v16 = vld [vmem:[#allocation6 + $0x710] sm:$0xf0]  ;;  %v10976_v13 = vld [vmem:[#allocation6 + $0x8e4] sm:$0xf]  ;;  %v9162_v21 = vor.u32 %v10884_v2, %v9159_v58  ;;  %v6821_v36 = vadd.f32 %v6820_v56, %v6808_v63 }
 0x4f6   :  { %7050 = vmatpush.bf16.msra.mxu1 %v9066_v15  ;;  %7063 = vmatpush.bf16.msrb.mxu2 %v9194_v17  ;;  %v9527_v23 = vld [vmem:[#allocation6 + $0x8f0] sm:$0xf0]  ;;  %v11008_v19 = vld [vmem:[#allocation6 + $0x9e4] sm:$0xf]  ;;  %v9290_v29 = vor.u32 %v10916_v14, %v9287_v16  ;;  %v6796_v15 = vpop.f32.mrf.mxu1 }
 0x4f7   :  { %7076 = vmatpush.bf16.msra.mxu3 %v9322_v31  ;;  %v9655_v52 = vld [vmem:[#allocation6 + $0x9f0] sm:$0xf0]  ;;  %v11040_v38 = vld [vmem:[#allocation6 + $0xae4] sm:$0xf]  ;;  %v9530_v28 = vor.u32 %v10976_v13, %v9527_v23 }
 0x4f8   :  { %7038 = vmatpush.bf16.msrb.mxu0 %v8922_v57  ;;  %v9783_v20 = vld [vmem:[#allocation6 + $0xaf0] sm:$0xf0]  ;;  %v11072_v24 = vld [vmem:[#allocation6 + $0xbe4] sm:$0xf]  ;;  %v9658_v41 = vor.u32 %v11008_v19, %v9655_v52 }
 0x4f9   :  { %v9911_v33 = vld [vmem:[#allocation6 + $0xbf0] sm:$0xf0]  ;;  %v9786_v25 = vor.u32 %v11040_v38, %v9783_v20  ;;  %v10972_v8 = vld [vmem:[#allocation6 + $0x8c4] sm:$0xf] }
 0x4fa   :  { %7051 = vmatpush.bf16.msra.mxu1 %v9050_v40  ;;  %7064 = vmatpush.bf16.msrb.mxu2 %v9178_v9  ;;  %v9511_v26 = vld [vmem:[#allocation6 + $0x8d0] sm:$0xf0]  ;;  %v11004_v49 = vld [vmem:[#allocation6 + $0x9c4] sm:$0xf]  ;;  %v9914_v34 = vor.u32 %v11072_v24, %v9911_v33  ;;  %v6809_v11 = vpop.f32.mrf.mxu2  ;;  %v6822_v40 = vpop.f32.mrf.mxu3 }
 0x4fb   :  { %7077 = vmatpush.bf16.msra.mxu3 %v9306_v1  ;;  %v9639_v3 = vld [vmem:[#allocation6 + $0x9d0] sm:$0xf0]  ;;  %v11036_v10 = vld [vmem:[#allocation6 + $0xac4] sm:$0xf]  ;;  %v9514_v17 = vor.u32 %v10972_v8, %v9511_v26 }
 0x4fc   :  { %7039 = vmatpush.bf16.msrb.mxu0 %v8906_v48  ;;  %v9767_v35 = vld [vmem:[#allocation6 + $0xad0] sm:$0xf0]  ;;  %v11068_v0 = vld [vmem:[#allocation6 + $0xbc4] sm:$0xf]  ;;  %v9642_v37 = vor.u32 %v11004_v49, %v9639_v3 }
 0x4fd   :  { %v9895_v30 = vld [vmem:[#allocation6 + $0xbd0] sm:$0xf0]  ;;  %v9770_v27 = vor.u32 %v11036_v10, %v9767_v35  ;;  %v10968_v39 = vld [vmem:[#allocation6 + $0x8a4] sm:$0xf] }
 0x4fe   :  { %7052 = vmatpush.bf16.msra.mxu1 %v9034_v62  ;;  %7065 = vmatpush.bf16.msrb.mxu2 %v9162_v21  ;;  %v9495_v31 = vld [vmem:[#allocation6 + $0x8b0] sm:$0xf0]  ;;  %v11000_v45 = vld [vmem:[#allocation6 + $0x9a4] sm:$0xf]  ;;  %v9898_v7 = vor.u32 %v11068_v0, %v9895_v30  ;;  %v6846_v21 = vpop.f32.mrf.mxu1 }
 0x4ff   :  { %7078 = vmatpush.bf16.msra.mxu3 %v9290_v29  ;;  %v9623_v61 = vld [vmem:[#allocation6 + $0x9b0] sm:$0xf0]  ;;  %v11032_v54 = vld [vmem:[#allocation6 + $0xaa4] sm:$0xf]  ;;  %7040 = vmatmul.bf16.vlgmr.msrb.gmra.mxu0 %v12675_v4  ;;  %v9498_v50 = vor.u32 %v10968_v39, %v9495_v31 }
 0x500   :  { %7084 = vmatpush.bf16.msra.mxu0 %v9530_v28  ;;  %v9751_v12 = vld [vmem:[#allocation6 + $0xab0] sm:$0xf0]  ;;  %v11064_v57 = vld [vmem:[#allocation6 + $0xba4] sm:$0xf]  ;;  %v9626_v9 = vor.u32 %v11000_v45, %v9623_v61 }
 0x501   :  { %7066 = vmatmul.bf16.vlgmr.msrb.gmra.mxu2 %v12673_v44  ;;  %v9879_v43 = vld [vmem:[#allocation6 + $0xbb0] sm:$0xf0]  ;;  %7053 = vmatmul.bf16.vlgmr.msra.gmra.mxu1 %v12679_v18  ;;  %v9754_v32 = vor.u32 %v11032_v54, %v9751_v12  ;;  %v10964_v60 = vld [vmem:[#allocation6 + $0x884] sm:$0xf]  ;;  %v6833_v19 = vpop.f32.mrf.mxu0 }
 0x502   :  { %7097 = vmatpush.bf16.msrb.mxu1 %v9658_v41  ;;  %7110 = vmatpush.bf16.msra.mxu2 %v9786_v25  ;;  %v9479_v2 = vld [vmem:[#allocation6 + $0x890] sm:$0xf0]  ;;  %v10996_v6 = vld [vmem:[#allocation6 + $0x984] sm:$0xf]  ;;  %v9882_v5 = vor.u32 %v11064_v57, %v9879_v43  ;;  %v6834_v62 = vadd.f32 %v6833_v19, %v6821_v36 }
 0x503   :  { %7123 = vmatpush.bf16.msrb.mxu3 %v9914_v34  ;;  %v9607_v1 = vld [vmem:[#allocation6 + $0x990] sm:$0xf0]  ;;  %v11028_v58 = vld [vmem:[#allocation6 + $0xa84] sm:$0xf]  ;;  %v9482_v23 = vor.u32 %v10964_v60, %v9479_v2  ;;  %v6872_v30 = vpop.f32.mrf.mxu3 }
 0x504   :  { %7079 = vmatmul.bf16.vlgmr.msra.gmra.mxu3 %v12677_v22  ;;  %7085 = vmatpush.bf16.msra.mxu0 %v9514_v17  ;;  %v9735_v14 = vld [vmem:[#allocation6 + $0xa90] sm:$0xf0]  ;;  %v11060_v16 = vld [vmem:[#allocation6 + $0xb84] sm:$0xf]  ;;  %v9610_v59 = vor.u32 %v10996_v6, %v9607_v1  ;;  %v6847_v56 = vadd.f32 %v6846_v21, %v6834_v62 }
 0x505   :  { %v9863_v13 = vld [vmem:[#allocation6 + $0xb90] sm:$0xf0]  ;;  %v9738_v48 = vor.u32 %v11028_v58, %v9735_v14  ;;  %v10960_v52 = vld [vmem:[#allocation6 + $0x864] sm:$0xf] }
 0x506   :  { %7098 = vmatpush.bf16.msrb.mxu1 %v9642_v37  ;;  %7111 = vmatpush.bf16.msra.mxu2 %v9770_v27  ;;  %v9463_v38 = vld [vmem:[#allocation6 + $0x870] sm:$0xf0]  ;;  %v10992_v20 = vld [vmem:[#allocation6 + $0x964] sm:$0xf]  ;;  %v9866_v24 = vor.u32 %v11060_v16, %v9863_v13  ;;  %v6848_v12 = vpop.f32.mrf.mxu1 }
 0x507   :  { %7124 = vmatpush.bf16.msrb.mxu3 %v9898_v7  ;;  %v9591_v33 = vld [vmem:[#allocation6 + $0x970] sm:$0xf0]  ;;  %v11024_v53 = vld [vmem:[#allocation6 + $0xa64] sm:$0xf]  ;;  %v9466_v41 = vor.u32 %v10960_v52, %v9463_v38  ;;  %v6859_v3 = vpop.f32.mrf.mxu2 }
 0x508   :  { %7086 = vmatpush.bf16.msra.mxu0 %v9498_v50  ;;  %v9719_v29 = vld [vmem:[#allocation6 + $0xa70] sm:$0xf0]  ;;  %v11056_v28 = vld [vmem:[#allocation6 + $0xb64] sm:$0xf]  ;;  %v9594_v25 = vor.u32 %v10992_v20, %v9591_v33  ;;  %v6860_v0 = vadd.f32 %v6859_v3, %v6847_v56 }
 0x509   :  { %v9847_v63 = vld [vmem:[#allocation6 + $0xb70] sm:$0xf0]  ;;  %v9722_v8 = vor.u32 %v11024_v53, %v9719_v29  ;;  %v10956_v26 = vld [vmem:[#allocation6 + $0x844] sm:$0xf]  ;;  %v6835_v39 = vpop.f32.mrf.mxu0 }
 0x50a   :  { %7099 = vmatpush.bf16.msrb.mxu1 %v9626_v9  ;;  %7112 = vmatpush.bf16.msra.mxu2 %v9754_v32  ;;  %v9447_v49 = vld [vmem:[#allocation6 + $0x850] sm:$0xf0]  ;;  %v10988_v34 = vld [vmem:[#allocation6 + $0x944] sm:$0xf]  ;;  %v9850_v10 = vor.u32 %v11056_v28, %v9847_v63  ;;  %v12693_v27 = vadd.f32 %v6872_v30, %v6860_v0 }
 0x50b   :  { %7125 = vmatpush.bf16.msrb.mxu3 %v9882_v5  ;;  %v9575_v35 = vld [vmem:[#allocation6 + $0x950] sm:$0xf0]  ;;  %v11020_v36 = vld [vmem:[#allocation6 + $0xa44] sm:$0xf]  ;;  %v9450_v37 = vor.u32 %v10956_v26, %v9447_v49 }
 0x50c   :  { %7087 = vmatpush.bf16.msra.mxu0 %v9482_v23  ;;  %v9703_v55 = vld [vmem:[#allocation6 + $0xa50] sm:$0xf0]  ;;  %v11052_v15 = vld [vmem:[#allocation6 + $0xb44] sm:$0xf]  ;;  %v9578_v31 = vor.u32 %v10988_v34, %v9575_v35 }
 0x50d   :  { %v9831_v17 = vld [vmem:[#allocation6 + $0xb50] sm:$0xf0]  ;;  %v9706_v45 = vor.u32 %v11020_v36, %v9703_v55  ;;  %v10952_v7 = vld [vmem:[#allocation6 + $0x824] sm:$0xf] }
 0x50e   :  { %7100 = vmatpush.bf16.msrb.mxu1 %v9610_v59  ;;  %7113 = vmatpush.bf16.msra.mxu2 %v9738_v48  ;;  %v9431_v61 = vld [vmem:[#allocation6 + $0x830] sm:$0xf0]  ;;  %v10984_v54 = vld [vmem:[#allocation6 + $0x924] sm:$0xf]  ;;  %v9834_v57 = vor.u32 %v11052_v15, %v9831_v17  ;;  %v6874_v48 = vpop.f32.mrf.mxu3 }
 0x50f   :  { %7126 = vmatpush.bf16.msrb.mxu3 %v9866_v24  ;;  %v9559_v43 = vld [vmem:[#allocation6 + $0x930] sm:$0xf0]  ;;  %v11016_v11 = vld [vmem:[#allocation6 + $0xa24] sm:$0xf]  ;;  %v9434_v32 = vor.u32 %v10952_v7, %v9431_v61  ;;  %v6861_v16 = vpop.f32.mrf.mxu2 }
 0x510   :  { %7088 = vmatpush.bf16.msra.mxu0 %v9466_v41  ;;  %v9687_v50 = vld [vmem:[#allocation6 + $0xa30] sm:$0xf0]  ;;  %v11048_v40 = vld [vmem:[#allocation6 + $0xb24] sm:$0xf]  ;;  %v9562_v6 = vor.u32 %v10984_v54, %v9559_v43 }
 0x511   :  { %v9815_v9 = vld [vmem:[#allocation6 + $0xb30] sm:$0xf0]  ;;  %v10948_v60 = vld [vmem:[#allocation6 + $0x804] sm:$0xf]  ;;  %v9690_v5 = vor.u32 %v11016_v11, %v9687_v50 }
 0x512   :  { %7101 = vmatpush.bf16.msrb.mxu1 %v9594_v25  ;;  %7114 = vmatpush.bf16.msra.mxu2 %v9722_v8  ;;  %v9415_v2 = vld [vmem:[#allocation6 + $0x810] sm:$0xf0]  ;;  %v10980_v1 = vld [vmem:[#allocation6 + $0x904] sm:$0xf]  ;;  %v9818_v13 = vor.u32 %v11048_v40, %v9815_v9 }
 0x513   :  { %7127 = vmatpush.bf16.msrb.mxu3 %v9850_v10  ;;  %v9543_v58 = vld [vmem:[#allocation6 + $0x910] sm:$0xf0]  ;;  %v11012_v14 = vld [vmem:[#allocation6 + $0xa04] sm:$0xf]  ;;  %v9418_v62 = vor.u32 %v10948_v60, %v9415_v2 }
 0x514   :  { %7089 = vmatpush.bf16.msra.mxu0 %v9450_v37  ;;  %v9671_v23 = vld [vmem:[#allocation6 + $0xa10] sm:$0xf0]  ;;  %v11044_v19 = vld [vmem:[#allocation6 + $0xb04] sm:$0xf]  ;;  %v9546_v53 = vor.u32 %v10980_v1, %v9543_v58 }
 0x515   :  { %v9799_v59 = vld [vmem:[#allocation6 + $0xb10] sm:$0xf0]  ;;  %v11104_v52 = vld [vmem:[#allocation6 + $0xce4] sm:$0xf]  ;;  %v9674_v29 = vor.u32 %v11012_v14, %v9671_v23 }
 0x516   :  { %7102 = vmatpush.bf16.msrb.mxu1 %v9578_v31  ;;  %7115 = vmatpush.bf16.msra.mxu2 %v9706_v45  ;;  %v10039_v38 = vld [vmem:[#allocation6 + $0xcf0] sm:$0xf0]  ;;  %v11136_v20 = vld [vmem:[#allocation6 + $0xde4] sm:$0xf]  ;;  %v9802_v56 = vor.u32 %v11044_v19, %v9799_v59  ;;  %v11293_v45 = vld [vmem:[#allocation1] sm:$0xff] }
 0x517   :  { %7128 = vmatpush.bf16.msrb.mxu3 %v9834_v57  ;;  %v10167_v21 = vld [vmem:[#allocation6 + $0xdf0] sm:$0xf0]  ;;  %v11168_v24 = vld [vmem:[#allocation6 + $0xee4] sm:$0xf]  ;;  %v10042_v41 = vor.u32 %v11104_v52, %v10039_v38  ;;  %v11294_v57 = vld [vmem:[#allocation1 + $0x12] sm:$0xff] }
 0x518   :  { %7090 = vmatpush.bf16.msra.mxu0 %v9434_v32  ;;  %v10295_v33 = vld [vmem:[#allocation6 + $0xef0] sm:$0xf0]  ;;  %v11200_v28 = vld [vmem:[#allocation6 + $0xfe4] sm:$0xf]  ;;  %v10170_v25 = vor.u32 %v11136_v20, %v10167_v21 }
 0x519   :  { %v10423_v63 = vld [vmem:[#allocation6 + $0xff0] sm:$0xf0]  ;;  %v10298_v8 = vor.u32 %v11168_v24, %v10295_v33  ;;  %v11100_v26 = vld [vmem:[#allocation6 + $0xcc4] sm:$0xf] }
 0x51a   :  { %7103 = vmatpush.bf16.msrb.mxu1 %v9562_v6  ;;  %7116 = vmatpush.bf16.msra.mxu2 %v9690_v5  ;;  %v10023_v49 = vld [vmem:[#allocation6 + $0xcd0] sm:$0xf0]  ;;  %v11132_v34 = vld [vmem:[#allocation6 + $0xdc4] sm:$0xf]  ;;  %v10426_v3 = vor.u32 %v11200_v28, %v10423_v63 }
 0x51b   :  { %7129 = vmatpush.bf16.msrb.mxu3 %v9818_v13  ;;  %v10151_v10 = vld [vmem:[#allocation6 + $0xdd0] sm:$0xf0]  ;;  %v11164_v35 = vld [vmem:[#allocation6 + $0xec4] sm:$0xf]  ;;  %v10026_v30 = vor.u32 %v11100_v26, %v10023_v49  ;;  %v6885_v13 = vpop.f32.mrf.mxu0 }
 0x51c   :  { %7091 = vmatpush.bf16.msra.mxu0 %v9418_v62  ;;  %v10279_v36 = vld [vmem:[#allocation6 + $0xed0] sm:$0xf0]  ;;  %v11196_v55 = vld [vmem:[#allocation6 + $0xfc4] sm:$0xf]  ;;  %v10154_v15 = vor.u32 %v11132_v34, %v10151_v10  ;;  %v6886_v59 = vadd.f32 %v6885_v13, %v12693_v27 }
 0x51d   :  { %v10407_v0 = vld [vmem:[#allocation6 + $0xfd0] sm:$0xf0]  ;;  %v10282_v17 = vor.u32 %v11164_v35, %v10279_v36  ;;  %v11096_v37 = vld [vmem:[#allocation6 + $0xca4] sm:$0xf] }
 0x51e   :  { %7104 = vmatpush.bf16.msrb.mxu1 %v9546_v53  ;;  %7117 = vmatpush.bf16.msra.mxu2 %v9674_v29  ;;  %v10007_v39 = vld [vmem:[#allocation6 + $0xcb0] sm:$0xf0]  ;;  %v11128_v31 = vld [vmem:[#allocation6 + $0xda4] sm:$0xf]  ;;  %v10410_v7 = vor.u32 %v11196_v55, %v10407_v0 }
 0x51f   :  { %7130 = vmatpush.bf16.msrb.mxu3 %v9802_v56  ;;  %7092 = vmatmul.bf16.vlgmr.msra.gmra.mxu0 %v11293_v45  ;;  %v10135_v61 = vld [vmem:[#allocation6 + $0xdb0] sm:$0xf0]  ;;  %v11160_v54 = vld [vmem:[#allocation6 + $0xea4] sm:$0xf]  ;;  %v10010_v9 = vor.u32 %v11096_v37, %v10007_v39 }
 0x520   :  { %7136 = vmatpush.bf16.msrb.mxu0 %v10042_v41  ;;  %v10263_v12 = vld [vmem:[#allocation6 + $0xeb0] sm:$0xf0]  ;;  %v11295_v43 = vld [vmem:[#allocation1 + $0x9] sm:$0xff]  ;;  %v10138_v32 = vor.u32 %v11128_v31, %v10135_v61 }
 0x521   :  { %7118 = vmatmul.bf16.vlgmr.msra.gmra.mxu2 %v11294_v57  ;;  %7105 = vmatmul.bf16.vlgmr.msrb.gmra.mxu1 %v11295_v43  ;;  %v11192_v11 = vld [vmem:[#allocation6 + $0xfa4] sm:$0xf]  ;;  %v10391_v50 = vld [vmem:[#allocation6 + $0xfb0] sm:$0xf0]  ;;  %v10266_v60 = vor.u32 %v11160_v54, %v10263_v12  ;;  %v6898_v52 = vpop.f32.mrf.mxu1 }
 0x522   :  { %7149 = vmatpush.bf16.msra.mxu1 %v10170_v25  ;;  %7162 = vmatpush.bf16.msrb.mxu2 %v10298_v8  ;;  %v11296_v40 = vld [vmem:[#allocation1 + $0x1b] sm:$0xff]  ;;  %v11092_v2 = vld [vmem:[#allocation6 + $0xc84] sm:$0xf]  ;;  %v10394_v1 = vor.u32 %v11192_v11, %v10391_v50  ;;  %v6899_v53 = vadd.f32 %v6898_v52, %v6886_v59  ;;  %v8509_v52 = vld [vmem:[#allocation6 + $0xe8] sm:$0xf] }
 0x523   :  { %7175 = vmatpush.bf16.msra.mxu3 %v10426_v3  ;;  %v9991_v6 = vld [vmem:[#allocation6 + $0xc90] sm:$0xf0]  ;;  %v11124_v5 = vld [vmem:[#allocation6 + $0xd84] sm:$0xf]  ;;  %v6887_v37 = vpop.f32.mrf.mxu0 }
 0x524   :  { %7131 = vmatmul.bf16.vlgmr.msrb.gmra.mxu3 %v11296_v40  ;;  %7137 = vmatpush.bf16.msrb.mxu0 %v10026_v30  ;;  %v10119_v58 = vld [vmem:[#allocation6 + $0xd90] sm:$0xf0]  ;;  %v11156_v14 = vld [vmem:[#allocation6 + $0xe84] sm:$0xf]  ;;  %v9994_v48 = vor.u32 %v11092_v2, %v9991_v6  ;;  %v8477_v37 = vld [vmem:[#allocation6 + $0xa8] sm:$0xf] }
 0x525   :  { %v10247_v16 = vld [vmem:[#allocation6 + $0xe90] sm:$0xf0]  ;;  %v11188_v23 = vld [vmem:[#allocation6 + $0xf84] sm:$0xf]  ;;  %v10122_v38 = vor.u32 %v11124_v5, %v10119_v58 }
 0x526   :  { %7150 = vmatpush.bf16.msra.mxu1 %v10154_v15  ;;  %7163 = vmatpush.bf16.msrb.mxu2 %v10282_v17  ;;  %v10375_v19 = vld [vmem:[#allocation6 + $0xf90] sm:$0xf0]  ;;  %v10250_v20 = vor.u32 %v11156_v14, %v10247_v16  ;;  %v11088_v62 = vld [vmem:[#allocation6 + $0xc64] sm:$0xf] }
 0x527   :  { %7176 = vmatpush.bf16.msra.mxu3 %v10410_v7  ;;  %v9975_v21 = vld [vmem:[#allocation6 + $0xc70] sm:$0xf0]  ;;  %v11120_v24 = vld [vmem:[#allocation6 + $0xd64] sm:$0xf]  ;;  %v10378_v33 = vor.u32 %v11188_v23, %v10375_v19 }
 0x528   :  { %7138 = vmatpush.bf16.msrb.mxu0 %v10010_v9  ;;  %v10103_v29 = vld [vmem:[#allocation6 + $0xd70] sm:$0xf0]  ;;  %v11152_v28 = vld [vmem:[#allocation6 + $0xe64] sm:$0xf]  ;;  %v9978_v25 = vor.u32 %v11088_v62, %v9975_v21  ;;  %v6911_v10 = vpop.f32.mrf.mxu2  ;;  %v6924_v30 = vpop.f32.mrf.mxu3 }
 0x529   :  { %v10231_v63 = vld [vmem:[#allocation6 + $0xe70] sm:$0xf0]  ;;  %v11184_v56 = vld [vmem:[#allocation6 + $0xf64] sm:$0xf]  ;;  %v10106_v27 = vor.u32 %v11120_v24, %v10103_v29  ;;  %v6912_v0 = vadd.f32 %v6911_v10, %v6899_v53  ;;  %v6900_v31 = vpop.f32.mrf.mxu1  ;;  %v10755_v24 = vld [vmem:[#allocation6 + $0x1f4] sm:$0xf0] }
 0x52a   :  { %7151 = vmatpush.bf16.msra.mxu1 %v10138_v32  ;;  %7164 = vmatpush.bf16.msrb.mxu2 %v10266_v60  ;;  %v10359_v41 = vld [vmem:[#allocation6 + $0xf70] sm:$0xf0]  ;;  %v10234_v8 = vor.u32 %v11152_v28, %v10231_v63  ;;  %v11084_v26 = vld [vmem:[#allocation6 + $0xc44] sm:$0xf]  ;;  %v10787_v53 = vld [vmem:[#allocation6 + $0x2f4] sm:$0xf0] }
 0x52b   :  { %7177 = vmatpush.bf16.msra.mxu3 %v10394_v1  ;;  %v9959_v49 = vld [vmem:[#allocation6 + $0xc50] sm:$0xf0]  ;;  %v11116_v34 = vld [vmem:[#allocation6 + $0xd44] sm:$0xf]  ;;  %v10362_v3 = vor.u32 %v11184_v56, %v10359_v41  ;;  %v12696_v45 = vadd.f32 %v6924_v30, %v6912_v0  ;;  %v8893_v63 = vld [vmem:[#allocation6 + $0x3e8] sm:$0xf] }
 0x52c   :  { %7139 = vmatpush.bf16.msrb.mxu0 %v9994_v48  ;;  %v10087_v35 = vld [vmem:[#allocation6 + $0xd50] sm:$0xf0]  ;;  %v11148_v36 = vld [vmem:[#allocation6 + $0xe44] sm:$0xf]  ;;  %v9962_v39 = vor.u32 %v11084_v26, %v9959_v49  ;;  %v10819_v56 = vld [vmem:[#allocation6 + $0x3f4] sm:$0xf0] }
 0x52d   :  { %v10215_v55 = vld [vmem:[#allocation6 + $0xe50] sm:$0xf0]  ;;  %v11180_v15 = vld [vmem:[#allocation6 + $0xf44] sm:$0xf]  ;;  %v10090_v7 = vor.u32 %v11116_v34, %v10087_v35  ;;  %v8493_v26 = vld [vmem:[#allocation6 + $0xc8] sm:$0xf] }
 0x52e   :  { %7152 = vmatpush.bf16.msra.mxu1 %v10122_v38  ;;  %7165 = vmatpush.bf16.msrb.mxu2 %v10250_v20  ;;  %v10343_v17 = vld [vmem:[#allocation6 + $0xf50] sm:$0xf0]  ;;  %v10218_v61 = vor.u32 %v11148_v36, %v10215_v55  ;;  %v11080_v54 = vld [vmem:[#allocation6 + $0xc24] sm:$0xf]  ;;  %v10723_v38 = vld [vmem:[#allocation6 + $0xf4] sm:$0xf0] }
 0x52f   :  { %7178 = vmatpush.bf16.msra.mxu3 %v10378_v33  ;;  %v9943_v12 = vld [vmem:[#allocation6 + $0xc30] sm:$0xf0]  ;;  %v11112_v57 = vld [vmem:[#allocation6 + $0xd24] sm:$0xf]  ;;  %v10346_v43 = vor.u32 %v11180_v15, %v10343_v17  ;;  %v8637_v20 = vld [vmem:[#allocation6 + $0x1e8] sm:$0xf] }
 0x530   :  { %7140 = vmatpush.bf16.msrb.mxu0 %v9978_v25  ;;  %v10071_v11 = vld [vmem:[#allocation6 + $0xd30] sm:$0xf0]  ;;  %v11144_v50 = vld [vmem:[#allocation6 + $0xe24] sm:$0xf]  ;;  %v9946_v60 = vor.u32 %v11080_v54, %v9943_v12  ;;  %v6913_v48 = vpop.f32.mrf.mxu2  ;;  %v6926_v62 = vpop.f32.mrf.mxu3  ;;  %v8765_v33 = vld [vmem:[#allocation6 + $0x2e8] sm:$0xf]  ;;  %v8510_v25 = vor.u32 %v10723_v38, %v8509_v52 }
 0x531   :  { %v10199_v40 = vld [vmem:[#allocation6 + $0xe30] sm:$0xf0]  ;;  %v11176_v9 = vld [vmem:[#allocation6 + $0xf24] sm:$0xf]  ;;  %v10074_v5 = vor.u32 %v11112_v57, %v10071_v11  ;;  %v10719_v49 = vld [vmem:[#allocation6 + $0xd4] sm:$0xf0] }
 0x532   :  { %7153 = vmatpush.bf16.msra.mxu1 %v10106_v27  ;;  %7166 = vmatpush.bf16.msrb.mxu2 %v10234_v8  ;;  %v10327_v32 = vld [vmem:[#allocation6 + $0xf30] sm:$0xf0]  ;;  %v11076_v2 = vld [vmem:[#allocation6 + $0xc04] sm:$0xf]  ;;  %v10202_v1 = vor.u32 %v11144_v50, %v10199_v40  ;;  %v8638_v27 = vor.u32 %v10755_v24, %v8637_v20  ;;  %v8766_v8 = vor.u32 %v10787_v53, %v8765_v33  ;;  %v8621_v34 = vld [vmem:[#allocation6 + $0x1c8] sm:$0xf] }
 0x533   :  { %7179 = vmatpush.bf16.msra.mxu3 %v10362_v3  ;;  %v9927_v6 = vld [vmem:[#allocation6 + $0xc10] sm:$0xf0]  ;;  %v11108_v58 = vld [vmem:[#allocation6 + $0xd04] sm:$0xf]  ;;  %v10330_v13 = vor.u32 %v11176_v9, %v10327_v32  ;;  %v8894_v3 = vor.u32 %v10819_v56, %v8893_v63  ;;  %v10751_v10 = vld [vmem:[#allocation6 + $0x1d4] sm:$0xf0]  ;;  %v8494_v30 = vor.u32 %v10719_v49, %v8493_v26 }
 0x534   :  { %7141 = vmatpush.bf16.msrb.mxu0 %v9962_v39  ;;  %v10055_v14 = vld [vmem:[#allocation6 + $0xd10] sm:$0xf0]  ;;  %v11140_v16 = vld [vmem:[#allocation6 + $0xe04] sm:$0xf]  ;;  %v9930_v21 = vor.u32 %v11076_v2, %v9927_v6  ;;  %v8749_v35 = vld [vmem:[#allocation6 + $0x2c8] sm:$0xf]  ;;  %v8622_v15 = vor.u32 %v10751_v10, %v8621_v34 }
 0x535   :  { %v10183_v23 = vld [vmem:[#allocation6 + $0xe10] sm:$0xf0]  ;;  %v11172_v19 = vld [vmem:[#allocation6 + $0xf04] sm:$0xf]  ;;  %v10058_v29 = vor.u32 %v11108_v58, %v10055_v14  ;;  %v10783_v36 = vld [vmem:[#allocation6 + $0x2d4] sm:$0xf0] }
 0x536   :  { %7154 = vmatpush.bf16.msra.mxu1 %v10090_v7  ;;  %7167 = vmatpush.bf16.msrb.mxu2 %v10218_v61  ;;  %v10311_v59 = vld [vmem:[#allocation6 + $0xf10] sm:$0xf0]  ;;  %v10186_v28 = vor.u32 %v11140_v16, %v10183_v23  ;;  %v8877_v55 = vld [vmem:[#allocation6 + $0x3c8] sm:$0xf]  ;;  %v10815_v0 = vld [vmem:[#allocation6 + $0x3d4] sm:$0xf0]  ;;  %v8750_v17 = vor.u32 %v10783_v36, %v8749_v35 }
 0x537   :  { %7180 = vmatpush.bf16.msra.mxu3 %v10346_v43  ;;  %v10314_v41 = vor.u32 %v11172_v19, %v10311_v59  ;;  %v10715_v39 = vld [vmem:[#allocation6 + $0xb4] sm:$0xf0]  ;;  %v8605_v31 = vld [vmem:[#allocation6 + $0x1a8] sm:$0xf]  ;;  %v11297_v7 = vld [vmem:[#allocation1 + $0x24] sm:$0xff]  ;;  %v8878_v61 = vor.u32 %v10815_v0, %v8877_v55 }
 0x538   :  { %7142 = vmatpush.bf16.msrb.mxu0 %v9946_v60  ;;  %v10747_v54 = vld [vmem:[#allocation6 + $0x1b4] sm:$0xf0]  ;;  %v8733_v12 = vld [vmem:[#allocation6 + $0x2a8] sm:$0xf]  ;;  %v11298_v43 = vld [vmem:[#allocation1 + $0x36] sm:$0xff]  ;;  %v8478_v32 = vor.u32 %v10715_v39, %v8477_v37 }
 0x539   :  { %v10779_v57 = vld [vmem:[#allocation6 + $0x2b4] sm:$0xf0]  ;;  %v11299_v11 = vld [vmem:[#allocation1 + $0x2d] sm:$0xff]  ;;  %v8606_v60 = vor.u32 %v10747_v54, %v8605_v31 }
 0x53a   :  { %7155 = vmatpush.bf16.msra.mxu1 %v10074_v5  ;;  %7168 = vmatpush.bf16.msrb.mxu2 %v10202_v1  ;;  %v8861_v50 = vld [vmem:[#allocation6 + $0x3a8] sm:$0xf]  ;;  %v10811_v40 = vld [vmem:[#allocation6 + $0x3b4] sm:$0xf0]  ;;  %v8734_v2 = vor.u32 %v10779_v57, %v8733_v12 }
 0x53b   :  { %7181 = vmatpush.bf16.msra.mxu3 %v10330_v13  ;;  %v11300_v9 = vld [vmem:[#allocation1 + $0x3f] sm:$0xff]  ;;  %v8461_v6 = vld [vmem:[#allocation6 + $0x88] sm:$0xf]  ;;  %v8862_v58 = vor.u32 %v10811_v40, %v8861_v50 }
 0x53c   :  { %7143 = vmatpush.bf16.msrb.mxu0 %v9930_v21  ;;  %v10711_v5 = vld [vmem:[#allocation6 + $0x94] sm:$0xf0]  ;;  %v8589_v1 = vld [vmem:[#allocation6 + $0x188] sm:$0xf]  ;;  %v6937_v23 = vpop.f32.mrf.mxu0 }
 0x53d   :  { %v10743_v14 = vld [vmem:[#allocation6 + $0x194] sm:$0xf0]  ;;  %v8717_v16 = vld [vmem:[#allocation6 + $0x288] sm:$0xf]  ;;  %v6938_v48 = vadd.f32 %v6937_v23, %v12696_v45  ;;  %v8462_v52 = vor.u32 %v10711_v5, %v8461_v6 }
 0x53e   :  { %7156 = vmatpush.bf16.msra.mxu1 %v10058_v29  ;;  %7169 = vmatpush.bf16.msrb.mxu2 %v10186_v28  ;;  %v10775_v13 = vld [vmem:[#allocation6 + $0x294] sm:$0xf0]  ;;  %v8845_v19 = vld [vmem:[#allocation6 + $0x388] sm:$0xf]  ;;  %v6950_v38 = vpop.f32.mrf.mxu1  ;;  %v8590_v20 = vor.u32 %v10743_v14, %v8589_v1 }
 0x53f   :  { %7182 = vmatpush.bf16.msra.mxu3 %v10314_v41  ;;  %7144 = vmatmul.bf16.vlgmr.msrb.gmra.mxu0 %v11297_v7  ;;  %v10807_v59 = vld [vmem:[#allocation6 + $0x394] sm:$0xf0]  ;;  %v8718_v62 = vor.u32 %v10775_v13, %v8717_v16  ;;  %v8445_v21 = vld [vmem:[#allocation6 + $0x68] sm:$0xf]  ;;  %v6951_v29 = vadd.f32 %v6950_v38, %v6938_v48 }
 0x540   :  { %7188 = vmatpush.bf16.msra.mxu0 %v8510_v25  ;;  %v10707_v24 = vld [vmem:[#allocation6 + $0x74] sm:$0xf0]  ;;  %v8573_v33 = vld [vmem:[#allocation6 + $0x168] sm:$0xf]  ;;  %v8846_v53 = vor.u32 %v10807_v59, %v8845_v19 }
 0x541   :  { %7170 = vmatmul.bf16.vlgmr.msrb.gmra.mxu2 %v11298_v43  ;;  %7157 = vmatmul.bf16.vlgmr.msra.gmra.mxu1 %v11299_v11  ;;  %v10739_v28 = vld [vmem:[#allocation6 + $0x174] sm:$0xf0]  ;;  %v8701_v63 = vld [vmem:[#allocation6 + $0x268] sm:$0xf] }
 0x542   :  { %7201 = vmatpush.bf16.msrb.mxu1 %v8638_v27  ;;  %7214 = vmatpush.bf16.msra.mxu2 %v8766_v8  ;;  %v10771_v56 = vld [vmem:[#allocation6 + $0x274] sm:$0xf0]  ;;  %v8829_v41 = vld [vmem:[#allocation6 + $0x368] sm:$0xf]  ;;  %v8446_v27 = vor.u32 %v10707_v24, %v8445_v21  ;;  %v8574_v45 = vor.u32 %v10739_v28, %v8573_v33 }
 0x543   :  { %7227 = vmatpush.bf16.msrb.mxu3 %v8894_v3  ;;  %v10803_v25 = vld [vmem:[#allocation6 + $0x374] sm:$0xf0]  ;;  %v8702_v8 = vor.u32 %v10771_v56, %v8701_v63  ;;  %v8429_v26 = vld [vmem:[#allocation6 + $0x48] sm:$0xf] }
 0x544   :  { %7183 = vmatmul.bf16.vlgmr.msra.gmra.mxu3 %v11300_v9  ;;  %7189 = vmatpush.bf16.msra.mxu0 %v8494_v30  ;;  %v10703_v49 = vld [vmem:[#allocation6 + $0x54] sm:$0xf0]  ;;  %v8557_v34 = vld [vmem:[#allocation6 + $0x148] sm:$0xf]  ;;  %v8830_v3 = vor.u32 %v10803_v25, %v8829_v41  ;;  %v6963_v10 = vpop.f32.mrf.mxu2  ;;  %v6939_v37 = vpop.f32.mrf.mxu0 }
 0x545   :  { %v10735_v35 = vld [vmem:[#allocation6 + $0x154] sm:$0xf0]  ;;  %v8685_v36 = vld [vmem:[#allocation6 + $0x248] sm:$0xf]  ;;  %v6964_v0 = vadd.f32 %v6963_v10, %v6951_v29  ;;  %v8430_v39 = vor.u32 %v10703_v49, %v8429_v26 }
 0x546   :  { %7202 = vmatpush.bf16.msrb.mxu1 %v8622_v15  ;;  %7215 = vmatpush.bf16.msra.mxu2 %v8750_v17  ;;  %v10767_v55 = vld [vmem:[#allocation6 + $0x254] sm:$0xf0]  ;;  %v8813_v15 = vld [vmem:[#allocation6 + $0x348] sm:$0xf]  ;;  %v6952_v31 = vpop.f32.mrf.mxu1 }
 0x547   :  { %7228 = vmatpush.bf16.msrb.mxu3 %v8878_v61  ;;  %v6976_v30 = vpop.f32.mrf.mxu3  ;;  %v10799_v17 = vld [vmem:[#allocation6 + $0x354] sm:$0xf0]  ;;  %v8558_v61 = vor.u32 %v10735_v35, %v8557_v34  ;;  %v8686_v54 = vor.u32 %v10767_v55, %v8685_v36  ;;  %v8413_v12 = vld [vmem:[#allocation6 + $0x28] sm:$0xf] }
 0x548   :  { %7190 = vmatpush.bf16.msra.mxu0 %v8478_v32  ;;  %v12699_v7 = vadd.f32 %v6976_v30, %v6964_v0  ;;  %v10699_v57 = vld [vmem:[#allocation6 + $0x34] sm:$0xf0]  ;;  %v8541_v43 = vld [vmem:[#allocation6 + $0x128] sm:$0xf]  ;;  %v8814_v11 = vor.u32 %v10799_v17, %v8813_v15 }
 0x549   :  { %v10731_v50 = vld [vmem:[#allocation6 + $0x134] sm:$0xf0]  ;;  %v8669_v40 = vld [vmem:[#allocation6 + $0x228] sm:$0xf] }
 0x54a   :  { %7203 = vmatpush.bf16.msrb.mxu1 %v8606_v60  ;;  %7216 = vmatpush.bf16.msra.mxu2 %v8734_v2  ;;  %v10763_v9 = vld [vmem:[#allocation6 + $0x234] sm:$0xf0]  ;;  %v8797_v32 = vld [vmem:[#allocation6 + $0x328] sm:$0xf]  ;;  %v8414_v2 = vor.u32 %v10699_v57, %v8413_v12  ;;  %v8542_v1 = vor.u32 %v10731_v50, %v8541_v43 }
 0x54b   :  { %7229 = vmatpush.bf16.msrb.mxu3 %v8862_v58  ;;  %v10795_v60 = vld [vmem:[#allocation6 + $0x334] sm:$0xf0]  ;;  %v8397_v6 = vld [vmem:[#allocation6 + $0x8] sm:$0xf]  ;;  %v8670_v58 = vor.u32 %v10763_v9, %v8669_v40 }
 0x54c   :  { %7191 = vmatpush.bf16.msra.mxu0 %v8462_v52  ;;  %v10695_v5 = vld [vmem:[#allocation6 + $0x14] sm:$0xf0]  ;;  %v8525_v14 = vld [vmem:[#allocation6 + $0x108] sm:$0xf]  ;;  %v8798_v23 = vor.u32 %v10795_v60, %v8797_v32  ;;  %v6965_v52 = vpop.f32.mrf.mxu2 }
 0x54d   :  { %v10727_v16 = vld [vmem:[#allocation6 + $0x114] sm:$0xf0]  ;;  %v8653_v13 = vld [vmem:[#allocation6 + $0x208] sm:$0xf]  ;;  %v8398_v24 = vor.u32 %v10695_v5, %v8397_v6 }
 0x54e   :  { %7204 = vmatpush.bf16.msrb.mxu1 %v8590_v20  ;;  %7217 = vmatpush.bf16.msra.mxu2 %v8718_v62  ;;  %v10759_v19 = vld [vmem:[#allocation6 + $0x214] sm:$0xf0]  ;;  %v8781_v59 = vld [vmem:[#allocation6 + $0x308] sm:$0xf]  ;;  %v8526_v28 = vor.u32 %v10727_v16, %v8525_v14 }
 0x54f   :  { %7230 = vmatpush.bf16.msrb.mxu3 %v8846_v53  ;;  %v10791_v48 = vld [vmem:[#allocation6 + $0x314] sm:$0xf0]  ;;  %v9021_v38 = vld [vmem:[#allocation6 + $0x4e8] sm:$0xf]  ;;  %v6978_v21 = vpop.f32.mrf.mxu3  ;;  %v8654_v63 = vor.u32 %v10759_v19, %v8653_v13 }
 0x550   :  { %7192 = vmatpush.bf16.msra.mxu0 %v8446_v27  ;;  %v10851_v20 = vld [vmem:[#allocation6 + $0x4f4] sm:$0xf0]  ;;  %v9149_v62 = vld [vmem:[#allocation6 + $0x5e8] sm:$0xf]  ;;  %v8782_v25 = vor.u32 %v10791_v48, %v8781_v59 }
 0x551   :  { %v10883_v33 = vld [vmem:[#allocation6 + $0x5f4] sm:$0xf0]  ;;  %v9277_v53 = vld [vmem:[#allocation6 + $0x6e8] sm:$0xf]  ;;  %v9022_v27 = vor.u32 %v10851_v20, %v9021_v38 }
 0x552   :  { %7205 = vmatpush.bf16.msrb.mxu1 %v8574_v45  ;;  %7218 = vmatpush.bf16.msra.mxu2 %v8702_v8  ;;  %v10915_v29 = vld [vmem:[#allocation6 + $0x6f4] sm:$0xf0]  ;;  %v9405_v56 = vld [vmem:[#allocation6 + $0x7e8] sm:$0xf]  ;;  %v9150_v45 = vor.u32 %v10883_v33, %v9149_v62 }
 0x553   :  { %7231 = vmatpush.bf16.msrb.mxu3 %v8830_v3  ;;  %v10947_v41 = vld [vmem:[#allocation6 + $0x7f4] sm:$0xf0]  ;;  %v9278_v8 = vor.u32 %v10915_v29, %v9277_v53  ;;  %v9005_v26 = vld [vmem:[#allocation6 + $0x4c8] sm:$0xf] }
 0x554   :  { %7193 = vmatpush.bf16.msra.mxu0 %v8430_v39  ;;  %v10847_v49 = vld [vmem:[#allocation6 + $0x4d4] sm:$0xf0]  ;;  %v9133_v34 = vld [vmem:[#allocation6 + $0x5c8] sm:$0xf]  ;;  %v9406_v3 = vor.u32 %v10947_v41, %v9405_v56 }
 0x555   :  { %v10879_v10 = vld [vmem:[#allocation6 + $0x5d4] sm:$0xf0]  ;;  %v9261_v35 = vld [vmem:[#allocation6 + $0x6c8] sm:$0xf]  ;;  %v9006_v30 = vor.u32 %v10847_v49, %v9005_v26 }
 0x556   :  { %7206 = vmatpush.bf16.msrb.mxu1 %v8558_v61  ;;  %7219 = vmatpush.bf16.msra.mxu2 %v8686_v54  ;;  %v10911_v36 = vld [vmem:[#allocation6 + $0x6d4] sm:$0xf0]  ;;  %v9389_v55 = vld [vmem:[#allocation6 + $0x7c8] sm:$0xf]  ;;  %v9134_v15 = vor.u32 %v10879_v10, %v9133_v34 }
 0x557   :  { %7232 = vmatpush.bf16.msrb.mxu3 %v8814_v11  ;;  %v10943_v0 = vld [vmem:[#allocation6 + $0x7d4] sm:$0xf0]  ;;  %v9262_v17 = vor.u32 %v10911_v36, %v9261_v35  ;;  %v8989_v37 = vld [vmem:[#allocation6 + $0x4a8] sm:$0xf] }
 0x558   :  { %7194 = vmatpush.bf16.msra.mxu0 %v8414_v2  ;;  %v10843_v39 = vld [vmem:[#allocation6 + $0x4b4] sm:$0xf0]  ;;  %v9117_v31 = vld [vmem:[#allocation6 + $0x5a8] sm:$0xf]  ;;  %v9390_v61 = vor.u32 %v10943_v0, %v9389_v55 }
 0x559   :  { %v10875_v54 = vld [vmem:[#allocation6 + $0x5b4] sm:$0xf0]  ;;  %v9245_v12 = vld [vmem:[#allocation6 + $0x6a8] sm:$0xf]  ;;  %v8990_v50 = vor.u32 %v10843_v39, %v8989_v37 }
 0x55a   :  { %7207 = vmatpush.bf16.msrb.mxu1 %v8542_v1  ;;  %7220 = vmatpush.bf16.msra.mxu2 %v8670_v58  ;;  %v10907_v57 = vld [vmem:[#allocation6 + $0x6b4] sm:$0xf0]  ;;  %v9373_v43 = vld [vmem:[#allocation6 + $0x7a8] sm:$0xf]  ;;  %v9118_v9 = vor.u32 %v10875_v54, %v9117_v31 }
 0x55b   :  { %7233 = vmatpush.bf16.msrb.mxu3 %v8798_v23  ;;  %v10939_v11 = vld [vmem:[#allocation6 + $0x7b4] sm:$0xf0]  ;;  %v8973_v40 = vld [vmem:[#allocation6 + $0x488] sm:$0xf]  ;;  %v9246_v32 = vor.u32 %v10907_v57, %v9245_v12 }
 0x55c   :  { %7195 = vmatpush.bf16.msra.mxu0 %v8398_v24  ;;  %v10839_v60 = vld [vmem:[#allocation6 + $0x494] sm:$0xf0]  ;;  %v9101_v2 = vld [vmem:[#allocation6 + $0x588] sm:$0xf]  ;;  %v9374_v1 = vor.u32 %v10939_v11, %v9373_v43  ;;  %v6989_v59 = vpop.f32.mrf.mxu0 }
 0x55d   :  { %v11301_v6 = vld [vmem:[#allocation19] ss:$4 sm:$0xf]  ;;  %v9229_v14 = vld [vmem:[#allocation6 + $0x688] sm:$0xf]  ;;  %v8974_v19 = vor.u32 %v10839_v60, %v8973_v40 }
 0x55e   :  { %7208 = vmatpush.bf16.msrb.mxu1 %v8526_v28  ;;  %7221 = vmatpush.bf16.msra.mxu2 %v8654_v63  ;;  %v4169_v5 = vperm.slane %v11301_v6, 1  ;;  %v10871_v58 = vld [vmem:[#allocation6 + $0x594] sm:$0xf0]  ;;  %v9357_v13 = vld [vmem:[#allocation6 + $0x788] sm:$0xf]  ;;  %v7002_v24 = vpop.f32.mrf.mxu1 }
 0x55f   :  { %7234 = vmatpush.bf16.msrb.mxu3 %v8782_v25  ;;  %7196 = vmatmul.bf16.vlgmr.msra.gmra.mxu0 %v12663_v47  ;;  %v10903_v16 = vld [vmem:[#allocation6 + $0x694] sm:$0xf0]  ;;  %v9102_v48 = vor.u32 %v10871_v58, %v9101_v2  ;;  %v8957_v38 = vld [vmem:[#allocation6 + $0x468] sm:$0xf] }
 0x560   :  { %7240 = vmatpush.bf16.msrb.mxu0 %v9022_v27  ;;  %v10935_v23 = vld [vmem:[#allocation6 + $0x794] sm:$0xf0]  ;;  %v9230_v52 = vor.u32 %v10903_v16, %v9229_v14  ;;  %v9085_v62 = vld [vmem:[#allocation6 + $0x568] sm:$0xf]  ;;  %v6990_v21 = vadd.f32 %v6989_v59, %v4169_v5 }
 0x561   :  { %7222 = vmatmul.bf16.vlgmr.msra.gmra.mxu2 %v12661_v42  ;;  %7209 = vmatmul.bf16.vlgmr.msrb.gmra.mxu1 %v12667_v51  ;;  %v10835_v20 = vld [vmem:[#allocation6 + $0x474] sm:$0xf0]  ;;  %v9358_v33 = vor.u32 %v10935_v23, %v9357_v13  ;;  %v9213_v29 = vld [vmem:[#allocation6 + $0x668] sm:$0xf] }
 0x562   :  { %7253 = vmatpush.bf16.msra.mxu1 %v9150_v45  ;;  %7266 = vmatpush.bf16.msrb.mxu2 %v9278_v8  ;;  %v10867_v53 = vld [vmem:[#allocation6 + $0x574] sm:$0xf0]  ;;  %v9341_v63 = vld [vmem:[#allocation6 + $0x768] sm:$0xf]  ;;  %v7003_v41 = vadd.f32 %v7002_v24, %v6990_v21  ;;  %v8958_v25 = vor.u32 %v10835_v20, %v8957_v38 }
 0x563   :  { %7279 = vmatpush.bf16.msra.mxu3 %v9406_v3  ;;  %v10899_v28 = vld [vmem:[#allocation6 + $0x674] sm:$0xf0]  ;;  %v9086_v27 = vor.u32 %v10867_v53, %v9085_v62  ;;  %v8941_v8 = vld [vmem:[#allocation6 + $0x448] sm:$0xf] }
 0x564   :  { %7235 = vmatmul.bf16.vlgmr.msrb.gmra.mxu3 %v12665_v46  ;;  %7241 = vmatpush.bf16.msrb.mxu0 %v9006_v30  ;;  %v10931_v56 = vld [vmem:[#allocation6 + $0x774] sm:$0xf0]  ;;  %v9214_v45 = vor.u32 %v10899_v28, %v9213_v29  ;;  %v9069_v49 = vld [vmem:[#allocation6 + $0x548] sm:$0xf]  ;;  %v7015_v34 = vpop.f32.mrf.mxu2  ;;  %v6991_v39 = vpop.f32.mrf.mxu0 }
 0x565   :  { %v10831_v26 = vld [vmem:[#allocation6 + $0x454] sm:$0xf0]  ;;  %v9342_v3 = vor.u32 %v10931_v56, %v9341_v63  ;;  %v9197_v35 = vld [vmem:[#allocation6 + $0x648] sm:$0xf]  ;;  %v7016_v55 = vadd.f32 %v7015_v34, %v7003_v41 }
 0x566   :  { %7254 = vmatpush.bf16.msra.mxu1 %v9134_v15  ;;  %7267 = vmatpush.bf16.msrb.mxu2 %v9262_v17  ;;  %v10863_v10 = vld [vmem:[#allocation6 + $0x554] sm:$0xf0]  ;;  %v9325_v30 = vld [vmem:[#allocation6 + $0x748] sm:$0xf]  ;;  %v8942_v17 = vor.u32 %v10831_v26, %v8941_v8  ;;  %v7004_v43 = vpop.f32.mrf.mxu1 }
 0x567   :  { %7280 = vmatpush.bf16.msra.mxu3 %v9390_v61  ;;  %v10895_v36 = vld [vmem:[#allocation6 + $0x654] sm:$0xf0]  ;;  %v7028_v0 = vpop.f32.mrf.mxu3  ;;  %v9070_v31 = vor.u32 %v10863_v10, %v9069_v49  ;;  %v8925_v54 = vld [vmem:[#allocation6 + $0x428] sm:$0xf] }
 0x568   :  { %7242 = vmatpush.bf16.msrb.mxu0 %v8990_v50  ;;  %v10927_v15 = vld [vmem:[#allocation6 + $0x754] sm:$0xf0]  ;;  %v12705_v37 = vadd.f32 %v7028_v0, %v7016_v55  ;;  %v9198_v61 = vor.u32 %v10895_v36, %v9197_v35  ;;  %v9053_v57 = vld [vmem:[#allocation6 + $0x528] sm:$0xf] }
 0x569   :  { %v10827_v12 = vld [vmem:[#allocation6 + $0x434] sm:$0xf0]  ;;  %v9326_v11 = vor.u32 %v10927_v15, %v9325_v30  ;;  %v9181_v40 = vld [vmem:[#allocation6 + $0x628] sm:$0xf] }
 0x56a   :  { %7255 = vmatpush.bf16.msra.mxu1 %v9118_v9  ;;  %7268 = vmatpush.bf16.msrb.mxu2 %v9246_v32  ;;  %v10859_v50 = vld [vmem:[#allocation6 + $0x534] sm:$0xf0]  ;;  %v9309_v32 = vld [vmem:[#allocation6 + $0x728] sm:$0xf]  ;;  %v8926_v2 = vor.u32 %v10827_v12, %v8925_v54 }
 0x56b   :  { %7281 = vmatpush.bf16.msra.mxu3 %v9374_v1  ;;  %v10891_v9 = vld [vmem:[#allocation6 + $0x634] sm:$0xf0]  ;;  %v8909_v6 = vld [vmem:[#allocation6 + $0x408] sm:$0xf]  ;;  %v9054_v1 = vor.u32 %v10859_v50, %v9053_v57 }
 0x56c   :  { %7243 = vmatpush.bf16.msrb.mxu0 %v8974_v19  ;;  %v10923_v60 = vld [vmem:[#allocation6 + $0x734] sm:$0xf0]  ;;  %v9182_v58 = vor.u32 %v10891_v9, %v9181_v40  ;;  %v9037_v14 = vld [vmem:[#allocation6 + $0x508] sm:$0xf]  ;;  %v7017_v23 = vpop.f32.mrf.mxu2 }
 0x56d   :  { %v10823_v5 = vld [vmem:[#allocation6 + $0x414] sm:$0xf0]  ;;  %v9165_v13 = vld [vmem:[#allocation6 + $0x608] sm:$0xf]  ;;  %v9310_v19 = vor.u32 %v10923_v60, %v9309_v32 }
 0x56e   :  { %7256 = vmatpush.bf16.msra.mxu1 %v9102_v48  ;;  %7269 = vmatpush.bf16.msrb.mxu2 %v9230_v52  ;;  %v10855_v16 = vld [vmem:[#allocation6 + $0x514] sm:$0xf0]  ;;  %v9293_v48 = vld [vmem:[#allocation6 + $0x708] sm:$0xf]  ;;  %v8910_v24 = vor.u32 %v10823_v5, %v8909_v6 }
 0x56f   :  { %7282 = vmatpush.bf16.msra.mxu3 %v9358_v33  ;;  %v10887_v59 = vld [vmem:[#allocation6 + $0x614] sm:$0xf0]  ;;  %v7030_v38 = vpop.f32.mrf.mxu3  ;;  %v9533_v20 = vld [vmem:[#allocation6 + $0x8e8] sm:$0xf]  ;;  %v9038_v28 = vor.u32 %v10855_v16, %v9037_v14 }
 0x570   :  { %7244 = vmatpush.bf16.msrb.mxu0 %v8958_v25  ;;  %v10919_v52 = vld [vmem:[#allocation6 + $0x714] sm:$0xf0]  ;;  %v9661_v21 = vld [vmem:[#allocation6 + $0x9e8] sm:$0xf]  ;;  %v9166_v63 = vor.u32 %v10887_v59, %v9165_v13 }
 0x571   :  { %v10979_v62 = vld [vmem:[#allocation6 + $0x8f4] sm:$0xf0]  ;;  %v9789_v53 = vld [vmem:[#allocation6 + $0xae8] sm:$0xf]  ;;  %v9294_v25 = vor.u32 %v10919_v52, %v9293_v48 }
 0x572   :  { %7257 = vmatpush.bf16.msra.mxu1 %v9086_v27  ;;  %7270 = vmatpush.bf16.msrb.mxu2 %v9214_v45  ;;  %v11011_v33 = vld [vmem:[#allocation6 + $0x9f4] sm:$0xf0]  ;;  %v9917_v56 = vld [vmem:[#allocation6 + $0xbe8] sm:$0xf]  ;;  %v9534_v27 = vor.u32 %v10979_v62, %v9533_v20 }
 0x573   :  { %7283 = vmatpush.bf16.msra.mxu3 %v9342_v3  ;;  %v11043_v29 = vld [vmem:[#allocation6 + $0xaf4] sm:$0xf0]  ;;  %v9662_v45 = vor.u32 %v11011_v33, %v9661_v21  ;;  %v9517_v26 = vld [vmem:[#allocation6 + $0x8c8] sm:$0xf] }
 0x574   :  { %7245 = vmatpush.bf16.msrb.mxu0 %v8942_v17  ;;  %v11075_v41 = vld [vmem:[#allocation6 + $0xbf4] sm:$0xf0]  ;;  %v9790_v8 = vor.u32 %v11043_v29, %v9789_v53  ;;  %v9645_v34 = vld [vmem:[#allocation6 + $0x9c8] sm:$0xf] }
 0x575   :  { %v10975_v49 = vld [vmem:[#allocation6 + $0x8d4] sm:$0xf0]  ;;  %v9918_v3 = vor.u32 %v11075_v41, %v9917_v56  ;;  %v9773_v35 = vld [vmem:[#allocation6 + $0xac8] sm:$0xf] }
 0x576   :  { %7258 = vmatpush.bf16.msra.mxu1 %v9070_v31  ;;  %7271 = vmatpush.bf16.msrb.mxu2 %v9198_v61  ;;  %v11007_v10 = vld [vmem:[#allocation6 + $0x9d4] sm:$0xf0]  ;;  %v9901_v55 = vld [vmem:[#allocation6 + $0xbc8] sm:$0xf]  ;;  %v9518_v30 = vor.u32 %v10975_v49, %v9517_v26 }
 0x577   :  { %7284 = vmatpush.bf16.msra.mxu3 %v9326_v11  ;;  %v11039_v36 = vld [vmem:[#allocation6 + $0xad4] sm:$0xf0]  ;;  %v9646_v15 = vor.u32 %v11007_v10, %v9645_v34  ;;  %v9501_v39 = vld [vmem:[#allocation6 + $0x8a8] sm:$0xf] }
 0x578   :  { %7246 = vmatpush.bf16.msrb.mxu0 %v8926_v2  ;;  %v11071_v0 = vld [vmem:[#allocation6 + $0xbd4] sm:$0xf0]  ;;  %v9774_v17 = vor.u32 %v11039_v36, %v9773_v35  ;;  %v9629_v61 = vld [vmem:[#allocation6 + $0x9a8] sm:$0xf] }
 0x579   :  { %v10971_v31 = vld [vmem:[#allocation6 + $0x8b4] sm:$0xf0]  ;;  %v9902_v54 = vor.u32 %v11071_v0, %v9901_v55  ;;  %v9757_v57 = vld [vmem:[#allocation6 + $0xaa8] sm:$0xf] }
 0x57a   :  { %7259 = vmatpush.bf16.msra.mxu1 %v9054_v1  ;;  %7272 = vmatpush.bf16.msrb.mxu2 %v9182_v58  ;;  %v11003_v12 = vld [vmem:[#allocation6 + $0x9b4] sm:$0xf0]  ;;  %v9885_v11 = vld [vmem:[#allocation6 + $0xba8] sm:$0xf]  ;;  %v9502_v40 = vor.u32 %v10971_v31, %v9501_v39 }
 0x57b   :  { %7285 = vmatpush.bf16.msra.mxu3 %v9310_v19  ;;  %v11035_v43 = vld [vmem:[#allocation6 + $0xab4] sm:$0xf0]  ;;  %v9630_v9 = vor.u32 %v11003_v12, %v9629_v61  ;;  %v9485_v60 = vld [vmem:[#allocation6 + $0x888] sm:$0xf] }
 0x57c   :  { %7247 = vmatpush.bf16.msrb.mxu0 %v8910_v24  ;;  %v11067_v50 = vld [vmem:[#allocation6 + $0xbb4] sm:$0xf0]  ;;  %v9758_v32 = vor.u32 %v11035_v43, %v9757_v57  ;;  %v9613_v6 = vld [vmem:[#allocation6 + $0x988] sm:$0xf]  ;;  %v7041_v19 = vpop.f32.mrf.mxu0 }
 0x57d   :  { %v10967_v2 = vld [vmem:[#allocation6 + $0x894] sm:$0xf0]  ;;  %v9886_v5 = vor.u32 %v11067_v50, %v9885_v11  ;;  %v9741_v58 = vld [vmem:[#allocation6 + $0xa88] sm:$0xf]  ;;  %v7042_v62 = vadd.f32 %v7041_v19, %v12705_v37 }
 0x57e   :  { %7260 = vmatpush.bf16.msra.mxu1 %v9038_v28  ;;  %7273 = vmatpush.bf16.msrb.mxu2 %v9166_v63  ;;  %v10999_v1 = vld [vmem:[#allocation6 + $0x994] sm:$0xf0]  ;;  %v9869_v16 = vld [vmem:[#allocation6 + $0xb88] sm:$0xf]  ;;  %v9486_v23 = vor.u32 %v10967_v2, %v9485_v60  ;;  %v7054_v21 = vpop.f32.mrf.mxu1 }
 0x57f   :  { %7286 = vmatpush.bf16.msra.mxu3 %v9294_v25  ;;  %7248 = vmatmul.bf16.vlgmr.msrb.gmra.mxu0 %v12675_v4  ;;  %v11031_v14 = vld [vmem:[#allocation6 + $0xa94] sm:$0xf0]  ;;  %v9614_v59 = vor.u32 %v10999_v1, %v9613_v6  ;;  %v9469_v52 = vld [vmem:[#allocation6 + $0x868] sm:$0xf]  ;;  %v7055_v56 = vadd.f32 %v7054_v21, %v7042_v62 }
 0x580   :  { %7292 = vmatpush.bf16.msra.mxu0 %v9534_v27  ;;  %v11063_v13 = vld [vmem:[#allocation6 + $0xb94] sm:$0xf0]  ;;  %v9742_v48 = vor.u32 %v11031_v14, %v9741_v58  ;;  %v9597_v20 = vld [vmem:[#allocation6 + $0x968] sm:$0xf] }
 0x581   :  { %7274 = vmatmul.bf16.vlgmr.msrb.gmra.mxu2 %v12673_v44  ;;  %7261 = vmatmul.bf16.vlgmr.msra.gmra.mxu1 %v12679_v18  ;;  %v10963_v38 = vld [vmem:[#allocation6 + $0x874] sm:$0xf0]  ;;  %v9870_v24 = vor.u32 %v11063_v13, %v9869_v16  ;;  %v9725_v53 = vld [vmem:[#allocation6 + $0xa68] sm:$0xf] }
 0x582   :  { %7305 = vmatpush.bf16.msrb.mxu1 %v9662_v45  ;;  %7318 = vmatpush.bf16.msra.mxu2 %v9790_v8  ;;  %v10995_v33 = vld [vmem:[#allocation6 + $0x974] sm:$0xf0]  ;;  %v9853_v28 = vld [vmem:[#allocation6 + $0xb68] sm:$0xf]  ;;  %v9470_v41 = vor.u32 %v10963_v38, %v9469_v52 }
 0x583   :  { %7331 = vmatpush.bf16.msrb.mxu3 %v9918_v3  ;;  %v11027_v29 = vld [vmem:[#allocation6 + $0xa74] sm:$0xf0]  ;;  %v9598_v25 = vor.u32 %v10995_v33, %v9597_v20  ;;  %v9453_v45 = vld [vmem:[#allocation6 + $0x848] sm:$0xf] }
 0x584   :  { %7287 = vmatmul.bf16.vlgmr.msra.gmra.mxu3 %v12677_v22  ;;  %7293 = vmatpush.bf16.msra.mxu0 %v9518_v30  ;;  %v11059_v63 = vld [vmem:[#allocation6 + $0xb74] sm:$0xf0]  ;;  %v9726_v27 = vor.u32 %v11027_v29, %v9725_v53  ;;  %v9581_v26 = vld [vmem:[#allocation6 + $0x948] sm:$0xf]  ;;  %v7067_v49 = vpop.f32.mrf.mxu2 }
 0x585   :  { %v10959_v8 = vld [vmem:[#allocation6 + $0x854] sm:$0xf0]  ;;  %v9854_v37 = vor.u32 %v11059_v63, %v9853_v28  ;;  %v9709_v3 = vld [vmem:[#allocation6 + $0xa48] sm:$0xf]  ;;  %v7068_v35 = vadd.f32 %v7067_v49, %v7055_v56 }
 0x586   :  { %7306 = vmatpush.bf16.msrb.mxu1 %v9646_v15  ;;  %7319 = vmatpush.bf16.msra.mxu2 %v9774_v17  ;;  %v10991_v34 = vld [vmem:[#allocation6 + $0x954] sm:$0xf0]  ;;  %v9837_v55 = vld [vmem:[#allocation6 + $0xb48] sm:$0xf]  ;;  %v9454_v30 = vor.u32 %v10959_v8, %v9453_v45  ;;  %v7043_v17 = vpop.f32.mrf.mxu0  ;;  %v7056_v57 = vpop.f32.mrf.mxu1 }
 0x587   :  { %7332 = vmatpush.bf16.msrb.mxu3 %v9902_v54  ;;  %v11023_v10 = vld [vmem:[#allocation6 + $0xa54] sm:$0xf0]  ;;  %v7080_v36 = vpop.f32.mrf.mxu3  ;;  %v9582_v39 = vor.u32 %v10991_v34, %v9581_v26  ;;  %v9437_v61 = vld [vmem:[#allocation6 + $0x828] sm:$0xf] }
 0x588   :  { %7294 = vmatpush.bf16.msra.mxu0 %v9502_v40  ;;  %v11055_v0 = vld [vmem:[#allocation6 + $0xb54] sm:$0xf0]  ;;  %v12712_v15 = vadd.f32 %v7080_v36, %v7068_v35  ;;  %v9710_v31 = vor.u32 %v11023_v10, %v9709_v3  ;;  %v9565_v12 = vld [vmem:[#allocation6 + $0x928] sm:$0xf] }
 0x589   :  { %v10955_v54 = vld [vmem:[#allocation6 + $0x834] sm:$0xf0]  ;;  %v9838_v43 = vor.u32 %v11055_v0, %v9837_v55  ;;  %v9693_v50 = vld [vmem:[#allocation6 + $0xa28] sm:$0xf] }
 0x58a   :  { %7307 = vmatpush.bf16.msrb.mxu1 %v9630_v9  ;;  %7320 = vmatpush.bf16.msra.mxu2 %v9758_v32  ;;  %v10987_v11 = vld [vmem:[#allocation6 + $0x934] sm:$0xf0]  ;;  %v9821_v9 = vld [vmem:[#allocation6 + $0xb28] sm:$0xf]  ;;  %v9438_v60 = vor.u32 %v10955_v54, %v9437_v61 }
 0x58b   :  { %7333 = vmatpush.bf16.msrb.mxu3 %v9886_v5  ;;  %v11019_v40 = vld [vmem:[#allocation6 + $0xa34] sm:$0xf0]  ;;  %v9421_v2 = vld [vmem:[#allocation6 + $0x808] sm:$0xf]  ;;  %v9566_v5 = vor.u32 %v10987_v11, %v9565_v12 }
 0x58c   :  { %7295 = vmatpush.bf16.msra.mxu0 %v9486_v23  ;;  %v11051_v32 = vld [vmem:[#allocation6 + $0xb34] sm:$0xf0]  ;;  %v9694_v1 = vor.u32 %v11019_v40, %v9693_v50  ;;  %v9549_v58 = vld [vmem:[#allocation6 + $0x908] sm:$0xf]  ;;  %v7069_v13 = vpop.f32.mrf.mxu2 }
 0x58d   :  { %v10951_v6 = vld [vmem:[#allocation6 + $0x814] sm:$0xf0]  ;;  %v9677_v16 = vld [vmem:[#allocation6 + $0xa08] sm:$0xf]  ;;  %v9822_v23 = vor.u32 %v11051_v32, %v9821_v9 }
 0x58e   :  { %7308 = vmatpush.bf16.msrb.mxu1 %v9614_v59  ;;  %7321 = vmatpush.bf16.msra.mxu2 %v9742_v48  ;;  %v10983_v14 = vld [vmem:[#allocation6 + $0x914] sm:$0xf0]  ;;  %v9805_v59 = vld [vmem:[#allocation6 + $0xb08] sm:$0xf]  ;;  %v9422_v21 = vor.u32 %v10951_v6, %v9421_v2 }
 0x58f   :  { %7334 = vmatpush.bf16.msrb.mxu3 %v9870_v24  ;;  %v11015_v19 = vld [vmem:[#allocation6 + $0xa14] sm:$0xf0]  ;;  %v7082_v52 = vpop.f32.mrf.mxu3  ;;  %v10045_v38 = vld [vmem:[#allocation6 + $0xce8] sm:$0xf]  ;;  %v9550_v29 = vor.u32 %v10983_v14, %v9549_v58 }
 0x590   :  { %7296 = vmatpush.bf16.msra.mxu0 %v9470_v41  ;;  %v11047_v48 = vld [vmem:[#allocation6 + $0xb14] sm:$0xf0]  ;;  %v10173_v62 = vld [vmem:[#allocation6 + $0xde8] sm:$0xf]  ;;  %v9678_v28 = vor.u32 %v11015_v19, %v9677_v16 }
 0x591   :  { %v11107_v20 = vld [vmem:[#allocation6 + $0xcf4] sm:$0xf0]  ;;  %v10301_v33 = vld [vmem:[#allocation6 + $0xee8] sm:$0xf]  ;;  %v9806_v41 = vor.u32 %v11047_v48, %v9805_v59 }
 0x592   :  { %7309 = vmatpush.bf16.msrb.mxu1 %v9598_v25  ;;  %7322 = vmatpush.bf16.msra.mxu2 %v9726_v27  ;;  %v11139_v24 = vld [vmem:[#allocation6 + $0xdf4] sm:$0xf0]  ;;  %v10429_v63 = vld [vmem:[#allocation6 + $0xfe8] sm:$0xf]  ;;  %v10046_v25 = vor.u32 %v11107_v20, %v10045_v38 }
 0x593   :  { %7335 = vmatpush.bf16.msrb.mxu3 %v9854_v37  ;;  %v11171_v53 = vld [vmem:[#allocation6 + $0xef4] sm:$0xf0]  ;;  %v10174_v27 = vor.u32 %v11139_v24, %v10173_v62  ;;  %v10029_v8 = vld [vmem:[#allocation6 + $0xcc8] sm:$0xf] }
 0x594   :  { %7297 = vmatpush.bf16.msra.mxu0 %v9454_v30  ;;  %v11203_v56 = vld [vmem:[#allocation6 + $0xff4] sm:$0xf0]  ;;  %v10302_v45 = vor.u32 %v11171_v53, %v10301_v33  ;;  %v10157_v49 = vld [vmem:[#allocation6 + $0xdc8] sm:$0xf] }
 0x595   :  { %v11103_v26 = vld [vmem:[#allocation6 + $0xcd4] sm:$0xf0]  ;;  %v10430_v37 = vor.u32 %v11203_v56, %v10429_v63  ;;  %v10285_v3 = vld [vmem:[#allocation6 + $0xec8] sm:$0xf] }
 0x596   :  { %7310 = vmatpush.bf16.msrb.mxu1 %v9582_v39  ;;  %7323 = vmatpush.bf16.msra.mxu2 %v9710_v31  ;;  %v11135_v34 = vld [vmem:[#allocation6 + $0xdd4] sm:$0xf0]  ;;  %v10413_v35 = vld [vmem:[#allocation6 + $0xfc8] sm:$0xf]  ;;  %v10030_v55 = vor.u32 %v11103_v26, %v10029_v8 }
 0x597   :  { %7336 = vmatpush.bf16.msrb.mxu3 %v9838_v43  ;;  %v11167_v10 = vld [vmem:[#allocation6 + $0xed4] sm:$0xf0]  ;;  %v10158_v0 = vor.u32 %v11135_v34, %v10157_v49  ;;  %v10013_v17 = vld [vmem:[#allocation6 + $0xca8] sm:$0xf] }
 0x598   :  { %7298 = vmatpush.bf16.msra.mxu0 %v9438_v60  ;;  %v11199_v36 = vld [vmem:[#allocation6 + $0xfd4] sm:$0xf0]  ;;  %v10286_v30 = vor.u32 %v11167_v10, %v10285_v3  ;;  %v10141_v31 = vld [vmem:[#allocation6 + $0xda8] sm:$0xf] }
 0x599   :  { %v11099_v39 = vld [vmem:[#allocation6 + $0xcb4] sm:$0xf0]  ;;  %v10414_v54 = vor.u32 %v11199_v36, %v10413_v35  ;;  %v10269_v57 = vld [vmem:[#allocation6 + $0xea8] sm:$0xf] }
 0x59a   :  { %7311 = vmatpush.bf16.msrb.mxu1 %v9566_v5  ;;  %7324 = vmatpush.bf16.msra.mxu2 %v9694_v1  ;;  %v11302_v61 = vld [vmem:[#allocation1] sm:$0xff]  ;;  %v11303_v11 = vld [vmem:[#allocation1 + $0x12] sm:$0xff]  ;;  %v11304_v50 = vld [vmem:[#allocation1 + $0x9] sm:$0xff]  ;;  %v10014_v60 = vor.u32 %v11099_v39, %v10013_v17 }
 0x59b   :  { %7337 = vmatpush.bf16.msrb.mxu3 %v9822_v23  ;;  %v11131_v12 = vld [vmem:[#allocation6 + $0xdb4] sm:$0xf0]  ;;  %v10397_v40 = vld [vmem:[#allocation6 + $0xfa8] sm:$0xf] }
 0x59c   :  { %7299 = vmatpush.bf16.msra.mxu0 %v9422_v21  ;;  %v11163_v43 = vld [vmem:[#allocation6 + $0xeb4] sm:$0xf0]  ;;  %v10142_v2 = vor.u32 %v11131_v12, %v10141_v31  ;;  %v9997_v5 = vld [vmem:[#allocation6 + $0xc88] sm:$0xf]  ;;  %v7093_v19 = vpop.f32.mrf.mxu0 }
 0x59d   :  { %v11195_v9 = vld [vmem:[#allocation6 + $0xfb4] sm:$0xf0]  ;;  %v10270_v6 = vor.u32 %v11163_v43, %v10269_v57  ;;  %v10125_v58 = vld [vmem:[#allocation6 + $0xd88] sm:$0xf]  ;;  %v7094_v20 = vadd.f32 %v7093_v19, %v12712_v15 }
 0x59e   :  { %7312 = vmatpush.bf16.msrb.mxu1 %v9550_v29  ;;  %7325 = vmatpush.bf16.msra.mxu2 %v9678_v28  ;;  %v11305_v32 = vld [vmem:[#allocation1 + $0x1b] sm:$0xff]  ;;  %v10398_v14 = vor.u32 %v11195_v9, %v10397_v40  ;;  %v10253_v13 = vld [vmem:[#allocation6 + $0xe88] sm:$0xf]  ;;  %v7106_v38 = vpop.f32.mrf.mxu1 }
 0x59f   :  { %7338 = vmatpush.bf16.msrb.mxu3 %v9806_v41  ;;  %7300 = vmatmul.bf16.vlgmr.msra.gmra.mxu0 %v11302_v61  ;;  %v11095_v1 = vld [vmem:[#allocation6 + $0xc94] sm:$0xf0]  ;;  %v10381_v59 = vld [vmem:[#allocation6 + $0xf88] sm:$0xf] }
 0x5a0   :  { %7344 = vmatpush.bf16.msrb.mxu0 %v10046_v25  ;;  %v11127_v16 = vld [vmem:[#allocation6 + $0xd94] sm:$0xf0]  ;;  %v9998_v52 = vor.u32 %v11095_v1, %v9997_v5  ;;  %v9981_v24 = vld [vmem:[#allocation6 + $0xc68] sm:$0xf] }
 0x5a1   :  { %7326 = vmatmul.bf16.vlgmr.msra.gmra.mxu2 %v11303_v11  ;;  %7313 = vmatmul.bf16.vlgmr.msrb.gmra.mxu1 %v11304_v50  ;;  %v11159_v23 = vld [vmem:[#allocation6 + $0xe94] sm:$0xf0]  ;;  %v10126_v62 = vor.u32 %v11127_v16, %v10125_v58  ;;  %v10109_v53 = vld [vmem:[#allocation6 + $0xd68] sm:$0xf] }
 0x5a2   :  { %7357 = vmatpush.bf16.msra.mxu1 %v10174_v27  ;;  %7370 = vmatpush.bf16.msrb.mxu2 %v10302_v45  ;;  %v11191_v48 = vld [vmem:[#allocation6 + $0xf94] sm:$0xf0]  ;;  %v10254_v21 = vor.u32 %v11159_v23, %v10253_v13  ;;  %v10237_v63 = vld [vmem:[#allocation6 + $0xe68] sm:$0xf]  ;;  %v7107_v45 = vadd.f32 %v7106_v38, %v7094_v20 }
 0x5a3   :  { %7383 = vmatpush.bf16.msra.mxu3 %v10430_v37  ;;  %v11091_v33 = vld [vmem:[#allocation6 + $0xc74] sm:$0xf0]  ;;  %v10382_v29 = vor.u32 %v11191_v48, %v10381_v59  ;;  %v10365_v41 = vld [vmem:[#allocation6 + $0xf68] sm:$0xf] }
 0x5a4   :  { %7339 = vmatmul.bf16.vlgmr.msrb.gmra.mxu3 %v11305_v32  ;;  %7345 = vmatpush.bf16.msrb.mxu0 %v10030_v55  ;;  %v11123_v28 = vld [vmem:[#allocation6 + $0xd74] sm:$0xf0]  ;;  %v9982_v27 = vor.u32 %v11091_v33, %v9981_v24  ;;  %v9965_v15 = vld [vmem:[#allocation6 + $0xc48] sm:$0xf]  ;;  %v7119_v3 = vpop.f32.mrf.mxu2  ;;  %v7095_v39 = vpop.f32.mrf.mxu0  ;;  %v10753_v24 = vld [vmem:[#allocation6 + $0x1ec] sm:$0xf] }
 0x5a5   :  { %v11155_v56 = vld [vmem:[#allocation6 + $0xe74] sm:$0xf0]  ;;  %v10110_v8 = vor.u32 %v11123_v28, %v10109_v53  ;;  %v10093_v37 = vld [vmem:[#allocation6 + $0xd48] sm:$0xf]  ;;  %v7120_v55 = vadd.f32 %v7119_v3, %v7107_v45  ;;  %v10785_v28 = vld [vmem:[#allocation6 + $0x2ec] sm:$0xf] }
 0x5a6   :  { %7358 = vmatpush.bf16.msra.mxu1 %v10158_v0  ;;  %7371 = vmatpush.bf16.msrb.mxu2 %v10286_v30  ;;  %v11187_v25 = vld [vmem:[#allocation6 + $0xf74] sm:$0xf0]  ;;  %v10238_v26 = vor.u32 %v11155_v56, %v10237_v63  ;;  %v10221_v35 = vld [vmem:[#allocation6 + $0xe48] sm:$0xf]  ;;  %v7108_v61 = vpop.f32.mrf.mxu1  ;;  %v8767_v63 = vld [vmem:[#allocation6 + $0x2f8] sm:$0xf0] }
 0x5a7   :  { %7384 = vmatpush.bf16.msra.mxu3 %v10414_v54  ;;  %v11087_v49 = vld [vmem:[#allocation6 + $0xc54] sm:$0xf0]  ;;  %v10366_v34 = vor.u32 %v11187_v25, %v10365_v41  ;;  %v7132_v0 = vpop.f32.mrf.mxu3  ;;  %v10349_v30 = vld [vmem:[#allocation6 + $0xf48] sm:$0xf]  ;;  %v10817_v25 = vld [vmem:[#allocation6 + $0x3ec] sm:$0xf] }
 0x5a8   :  { %7346 = vmatpush.bf16.msrb.mxu0 %v10014_v60  ;;  %v11119_v10 = vld [vmem:[#allocation6 + $0xd54] sm:$0xf0]  ;;  %v9966_v31 = vor.u32 %v11087_v49, %v9965_v15  ;;  %v12715_v54 = vadd.f32 %v7132_v0, %v7120_v55  ;;  %v9949_v43 = vld [vmem:[#allocation6 + $0xc28] sm:$0xf]  ;;  %v8770_v15 = vor.u32 %v10785_v28, %v8767_v63  ;;  %v10717_v49 = vld [vmem:[#allocation6 + $0xcc] sm:$0xf] }
 0x5a9   :  { %v11151_v36 = vld [vmem:[#allocation6 + $0xe54] sm:$0xf0]  ;;  %v10094_v12 = vor.u32 %v11119_v10, %v10093_v37  ;;  %v10077_v50 = vld [vmem:[#allocation6 + $0xd28] sm:$0xf]  ;;  %v8495_v37 = vld [vmem:[#allocation6 + $0xd8] sm:$0xf0] }
 0x5aa   :  { %7359 = vmatpush.bf16.msra.mxu1 %v10142_v2  ;;  %7372 = vmatpush.bf16.msrb.mxu2 %v10270_v6  ;;  %v11183_v17 = vld [vmem:[#allocation6 + $0xf54] sm:$0xf0]  ;;  %v10222_v57 = vor.u32 %v11151_v36, %v10221_v35  ;;  %v10205_v32 = vld [vmem:[#allocation6 + $0xe28] sm:$0xf]  ;;  %v8623_v10 = vld [vmem:[#allocation6 + $0x1d8] sm:$0xf0] }
 0x5ab   :  { %7385 = vmatpush.bf16.msra.mxu3 %v10398_v14  ;;  %v11083_v11 = vld [vmem:[#allocation6 + $0xc34] sm:$0xf0]  ;;  %v10350_v40 = vor.u32 %v11183_v17, %v10349_v30  ;;  %v10333_v2 = vld [vmem:[#allocation6 + $0xf28] sm:$0xf]  ;;  %v10781_v35 = vld [vmem:[#allocation6 + $0x2cc] sm:$0xf]  ;;  %v8498_v30 = vor.u32 %v10717_v49, %v8495_v37 }
 0x5ac   :  { %7347 = vmatpush.bf16.msrb.mxu0 %v9998_v52  ;;  %v11115_v9 = vld [vmem:[#allocation6 + $0xd34] sm:$0xf0]  ;;  %v9950_v5 = vor.u32 %v11083_v11, %v9949_v43  ;;  %v9933_v1 = vld [vmem:[#allocation6 + $0xc08] sm:$0xf]  ;;  %v7121_v20 = vpop.f32.mrf.mxu2  ;;  %v8751_v36 = vld [vmem:[#allocation6 + $0x2d8] sm:$0xf0] }
 0x5ad   :  { %v11147_v60 = vld [vmem:[#allocation6 + $0xe34] sm:$0xf0]  ;;  %v10078_v14 = vor.u32 %v11115_v9, %v10077_v50  ;;  %v10061_v13 = vld [vmem:[#allocation6 + $0xd08] sm:$0xf]  ;;  %v10813_v55 = vld [vmem:[#allocation6 + $0x3cc] sm:$0xf]  ;;  %v8754_v39 = vor.u32 %v10781_v35, %v8751_v36 }
 0x5ae   :  { %7360 = vmatpush.bf16.msra.mxu1 %v10126_v62  ;;  %7373 = vmatpush.bf16.msrb.mxu2 %v10254_v21  ;;  %v11179_v6 = vld [vmem:[#allocation6 + $0xf34] sm:$0xf0]  ;;  %v10206_v16 = vor.u32 %v11147_v60, %v10205_v32  ;;  %v10189_v19 = vld [vmem:[#allocation6 + $0xe08] sm:$0xf]  ;;  %v10721_v62 = vld [vmem:[#allocation6 + $0xec] sm:$0xf] }
 0x5af   :  { %7386 = vmatpush.bf16.msra.mxu3 %v10382_v29  ;;  %v11079_v58 = vld [vmem:[#allocation6 + $0xc14] sm:$0xf0]  ;;  %v10334_v59 = vor.u32 %v11179_v6, %v10333_v2  ;;  %v10317_v52 = vld [vmem:[#allocation6 + $0xf08] sm:$0xf]  ;;  %v8511_v21 = vld [vmem:[#allocation6 + $0xf8] sm:$0xf0]  ;;  %v7134_v33 = vpop.f32.mrf.mxu3 }
 0x5b0   :  { %7348 = vmatpush.bf16.msrb.mxu0 %v9982_v27  ;;  %v11111_v23 = vld [vmem:[#allocation6 + $0xd14] sm:$0xf0]  ;;  %v9934_v53 = vor.u32 %v11079_v58, %v9933_v1  ;;  %v8639_v29 = vld [vmem:[#allocation6 + $0x1f8] sm:$0xf0]  ;;  %v10777_v50 = vld [vmem:[#allocation6 + $0x2ac] sm:$0xf] }
 0x5b1   :  { %v11143_v48 = vld [vmem:[#allocation6 + $0xe14] sm:$0xf0]  ;;  %v10062_v56 = vor.u32 %v11111_v23, %v10061_v13  ;;  %v8895_v27 = vld [vmem:[#allocation6 + $0x3f8] sm:$0xf0]  ;;  %v11307_v9 = vld [vmem:[#allocation1 + $0x36] sm:$0xff] }
 0x5b2   :  { %7361 = vmatpush.bf16.msra.mxu1 %v10110_v8  ;;  %7374 = vmatpush.bf16.msrb.mxu2 %v10238_v26  ;;  %v11175_v38 = vld [vmem:[#allocation6 + $0xf14] sm:$0xf0]  ;;  %v10190_v41 = vor.u32 %v11143_v48, %v10189_v19  ;;  %v8514_v8 = vor.u32 %v10721_v62, %v8511_v21  ;;  %v8642_v26 = vor.u32 %v10753_v24, %v8639_v29  ;;  %v8879_v0 = vld [vmem:[#allocation6 + $0x3d8] sm:$0xf0]  ;;  %v11308_v32 = vld [vmem:[#allocation1 + $0x2d] sm:$0xff] }
 0x5b3   :  { %7387 = vmatpush.bf16.msra.mxu3 %v10366_v34  ;;  %v10318_v45 = vor.u32 %v11175_v38, %v10317_v52  ;;  %v10749_v34 = vld [vmem:[#allocation6 + $0x1cc] sm:$0xf]  ;;  %v8898_v3 = vor.u32 %v10817_v25, %v8895_v27  ;;  %v8479_v61 = vld [vmem:[#allocation6 + $0xb8] sm:$0xf0]  ;;  %v8882_v43 = vor.u32 %v10813_v55, %v8879_v0 }
 0x5b4   :  { %7349 = vmatpush.bf16.msrb.mxu0 %v9966_v31  ;;  %v8626_v17 = vor.u32 %v10749_v34, %v8623_v10  ;;  %v10713_v31 = vld [vmem:[#allocation6 + $0xac] sm:$0xf]  ;;  %v8607_v11 = vld [vmem:[#allocation6 + $0x1b8] sm:$0xf0] }
 0x5b5   :  { %v10809_v60 = vld [vmem:[#allocation6 + $0x3ac] sm:$0xf]  ;;  %v8863_v2 = vld [vmem:[#allocation6 + $0x3b8] sm:$0xf0] }
 0x5b6   :  { %7362 = vmatpush.bf16.msra.mxu1 %v10094_v12  ;;  %7375 = vmatpush.bf16.msrb.mxu2 %v10222_v57  ;;  %v10745_v12 = vld [vmem:[#allocation6 + $0x1ac] sm:$0xf]  ;;  %v11306_v57 = vld [vmem:[#allocation1 + $0x24] sm:$0xff]  ;;  %v8866_v23 = vor.u32 %v10809_v60, %v8863_v2 }
 0x5b7   :  { %7388 = vmatpush.bf16.msra.mxu3 %v10350_v40  ;;  %v8735_v40 = vld [vmem:[#allocation6 + $0x2b8] sm:$0xf0]  ;;  %v8610_v1 = vor.u32 %v10745_v12, %v8607_v11  ;;  %v10741_v13 = vld [vmem:[#allocation6 + $0x18c] sm:$0xf] }
 0x5b8   :  { %7350 = vmatpush.bf16.msrb.mxu0 %v9950_v5  ;;  %v11309_v6 = vld [vmem:[#allocation1 + $0x3f] sm:$0xff]  ;;  %v8482_v5 = vor.u32 %v10713_v31, %v8479_v61  ;;  %v8738_v58 = vor.u32 %v10777_v50, %v8735_v40  ;;  %v10805_v38 = vld [vmem:[#allocation6 + $0x38c] sm:$0xf] }
 0x5b9   :  { %v8591_v19 = vld [vmem:[#allocation6 + $0x198] sm:$0xf0]  ;;  %v10705_v29 = vld [vmem:[#allocation6 + $0x6c] sm:$0xf] }
 0x5ba   :  { %7363 = vmatpush.bf16.msra.mxu1 %v10078_v14  ;;  %7376 = vmatpush.bf16.msrb.mxu2 %v10206_v16  ;;  %v10709_v14 = vld [vmem:[#allocation6 + $0x8c] sm:$0xf]  ;;  %v8463_v16 = vld [vmem:[#allocation6 + $0x98] sm:$0xf0]  ;;  %v8594_v33 = vor.u32 %v10741_v13, %v8591_v19 }
 0x5bb   :  { %7389 = vmatpush.bf16.msra.mxu3 %v10334_v59  ;;  %v10773_v59 = vld [vmem:[#allocation6 + $0x28c] sm:$0xf]  ;;  %v8719_v48 = vld [vmem:[#allocation6 + $0x298] sm:$0xf0]  ;;  %v8466_v21 = vor.u32 %v10709_v14, %v8463_v16 }
 0x5bc   :  { %7351 = vmatpush.bf16.msrb.mxu0 %v9934_v53  ;;  %v7145_v52 = vpop.f32.mrf.mxu0  ;;  %v8847_v20 = vld [vmem:[#allocation6 + $0x398] sm:$0xf0]  ;;  %v8722_v53 = vor.u32 %v10773_v59, %v8719_v48  ;;  %v10737_v63 = vld [vmem:[#allocation6 + $0x16c] sm:$0xf] }
 0x5bd   :  { %v7146_v62 = vadd.f32 %v7145_v52, %v12715_v54  ;;  %v8447_v28 = vld [vmem:[#allocation6 + $0x78] sm:$0xf0]  ;;  %v10769_v27 = vld [vmem:[#allocation6 + $0x26c] sm:$0xf] }
 0x5be   :  { %7364 = vmatpush.bf16.msra.mxu1 %v10062_v56  ;;  %7377 = vmatpush.bf16.msrb.mxu2 %v10190_v41  ;;  %v7158_v24 = vpop.f32.mrf.mxu1  ;;  %v8850_v56 = vor.u32 %v10805_v38, %v8847_v20  ;;  %v8575_v25 = vld [vmem:[#allocation6 + $0x178] sm:$0xf0]  ;;  %v10701_v37 = vld [vmem:[#allocation6 + $0x4c] sm:$0xf] }
 0x5bf   :  { %7390 = vmatpush.bf16.msra.mxu3 %v10318_v45  ;;  %7352 = vmatmul.bf16.vlgmr.msrb.gmra.mxu0 %v11306_v57  ;;  %v7159_v41 = vadd.f32 %v7158_v24, %v7146_v62  ;;  %v8703_v45 = vld [vmem:[#allocation6 + $0x278] sm:$0xf0]  ;;  %v8578_v54 = vor.u32 %v10737_v63, %v8575_v25  ;;  %v10765_v55 = vld [vmem:[#allocation6 + $0x24c] sm:$0xf] }
 0x5c0   :  { %7396 = vmatpush.bf16.msra.mxu0 %v8514_v8  ;;  %v10801_v8 = vld [vmem:[#allocation6 + $0x36c] sm:$0xf]  ;;  %v8706_v49 = vor.u32 %v10769_v27, %v8703_v45  ;;  %v8431_v34 = vld [vmem:[#allocation6 + $0x58] sm:$0xf0] }
 0x5c1   :  { %7378 = vmatmul.bf16.vlgmr.msrb.gmra.mxu2 %v11307_v9  ;;  %7365 = vmatmul.bf16.vlgmr.msra.gmra.mxu1 %v11308_v32  ;;  %v8559_v36 = vld [vmem:[#allocation6 + $0x158] sm:$0xf0]  ;;  %v8434_v12 = vor.u32 %v10701_v37, %v8431_v34  ;;  %v10697_v40 = vld [vmem:[#allocation6 + $0x2c] sm:$0xf] }
 0x5c2   :  { %7409 = vmatpush.bf16.msrb.mxu1 %v8642_v26  ;;  %7422 = vmatpush.bf16.msra.mxu2 %v8770_v15  ;;  %v8831_v26 = vld [vmem:[#allocation6 + $0x378] sm:$0xf0]  ;;  %v8450_v15 = vor.u32 %v10705_v29, %v8447_v28  ;;  %v10729_v32 = vld [vmem:[#allocation6 + $0x12c] sm:$0xf] }
 0x5c3   :  { %7435 = vmatpush.bf16.msrb.mxu3 %v8898_v3  ;;  %v10733_v3 = vld [vmem:[#allocation6 + $0x14c] sm:$0xf]  ;;  %v8834_v10 = vor.u32 %v10801_v8, %v8831_v26  ;;  %v8687_v0 = vld [vmem:[#allocation6 + $0x258] sm:$0xf0] }
 0x5c4   :  { %7391 = vmatmul.bf16.vlgmr.msra.gmra.mxu3 %v11309_v6  ;;  %7397 = vmatpush.bf16.msra.mxu0 %v8498_v30  ;;  %v7171_v35 = vpop.f32.mrf.mxu2  ;;  %v8815_v31 = vld [vmem:[#allocation6 + $0x358] sm:$0xf0]  ;;  %v7147_v61 = vpop.f32.mrf.mxu0  ;;  %v8562_v11 = vor.u32 %v10733_v3, %v8559_v36  ;;  %v8690_v50 = vor.u32 %v10765_v55, %v8687_v0  ;;  %v10761_v6 = vld [vmem:[#allocation6 + $0x22c] sm:$0xf] }
 0x5c5   :  { %v7172_v30 = vadd.f32 %v7171_v35, %v7159_v41  ;;  %v8415_v9 = vld [vmem:[#allocation6 + $0x38] sm:$0xf0]  ;;  %v10693_v16 = vld [vmem:[#allocation6 + $0xc] sm:$0xf] }
 0x5c6   :  { %7410 = vmatpush.bf16.msrb.mxu1 %v8626_v17  ;;  %7423 = vmatpush.bf16.msra.mxu2 %v8754_v39  ;;  %v10797_v39 = vld [vmem:[#allocation6 + $0x34c] sm:$0xf]  ;;  %v7160_v57 = vpop.f32.mrf.mxu1  ;;  %v8543_v2 = vld [vmem:[#allocation6 + $0x138] sm:$0xf0]  ;;  %v8418_v14 = vor.u32 %v10697_v40, %v8415_v9 }
 0x5c7   :  { %7436 = vmatpush.bf16.msrb.mxu3 %v8882_v43  ;;  %v7184_v17 = vpop.f32.mrf.mxu3  ;;  %v8818_v60 = vor.u32 %v10797_v39, %v8815_v31  ;;  %v8399_v13 = vld [vmem:[#allocation6 + $0x18] sm:$0xf0]  ;;  %v10725_v59 = vld [vmem:[#allocation6 + $0x10c] sm:$0xf] }
 0x5c8   :  { %7398 = vmatpush.bf16.msra.mxu0 %v8482_v5  ;;  %v12718_v43 = vadd.f32 %v7184_v17, %v7172_v30  ;;  %v8671_v5 = vld [vmem:[#allocation6 + $0x238] sm:$0xf0]  ;;  %v10757_v52 = vld [vmem:[#allocation6 + $0x20c] sm:$0xf]  ;;  %v8402_v63 = vor.u32 %v10693_v16, %v8399_v13 }
 0x5c9   :  { %v8674_v19 = vor.u32 %v10761_v6, %v8671_v5  ;;  %v8527_v48 = vld [vmem:[#allocation6 + $0x118] sm:$0xf0]  ;;  %v10789_v62 = vld [vmem:[#allocation6 + $0x30c] sm:$0xf] }
 0x5ca   :  { %7411 = vmatpush.bf16.msrb.mxu1 %v8610_v1  ;;  %7424 = vmatpush.bf16.msra.mxu2 %v8738_v58  ;;  %v10793_v1 = vld [vmem:[#allocation6 + $0x32c] sm:$0xf]  ;;  %v8799_v58 = vld [vmem:[#allocation6 + $0x338] sm:$0xf0]  ;;  %v8530_v27 = vor.u32 %v10725_v59, %v8527_v48 }
 0x5cb   :  { %7437 = vmatpush.bf16.msrb.mxu3 %v8866_v23  ;;  %v8546_v23 = vor.u32 %v10729_v32, %v8543_v2  ;;  %v8802_v38 = vor.u32 %v10793_v1, %v8799_v58  ;;  %v8655_v20 = vld [vmem:[#allocation6 + $0x218] sm:$0xf0]  ;;  %v10881_v29 = vld [vmem:[#allocation6 + $0x5ec] sm:$0xf] }
 0x5cc   :  { %7399 = vmatpush.bf16.msra.mxu0 %v8466_v21  ;;  %v8783_v21 = vld [vmem:[#allocation6 + $0x318] sm:$0xf0]  ;;  %v7173_v24 = vpop.f32.mrf.mxu2  ;;  %v10913_v41 = vld [vmem:[#allocation6 + $0x6ec] sm:$0xf]  ;;  %v8658_v45 = vor.u32 %v10757_v52, %v8655_v20 }
 0x5cd   :  { %v9279_v25 = vld [vmem:[#allocation6 + $0x6f8] sm:$0xf0]  ;;  %v10945_v8 = vld [vmem:[#allocation6 + $0x7ec] sm:$0xf] }
 0x5ce   :  { %7412 = vmatpush.bf16.msrb.mxu1 %v8594_v33  ;;  %7425 = vmatpush.bf16.msra.mxu2 %v8722_v53  ;;  %v10849_v33 = vld [vmem:[#allocation6 + $0x4ec] sm:$0xf]  ;;  %v9023_v53 = vld [vmem:[#allocation6 + $0x4f8] sm:$0xf0]  ;;  %v9282_v37 = vor.u32 %v10913_v41, %v9279_v25 }
 0x5cf   :  { %7438 = vmatpush.bf16.msrb.mxu3 %v8850_v56  ;;  %v7186_v28 = vpop.f32.mrf.mxu3  ;;  %v9151_v56 = vld [vmem:[#allocation6 + $0x5f8] sm:$0xf0]  ;;  %v10845_v34 = vld [vmem:[#allocation6 + $0x4cc] sm:$0xf] }
 0x5d0   :  { %7400 = vmatpush.bf16.msra.mxu0 %v8450_v15  ;;  %v9407_v26 = vld [vmem:[#allocation6 + $0x7f8] sm:$0xf0]  ;;  %v8786_v15 = vor.u32 %v10789_v62, %v8783_v21  ;;  %v10909_v55 = vld [vmem:[#allocation6 + $0x6cc] sm:$0xf] }
 0x5d1   :  { %v9007_v3 = vld [vmem:[#allocation6 + $0x4d8] sm:$0xf0]  ;;  %v9410_v35 = vor.u32 %v10945_v8, %v9407_v26  ;;  %v10941_v30 = vld [vmem:[#allocation6 + $0x7cc] sm:$0xf] }
 0x5d2   :  { %7413 = vmatpush.bf16.msrb.mxu1 %v8578_v54  ;;  %7426 = vmatpush.bf16.msra.mxu2 %v8706_v49  ;;  %v9026_v54 = vor.u32 %v10849_v33, %v9023_v53  ;;  %v9154_v49 = vor.u32 %v10881_v29, %v9151_v56  ;;  %v9135_v36 = vld [vmem:[#allocation6 + $0x5d8] sm:$0xf0]  ;;  %v9010_v39 = vor.u32 %v10845_v34, %v9007_v3  ;;  %v10905_v9 = vld [vmem:[#allocation6 + $0x6ac] sm:$0xf] }
 0x5d3   :  { %7439 = vmatpush.bf16.msrb.mxu3 %v8834_v10  ;;  %v10877_v10 = vld [vmem:[#allocation6 + $0x5cc] sm:$0xf]  ;;  %v9263_v0 = vld [vmem:[#allocation6 + $0x6d8] sm:$0xf0] }
 0x5d4   :  { %7401 = vmatpush.bf16.msra.mxu0 %v8434_v12  ;;  %v9391_v17 = vld [vmem:[#allocation6 + $0x7d8] sm:$0xf0]  ;;  %v9138_v31 = vor.u32 %v10877_v10, %v9135_v36  ;;  %v9266_v61 = vor.u32 %v10909_v55, %v9263_v0  ;;  %v10841_v12 = vld [vmem:[#allocation6 + $0x4ac] sm:$0xf] }
 0x5d5   :  { %v8991_v57 = vld [vmem:[#allocation6 + $0x4b8] sm:$0xf0]  ;;  %v10837_v5 = vld [vmem:[#allocation6 + $0x48c] sm:$0xf] }
 0x5d6   :  { %7414 = vmatpush.bf16.msrb.mxu1 %v8562_v11  ;;  %7427 = vmatpush.bf16.msra.mxu2 %v8690_v50  ;;  %v10873_v11 = vld [vmem:[#allocation6 + $0x5ac] sm:$0xf]  ;;  %v9394_v50 = vor.u32 %v10941_v30, %v9391_v17  ;;  %v9119_v40 = vld [vmem:[#allocation6 + $0x5b8] sm:$0xf0]  ;;  %v8994_v6 = vor.u32 %v10841_v12, %v8991_v57 }
 0x5d7   :  { %7440 = vmatpush.bf16.msrb.mxu3 %v8818_v60  ;;  %v9247_v32 = vld [vmem:[#allocation6 + $0x6b8] sm:$0xf0]  ;;  %v10937_v60 = vld [vmem:[#allocation6 + $0x7ac] sm:$0xf]  ;;  %v9122_v1 = vor.u32 %v10873_v11, %v9119_v40 }
 0x5d8   :  { %7402 = vmatpush.bf16.msra.mxu0 %v8418_v14  ;;  %v9375_v2 = vld [vmem:[#allocation6 + $0x7b8] sm:$0xf0]  ;;  %v9250_v58 = vor.u32 %v10905_v9, %v9247_v32  ;;  %v10869_v16 = vld [vmem:[#allocation6 + $0x58c] sm:$0xf] }
 0x5d9   :  { %v8975_v14 = vld [vmem:[#allocation6 + $0x498] sm:$0xf0]  ;;  %v10901_v59 = vld [vmem:[#allocation6 + $0x68c] sm:$0xf] }
 0x5da   :  { %7415 = vmatpush.bf16.msrb.mxu1 %v8546_v23  ;;  %7428 = vmatpush.bf16.msra.mxu2 %v8674_v19  ;;  %v11310_v13 = vld [vmem:[#allocation19] ss:$4 sm:$0xf]  ;;  %v10933_v48 = vld [vmem:[#allocation6 + $0x78c] sm:$0xf]  ;;  %v8978_v52 = vor.u32 %v10837_v5, %v8975_v14 }
 0x5db   :  { %7441 = vmatpush.bf16.msrb.mxu3 %v8802_v38  ;;  %v4170_v23 = vperm.slane %v11310_v13, 2  ;;  %v9103_v19 = vld [vmem:[#allocation6 + $0x598] sm:$0xf0]  ;;  %v10833_v62 = vld [vmem:[#allocation6 + $0x46c] sm:$0xf] }
 0x5dc   :  { %7403 = vmatpush.bf16.msra.mxu0 %v8402_v63  ;;  %v7197_v38 = vpop.f32.mrf.mxu0  ;;  %v8959_v21 = vld [vmem:[#allocation6 + $0x478] sm:$0xf0]  ;;  %v10865_v24 = vld [vmem:[#allocation6 + $0x56c] sm:$0xf] }
 0x5dd   :  { %v7198_v33 = vadd.f32 %v7197_v38, %v4170_v23  ;;  %v9087_v28 = vld [vmem:[#allocation6 + $0x578] sm:$0xf0]  ;;  %v10897_v63 = vld [vmem:[#allocation6 + $0x66c] sm:$0xf] }
 0x5de   :  { %7416 = vmatpush.bf16.msrb.mxu1 %v8530_v27  ;;  %7429 = vmatpush.bf16.msra.mxu2 %v8658_v45  ;;  %v7210_v53 = vpop.f32.mrf.mxu1  ;;  %v9215_v56 = vld [vmem:[#allocation6 + $0x678] sm:$0xf0]  ;;  %v10929_v41 = vld [vmem:[#allocation6 + $0x76c] sm:$0xf]  ;;  %v8962_v45 = vor.u32 %v10833_v62, %v8959_v21  ;;  %v9090_v8 = vor.u32 %v10865_v24, %v9087_v28 }
 0x5df   :  { %7442 = vmatpush.bf16.msrb.mxu3 %v8786_v15  ;;  %7404 = vmatmul.bf16.vlgmr.msra.gmra.mxu0 %v12663_v47  ;;  %v9231_v47 = vld [vmem:[#allocation6 + $0x698] sm:$0xf0]  ;;  %v7211_v27 = vadd.f32 %v7210_v53, %v7198_v33  ;;  %v9218_v26 = vor.u32 %v10897_v63, %v9215_v56  ;;  %v10829_v15 = vld [vmem:[#allocation6 + $0x44c] sm:$0xf] }
 0x5e0   :  { %7448 = vmatpush.bf16.msrb.mxu0 %v9026_v54  ;;  %v9234_v20 = vor.u32 %v10901_v59, %v9231_v47  ;;  %v9343_v25 = vld [vmem:[#allocation6 + $0x778] sm:$0xf0]  ;;  %v10893_v10 = vld [vmem:[#allocation6 + $0x64c] sm:$0xf] }
 0x5e1   :  { %7430 = vmatmul.bf16.vlgmr.msra.gmra.mxu2 %v12661_v42  ;;  %7417 = vmatmul.bf16.vlgmr.msrb.gmra.mxu1 %v12667_v51  ;;  %v9378_v42 = vor.u32 %v10937_v60, %v9375_v2  ;;  %v9106_v51 = vor.u32 %v10869_v16, %v9103_v19  ;;  %v8943_v54 = vld [vmem:[#allocation6 + $0x458] sm:$0xf0]  ;;  %v9346_v34 = vor.u32 %v10929_v41, %v9343_v25  ;;  %v10925_v0 = vld [vmem:[#allocation6 + $0x74c] sm:$0xf] }
 0x5e2   :  { %7461 = vmatpush.bf16.msra.mxu1 %v9154_v49  ;;  %7474 = vmatpush.bf16.msrb.mxu2 %v9282_v37  ;;  %v10861_v49 = vld [vmem:[#allocation6 + $0x54c] sm:$0xf]  ;;  %v9071_v3 = vld [vmem:[#allocation6 + $0x558] sm:$0xf0]  ;;  %v8946_v17 = vor.u32 %v10829_v15, %v8943_v54 }
 0x5e3   :  { %7487 = vmatpush.bf16.msra.mxu3 %v9410_v35  ;;  %v9199_v35 = vld [vmem:[#allocation6 + $0x658] sm:$0xf0]  ;;  %v10825_v57 = vld [vmem:[#allocation6 + $0x42c] sm:$0xf] }
 0x5e4   :  { %7443 = vmatmul.bf16.vlgmr.msrb.gmra.mxu3 %v12665_v46  ;;  %7449 = vmatpush.bf16.msrb.mxu0 %v9010_v39  ;;  %v9359_v46 = vld [vmem:[#allocation6 + $0x798] sm:$0xf0]  ;;  %v7223_v37 = vpop.f32.mrf.mxu2  ;;  %v9202_v12 = vor.u32 %v10893_v10, %v9199_v35  ;;  %v10889_v60 = vld [vmem:[#allocation6 + $0x62c] sm:$0xf] }
 0x5e5   :  { %v9362_v29 = vor.u32 %v10933_v48, %v9359_v46  ;;  %v7224_v36 = vadd.f32 %v7223_v37, %v7211_v27  ;;  %v9327_v30 = vld [vmem:[#allocation6 + $0x758] sm:$0xf0]  ;;  %v10853_v23 = vld [vmem:[#allocation6 + $0x50c] sm:$0xf] }
 0x5e6   :  { %7462 = vmatpush.bf16.msra.mxu1 %v9138_v31  ;;  %7475 = vmatpush.bf16.msrb.mxu2 %v9266_v61  ;;  %v7199_v31 = vpop.f32.mrf.mxu0  ;;  %v9074_v61 = vor.u32 %v10861_v49, %v9071_v3  ;;  %v8927_v11 = vld [vmem:[#allocation6 + $0x438] sm:$0xf0]  ;;  %v7212_v40 = vpop.f32.mrf.mxu1  ;;  %v9330_v9 = vor.u32 %v10925_v0, %v9327_v30  ;;  %v10885_v19 = vld [vmem:[#allocation6 + $0x60c] sm:$0xf] }
 0x5e7   :  { %7488 = vmatpush.bf16.msra.mxu3 %v9394_v50  ;;  %v7236_v55 = vpop.f32.mrf.mxu3  ;;  %v10857_v50 = vld [vmem:[#allocation6 + $0x52c] sm:$0xf]  ;;  %v9055_v32 = vld [vmem:[#allocation6 + $0x538] sm:$0xf0] }
 0x5e8   :  { %7450 = vmatpush.bf16.msrb.mxu0 %v8994_v6  ;;  %v12724_v39 = vadd.f32 %v7236_v55, %v7224_v36  ;;  %v9183_v2 = vld [vmem:[#allocation6 + $0x638] sm:$0xf0]  ;;  %v10921_v6 = vld [vmem:[#allocation6 + $0x72c] sm:$0xf]  ;;  %v9058_v16 = vor.u32 %v10857_v50, %v9055_v32 }
 0x5e9   :  { %v9311_v5 = vld [vmem:[#allocation6 + $0x738] sm:$0xf0]  ;;  %v9186_v13 = vor.u32 %v10889_v60, %v9183_v2  ;;  %v10917_v46 = vld [vmem:[#allocation6 + $0x70c] sm:$0xf] }
 0x5ea   :  { %7463 = vmatpush.bf16.msra.mxu1 %v9122_v1  ;;  %7476 = vmatpush.bf16.msrb.mxu2 %v9250_v58  ;;  %v8930_v1 = vor.u32 %v10825_v57, %v8927_v11  ;;  %v10821_v58 = vld [vmem:[#allocation6 + $0x40c] sm:$0xf]  ;;  %v8911_v14 = vld [vmem:[#allocation6 + $0x418] sm:$0xf0]  ;;  %v9314_v47 = vor.u32 %v10921_v6, %v9311_v5 }
 0x5eb   :  { %7489 = vmatpush.bf16.msra.mxu3 %v9378_v42  ;;  %v9039_v42 = vld [vmem:[#allocation6 + $0x518] sm:$0xf0]  ;;  %v11009_v62 = vld [vmem:[#allocation6 + $0x9ec] sm:$0xf]  ;;  %v8914_v21 = vor.u32 %v10821_v58, %v8911_v14 }
 0x5ec   :  { %7451 = vmatpush.bf16.msrb.mxu0 %v8978_v52  ;;  %v7225_v59 = vpop.f32.mrf.mxu2  ;;  %v9167_v48 = vld [vmem:[#allocation6 + $0x618] sm:$0xf0]  ;;  %v11041_v33 = vld [vmem:[#allocation6 + $0xaec] sm:$0xf] }
 0x5ed   :  { %v9295_v52 = vld [vmem:[#allocation6 + $0x718] sm:$0xf0]  ;;  %v9170_v28 = vor.u32 %v10885_v19, %v9167_v48  ;;  %v11073_v63 = vld [vmem:[#allocation6 + $0xbec] sm:$0xf] }
 0x5ee   :  { %7464 = vmatpush.bf16.msra.mxu1 %v9106_v51  ;;  %7477 = vmatpush.bf16.msrb.mxu2 %v9234_v20  ;;  %v10977_v51 = vld [vmem:[#allocation6 + $0x8ec] sm:$0xf]  ;;  %v9535_v20 = vld [vmem:[#allocation6 + $0x8f8] sm:$0xf0]  ;;  %v9298_v41 = vor.u32 %v10917_v46, %v9295_v52 }
 0x5ef   :  { %7490 = vmatpush.bf16.msra.mxu3 %v9362_v29  ;;  %v7238_v38 = vpop.f32.mrf.mxu3  ;;  %v9663_v24 = vld [vmem:[#allocation6 + $0x9f8] sm:$0xf0]  ;;  %v9042_v29 = vor.u32 %v10853_v23, %v9039_v42  ;;  %v9538_v25 = vor.u32 %v10977_v51, %v9535_v20  ;;  %v11005_v15 = vld [vmem:[#allocation6 + $0x9cc] sm:$0xf] }
 0x5f0   :  { %7452 = vmatpush.bf16.msrb.mxu0 %v8962_v45  ;;  %v9791_v53 = vld [vmem:[#allocation6 + $0xaf8] sm:$0xf0]  ;;  %v9666_v27 = vor.u32 %v11009_v62, %v9663_v24  ;;  %v11037_v37 = vld [vmem:[#allocation6 + $0xacc] sm:$0xf] }
 0x5f1   :  { %v9919_v56 = vld [vmem:[#allocation6 + $0xbf8] sm:$0xf0]  ;;  %v9794_v45 = vor.u32 %v11041_v33, %v9791_v53  ;;  %v11069_v3 = vld [vmem:[#allocation6 + $0xbcc] sm:$0xf] }
 0x5f2   :  { %7465 = vmatpush.bf16.msra.mxu1 %v9090_v8  ;;  %7478 = vmatpush.bf16.msrb.mxu2 %v9218_v26  ;;  %v10973_v8 = vld [vmem:[#allocation6 + $0x8cc] sm:$0xf]  ;;  %v9519_v26 = vld [vmem:[#allocation6 + $0x8d8] sm:$0xf0]  ;;  %v9922_v54 = vor.u32 %v11073_v63, %v9919_v56 }
 0x5f3   :  { %7491 = vmatpush.bf16.msra.mxu3 %v9346_v34  ;;  %v9647_v49 = vld [vmem:[#allocation6 + $0x9d8] sm:$0xf0]  ;;  %v9522_v35 = vor.u32 %v10973_v8, %v9519_v26  ;;  %v10969_v0 = vld [vmem:[#allocation6 + $0x8ac] sm:$0xf] }
 0x5f4   :  { %7453 = vmatpush.bf16.msrb.mxu0 %v8946_v17  ;;  %v9775_v34 = vld [vmem:[#allocation6 + $0xad8] sm:$0xf0]  ;;  %v9650_v36 = vor.u32 %v11005_v15, %v9647_v49  ;;  %v11001_v17 = vld [vmem:[#allocation6 + $0x9ac] sm:$0xf] }
 0x5f5   :  { %v9903_v10 = vld [vmem:[#allocation6 + $0xbd8] sm:$0xf0]  ;;  %v9778_v55 = vor.u32 %v11037_v37, %v9775_v34  ;;  %v11065_v11 = vld [vmem:[#allocation6 + $0xbac] sm:$0xf] }
 0x5f6   :  { %7466 = vmatpush.bf16.msra.mxu1 %v9074_v61  ;;  %7479 = vmatpush.bf16.msrb.mxu2 %v9202_v12  ;;  %v9503_v30 = vld [vmem:[#allocation6 + $0x8b8] sm:$0xf0]  ;;  %v9906_v31 = vor.u32 %v11069_v3, %v9903_v10  ;;  %v11033_v12 = vld [vmem:[#allocation6 + $0xaac] sm:$0xf] }
 0x5f7   :  { %7492 = vmatpush.bf16.msra.mxu3 %v9330_v9  ;;  %v9631_v61 = vld [vmem:[#allocation6 + $0x9b8] sm:$0xf0]  ;;  %v9506_v40 = vor.u32 %v10969_v0, %v9503_v30  ;;  %v10965_v60 = vld [vmem:[#allocation6 + $0x88c] sm:$0xf] }
 0x5f8   :  { %7454 = vmatpush.bf16.msrb.mxu0 %v8930_v1  ;;  %v9759_v57 = vld [vmem:[#allocation6 + $0xab8] sm:$0xf0]  ;;  %v9634_v9 = vor.u32 %v11001_v17, %v9631_v61  ;;  %v11029_v1 = vld [vmem:[#allocation6 + $0xa8c] sm:$0xf] }
 0x5f9   :  { %v9887_v50 = vld [vmem:[#allocation6 + $0xbb8] sm:$0xf0]  ;;  %v9762_v32 = vor.u32 %v11033_v12, %v9759_v57  ;;  %v11061_v14 = vld [vmem:[#allocation6 + $0xb8c] sm:$0xf] }
 0x5fa   :  { %7467 = vmatpush.bf16.msra.mxu1 %v9058_v16  ;;  %7480 = vmatpush.bf16.msrb.mxu2 %v9186_v13  ;;  %v9487_v2 = vld [vmem:[#allocation6 + $0x898] sm:$0xf0]  ;;  %v9890_v6 = vor.u32 %v11065_v11, %v9887_v50  ;;  %v10961_v23 = vld [vmem:[#allocation6 + $0x86c] sm:$0xf] }
 0x5fb   :  { %7493 = vmatpush.bf16.msra.mxu3 %v9314_v47  ;;  %v9615_v5 = vld [vmem:[#allocation6 + $0x998] sm:$0xf0]  ;;  %v10993_v19 = vld [vmem:[#allocation6 + $0x96c] sm:$0xf] }
 0x5fc   :  { %7455 = vmatpush.bf16.msrb.mxu0 %v8914_v21  ;;  %v9743_v58 = vld [vmem:[#allocation6 + $0xa98] sm:$0xf0]  ;;  %v12730_v16 = vpop.f32.mrf.mxu0  ;;  %v11025_v46 = vld [vmem:[#allocation6 + $0xa6c] sm:$0xf] }
 0x5fd   :  { %v9746_v13 = vor.u32 %v11029_v1, %v9743_v58  ;;  %v9471_v42 = vld [vmem:[#allocation6 + $0x878] sm:$0xf0]  ;;  %v11057_v38 = vld [vmem:[#allocation6 + $0xb6c] sm:$0xf] }
 0x5fe   :  { %7468 = vmatpush.bf16.msra.mxu1 %v9042_v29  ;;  %7481 = vmatpush.bf16.msrb.mxu2 %v9170_v28  ;;  %v12732_v59 = vpop.f32.mrf.mxu1  ;;  %v9599_v48 = vld [vmem:[#allocation6 + $0x978] sm:$0xf0]  ;;  %v9474_v20 = vor.u32 %v10961_v23, %v9471_v42  ;;  %v10957_v24 = vld [vmem:[#allocation6 + $0x84c] sm:$0xf] }
 0x5ff   :  { %7494 = vmatpush.bf16.msra.mxu3 %v9298_v41  ;;  %7456 = vmatmul.bf16.vlgmr.msrb.gmra.mxu0 %v12675_v4  ;;  %v9871_v4 = vld [vmem:[#allocation6 + $0xb98] sm:$0xf0]  ;;  %v9602_v62 = vor.u32 %v10993_v19, %v9599_v48  ;;  %v10989_v53 = vld [vmem:[#allocation6 + $0x94c] sm:$0xf] }
 0x600   :  { %7500 = vmatpush.bf16.msra.mxu0 %v9538_v25  ;;  %v9874_v47 = vor.u32 %v11061_v14, %v9871_v4  ;;  %v9727_v52 = vld [vmem:[#allocation6 + $0xa78] sm:$0xf0]  ;;  %v11021_v56 = vld [vmem:[#allocation6 + $0xa4c] sm:$0xf] }
 0x601   :  { %7482 = vmatmul.bf16.vlgmr.msrb.gmra.mxu2 %v12673_v44  ;;  %7469 = vmatmul.bf16.vlgmr.msra.gmra.mxu1 %v12679_v18  ;;  %v10997_v44 = vld [vmem:[#allocation6 + $0x98c] sm:$0xf]  ;;  %v9855_v51 = vld [vmem:[#allocation6 + $0xb78] sm:$0xf0]  ;;  %v9730_v21 = vor.u32 %v11025_v46, %v9727_v52 }
 0x602   :  { %7513 = vmatpush.bf16.msrb.mxu1 %v9666_v27  ;;  %7526 = vmatpush.bf16.msra.mxu2 %v9794_v45  ;;  %v9618_v18 = vor.u32 %v10997_v44, %v9615_v5  ;;  %v9455_v33 = vld [vmem:[#allocation6 + $0x858] sm:$0xf0]  ;;  %v9858_v28 = vor.u32 %v11057_v38, %v9855_v51  ;;  %v11053_v27 = vld [vmem:[#allocation6 + $0xb4c] sm:$0xf] }
 0x603   :  { %7539 = vmatpush.bf16.msrb.mxu3 %v9922_v54  ;;  %v9583_v63 = vld [vmem:[#allocation6 + $0x958] sm:$0xf0]  ;;  %v9458_v8 = vor.u32 %v10957_v24, %v9455_v33  ;;  %v10953_v49 = vld [vmem:[#allocation6 + $0x82c] sm:$0xf] }
 0x604   :  { %7495 = vmatmul.bf16.vlgmr.msra.gmra.mxu3 %v12677_v22  ;;  %7501 = vmatpush.bf16.msra.mxu0 %v9522_v35  ;;  %v9490_v22 = vor.u32 %v10965_v60, %v9487_v2  ;;  %v12734_v29 = vpop.f32.mrf.mxu2  ;;  %v9711_v41 = vld [vmem:[#allocation6 + $0xa58] sm:$0xf0]  ;;  %v7251_v26 = vpop.f32.mrf.mxu0  ;;  %v9586_v15 = vor.u32 %v10989_v53, %v9583_v63  ;;  %v10985_v34 = vld [vmem:[#allocation6 + $0x92c] sm:$0xf] }
 0x605   :  { %v9839_v45 = vld [vmem:[#allocation6 + $0xb58] sm:$0xf0]  ;;  %v9714_v54 = vor.u32 %v11021_v56, %v9711_v41  ;;  %v11049_v0 = vld [vmem:[#allocation6 + $0xb2c] sm:$0xf] }
 0x606   :  { %7514 = vmatpush.bf16.msrb.mxu1 %v9650_v36  ;;  %7527 = vmatpush.bf16.msra.mxu2 %v9778_v55  ;;  %v9439_v37 = vld [vmem:[#allocation6 + $0x838] sm:$0xf0]  ;;  %v7264_v3 = vpop.f32.mrf.mxu1  ;;  %v9842_v10 = vor.u32 %v11053_v27, %v9839_v45  ;;  %v11017_v36 = vld [vmem:[#allocation6 + $0xa2c] sm:$0xf] }
 0x607   :  { %7540 = vmatpush.bf16.msrb.mxu3 %v9906_v31  ;;  %v12736_v25 = vpop.f32.mrf.mxu3  ;;  %v9567_v35 = vld [vmem:[#allocation6 + $0x938] sm:$0xf0]  ;;  %v9442_v17 = vor.u32 %v10953_v49, %v9439_v37  ;;  %v10949_v31 = vld [vmem:[#allocation6 + $0x80c] sm:$0xf]  ;;  %v11313_v3 = vld [vmem:[#allocation1 + $0x9] sm:$0xff] }
 0x608   :  { %7502 = vmatpush.bf16.msra.mxu0 %v9506_v40  ;;  %v9695_v55 = vld [vmem:[#allocation6 + $0xa38] sm:$0xf0]  ;;  %v9570_v12 = vor.u32 %v10985_v34, %v9567_v35  ;;  %v10981_v11 = vld [vmem:[#allocation6 + $0x90c] sm:$0xf] }
 0x609   :  { %v9823_v30 = vld [vmem:[#allocation6 + $0xb38] sm:$0xf0]  ;;  %v9698_v57 = vor.u32 %v11017_v36, %v9695_v55  ;;  %v11013_v40 = vld [vmem:[#allocation6 + $0xa0c] sm:$0xf]  ;;  %v11314_v36 = vld [vmem:[#allocation1 + $0x1b] sm:$0xff] }
 0x60a   :  { %7515 = vmatpush.bf16.msrb.mxu1 %v9634_v9  ;;  %7528 = vmatpush.bf16.msra.mxu2 %v9762_v32  ;;  %v9423_v61 = vld [vmem:[#allocation6 + $0x818] sm:$0xf0]  ;;  %v9826_v32 = vor.u32 %v11049_v0, %v9823_v30  ;;  %v11045_v2 = vld [vmem:[#allocation6 + $0xb0c] sm:$0xf] }
 0x60b   :  { %7541 = vmatpush.bf16.msrb.mxu3 %v9890_v6  ;;  %v9551_v50 = vld [vmem:[#allocation6 + $0x918] sm:$0xf0]  ;;  %v11105_v5 = vld [vmem:[#allocation6 + $0xcec] sm:$0xf]  ;;  %v9426_v14 = vor.u32 %v10949_v31, %v9423_v61 }
 0x60c   :  { %7503 = vmatpush.bf16.msra.mxu0 %v9490_v22  ;;  %v7277_v9 = vpop.f32.mrf.mxu2  ;;  %v9679_v60 = vld [vmem:[#allocation6 + $0xa18] sm:$0xf0]  ;;  %v11137_v58 = vld [vmem:[#allocation6 + $0xdec] sm:$0xf] }
 0x60d   :  { %v9807_v44 = vld [vmem:[#allocation6 + $0xb18] sm:$0xf0]  ;;  %v11169_v22 = vld [vmem:[#allocation6 + $0xeec] sm:$0xf]  ;;  %v9682_v23 = vor.u32 %v11013_v40, %v9679_v60 }
 0x60e   :  { %7516 = vmatpush.bf16.msrb.mxu1 %v9618_v18  ;;  %7529 = vmatpush.bf16.msra.mxu2 %v9746_v13  ;;  %v10047_v1 = vld [vmem:[#allocation6 + $0xcf8] sm:$0xf0]  ;;  %v9554_v13 = vor.u32 %v10981_v11, %v9551_v50  ;;  %v11201_v42 = vld [vmem:[#allocation6 + $0xfec] sm:$0xf] }
 0x60f   :  { %7542 = vmatpush.bf16.msrb.mxu3 %v9874_v47  ;;  %v7290_v6 = vpop.f32.mrf.mxu3  ;;  %v10175_v4 = vld [vmem:[#allocation6 + $0xdf8] sm:$0xf0]  ;;  %v9810_v47 = vor.u32 %v11045_v2, %v9807_v44  ;;  %v10050_v48 = vor.u32 %v11105_v5, %v10047_v1  ;;  %v11101_v38 = vld [vmem:[#allocation6 + $0xccc] sm:$0xf] }
 0x610   :  { %7504 = vmatpush.bf16.msra.mxu0 %v9474_v20  ;;  %v10303_v18 = vld [vmem:[#allocation6 + $0xef8] sm:$0xf0]  ;;  %v10178_v46 = vor.u32 %v11137_v58, %v10175_v4  ;;  %v11133_v20 = vld [vmem:[#allocation6 + $0xdcc] sm:$0xf] }
 0x611   :  { %v10431_v19 = vld [vmem:[#allocation6 + $0xff8] sm:$0xf0]  ;;  %v10306_v52 = vor.u32 %v11169_v22, %v10303_v18  ;;  %v11165_v24 = vld [vmem:[#allocation6 + $0xecc] sm:$0xf] }
 0x612   :  { %7517 = vmatpush.bf16.msrb.mxu1 %v9602_v62  ;;  %7530 = vmatpush.bf16.msra.mxu2 %v9730_v21  ;;  %v10031_v51 = vld [vmem:[#allocation6 + $0xcd8] sm:$0xf0]  ;;  %v10434_v62 = vor.u32 %v11201_v42, %v10431_v19  ;;  %v11197_v53 = vld [vmem:[#allocation6 + $0xfcc] sm:$0xf]  ;;  %v7250_v19 = vadd.f32 %v12730_v16, %v12724_v39 }
 0x613   :  { %7543 = vmatpush.bf16.msrb.mxu3 %v9858_v28  ;;  %v10159_v21 = vld [vmem:[#allocation6 + $0xdd8] sm:$0xf0]  ;;  %v10034_v63 = vor.u32 %v11101_v38, %v10031_v51  ;;  %v11097_v27 = vld [vmem:[#allocation6 + $0xcac] sm:$0xf] }
 0x614   :  { %7505 = vmatpush.bf16.msra.mxu0 %v9458_v8  ;;  %v10287_v33 = vld [vmem:[#allocation6 + $0xed8] sm:$0xf0]  ;;  %v10162_v56 = vor.u32 %v11133_v20, %v10159_v21  ;;  %v11129_v8 = vld [vmem:[#allocation6 + $0xdac] sm:$0xf] }
 0x615   :  { %v10415_v28 = vld [vmem:[#allocation6 + $0xfd8] sm:$0xf0]  ;;  %v10290_v41 = vor.u32 %v11165_v24, %v10287_v33  ;;  %v11161_v49 = vld [vmem:[#allocation6 + $0xeac] sm:$0xf] }
 0x616   :  { %7518 = vmatpush.bf16.msrb.mxu1 %v9586_v15  ;;  %7531 = vmatpush.bf16.msra.mxu2 %v9714_v54  ;;  %v10015_v45 = vld [vmem:[#allocation6 + $0xcb8] sm:$0xf0]  ;;  %v10418_v15 = vor.u32 %v11197_v53, %v10415_v28  ;;  %v11312_v34 = vld [vmem:[#allocation1 + $0x12] sm:$0xff] }
 0x617   :  { %7544 = vmatpush.bf16.msrb.mxu3 %v9842_v10  ;;  %v11311_v26 = vld [vmem:[#allocation1] sm:$0xff]  ;;  %v11193_v10 = vld [vmem:[#allocation6 + $0xfac] sm:$0xf]  ;;  %v10018_v55 = vor.u32 %v11097_v27, %v10015_v45 }
 0x618   :  { %7506 = vmatpush.bf16.msra.mxu0 %v9442_v17  ;;  %v10143_v54 = vld [vmem:[#allocation6 + $0xdb8] sm:$0xf0]  ;;  %v11093_v17 = vld [vmem:[#allocation6 + $0xc8c] sm:$0xf] }
 0x619   :  { %v10271_v37 = vld [vmem:[#allocation6 + $0xeb8] sm:$0xf0]  ;;  %v10146_v0 = vor.u32 %v11129_v8, %v10143_v54  ;;  %v11125_v61 = vld [vmem:[#allocation6 + $0xd8c] sm:$0xf] }
 0x61a   :  { %7519 = vmatpush.bf16.msrb.mxu1 %v9570_v12  ;;  %7532 = vmatpush.bf16.msra.mxu2 %v9698_v57  ;;  %v10399_v35 = vld [vmem:[#allocation6 + $0xfb8] sm:$0xf0]  ;;  %v10274_v30 = vor.u32 %v11161_v49, %v10271_v37  ;;  %v11157_v11 = vld [vmem:[#allocation6 + $0xe8c] sm:$0xf] }
 0x61b   :  { %7545 = vmatpush.bf16.msrb.mxu3 %v9826_v32  ;;  %v9999_v31 = vld [vmem:[#allocation6 + $0xc98] sm:$0xf0]  ;;  %v10402_v12 = vor.u32 %v11193_v10, %v10399_v35  ;;  %v11189_v9 = vld [vmem:[#allocation6 + $0xf8c] sm:$0xf] }
 0x61c   :  { %7507 = vmatpush.bf16.msra.mxu0 %v9426_v14  ;;  %v10127_v57 = vld [vmem:[#allocation6 + $0xd98] sm:$0xf0]  ;;  %v12738_v40 = vpop.f32.mrf.mxu0  ;;  %v10002_v60 = vor.u32 %v11093_v17, %v9999_v31  ;;  %v11089_v5 = vld [vmem:[#allocation6 + $0xc6c] sm:$0xf] }
 0x61d   :  { %v10255_v50 = vld [vmem:[#allocation6 + $0xe98] sm:$0xf0]  ;;  %v10130_v44 = vor.u32 %v11125_v61, %v10127_v57  ;;  %v11121_v58 = vld [vmem:[#allocation6 + $0xd6c] sm:$0xf] }
 0x61e   :  { %7520 = vmatpush.bf16.msrb.mxu1 %v9554_v13  ;;  %7533 = vmatpush.bf16.msra.mxu2 %v9682_v23  ;;  %v10383_v32 = vld [vmem:[#allocation6 + $0xf98] sm:$0xf0]  ;;  %v12740_v2 = vpop.f32.mrf.mxu1  ;;  %v10258_v6 = vor.u32 %v11157_v11, %v10255_v50  ;;  %v11153_v22 = vld [vmem:[#allocation6 + $0xe6c] sm:$0xf] }
 0x61f   :  { %7546 = vmatpush.bf16.msrb.mxu3 %v9810_v47  ;;  %7508 = vmatmul.bf16.vlgmr.msra.gmra.mxu0 %v11311_v26  ;;  %v9983_v1 = vld [vmem:[#allocation6 + $0xc78] sm:$0xf0]  ;;  %v10386_v14 = vor.u32 %v11189_v9, %v10383_v32  ;;  %v11185_v13 = vld [vmem:[#allocation6 + $0xf6c] sm:$0xf]  ;;  %v11219_v32 = vld [vmem:[#allocation20 + $0x74] sm:$0xf0] }
 0x620   :  { %7552 = vmatpush.bf16.msrb.mxu0 %v10050_v48  ;;  %v10111_v4 = vld [vmem:[#allocation6 + $0xd78] sm:$0xf0]  ;;  %v9986_v42 = vor.u32 %v11089_v5, %v9983_v1  ;;  %v11117_v38 = vld [vmem:[#allocation6 + $0xd4c] sm:$0xf]  ;;  %v11251_v1 = vld [vmem:[#allocation20 + $0x174] sm:$0xf0] }
 0x621   :  { %7534 = vmatmul.bf16.vlgmr.msra.gmra.mxu2 %v11312_v34  ;;  %7521 = vmatmul.bf16.vlgmr.msrb.gmra.mxu1 %v11313_v3  ;;  %v10239_v18 = vld [vmem:[#allocation6 + $0xe78] sm:$0xf0]  ;;  %v10114_v47 = vor.u32 %v11121_v58, %v10111_v4  ;;  %v11149_v21 = vld [vmem:[#allocation6 + $0xe4c] sm:$0xf] }
 0x622   :  { %7565 = vmatpush.bf16.msra.mxu1 %v10178_v46  ;;  %7578 = vmatpush.bf16.msrb.mxu2 %v10306_v52  ;;  %v10367_v23 = vld [vmem:[#allocation6 + $0xf78] sm:$0xf0]  ;;  %v10242_v48 = vor.u32 %v11153_v22, %v10239_v18  ;;  %v11085_v46 = vld [vmem:[#allocation6 + $0xc4c] sm:$0xf] }
 0x623   :  { %7591 = vmatpush.bf16.msra.mxu3 %v10434_v62  ;;  %v9967_v52 = vld [vmem:[#allocation6 + $0xc58] sm:$0xf0]  ;;  %v10370_v51 = vor.u32 %v11185_v13, %v10367_v23  ;;  %v11181_v53 = vld [vmem:[#allocation6 + $0xf4c] sm:$0xf] }
 0x624   :  { %7547 = vmatmul.bf16.vlgmr.msrb.gmra.mxu3 %v11314_v36  ;;  %7553 = vmatpush.bf16.msrb.mxu0 %v10034_v63  ;;  %v12744_v20 = vpop.f32.mrf.mxu2  ;;  %v10095_v62 = vld [vmem:[#allocation6 + $0xd58] sm:$0xf0]  ;;  %v7303_v63 = vpop.f32.mrf.mxu0  ;;  %v9970_v39 = vor.u32 %v11085_v46, %v9967_v52  ;;  %v11081_v45 = vld [vmem:[#allocation6 + $0xc2c] sm:$0xf]  ;;  %v11233_v46 = vld [vmem:[#allocation20 + $0xe4] sm:$0xf0] }
 0x625   :  { %v10223_v24 = vld [vmem:[#allocation6 + $0xe58] sm:$0xf0]  ;;  %v11113_v26 = vld [vmem:[#allocation6 + $0xd2c] sm:$0xf] }
 0x626   :  { %7566 = vmatpush.bf16.msra.mxu1 %v10162_v56  ;;  %7579 = vmatpush.bf16.msrb.mxu2 %v10290_v41  ;;  %v10351_v28 = vld [vmem:[#allocation6 + $0xf58] sm:$0xf0]  ;;  %v7316_v16 = vpop.f32.mrf.mxu1  ;;  %v7263_v56 = vadd.f32 %v12732_v59, %v7250_v19  ;;  %v10098_v41 = vor.u32 %v11117_v38, %v10095_v62  ;;  %v10226_v27 = vor.u32 %v11149_v21, %v10223_v24  ;;  %v11145_v49 = vld [vmem:[#allocation6 + $0xe2c] sm:$0xf]  ;;  %v11249_v38 = vld [vmem:[#allocation20 + $0x164] sm:$0xf0] }
 0x627   :  { %7592 = vmatpush.bf16.msra.mxu3 %v10418_v15  ;;  %v12746_v33 = vpop.f32.mrf.mxu3  ;;  %v9951_v8 = vld [vmem:[#allocation6 + $0xc38] sm:$0xf0]  ;;  %v10354_v15 = vor.u32 %v11181_v53, %v10351_v28  ;;  %v11177_v34 = vld [vmem:[#allocation6 + $0xf2c] sm:$0xf]  ;;  %v11215_v24 = vld [vmem:[#allocation20 + $0x54] sm:$0xf0] }
 0x628   :  { %7554 = vmatpush.bf16.msrb.mxu0 %v10018_v55  ;;  %v10079_v54 = vld [vmem:[#allocation6 + $0xd38] sm:$0xf0]  ;;  %v9954_v10 = vor.u32 %v11081_v45, %v9951_v8  ;;  %v11077_v35 = vld [vmem:[#allocation6 + $0xc0c] sm:$0xf]  ;;  %v7276_v59 = vadd.f32 %v12734_v29, %v7263_v56  ;;  %v11235_v29 = vld [vmem:[#allocation20 + $0xf4] sm:$0xf0] }
 0x629   :  { %v10207_v37 = vld [vmem:[#allocation6 + $0xe38] sm:$0xf0]  ;;  %v10082_v55 = vor.u32 %v11113_v26, %v10079_v54  ;;  %v11141_v31 = vld [vmem:[#allocation6 + $0xe0c] sm:$0xf]  ;;  %v11247_v56 = vld [vmem:[#allocation20 + $0x154] sm:$0xf0] }
 0x62a   :  { %7567 = vmatpush.bf16.msra.mxu1 %v10146_v0  ;;  %7580 = vmatpush.bf16.msrb.mxu2 %v10274_v30  ;;  %v10335_v3 = vld [vmem:[#allocation6 + $0xf38] sm:$0xf0]  ;;  %v10210_v0 = vor.u32 %v11145_v49, %v10207_v37  ;;  %v11109_v30 = vld [vmem:[#allocation6 + $0xd0c] sm:$0xf]  ;;  %v7289_v58 = vadd.f32 %v12736_v25, %v7276_v59  ;;  %v11213_v54 = vld [vmem:[#allocation20 + $0x44] sm:$0xf0] }
 0x62b   :  { %7593 = vmatpush.bf16.msra.mxu3 %v10402_v12  ;;  %v9935_v36 = vld [vmem:[#allocation6 + $0xc18] sm:$0xf0]  ;;  %v10338_v61 = vor.u32 %v11177_v34, %v10335_v3  ;;  %v11173_v57 = vld [vmem:[#allocation6 + $0xf0c] sm:$0xf]  ;;  %v11229_v37 = vld [vmem:[#allocation20 + $0xc4] sm:$0xf0] }
 0x62c   :  { %7555 = vmatpush.bf16.msrb.mxu0 %v10002_v60  ;;  %v10063_v17 = vld [vmem:[#allocation6 + $0xd18] sm:$0xf0]  ;;  %v7329_v50 = vpop.f32.mrf.mxu2  ;;  %v7302_v13 = vadd.f32 %v12738_v40, %v7289_v58  ;;  %v10485_v19 = vld [vmem:[#allocation20 + $0x60] sm:$0xf]  ;;  %v11245_v3 = vld [vmem:[#allocation20 + $0x144] sm:$0xf0] }
 0x62d   :  { %v10191_v12 = vld [vmem:[#allocation6 + $0xe18] sm:$0xf0]  ;;  %v10613_v52 = vld [vmem:[#allocation20 + $0x160] sm:$0xf]  ;;  %v11241_v58 = vld [vmem:[#allocation20 + $0x124] sm:$0xf0] }
 0x62e   :  { %7568 = vmatpush.bf16.msra.mxu1 %v10130_v44  ;;  %7581 = vmatpush.bf16.msrb.mxu2 %v10258_v6  ;;  %v10319_v11 = vld [vmem:[#allocation6 + $0xf18] sm:$0xf0]  ;;  %v9938_v6 = vor.u32 %v11077_v35, %v9935_v36  ;;  %v10194_v4 = vor.u32 %v11141_v31, %v10191_v12  ;;  %v10614_v40 = vor.u32 %v11249_v38, %v10613_v52  ;;  %v11316_v63 = vld [vmem:[#allocation1 + $0x2d] sm:$0xff] }
 0x62f   :  { %7594 = vmatpush.bf16.msra.mxu3 %v10386_v14  ;;  %v10493_v9 = vld [vmem:[#allocation20 + $0x70] sm:$0xf]  ;;  %v7342_v44 = vpop.f32.mrf.mxu3  ;;  %v10066_v14 = vor.u32 %v11109_v30, %v10063_v17  ;;  %v10322_v22 = vor.u32 %v11173_v57, %v10319_v11  ;;  %v10533_v49 = vld [vmem:[#allocation20 + $0xc0] sm:$0xf]  ;;  %v11211_v17 = vld [vmem:[#allocation20 + $0x34] sm:$0xf0] }
 0x630   :  { %7556 = vmatpush.bf16.msrb.mxu0 %v9986_v42  ;;  %v10557_v60 = vld [vmem:[#allocation20 + $0xf0] sm:$0xf]  ;;  %v10494_v18 = vor.u32 %v11219_v32, %v10493_v9  ;;  %v10597_v34 = vld [vmem:[#allocation20 + $0x140] sm:$0xf]  ;;  %v11243_v57 = vld [vmem:[#allocation20 + $0x134] sm:$0xf0] }
 0x631   :  { %v10621_v5 = vld [vmem:[#allocation20 + $0x170] sm:$0xf]  ;;  %v10558_v23 = vor.u32 %v11235_v29, %v10557_v60  ;;  %v10453_v60 = vld [vmem:[#allocation20 + $0x20] sm:$0xf]  ;;  %v11209_v44 = vld [vmem:[#allocation20 + $0x24] sm:$0xf0] }
 0x632   :  { %7569 = vmatpush.bf16.msra.mxu1 %v10114_v47  ;;  %7582 = vmatpush.bf16.msrb.mxu2 %v10242_v48  ;;  %v10622_v42 = vor.u32 %v11251_v1, %v10621_v5  ;;  %v11217_v47 = vld [vmem:[#allocation20 + $0x64] sm:$0xf0]  ;;  %v10549_v48 = vld [vmem:[#allocation20 + $0xe0] sm:$0xf]  ;;  %v10477_v21 = vld [vmem:[#allocation20 + $0x50] sm:$0xf] }
 0x633   :  { %7595 = vmatpush.bf16.msra.mxu3 %v10370_v51  ;;  %v10486_v25 = vor.u32 %v11217_v47, %v10485_v19  ;;  %v7315_v51 = vadd.f32 %v12740_v2, %v7302_v13  ;;  %v10550_v62 = vor.u32 %v11233_v46, %v10549_v48  ;;  %v10541_v53 = vld [vmem:[#allocation20 + $0xd0] sm:$0xf]  ;;  %v10478_v2 = vor.u32 %v11215_v24, %v10477_v21  ;;  %v11225_v5 = vld [vmem:[#allocation20 + $0xa4] sm:$0xf0]  ;;  %v10581_v1 = vld [vmem:[#allocation20 + $0x120] sm:$0xf] }
 0x634   :  { %7557 = vmatpush.bf16.msrb.mxu0 %v9970_v39  ;;  %v11315_v28 = vld [vmem:[#allocation1 + $0x24] sm:$0xff]  ;;  %v10454_v48 = vor.u32 %v11209_v44, %v10453_v60  ;;  %v10582_v38 = vor.u32 %v11241_v58, %v10581_v1  ;;  %v10551_v60 = vld [vmem:[#allocation20 + $0xe8] sm:$0xf0] }
 0x635   :  { %v11231_v39 = vld [vmem:[#allocation20 + $0xd4] sm:$0xf0]  ;;  %v10605_v16 = vld [vmem:[#allocation20 + $0x150] sm:$0xf] }
 0x636   :  { %7570 = vmatpush.bf16.msra.mxu1 %v10098_v41  ;;  %7583 = vmatpush.bf16.msrb.mxu2 %v10226_v27  ;;  %v7328_v41 = vadd.f32 %v12744_v20, %v7315_v51  ;;  %v11317_v27 = vld [vmem:[#allocation1 + $0x36] sm:$0xff]  ;;  %v11318_v45 = vld [vmem:[#allocation1 + $0x3f] sm:$0xff]  ;;  %v10542_v8 = vor.u32 %v11231_v39, %v10541_v53  ;;  %v10606_v26 = vor.u32 %v11247_v56, %v10605_v16  ;;  %v11207_v51 = vld [vmem:[#allocation20 + $0x14] sm:$0xf0] }
 0x637   :  { %7596 = vmatpush.bf16.msra.mxu3 %v10354_v15  ;;  %v10469_v15 = vld [vmem:[#allocation20 + $0x40] sm:$0xf]  ;;  %v10461_v30 = vld [vmem:[#allocation20 + $0x30] sm:$0xf]  ;;  %v11239_v24 = vld [vmem:[#allocation20 + $0x114] sm:$0xf0] }
 0x638   :  { %7558 = vmatpush.bf16.msrb.mxu0 %v9954_v10  ;;  %v7341_v10 = vadd.f32 %v12746_v33, %v7328_v41  ;;  %v10470_v20 = vor.u32 %v11213_v54, %v10469_v15  ;;  %v10525_v31 = vld [vmem:[#allocation20 + $0xb0] sm:$0xf]  ;;  %v10462_v50 = vor.u32 %v11211_v17, %v10461_v30  ;;  %v10437_v56 = vld [vmem:[#allocation20] sm:$0xf] }
 0x639   :  { %v10589_v12 = vld [vmem:[#allocation20 + $0x130] sm:$0xf]  ;;  %v10565_v54 = vld [vmem:[#allocation20 + $0x100] sm:$0xf] }
 0x63a   :  { %7571 = vmatpush.bf16.msra.mxu1 %v10082_v55  ;;  %7584 = vmatpush.bf16.msrb.mxu2 %v10210_v0  ;;  %v10534_v55 = vor.u32 %v11229_v37, %v10533_v49  ;;  %v10598_v0 = vor.u32 %v11245_v3, %v10597_v34  ;;  %v12755_v11 = vld [vmem:[#allocation19 + $0x1] ss:$4 sm:$0xf]  ;;  %v10590_v32 = vor.u32 %v11243_v57, %v10589_v12  ;;  %v11237_v49 = vld [vmem:[#allocation20 + $0x104] sm:$0xf0] }
 0x63b   :  { %7597 = vmatpush.bf16.msra.mxu3 %v10338_v61  ;;  %v11227_v61 = vld [vmem:[#allocation20 + $0xb4] sm:$0xf0]  ;;  %v7612_v19 = vperm.slane %v12755_v11, 1  ;;  %v7613_v47 = vperm.slane %v12755_v11, 2  ;;  %v10573_v21 = vld [vmem:[#allocation20 + $0x110] sm:$0xf] }
 0x63c   :  { %7559 = vmatpush.bf16.msrb.mxu0 %v9938_v6  ;;  %v7353_v35 = vpop.f32.mrf.mxu0  ;;  %v10526_v9 = vor.u32 %v11227_v61, %v10525_v31  ;;  %v10517_v6 = vld [vmem:[#allocation20 + $0xa0] sm:$0xf]  ;;  %v11218_v37 = vld [vmem:[#allocation20 + $0x74] sm:$0xf]  ;;  %v10495_v3 = vld [vmem:[#allocation20 + $0x78] sm:$0xf0]  ;;  %v10566_v31 = vor.u32 %v11237_v49, %v10565_v54 }
 0x63d   :  { %v7354_v59 = vadd.f32 %v7353_v35, %v7341_v10  ;;  %v11234_v10 = vld [vmem:[#allocation20 + $0xf4] sm:$0xf]  ;;  %v10559_v35 = vld [vmem:[#allocation20 + $0xf8] sm:$0xf0]  ;;  %v10498_v12 = vor.u32 %v11218_v37, %v10495_v3  ;;  %v11208_v49 = vld [vmem:[#allocation20 + $0x24] sm:$0xf] }
 0x63e   :  { %7572 = vmatpush.bf16.msra.mxu1 %v10066_v14  ;;  %7585 = vmatpush.bf16.msrb.mxu2 %v10194_v4  ;;  %v7366_v36 = vpop.f32.mrf.mxu1  ;;  %v7604_v14 = vmax.f32 %v12699_v7, 0.0  ;;  %v7611_v4 = vperm.slane %v12755_v11, 0  ;;  %v10518_v7 = vor.u32 %v11225_v5, %v10517_v6  ;;  %v10562_v57 = vor.u32 %v11234_v10, %v10559_v35  ;;  %v11248_v6 = vld [vmem:[#allocation20 + $0x164] sm:$0xf]  ;;  %v10519_v10 = vld [vmem:[#allocation20 + $0xa8] sm:$0xf0] }
 0x63f   :  { %7598 = vmatpush.bf16.msra.mxu3 %v10322_v22  ;;  %7560 = vmatmul.bf16.vlgmr.msrb.gmra.mxu0 %v11315_v28  ;;  %v7367_v33 = vadd.f32 %v7366_v36, %v7354_v59  ;;  %v11224_v3 = vld [vmem:[#allocation20 + $0xa4] sm:$0xf] }
 0x640   :  { %8032 = vmatpush.bf16.msra.mxu0 %v10494_v18  ;;  %v7619_v28 = vmul.f32 %v7611_v4, %v7604_v14  ;;  %v11214_v4 = vld [vmem:[#allocation20 + $0x54] sm:$0xf] }
 0x641   :  { %7573 = vmatmul.bf16.vlgmr.msra.gmra.mxu1 %v11316_v63  ;;  %7586 = vmatmul.bf16.vlgmr.msrb.gmra.mxu2 %v11317_v27 }
 0x642   :  { %8045 = vmatpush.bf16.msrb.mxu1 %v10558_v23  ;;  %8058 = vmatpush.bf16.msra.mxu2 %v10622_v42  ;;  %v12759_v23 = vld [vmem:[#allocation19 + $0x2] ss:$4 sm:$0xf]  ;;  %v7605_v42 = vmax.f32 %v12718_v43, 0.0 }
 0x643   :  { %7599 = vmatmul.bf16.vlgmr.msra.gmra.mxu3 %v11318_v45  ;;  %v7626_v43 = vperm.slane %v12759_v23, 0  ;;  %v7627_v63 = vperm.slane %v12759_v23, 1  ;;  %v7628_v39 = vperm.slane %v12759_v23, 2  ;;  %v10574_v45 = vor.u32 %v11239_v24, %v10573_v21  ;;  %v11244_v21 = vld [vmem:[#allocation20 + $0x144] sm:$0xf] }
 0x644   :  { %8033 = vmatpush.bf16.msra.mxu0 %v10486_v25  ;;  %v7379_v29 = vpop.f32.mrf.mxu2  ;;  %v7355_v13 = vpop.f32.mrf.mxu0  ;;  %v10445_v25 = vld [vmem:[#allocation20 + $0x10] sm:$0xf]  ;;  %v7620_v15 = vmul.f32 %v7612_v19, %v7605_v42  ;;  %v10543_v42 = vld [vmem:[#allocation20 + $0xd8] sm:$0xf0]  ;;  %v11246_v19 = vld [vmem:[#allocation20 + $0x154] sm:$0xf] }
 0x645   :  { %v7380_v22 = vadd.f32 %v7379_v29, %v7367_v33  ;;  %v10446_v16 = vor.u32 %v11207_v51, %v10445_v25  ;;  %v7634_v30 = vadd.f32 %v7626_v43, %v7619_v28  ;;  %v10615_v29 = vld [vmem:[#allocation20 + $0x168] sm:$0xf0]  ;;  %v11230_v13 = vld [vmem:[#allocation20 + $0xd4] sm:$0xf]  ;;  %v11228_v25 = vld [vmem:[#allocation20 + $0xc4] sm:$0xf] }
 0x646   :  { %8046 = vmatpush.bf16.msrb.mxu1 %v10550_v62  ;;  %8059 = vmatpush.bf16.msra.mxu2 %v10614_v40  ;;  %v7368_v46 = vpop.f32.mrf.mxu1  ;;  %v10509_v62 = vld [vmem:[#allocation20 + $0x90] sm:$0xf]  ;;  %v11223_v40 = vld [vmem:[#allocation20 + $0x94] sm:$0xf0]  ;;  %v7635_v61 = vadd.f32 %v7627_v63, %v7620_v15  ;;  %v10535_v51 = vld [vmem:[#allocation20 + $0xc8] sm:$0xf0] }
 0x647   :  { %v7392_v18 = vpop.f32.mrf.mxu3  ;;  %v10510_v27 = vor.u32 %v11223_v40, %v10509_v62  ;;  %v12769_v5 = vpack.c.bf16 %v7634_v30, %v7634_v30  ;;  %v10546_v46 = vor.u32 %v11230_v13, %v10543_v42  ;;  %v11319_v62 = vld [vmem:[#allocation19] ss:$4 sm:$0xf]  ;;  %v10599_v24 = vld [vmem:[#allocation20 + $0x148] sm:$0xf0]  ;;  %v10522_v30 = vor.u32 %v11224_v3, %v10519_v10 }
 0x648   :  { %8034 = vmatpush.bf16.msra.mxu0 %v10478_v2  ;;  %v7393_v52 = vadd.f32 %v7392_v18, %v7380_v22  ;;  %v11205_v2 = vld [vmem:[#allocation20 + $0x4] sm:$0xf0]  ;;  %v12771_v1 = vpack.c.bf16 %v7635_v61, %v7635_v61  ;;  %v10618_v22 = vor.u32 %v11248_v6, %v10615_v29  ;;  %v10479_v18 = vld [vmem:[#allocation20 + $0x58] sm:$0xf0]  ;;  %v4171_v40 = vperm.slane %v11319_v62, 3 }
 0x649   :  { %v10438_v59 = vor.u32 %v11205_v2, %v10437_v56  ;;  %v11210_v28 = vld [vmem:[#allocation20 + $0x34] sm:$0xf]  ;;  %v11236_v42 = vld [vmem:[#allocation20 + $0x104] sm:$0xf]  ;;  %v10629_v10 = vld [vmem:[#allocation20 + $0x180] sm:$0xf] }
 0x64a   :  { %8047 = vmatpush.bf16.msrb.mxu1 %v10542_v8  ;;  %8060 = vmatpush.bf16.msra.mxu2 %v10606_v26  ;;  %v7606_v53 = vmax.f32 %v7393_v52, 0.0  ;;  %v10501_v8 = vld [vmem:[#allocation20 + $0x80] sm:$0xf]  ;;  %v11221_v26 = vld [vmem:[#allocation20 + $0x84] sm:$0xf0] }
 0x64b   :  { %v10502_v17 = vor.u32 %v11221_v26, %v10501_v8  ;;  %v11212_v52 = vld [vmem:[#allocation20 + $0x44] sm:$0xf]  ;;  %v11226_v56 = vld [vmem:[#allocation20 + $0xb4] sm:$0xf]  ;;  %v10591_v8 = vld [vmem:[#allocation20 + $0x138] sm:$0xf0] }
 0x64c   :  { %8035 = vmatpush.bf16.msra.mxu0 %v10470_v20  ;;  %v7621_v41 = vmul.f32 %v7613_v47, %v7606_v53  ;;  %v7381_v34 = vpop.f32.mrf.mxu2  ;;  %v10607_v47 = vld [vmem:[#allocation20 + $0x158] sm:$0xf0]  ;;  %v10538_v53 = vor.u32 %v11228_v25, %v10535_v51  ;;  %v11242_v2 = vld [vmem:[#allocation20 + $0x134] sm:$0xf]  ;;  %v11267_v25 = vld [vmem:[#allocation20 + $0x1f4] sm:$0xf0] }
 0x64d   :  { %v10594_v37 = vor.u32 %v11242_v2, %v10591_v8  ;;  %v10455_v34 = vld [vmem:[#allocation20 + $0x28] sm:$0xf0] }
 0x64e   :  { %8048 = vmatpush.bf16.msrb.mxu1 %v10534_v55  ;;  %8061 = vmatpush.bf16.msra.mxu2 %v10598_v0  ;;  %v7636_v36 = vadd.f32 %v7628_v39, %v7621_v41  ;;  %v11250_v55 = vld [vmem:[#allocation20 + $0x174] sm:$0xf]  ;;  %v10623_v0 = vld [vmem:[#allocation20 + $0x178] sm:$0xf0]  ;;  %v10602_v39 = vor.u32 %v11244_v21, %v10599_v24  ;;  %v10677_v21 = vld [vmem:[#allocation20 + $0x1e0] sm:$0xf] }
 0x64f   :  { %v7394_v20 = vpop.f32.mrf.mxu3  ;;  %v10626_v33 = vor.u32 %v11250_v55, %v10623_v0  ;;  %v10527_v41 = vld [vmem:[#allocation20 + $0xb8] sm:$0xf0]  ;;  %v10458_v0 = vor.u32 %v11208_v49, %v10455_v34  ;;  %v11265_v24 = vld [vmem:[#allocation20 + $0x1e4] sm:$0xf0]  ;;  %v10637_v49 = vld [vmem:[#allocation20 + $0x190] sm:$0xf] }
 0x650   :  { %8036 = vmatpush.bf16.msra.mxu0 %v10462_v50  ;;  %v11216_v50 = vld [vmem:[#allocation20 + $0x64] sm:$0xf]  ;;  %v12767_v44 = vpack.c.bf16 %v7636_v36, %v7636_v36  ;;  %v10530_v54 = vor.u32 %v11226_v56, %v10527_v41  ;;  %v10583_v36 = vld [vmem:[#allocation20 + $0x128] sm:$0xf0]  ;;  %v11261_v56 = vld [vmem:[#allocation20 + $0x1c4] sm:$0xf0] }
 0x651   :  { %v11240_v20 = vld [vmem:[#allocation20 + $0x124] sm:$0xf] }
 0x652   :  { %8049 = vmatpush.bf16.msrb.mxu1 %v10526_v9  ;;  %8062 = vmatpush.bf16.msra.mxu2 %v10590_v32  ;;  %v10487_v9 = vld [vmem:[#allocation20 + $0x68] sm:$0xf0]  ;;  %v11232_v32 = vld [vmem:[#allocation20 + $0xe4] sm:$0xf] }
 0x653   :  { %v10490_v58 = vor.u32 %v11216_v50, %v10487_v9  ;;  %v10554_v14 = vor.u32 %v11232_v32, %v10551_v60  ;;  %v11222_v50 = vld [vmem:[#allocation20 + $0x94] sm:$0xf]  ;;  %v10575_v60 = vld [vmem:[#allocation20 + $0x118] sm:$0xf0] }
 0x654   :  { %8037 = vmatpush.bf16.msra.mxu0 %v10454_v48  ;;  %v10482_v48 = vor.u32 %v11214_v4, %v10479_v18  ;;  %v11238_v32 = vld [vmem:[#allocation20 + $0x114] sm:$0xf]  ;;  %v10439_v4 = vld [vmem:[#allocation20 + $0x8] sm:$0xf0] }
 0x655   :  { %v10503_v18 = vld [vmem:[#allocation20 + $0x88] sm:$0xf0] }
 0x656   :  { %8050 = vmatpush.bf16.msrb.mxu1 %v10518_v7  ;;  %8063 = vmatpush.bf16.msra.mxu2 %v10582_v38  ;;  %v10471_v7 = vld [vmem:[#allocation20 + $0x48] sm:$0xf0]  ;;  %v10610_v38 = vor.u32 %v11246_v19, %v10607_v47 }
 0x657   :  { %v10474_v43 = vor.u32 %v11212_v52, %v10471_v7  ;;  %v10567_v19 = vld [vmem:[#allocation20 + $0x108] sm:$0xf0] }
 0x658   :  { %8038 = vmatpush.bf16.msra.mxu0 %v10446_v16  ;;  %v10463_v16 = vld [vmem:[#allocation20 + $0x38] sm:$0xf0]  ;;  %v10570_v52 = vor.u32 %v11236_v42, %v10567_v19  ;;  %v11258_v42 = vld [vmem:[#allocation20 + $0x1b4] sm:$0xf] }
 0x659   :  { %v10466_v15 = vor.u32 %v11210_v28, %v10463_v16  ;;  %v10669_v28 = vld [vmem:[#allocation20 + $0x1d0] sm:$0xf] }
 0x65a   :  { %8051 = vmatpush.bf16.msrb.mxu1 %v10510_v27  ;;  %8064 = vmatpush.bf16.msra.mxu2 %v10574_v45 }
 0x65c   :  { %8039 = vmatpush.bf16.msra.mxu0 %v10438_v59  ;;  %v7405_v63 = vpop.f32.mrf.mxu0 }
 0x65d   :  { %v7406_v27 = vadd.f32 %v7405_v63, %v4171_v40  ;;  %v11263_v63 = vld [vmem:[#allocation20 + $0x1d4] sm:$0xf0] }
 0x65e   :  { %8052 = vmatpush.bf16.msrb.mxu1 %v10502_v17  ;;  %8065 = vmatpush.bf16.msra.mxu2 %v10566_v31  ;;  %v7418_v45 = vpop.f32.mrf.mxu1  ;;  %v11206_v17 = vld [vmem:[#allocation20 + $0x14] sm:$0xf] }
 0x65f   :  { %8040 = vmatmul.bf16.vlgmr.msra.gmra.mxu0 %v12769_v5  ;;  %v7419_v26 = vadd.f32 %v7418_v45, %v7406_v27  ;;  %v10653_v27 = vld [vmem:[#allocation20 + $0x1b0] sm:$0xf]  ;;  %v11259_v45 = vld [vmem:[#allocation20 + $0x1b4] sm:$0xf0] }
 0x660   :  { %8084 = vmatpush.bf16.msrb.mxu0 %v10498_v12  ;;  %v10586_v12 = vor.u32 %v11240_v20, %v10583_v36  ;;  %v10654_v8 = vor.u32 %v11259_v45, %v10653_v27  ;;  %v7614_v45 = vperm.slane %v12755_v11, 3 }
 0x661   :  { %8053 = vmatmul.bf16.vlgmr.msrb.gmra.mxu1 %v12771_v1  ;;  %8066 = vmatmul.bf16.vlgmr.msra.gmra.mxu2 %v12767_v44 }
 0x662   :  { %8097 = vmatpush.bf16.msra.mxu1 %v10562_v57  ;;  %8110 = vmatpush.bf16.msrb.mxu2 %v10626_v33  ;;  %v10447_v57 = vld [vmem:[#allocation20 + $0x18] sm:$0xf0] }
 0x663   :  { %v10511_v33 = vld [vmem:[#allocation20 + $0x98] sm:$0xf0]  ;;  %v10450_v6 = vor.u32 %v11206_v17, %v10447_v57  ;;  %v10679_v17 = vld [vmem:[#allocation20 + $0x1e8] sm:$0xf0] }
 0x664   :  { %8085 = vmatpush.bf16.msrb.mxu0 %v10490_v58  ;;  %v7431_v35 = vpop.f32.mrf.mxu2  ;;  %v7407_v61 = vpop.f32.mrf.mxu0  ;;  %v10514_v29 = vor.u32 %v11222_v50, %v10511_v33  ;;  %v11204_v58 = vld [vmem:[#allocation20 + $0x4] sm:$0xf] }
 0x665   :  { %v7432_v59 = vadd.f32 %v7431_v35, %v7419_v26  ;;  %v10645_v26 = vld [vmem:[#allocation20 + $0x1a0] sm:$0xf]  ;;  %v11253_v35 = vld [vmem:[#allocation20 + $0x184] sm:$0xf0] }
 0x666   :  { %8098 = vmatpush.bf16.msra.mxu1 %v10554_v14  ;;  %8111 = vmatpush.bf16.msrb.mxu2 %v10618_v22  ;;  %v7420_v9 = vpop.f32.mrf.mxu1  ;;  %v10578_v14 = vor.u32 %v11238_v32, %v10575_v60  ;;  %v11220_v22 = vld [vmem:[#allocation20 + $0x84] sm:$0xf]  ;;  %v10630_v36 = vor.u32 %v11253_v35, %v10629_v10  ;;  %v11262_v32 = vld [vmem:[#allocation20 + $0x1d4] sm:$0xf]  ;;  %v10671_v60 = vld [vmem:[#allocation20 + $0x1d8] sm:$0xf0] }
 0x667   :  { %v7444_v55 = vpop.f32.mrf.mxu3 }
 0x668   :  { %8086 = vmatpush.bf16.msrb.mxu0 %v10482_v48  ;;  %v12776_v31 = vadd.f32 %v7444_v55, %v7432_v59  ;;  %v10442_v48 = vor.u32 %v11204_v58, %v10439_v4  ;;  %v11266_v59 = vld [vmem:[#allocation20 + $0x1f4] sm:$0xf]  ;;  %v10687_v55 = vld [vmem:[#allocation20 + $0x1f8] sm:$0xf0]  ;;  %v11260_v58 = vld [vmem:[#allocation20 + $0x1c4] sm:$0xf] }
 0x66a   :  { %8099 = vmatpush.bf16.msra.mxu1 %v10546_v46  ;;  %8112 = vmatpush.bf16.msrb.mxu2 %v10610_v38  ;;  %v10506_v46 = vor.u32 %v11220_v22, %v10503_v18  ;;  %v10685_v38 = vld [vmem:[#allocation20 + $0x1f0] sm:$0xf] }
 0x66b   :  { %v10686_v62 = vor.u32 %v11267_v25, %v10685_v38  ;;  %v11254_v38 = vld [vmem:[#allocation20 + $0x194] sm:$0xf]  ;;  %v10639_v25 = vld [vmem:[#allocation20 + $0x198] sm:$0xf0] }
 0x66c   :  { %8087 = vmatpush.bf16.msrb.mxu0 %v10474_v43  ;;  %v7433_v13 = vpop.f32.mrf.mxu2 }
 0x66d   :  { %8071 = vmatpush.bf16.msrb.mxu3 %v10686_v62  ;;  %v10642_v62 = vor.u32 %v11254_v38, %v10639_v25  ;;  %v8159_v38 = vld [vmem:[%s12897_s11 + $0x18] sm:$0xff] }
 0x66e   :  { %8100 = vmatpush.bf16.msra.mxu1 %v10538_v53  ;;  %8113 = vmatpush.bf16.msrb.mxu2 %v10602_v39  ;;  %v10678_v53 = vor.u32 %v11265_v24, %v10677_v21  ;;  %v10631_v24 = vld [vmem:[#allocation20 + $0x188] sm:$0xf0] }
 0x66f   :  { %v7446_v47 = vpop.f32.mrf.mxu3  ;;  %v8183_v25 = vld [vmem:[%s12897_s11 + $0xd8] sm:$0xff] }
 0x670   :  { %8088 = vmatpush.bf16.msrb.mxu0 %v10466_v15  ;;  %v11257_v15 = vld [vmem:[#allocation20 + $0x1a4] sm:$0xf0] }
 0x671   :  { %8072 = vmatpush.bf16.msrb.mxu3 %v10678_v53 }
 0x672   :  { %8101 = vmatpush.bf16.msra.mxu1 %v10530_v54  ;;  %8114 = vmatpush.bf16.msrb.mxu2 %v10594_v37  ;;  %v10646_v54 = vor.u32 %v11257_v15, %v10645_v26  ;;  %v11255_v37 = vld [vmem:[#allocation20 + $0x194] sm:$0xf0] }
 0x673   :  { %v10638_v34 = vor.u32 %v11255_v37, %v10637_v49 }
 0x674   :  { %8089 = vmatpush.bf16.msrb.mxu0 %v10458_v0  ;;  %v10690_v0 = vor.u32 %v11266_v59, %v10687_v55 }
 0x676   :  { %8102 = vmatpush.bf16.msra.mxu1 %v10522_v30  ;;  %8115 = vmatpush.bf16.msrb.mxu2 %v10586_v12  ;;  %v11264_v30 = vld [vmem:[#allocation20 + $0x1e4] sm:$0xf] }
 0x677   :  { %v10682_v12 = vor.u32 %v11264_v30, %v10679_v17  ;;  %v8170_v30 = vld [vmem:[%s12897_s11 + $0x70] sm:$0xff] }
 0x678   :  { %8090 = vmatpush.bf16.msrb.mxu0 %v10450_v6 }
 0x67a   :  { %8103 = vmatpush.bf16.msra.mxu1 %v10514_v29  ;;  %8116 = vmatpush.bf16.msrb.mxu2 %v10578_v14  ;;  %v10674_v29 = vor.u32 %v11262_v32, %v10671_v60  ;;  %v10663_v14 = vld [vmem:[#allocation20 + $0x1c8] sm:$0xf0]  ;;  %v8166_v32 = vld [vmem:[%s12897_s11 + $0x50] sm:$0xff]  ;;  %v8165_v60 = vld [vmem:[%s12897_s11 + $0x48] sm:$0xff] }
 0x67b   :  { %v10666_v22 = vor.u32 %v11260_v58, %v10663_v14  ;;  %v8163_v58 = vld [vmem:[%s12897_s11 + $0x38] sm:$0xff]  ;;  %v8162_v14 = vld [vmem:[%s12897_s11 + $0x30] sm:$0xff] }
 0x67c   :  { %8091 = vmatpush.bf16.msrb.mxu0 %v10442_v48  ;;  %v7457_v7 = vpop.f32.mrf.mxu0  ;;  %v11256_v48 = vld [vmem:[#allocation20 + $0x1a4] sm:$0xf] }
 0x67d   :  { %v7458_v61 = vadd.f32 %v7457_v7, %v12776_v31  ;;  %v10655_v31 = vld [vmem:[#allocation20 + $0x1b8] sm:$0xf0] }
 0x67e   :  { %8104 = vmatpush.bf16.msra.mxu1 %v10506_v46  ;;  %8117 = vmatpush.bf16.msrb.mxu2 %v10570_v52  ;;  %v7470_v51 = vpop.f32.mrf.mxu1  ;;  %v10658_v47 = vor.u32 %v11258_v42, %v10655_v31  ;;  %v10647_v46 = vld [vmem:[#allocation20 + $0x1a8] sm:$0xf0] }
 0x67f   :  { %8092 = vmatmul.bf16.vlgmr.msrb.gmra.mxu0 %v12769_v5  ;;  %v10670_v5 = vor.u32 %v11263_v63, %v10669_v28  ;;  %v7471_v6 = vadd.f32 %v7470_v51, %v7458_v61  ;;  %v10650_v7 = vor.u32 %v11256_v48, %v10647_v46  ;;  %v8169_v61 = vld [vmem:[%s12897_s11 + $0x68] sm:$0xff] }
 0x681   :  { %8105 = vmatmul.bf16.vlgmr.msra.gmra.mxu1 %v12771_v1  ;;  %8118 = vmatmul.bf16.vlgmr.msrb.gmra.mxu2 %v12767_v44  ;;  %v10661_v1 = vld [vmem:[#allocation20 + $0x1c0] sm:$0xf] }
 0x682   :  { %8073 = vmatpush.bf16.msrb.mxu3 %v10670_v5  ;;  %v10662_v44 = vor.u32 %v11261_v56, %v10661_v1 }
 0x684   :  { %v7483_v40 = vpop.f32.mrf.mxu2  ;;  %v7459_v39 = vpop.f32.mrf.mxu0 }
 0x685   :  { %v7484_v4 = vadd.f32 %v7483_v40, %v7471_v6  ;;  %v11252_v40 = vld [vmem:[#allocation20 + $0x184] sm:$0xf]  ;;  %v8164_v6 = vld [vmem:[%s12897_s11 + $0x40] sm:$0xff] }
 0x686   :  { %v7472_v16 = vpop.f32.mrf.mxu1  ;;  %8074 = vmatpush.bf16.msrb.mxu3 %v10662_v44  ;;  %v10634_v39 = vor.u32 %v11252_v40, %v10631_v24  ;;  %v8181_v40 = vld [vmem:[%s12897_s11 + $0xc8] sm:$0xff]  ;;  %v8156_v24 = vld [vmem:[%s12897_s11] sm:$0xff] }
 0x687   :  { %v7496_v43 = vpop.f32.mrf.mxu3 }
 0x688   :  { %v7497_v19 = vadd.f32 %v7496_v43, %v7484_v4 }
 0x68a   :  { %8075 = vmatpush.bf16.msrb.mxu3 %v10654_v8  ;;  %v7629_v8 = vperm.slane %v12759_v23, 3  ;;  %v8171_v23 = vld [vmem:[%s12897_s11 + $0x78] sm:$0xff] }
 0x68b   :  { %8192 = vmatpush.msra.mxu0 %v8171_v23 }
 0x68c   :  { %v7485_v41 = vpop.f32.mrf.mxu2 }
 0x68d   :  { %8193 = vmatpush.msra.mxu0 %v8170_v30 }
 0x68e   :  { %8076 = vmatpush.bf16.msrb.mxu3 %v10646_v54 }
 0x68f   :  { %v7498_v2 = vpop.f32.mrf.mxu3  ;;  %8194 = vmatpush.msra.mxu0 %v8169_v61 }
 0x692   :  { %8077 = vmatpush.bf16.msrb.mxu3 %v10638_v34  ;;  %v7706_v34 = vld [vmem:[#allocation22] ss:$4 sm:$0x3] }
 0x696   :  { %8078 = vmatpush.bf16.msrb.mxu3 %v10630_v36 }
 0x69a   :  { %8123 = vmatpush.bf16.msra.mxu3 %v10690_v0 }
 0x69c   :  { %v7509_v3 = vpop.f32.mrf.mxu0 }
 0x69d   :  { %v7510_v52 = vadd.f32 %v7509_v3, %v7497_v19  ;;  %v7708_v3 = vperm.slane %v7706_v34, 0 }
 0x69e   :  { %v7522_v20 = vpop.f32.mrf.mxu1  ;;  %8124 = vmatpush.bf16.msra.mxu3 %v10682_v12  ;;  %v8187_v12 = vld [vmem:[%s12897_s11 + $0xf8] sm:$0xff] }
 0x69f   :  { %v7523_v51 = vadd.f32 %v7522_v20, %v7510_v52  ;;  %8212 = vmatpush.msrb.mxu1 %v8187_v12  ;;  %v8160_v52 = vld [vmem:[%s12897_s11 + $0x20] sm:$0xff] }
 0x6a2   :  { %8125 = vmatpush.bf16.msra.mxu3 %v10674_v29  ;;  %v7709_v29 = vperm.slane %v7706_v34, 1 }
 0x6a4   :  { %v7535_v57 = vpop.f32.mrf.mxu2  ;;  %v7511_v33 = vpop.f32.mrf.mxu0 }
 0x6a5   :  { %v7536_v21 = vadd.f32 %v7535_v57, %v7523_v51  ;;  %v8186_v57 = vld [vmem:[%s12897_s11 + $0xf0] sm:$0xff]  ;;  %v8185_v33 = vld [vmem:[%s12897_s11 + $0xe8] sm:$0xff] }
 0x6a6   :  { %v7524_v9 = vpop.f32.mrf.mxu1  ;;  %8126 = vmatpush.bf16.msra.mxu3 %v10666_v22  ;;  %8213 = vmatpush.msrb.mxu1 %v8186_v57  ;;  %v8158_v51 = vld [vmem:[%s12897_s11 + $0x10] sm:$0xff] }
 0x6a7   :  { %v7548_v50 = vpop.f32.mrf.mxu3  ;;  %v8167_v9 = vld [vmem:[%s12897_s11 + $0x58] sm:$0xff] }
 0x6a8   :  { %v7549_v53 = vadd.f32 %v7548_v50, %v7536_v21  ;;  %v8168_v50 = vld [vmem:[%s12897_s11 + $0x60] sm:$0xff]  ;;  %8214 = vmatpush.msrb.mxu1 %v8185_v33  ;;  %v8157_v21 = vld [vmem:[%s12897_s11 + $0x8] sm:$0xff] }
 0x6a9   :  { %8195 = vmatpush.msra.mxu0 %v8168_v50 }
 0x6aa   :  { %8127 = vmatpush.bf16.msra.mxu3 %v10658_v47 }
 0x6ab   :  { %8196 = vmatpush.msra.mxu0 %v8167_v9 }
 0x6ac   :  { %v7537_v18 = vpop.f32.mrf.mxu2 }
 0x6ad   :  { %8197 = vmatpush.msra.mxu0 %v8166_v32 }
 0x6ae   :  { %8128 = vmatpush.bf16.msra.mxu3 %v10650_v7  ;;  %v8184_v7 = vld [vmem:[%s12897_s11 + $0xe0] sm:$0xff] }
 0x6af   :  { %v7550_v13 = vpop.f32.mrf.mxu3  ;;  %8198 = vmatpush.msra.mxu0 %v8165_v60  ;;  %8215 = vmatpush.msrb.mxu1 %v8184_v7 }
 0x6b0   :  { %v8161_v13 = vld [vmem:[%s12897_s11 + $0x28] sm:$0xff] }
 0x6b1   :  { %8199 = vmatpush.msra.mxu0 %v8164_v6  ;;  %8216 = vmatpush.msrb.mxu1 %v8183_v25 }
 0x6b2   :  { %8129 = vmatpush.bf16.msra.mxu3 %v10642_v62  ;;  %v8182_v62 = vld [vmem:[%s12897_s11 + $0xd0] sm:$0xff] }
 0x6b3   :  { %8200 = vmatpush.msra.mxu0 %v8163_v58  ;;  %8217 = vmatpush.msrb.mxu1 %v8182_v62 }
 0x6b5   :  { %8201 = vmatpush.msra.mxu0 %v8162_v14  ;;  %8218 = vmatpush.msrb.mxu1 %v8181_v40 }
 0x6b6   :  { %8130 = vmatpush.bf16.msra.mxu3 %v10634_v39  ;;  %v8177_v39 = vld [vmem:[%s12897_s11 + $0xa8] sm:$0xff] }
 0x6b7   :  { %8202 = vmatpush.msra.mxu0 %v8161_v13 }
 0x6b9   :  { %8203 = vmatpush.msra.mxu0 %v8160_v52 }
 0x6bb   :  { %8204 = vmatpush.msra.mxu0 %v8159_v38 }
 0x6bc   :  { %v7561_v28 = vpop.f32.mrf.mxu0 }
 0x6bd   :  { %v7562_v43 = vadd.f32 %v7561_v28, %v7549_v53  ;;  %8205 = vmatpush.msra.mxu0 %v8158_v51  ;;  %v8180_v53 = vld [vmem:[%s12897_s11 + $0xc0] sm:$0xff]  ;;  %v8179_v28 = vld [vmem:[%s12897_s11 + $0xb8] sm:$0xff] }
 0x6be   :  { %v7574_v63 = vpop.f32.mrf.mxu1  ;;  %8219 = vmatpush.msrb.mxu1 %v8180_v53 }
 0x6bf   :  { %v7575_v5 = vadd.f32 %v7574_v63, %v7562_v43  ;;  %8206 = vmatpush.msra.mxu0 %v8157_v21  ;;  %v8178_v63 = vld [vmem:[%s12897_s11 + $0xb0] sm:$0xff]  ;;  %v8176_v43 = vld [vmem:[%s12897_s11 + $0xa0] sm:$0xff] }
 0x6c0   :  { %8220 = vmatpush.msrb.mxu1 %v8179_v28 }
 0x6c1   :  { %8207 = vmatpush.msra.mxu0 %v8156_v24 }
 0x6c2   :  { %8221 = vmatpush.msrb.mxu1 %v8178_v63 }
 0x6c4   :  { %v7587_v16 = vpop.f32.mrf.mxu2  ;;  %v7563_v44 = vpop.f32.mrf.mxu0  ;;  %8222 = vmatpush.msrb.mxu1 %v8177_v39 }
 0x6c5   :  { %v7588_v56 = vadd.f32 %v7587_v16, %v7575_v5  ;;  %v8175_v5 = vld [vmem:[%s12897_s11 + $0x98] sm:$0xff]  ;;  %v8174_v16 = vld [vmem:[%s12897_s11 + $0x90] sm:$0xff] }
 0x6c6   :  { %v7600_v1 = vpop.f32.mrf.mxu3  ;;  %v7576_v41 = vpop.f32.mrf.mxu1  ;;  %8223 = vmatpush.msrb.mxu1 %v8176_v43  ;;  %v8139_v44 = vld [vmem:[#allocation22 + $0x1] ss:$4 sm:$0x3] }
 0x6c7   :  { %v7601_v27 = vadd.f32 %v7600_v1, %v7588_v56  ;;  %v8173_v1 = vld [vmem:[%s12897_s11 + $0x88] sm:$0xff]  ;;  %v8172_v56 = vld [vmem:[%s12897_s11 + $0x80] sm:$0xff]  ;;  %s11642_s11 = smov [#allocation25]  }
 0x6c8   :  { %8224 = vmatpush.msrb.mxu1 %v8175_v5  ;;  %s8239_s26 = sshll.u32 %s11642_s11, 4  ;;  %s8240_s26 = int_to_ptr.vmem [resolvable:$true] %s8239_s26 }
 0x6c9   :  { %v7607_v2 = vmax.f32 %v7601_v27, 0.0  ;;  %v8148_v27 = vld [vmem:[#allocation22 + $0x2] ss:$4 sm:$0x3] }
 0x6ca   :  { %8225 = vmatpush.msrb.mxu1 %v8174_v16 }
 0x6cb   :  { %v7622_v26 = vmul.f32 %v7614_v45, %v7607_v2  ;;  %v8141_v2 = vperm.slane %v8139_v44, 0 }
 0x6cc   :  { %v7589_v15 = vpop.f32.mrf.mxu2  ;;  %8226 = vmatpush.msrb.mxu1 %v8173_v1 }
 0x6cd   :  { %v7637_v49 = vadd.f32 %v7629_v8, %v7622_v26  ;;  %v8150_v26 = vperm.slane %v8148_v27, 0 }
 0x6ce   :  { %v7602_v54 = vpop.f32.mrf.mxu3  ;;  %8227 = vmatpush.msrb.mxu1 %v8172_v56 }
 0x6cf   :  { %v7641_v37 = vpack.c.bf16 %v7637_v49, %v7637_v49 }
 0x6d1   :  { %8079 = vmatmul.bf16.vlgmr.msrb.gmra.mxu3 %v7641_v37 }
 0x6dc   :  { %v8041_v10 = vpop.f32.mrf.mxu0 }
 0x6dd   :  { %v8042_v35 = vadd.f32 %v8041_v10, %v7708_v3  ;;  %v8142_v3 = vperm.slane %v8139_v44, 1 }
 0x6de   :  { %v8054_v20 = vpop.f32.mrf.mxu1 }
 0x6df   :  { %v8055_v36 = vadd.f32 %v8054_v20, %v8042_v35  ;;  %v8151_v35 = vperm.slane %v8148_v27, 1 }
 0x6e1   :  { %8131 = vmatmul.bf16.vlgmr.msra.gmra.mxu3 %v7641_v37 }
 0x6e4   :  { %v8067_v59 = vpop.f32.mrf.mxu2  ;;  %v8043_v11 = vpop.f32.mrf.mxu0 }
 0x6e5   :  { %v12784_v55 = vadd.f32 %v8067_v59, %v8055_v36  ;;  %v11292_v11 = vld [vmem:[#allocation23] ss:$0 sm:$0xff] }
 0x6e6   :  { %v8056_v0 = vpop.f32.mrf.mxu1 }
 0x6ec   :  { %v8069_v17 = vpop.f32.mrf.mxu2 }
 0x6fc   :  { %v8093_v4 = vpop.f32.mrf.mxu0 }
 0x6fd   :  { %v8094_v18 = vadd.f32 %v8093_v4, %v7709_v29 }
 0x6fe   :  { %v8106_v22 = vpop.f32.mrf.mxu1 }
 0x6ff   :  { %v8107_v42 = vadd.f32 %v8106_v22, %v8094_v18 }
 0x704   :  { %v8119_v31 = vpop.f32.mrf.mxu2  ;;  %v8095_v47 = vpop.f32.mrf.mxu0 }
 0x705   :  { %v8120_v19 = vadd.f32 %v8119_v31, %v8107_v42 }
 0x706   :  { %v8108_v48 = vpop.f32.mrf.mxu1 }
 0x70c   :  { %v8121_v46 = vpop.f32.mrf.mxu2 }
 0x754   :  { %v8080_v41 = vpop.f32.mrf.mxu3 }
 0x755   :  { %v8081_v45 = vadd.f32 %v8080_v41, %v12784_v55 }
 0x757   :  { %v8136_v8 = vmax.f32 %v8081_v45, 0.0 }
 0x759   :  { %v8145_v15 = vmul.f32 %v8141_v2, %v8136_v8 }
 0x75b   :  { %v8154_v54 = vadd.f32 %v8150_v26, %v8145_v15 }
 0x75c   :  { %v8082_v49 = vpop.f32.mrf.mxu3 }
 0x75d   :  { %8208 = vmatmul.f32.vlgmr.msra.gmra.mxu0 %v8154_v54 }
 0x764   :  { %v8132_v37 = vpop.f32.mrf.mxu3 }
 0x765   :  { %v8133_v34 = vadd.f32 %v8132_v37, %v8120_v19 }
 0x767   :  { %v8137_v10 = vmax.f32 %v8133_v34, 0.0 }
 0x769   :  { %v8146_v20 = vmul.f32 %v8142_v3, %v8137_v10 }
 0x76b   :  { %v8155_v36 = vadd.f32 %v8151_v35, %v8146_v20 }
 0x76c   :  { %v8134_v59 = vpop.f32.mrf.mxu3 }
 0x76d   :  { %8228 = vmatmul.f32.vlgmr.msrb.gmra.mxu1 %v8155_v36 }
 0x7da   :  { %v8209_v0 = vpop.f32.mrf.mxu0 }
 0x7db   :  { %v8210_v55 = vadd.f32 %v11292_v11, %v8209_v0 }
 0x7ea   :  { %v8229_v23 = vpop.f32.mrf.mxu1 }
 0x7eb   :  { %v8230_v30 = vadd.f32 %v8229_v23, %v8210_v55 }
 0x7ed   :  { %8233 = vst.msk [vmem:[#allocation25] sm:$0x3] %vm8232_vm1, %v8230_v30 }
 0x7ee   :  { %8244 = dma.vmem_to_hbm [thread:$0]  %s8240_s26, 32, %s8242_s30, [#allocation10]  }
 0x7ef   :  { %11622 = dma.done.wait [#allocation10], 32  }
 0x7f0   :  { %11623 = vsyncadd [#allocation10], 4294967264 }
 0x7f1   :  { %8249 = vsyncpa [#allocation9], 1 }
 0x7f2   :  { %8250 = vsyncpa [#allocation12], 1 }
 0x7f3   :  { %8251 = vsyncpa [#allocation15], 1 }
 0x7f4   :  { %8252 = vsyncpa [#allocation18], 1 }
 0x7f5   :  { %8253 = vsyncpa [#allocation21], 1 }
 0x7f6   :  { %8254 = vsyncpa [#allocation24], 1 }
 0x7f7   :  { %8255 = vsyncpa [#allocation10], 1 }
 0x7f8   :  { %8256 = vsyncmov [#allocation7] }
 0x7fb   :  { %s8257_s14 = vpop.sfrf %8256 }
 0x7fc   :  { %p10691_p0 = scmp.ne.s32.totalorder %s8257_s14, 0 }
 0x7fe   :  { %8261 = shalt.err (%p10691_p0)  }

</bundles_post_ra>
